<compile_context>
chip_gen: v7x
topology: tpu7x:2x2x1
jax: 0.10.0
libtpu: 0.0.40
codegen_flags: <defaults>
</compile_context>

<pallas_src>
import functools

import jax
import jax.numpy as jnp
from jax.experimental import pallas as pl
from jax.experimental.pallas import tpu as pltpu


# ----------------------------------------------------------------------------
# Pallas kernels
# ----------------------------------------------------------------------------
def _make_conv_kernel(k, Ho, Wo):
    """relu(stride-1 kxk VALID conv + bias) with im2col fused in-kernel.

    x_ref : (bt, Hi, Wi, Cin)   NHWC activation block (Hi >= Ho+k-1)
    w_ref : (k*k, Cin, Cout)    tap-blocked GEMM weights (resident)
    b_ref : (1, Cout)           f32 bias
    o_ref : (bt, Ho*Wo, Cout)   bf16 output, rows ordered (ho, wo)
    """

    def kernel(x_ref, w_ref, b_ref, o_ref):
        bt, _, _, cin = x_ref.shape
        cout = w_ref.shape[-1]
        m = bt * Ho * Wo
        acc = jnp.zeros((m, cout), jnp.float32)
        for kh in range(k):
            for kw in range(k):
                # Shifted window loaded straight from VMEM -- no HBM im2col.
                win = x_ref[:, kh:kh + Ho, kw:kw + Wo, :]
                acc += jnp.dot(win.reshape(m, cin), w_ref[kh * k + kw],
                               preferred_element_type=jnp.float32)
        acc = jnp.maximum(acc + b_ref[...], 0.0)
        o_ref[...] = acc.reshape(bt, Ho * Wo, cout).astype(o_ref.dtype)

    return kernel


def _fc_tail_kernel(x_ref, w4_ref, b4_ref, wh_ref, bh_ref, o_ref):
    # Fused fc4 (+ReLU) and head: the (bb, 512) hidden activation never leaves
    # the kernel.  Head weights are zero-padded to 128 lanes -> dense store.
    h = jnp.dot(x_ref[...], w4_ref[...], preferred_element_type=jnp.float32)
    h = jnp.maximum(h + b4_ref[...], 0.0)
    o = jnp.dot(h.astype(jnp.bfloat16), wh_ref[...],
                preferred_element_type=jnp.float32)
    o_ref[...] = (o + bh_ref[...]).astype(o_ref.dtype)


# ----------------------------------------------------------------------------
# Pallas wrappers
# ----------------------------------------------------------------------------
def _conv_batch_tile(batch, rows_per_image, target_rows=2048):
    # >=2 grid steps whenever batch >= 2 (keeps both v7x TensorCores busy);
    # otherwise sized so each step computes ~target_rows GEMM rows.
    nsteps = max(2, pl.cdiv(batch * rows_per_image, target_rows))
    nsteps = min(nsteps, batch)
    return pl.cdiv(batch, nsteps)


def conv2d_relu(x, w_taps, b, k, Ho, Wo):
    """relu(conv(x) + b) for a stride-1 kxk VALID conv, batch-tiled grid."""
    B, Hi, Wi, Cin = x.shape
    taps, Cin2, Cout = w_taps.shape
    assert taps == k * k and Cin2 == Cin, (w_taps.shape, k, Cin)
    assert Hi >= Ho + k - 1 and Wi >= Wo + k - 1, (x.shape, k, Ho, Wo)
    bt = _conv_batch_tile(B, Ho * Wo)
    return pl.pallas_call(
        _make_conv_kernel(k, Ho, Wo),
        out_shape=jax.ShapeDtypeStruct((B, Ho * Wo, Cout), jnp.bfloat16),
        grid_spec=pl.GridSpec(
            grid=(pl.cdiv(B, bt),),
            in_specs=[
                pl.BlockSpec((bt, Hi, Wi, Cin), lambda i: (i, 0, 0, 0)),
                pl.BlockSpec((taps, Cin, Cout), lambda i: (0, 0, 0)),  # resident
                pl.BlockSpec((1, Cout), lambda i: (0, 0)),
            ],
            out_specs=pl.BlockSpec((bt, Ho * Wo, Cout), lambda i: (i, 0, 0)),
        ),
        compiler_params=pltpu.CompilerParams(
            dimension_semantics=("parallel",)),
    )(x, w_taps, b)


def _fc_batch_tile(batch, target_rows=128):
    if batch <= 8:
        return batch                       # block == full batch dim
    nsteps = max(2, pl.cdiv(batch, target_rows))
    bb = pl.cdiv(pl.cdiv(batch, nsteps), 8) * 8   # multiple of 8 sublanes
    return min(bb, batch)


def fc_tail(x, w4, b4, wh, bh):
    """head(relu(fc4(x))) in a single Pallas kernel, tiled over the batch."""
    B, K = x.shape
    H = w4.shape[1]
    N = wh.shape[1]
    bb = _fc_batch_tile(B)
    return pl.pallas_call(
        _fc_tail_kernel,
        out_shape=jax.ShapeDtypeStruct((B, N), jnp.float32),
        grid_spec=pl.GridSpec(
            grid=(pl.cdiv(B, bb),),
            in_specs=[
                pl.BlockSpec((bb, K), lambda i: (i, 0)),
                pl.BlockSpec((K, H), lambda i: (0, 0)),
                pl.BlockSpec((1, H), lambda i: (0, 0)),
                pl.BlockSpec((H, N), lambda i: (0, 0)),
                pl.BlockSpec((1, N), lambda i: (0, 0)),
            ],
            out_specs=pl.BlockSpec((bb, N), lambda i: (i, 0)),
        ),
        compiler_params=pltpu.CompilerParams(
            dimension_semantics=("parallel",)),
    )(x, w4, b4, wh, bh)


# ----------------------------------------------------------------------------
# ConvolutionalQnet forward
# ----------------------------------------------------------------------------
def _space_to_depth(x, r):
    """(B,H,W,C) -> (B,H/r,W/r,r*r*C); new channel index order = (dh, dw, c)."""
    B, H, W, C = x.shape
    x = x.reshape(B, H // r, r, W // r, r, C)
    x = jnp.transpose(x, (0, 1, 3, 2, 4, 5))
    return x.reshape(B, H // r, W // r, r * r * C)


@functools.partial(jax.jit, static_argnames=("action_dim",))
def convolutional_qnet_forward(prepared, x_nchw, *, action_dim):
    B = x_nchw.shape[0]
    # TODO(synk): this NCHW->NHWC + space-to-depth + bf16 cast is one small XLA
    # copy of the raw input; folding it into the first conv kernel would need
    # an in-kernel transpose and was not worth the lowering risk.
    x = jnp.transpose(x_nchw, (0, 2, 3, 1)).astype(jnp.bfloat16)
    x = _space_to_depth(x, 4)                                     # (B,21,21,64)
    x = conv2d_relu(x, prepared["conv1_w"], prepared["conv1_b"], 2, 20, 20)
    x = _space_to_depth(x.reshape(B, 20, 20, 32), 2)              # (B,10,10,128)
    x = conv2d_relu(x, prepared["conv2_w"], prepared["conv2_b"], 2, 9, 9)
    x = conv2d_relu(x.reshape(B, 9, 9, 64),
                    prepared["conv3_w"], prepared["conv3_b"], 3, 7, 7)
    # TODO(synk): the original torch forward omits the flatten before fc4 (it
    # would error in PyTorch); we implement the intended .view(-1, 7*7*64).
    x = x.reshape(B, 7 * 7 * 64)          # (h, w, c) order; fc4_w rows match
    q = fc_tail(x, prepared["fc4_w"], prepared["fc4_b"],
                prepared["head_w"], prepared["head_b"])
    return q[:, :action_dim]              # drop zero-padded head lanes


def prepare_params(params):
    """One-time transform of PyTorch-layout params into kernel-ready operands."""

    def conv_taps(w, fold):
        # (Cout, Cin, KH, KW) torch conv weight -> (k*k, fold*fold*Cin, Cout)
        # tap-blocked weights for the stride-1 conv on the space-to-depth
        # (factor `fold`) input; per-tap channel order is (dh, dw, ci).
        Cout, Cin, KH, KW = w.shape
        kk = KH // fold
        w = jnp.transpose(w, (2, 3, 1, 0))                 # (KH, KW, Cin, Cout)
        w = w.reshape(kk, fold, kk, fold, Cin, Cout)       # (kh',dh,kw',dw,ci,co)
        w = jnp.transpose(w, (0, 2, 1, 3, 4, 5))           # (kh',kw',dh,dw,ci,co)
        return w.reshape(kk * kk, fold * fold * Cin, Cout)

    A = params["head_w"].shape[0]
    head_w = jnp.zeros((512, 128), jnp.float32).at[:, :A].set(params["head_w"].T)
    head_b = jnp.zeros((1, 128), jnp.float32).at[0, :A].set(params["head_b"])

    fc4_w = params["fc4_w"].reshape(512, 64, 7, 7)         # input idx = (c, h, w)
    fc4_w = jnp.transpose(fc4_w, (2, 3, 1, 0)).reshape(7 * 7 * 64, 512)  # (h,w,c)

    return {
        # x/255 of the original forward is folded into conv1's weights.
        "conv1_w": (conv_taps(params["conv1_w"], 4) / 255.0).astype(jnp.bfloat16),
        "conv1_b": params["conv1_b"].reshape(1, -1).astype(jnp.float32),
        "conv2_w": conv_taps(params["conv2_w"], 2).astype(jnp.bfloat16),
        "conv2_b": params["conv2_b"].reshape(1, -1).astype(jnp.float32),
        "conv3_w": conv_taps(params["conv3_w"], 1).astype(jnp.bfloat16),
        "conv3_b": params["conv3_b"].reshape(1, -1).astype(jnp.float32),
        "fc4_w": fc4_w.astype(jnp.bfloat16),
        "fc4_b": params["fc4_b"].reshape(1, -1).astype(jnp.float32),
        "head_w": head_w.astype(jnp.bfloat16),              # (512, 128), zero-padded
        "head_b": head_b,                                    # (1, 128) f32
    }


def init_params(key, action_dim, in_channels=4):
    ks = jax.random.split(key, 10)

    def w(k, shape, fan_in):
        return jax.random.normal(k, shape, jnp.float32) * (1.0 / jnp.sqrt(fan_in))

    return {
        "conv1_w": w(ks[0], (32, in_channels, 8, 8), in_channels * 8 * 8),
        "conv1_b": 0.01 * jax.random.normal(ks[1], (32,), jnp.float32),
        "conv2_w": w(ks[2], (64, 32, 4, 4), 32 * 4 * 4),
        "conv2_b": 0.01 * jax.random.normal(ks[3], (64,), jnp.float32),
        "conv3_w": w(ks[4], (64, 64, 3, 3), 64 * 3 * 3),
        "conv3_b": 0.01 * jax.random.normal(ks[5], (64,), jnp.float32),
        "fc4_w": w(ks[6], (512, 7 * 7 * 64), 7 * 7 * 64),
        "fc4_b": 0.01 * jax.random.normal(ks[7], (512,), jnp.float32),
        "head_w": w(ks[8], (action_dim, 512), 512),
        "head_b": 0.01 * jax.random.normal(ks[9], (action_dim,), jnp.float32),
    }


def reference_forward(params, x):
    """Pure-XLA f32 reference with PyTorch semantics (validation only)."""
    prec = jax.lax.Precision.HIGHEST
    x = x.astype(jnp.float32) / 255.0

    def conv(x, w, b, s):
        y = jax.lax.conv_general_dilated(
            x, w, (s, s), "VALID",
            dimension_numbers=("NCHW", "OIHW", "NCHW"), precision=prec)
        return jax.nn.relu(y + b[None, :, None, None])

    x = conv(x, params["conv1_w"], params["conv1_b"], 4)
    x = conv(x, params["conv2_w"], params["conv2_b"], 2)
    x = conv(x, params["conv3_w"], params["conv3_b"], 1)
    x = x.reshape(x.shape[0], -1)                   # torch .view: (c, h, w) order
    x = jax.nn.relu(jnp.dot(x, params["fc4_w"].T, precision=prec)
                    + params["fc4_b"])
    return jnp.dot(x, params["head_w"].T, precision=prec) + params["head_b"]


if __name__ == "__main__":
    key = jax.random.PRNGKey(0)
    k_params, k_x = jax.random.split(key)

    action_dim = 6
    batch, in_channels, H, W = 2, 4, 84, 84   # 84x84 is forced by fc4 = 7*7*64

    params = init_params(k_params, action_dim, in_channels)
    prepared = prepare_params(params)          # one-time weight transform
    x = jax.random.uniform(
        k_x, (batch, in_channels, H, W), jnp.float32, minval=0.0, maxval=255.0)

    out = convolutional_qnet_forward(prepared, x, action_dim=action_dim)
    out = jax.block_until_ready(out)
    assert out.shape == (batch, action_dim), out.shape
    assert out.dtype == jnp.float32

    # Validate the bf16 Pallas path against a pure-XLA f32 reference (2% tol).
    ref = jax.block_until_ready(reference_forward(params, x))
    err = float(jnp.max(jnp.abs(out - ref)))
    scale = float(jnp.max(jnp.abs(ref)))
    assert err <= 0.02 * scale + 0.02, (err, scale)

    print("KERNEL_OK")
</pallas_src>

<mosaic_0001>
module attributes {stable_mosaic.version = 11 : i64} {
  func.func @kernel(%arg0: i32, %arg1: memref<1x21x21x64xbf16, #tpu.memory_space<vmem>>, %arg2: memref<4x64x32xbf16, #tpu.memory_space<vmem>>, %arg3: memref<1x32xf32, #tpu.memory_space<vmem>>, %arg4: memref<1x400x32xbf16, #tpu.memory_space<vmem>>) attributes {dimension_semantics = [#tpu.dimension_semantics<parallel>], iteration_bounds = array<i64: 2>, scalar_prefetch = 0 : i64, scratch_operands = 0 : i64, tpu.core_type = #tpu.core_type<tc>, window_params = [{transform_indices = @transform_0, window_bounds = array<i64: 1, 21, 21, 64>}, {pipeline_mode = #tpu.pipeline_mode<synchronous>, transform_indices = @transform_1, window_bounds = array<i64: 4, 64, 32>}, {pipeline_mode = #tpu.pipeline_mode<synchronous>, transform_indices = @transform_2, window_bounds = array<i64: 1, 32>}, {transform_indices = @transform_3, window_bounds = array<i64: 1, 400, 32>}]} {
    %cst = arith.constant 0.000000e+00 : f32
    %0 = vector.broadcast %cst : f32 to vector<400x32xf32>
    %c0 = arith.constant 0 : index
    %c0_0 = arith.constant 0 : index
    %c0_1 = arith.constant 0 : index
    %c0_2 = arith.constant 0 : index
    %1 = vector.load %arg1[%c0, %c0_0, %c0_1, %c0_2] : memref<1x21x21x64xbf16, #tpu.memory_space<vmem>>, vector<1x20x20x64xbf16>
    %2 = vector.shape_cast %1 : vector<1x20x20x64xbf16> to vector<400x64xbf16>
    %c0_3 = arith.constant 0 : index
    %c0_4 = arith.constant 0 : index
    %c0_5 = arith.constant 0 : index
    %3 = vector.load %arg2[%c0_3, %c0_4, %c0_5] : memref<4x64x32xbf16, #tpu.memory_space<vmem>>, vector<1x64x32xbf16>
    %4 = vector.shape_cast %3 : vector<1x64x32xbf16> to vector<64x32xbf16>
    %cst_6 = arith.constant dense<0.000000e+00> : vector<400x32xf32>
    %5 = tpu.matmul %2, %4, %cst_6 {dimension_numbers = #tpu.dot_dimension_numbers<[1], [0], [0], [1], [0, 0, 1, 1], [], []>} : vector<400x64xbf16>, vector<64x32xbf16>, vector<400x32xf32> -> vector<400x32xf32>
    %6 = arith.addf %0, %5 : vector<400x32xf32>
    %c0_7 = arith.constant 0 : index
    %c0_8 = arith.constant 0 : index
    %c1 = arith.constant 1 : index
    %c0_9 = arith.constant 0 : index
    %7 = vector.load %arg1[%c0_7, %c0_8, %c1, %c0_9] : memref<1x21x21x64xbf16, #tpu.memory_space<vmem>>, vector<1x20x20x64xbf16>
    %8 = vector.shape_cast %7 : vector<1x20x20x64xbf16> to vector<400x64xbf16>
    %c1_10 = arith.constant 1 : index
    %c0_11 = arith.constant 0 : index
    %c0_12 = arith.constant 0 : index
    %9 = vector.load %arg2[%c1_10, %c0_11, %c0_12] : memref<4x64x32xbf16, #tpu.memory_space<vmem>>, vector<1x64x32xbf16>
    %10 = vector.shape_cast %9 : vector<1x64x32xbf16> to vector<64x32xbf16>
    %cst_13 = arith.constant dense<0.000000e+00> : vector<400x32xf32>
    %11 = tpu.matmul %8, %10, %cst_13 {dimension_numbers = #tpu.dot_dimension_numbers<[1], [0], [0], [1], [0, 0, 1, 1], [], []>} : vector<400x64xbf16>, vector<64x32xbf16>, vector<400x32xf32> -> vector<400x32xf32>
    %12 = arith.addf %6, %11 : vector<400x32xf32>
    %c0_14 = arith.constant 0 : index
    %c1_15 = arith.constant 1 : index
    %c0_16 = arith.constant 0 : index
    %c0_17 = arith.constant 0 : index
    %13 = vector.load %arg1[%c0_14, %c1_15, %c0_16, %c0_17] : memref<1x21x21x64xbf16, #tpu.memory_space<vmem>>, vector<1x20x20x64xbf16>
    %14 = vector.shape_cast %13 : vector<1x20x20x64xbf16> to vector<400x64xbf16>
    %c2 = arith.constant 2 : index
    %c0_18 = arith.constant 0 : index
    %c0_19 = arith.constant 0 : index
    %15 = vector.load %arg2[%c2, %c0_18, %c0_19] : memref<4x64x32xbf16, #tpu.memory_space<vmem>>, vector<1x64x32xbf16>
    %16 = vector.shape_cast %15 : vector<1x64x32xbf16> to vector<64x32xbf16>
    %cst_20 = arith.constant dense<0.000000e+00> : vector<400x32xf32>
    %17 = tpu.matmul %14, %16, %cst_20 {dimension_numbers = #tpu.dot_dimension_numbers<[1], [0], [0], [1], [0, 0, 1, 1], [], []>} : vector<400x64xbf16>, vector<64x32xbf16>, vector<400x32xf32> -> vector<400x32xf32>
    %18 = arith.addf %12, %17 : vector<400x32xf32>
    %c0_21 = arith.constant 0 : index
    %c1_22 = arith.constant 1 : index
    %c1_23 = arith.constant 1 : index
    %c0_24 = arith.constant 0 : index
    %19 = vector.load %arg1[%c0_21, %c1_22, %c1_23, %c0_24] : memref<1x21x21x64xbf16, #tpu.memory_space<vmem>>, vector<1x20x20x64xbf16>
    %20 = vector.shape_cast %19 : vector<1x20x20x64xbf16> to vector<400x64xbf16>
    %c3 = arith.constant 3 : index
    %c0_25 = arith.constant 0 : index
    %c0_26 = arith.constant 0 : index
    %21 = vector.load %arg2[%c3, %c0_25, %c0_26] : memref<4x64x32xbf16, #tpu.memory_space<vmem>>, vector<1x64x32xbf16>
    %22 = vector.shape_cast %21 : vector<1x64x32xbf16> to vector<64x32xbf16>
    %cst_27 = arith.constant dense<0.000000e+00> : vector<400x32xf32>
    %23 = tpu.matmul %20, %22, %cst_27 {dimension_numbers = #tpu.dot_dimension_numbers<[1], [0], [0], [1], [0, 0, 1, 1], [], []>} : vector<400x64xbf16>, vector<64x32xbf16>, vector<400x32xf32> -> vector<400x32xf32>
    %24 = arith.addf %18, %23 : vector<400x32xf32>
    %c0_28 = arith.constant 0 : index
    %c0_29 = arith.constant 0 : index
    %25 = vector.load %arg3[%c0_28, %c0_29] : memref<1x32xf32, #tpu.memory_space<vmem>>, vector<1x32xf32>
    %26 = vector.broadcast %25 : vector<1x32xf32> to vector<400x32xf32>
    %27 = arith.addf %24, %26 : vector<400x32xf32>
    %cst_30 = arith.constant 0.000000e+00 : f32
    %28 = vector.broadcast %cst_30 : f32 to vector<400x32xf32>
    %29 = arith.maximumf %27, %28 : vector<400x32xf32>
    %30 = vector.shape_cast %29 : vector<400x32xf32> to vector<1x400x32xf32>
    %31 = arith.truncf %30 : vector<1x400x32xf32> to vector<1x400x32xbf16>
    %c0_31 = arith.constant 0 : index
    %c0_32 = arith.constant 0 : index
    %c0_33 = arith.constant 0 : index
    %32 = vector.load %arg4[%c0_31, %c0_32, %c0_33] : memref<1x400x32xbf16, #tpu.memory_space<vmem>>, vector<1x400x32xbf16>
    tpu.vector_store %arg4[%c0_31, %c0_32, %c0_33], %31 {strides = array<i32>} : memref<1x400x32xbf16, #tpu.memory_space<vmem>>, vector<1x400x32xbf16>,
    return
  }
  func.func @transform_0(%arg0: i32) -> (i32, i32, i32, i32) {
    %c0_i32 = arith.constant 0 : i32
    %c0_i32_0 = arith.constant 0 : i32
    %c0_i32_1 = arith.constant 0 : i32
    %c0_i32_2 = arith.constant 0 : i32
    return %arg0, %c0_i32, %c0_i32_0, %c0_i32_1 : i32, i32, i32, i32
  }
  func.func @transform_1(%arg0: i32) -> (i32, i32, i32) {
    %c0_i32 = arith.constant 0 : i32
    %c0_i32_0 = arith.constant 0 : i32
    %c0_i32_1 = arith.constant 0 : i32
    %c0_i32_2 = arith.constant 0 : i32
    return %c0_i32, %c0_i32_0, %c0_i32_1 : i32, i32, i32
  }
  func.func @transform_2(%arg0: i32) -> (i32, i32) {
    %c0_i32 = arith.constant 0 : i32
    %c0_i32_0 = arith.constant 0 : i32
    %c0_i32_1 = arith.constant 0 : i32
    return %c0_i32, %c0_i32_0 : i32, i32
  }
  func.func @transform_3(%arg0: i32) -> (i32, i32, i32) {
    %c0_i32 = arith.constant 0 : i32
    %c0_i32_0 = arith.constant 0 : i32
    %c0_i32_1 = arith.constant 0 : i32
    return %arg0, %c0_i32, %c0_i32_0 : i32, i32, i32
  }
}

module attributes {stable_mosaic.version = 11 : i64} {
  func.func @kernel(%arg0: i32, %arg1: memref<1x10x10x128xbf16, #tpu.memory_space<vmem>>, %arg2: memref<4x128x64xbf16, #tpu.memory_space<vmem>>, %arg3: memref<1x64xf32, #tpu.memory_space<vmem>>, %arg4: memref<1x81x64xbf16, #tpu.memory_space<vmem>>) attributes {dimension_semantics = [#tpu.dimension_semantics<parallel>], iteration_bounds = array<i64: 2>, scalar_prefetch = 0 : i64, scratch_operands = 0 : i64, tpu.core_type = #tpu.core_type<tc>, window_params = [{transform_indices = @transform_0, window_bounds = array<i64: 1, 10, 10, 128>}, {pipeline_mode = #tpu.pipeline_mode<synchronous>, transform_indices = @transform_1, window_bounds = array<i64: 4, 128, 64>}, {pipeline_mode = #tpu.pipeline_mode<synchronous>, transform_indices = @transform_2, window_bounds = array<i64: 1, 64>}, {transform_indices = @transform_3, window_bounds = array<i64: 1, 81, 64>}]} {
    %cst = arith.constant 0.000000e+00 : f32
    %0 = vector.broadcast %cst : f32 to vector<81x64xf32>
    %c0 = arith.constant 0 : index
    %c0_0 = arith.constant 0 : index
    %c0_1 = arith.constant 0 : index
    %c0_2 = arith.constant 0 : index
    %1 = vector.load %arg1[%c0, %c0_0, %c0_1, %c0_2] : memref<1x10x10x128xbf16, #tpu.memory_space<vmem>>, vector<1x9x9x128xbf16>
    %2 = vector.shape_cast %1 : vector<1x9x9x128xbf16> to vector<81x128xbf16>
    %c0_3 = arith.constant 0 : index
    %c0_4 = arith.constant 0 : index
    %c0_5 = arith.constant 0 : index
    %3 = vector.load %arg2[%c0_3, %c0_4, %c0_5] : memref<4x128x64xbf16, #tpu.memory_space<vmem>>, vector<1x128x64xbf16>
    %4 = vector.shape_cast %3 : vector<1x128x64xbf16> to vector<128x64xbf16>
    %cst_6 = arith.constant dense<0.000000e+00> : vector<81x64xf32>
    %5 = tpu.matmul %2, %4, %cst_6 {dimension_numbers = #tpu.dot_dimension_numbers<[1], [0], [0], [1], [0, 0, 1, 1], [], []>} : vector<81x128xbf16>, vector<128x64xbf16>, vector<81x64xf32> -> vector<81x64xf32>
    %6 = arith.addf %0, %5 : vector<81x64xf32>
    %c0_7 = arith.constant 0 : index
    %c0_8 = arith.constant 0 : index
    %c1 = arith.constant 1 : index
    %c0_9 = arith.constant 0 : index
    %7 = vector.load %arg1[%c0_7, %c0_8, %c1, %c0_9] : memref<1x10x10x128xbf16, #tpu.memory_space<vmem>>, vector<1x9x9x128xbf16>
    %8 = vector.shape_cast %7 : vector<1x9x9x128xbf16> to vector<81x128xbf16>
    %c1_10 = arith.constant 1 : index
    %c0_11 = arith.constant 0 : index
    %c0_12 = arith.constant 0 : index
    %9 = vector.load %arg2[%c1_10, %c0_11, %c0_12] : memref<4x128x64xbf16, #tpu.memory_space<vmem>>, vector<1x128x64xbf16>
    %10 = vector.shape_cast %9 : vector<1x128x64xbf16> to vector<128x64xbf16>
    %cst_13 = arith.constant dense<0.000000e+00> : vector<81x64xf32>
    %11 = tpu.matmul %8, %10, %cst_13 {dimension_numbers = #tpu.dot_dimension_numbers<[1], [0], [0], [1], [0, 0, 1, 1], [], []>} : vector<81x128xbf16>, vector<128x64xbf16>, vector<81x64xf32> -> vector<81x64xf32>
    %12 = arith.addf %6, %11 : vector<81x64xf32>
    %c0_14 = arith.constant 0 : index
    %c1_15 = arith.constant 1 : index
    %c0_16 = arith.constant 0 : index
    %c0_17 = arith.constant 0 : index
    %13 = vector.load %arg1[%c0_14, %c1_15, %c0_16, %c0_17] : memref<1x10x10x128xbf16, #tpu.memory_space<vmem>>, vector<1x9x9x128xbf16>
    %14 = vector.shape_cast %13 : vector<1x9x9x128xbf16> to vector<81x128xbf16>
    %c2 = arith.constant 2 : index
    %c0_18 = arith.constant 0 : index
    %c0_19 = arith.constant 0 : index
    %15 = vector.load %arg2[%c2, %c0_18, %c0_19] : memref<4x128x64xbf16, #tpu.memory_space<vmem>>, vector<1x128x64xbf16>
    %16 = vector.shape_cast %15 : vector<1x128x64xbf16> to vector<128x64xbf16>
    %cst_20 = arith.constant dense<0.000000e+00> : vector<81x64xf32>
    %17 = tpu.matmul %14, %16, %cst_20 {dimension_numbers = #tpu.dot_dimension_numbers<[1], [0], [0], [1], [0, 0, 1, 1], [], []>} : vector<81x128xbf16>, vector<128x64xbf16>, vector<81x64xf32> -> vector<81x64xf32>
    %18 = arith.addf %12, %17 : vector<81x64xf32>
    %c0_21 = arith.constant 0 : index
    %c1_22 = arith.constant 1 : index
    %c1_23 = arith.constant 1 : index
    %c0_24 = arith.constant 0 : index
    %19 = vector.load %arg1[%c0_21, %c1_22, %c1_23, %c0_24] : memref<1x10x10x128xbf16, #tpu.memory_space<vmem>>, vector<1x9x9x128xbf16>
    %20 = vector.shape_cast %19 : vector<1x9x9x128xbf16> to vector<81x128xbf16>
    %c3 = arith.constant 3 : index
    %c0_25 = arith.constant 0 : index
    %c0_26 = arith.constant 0 : index
    %21 = vector.load %arg2[%c3, %c0_25, %c0_26] : memref<4x128x64xbf16, #tpu.memory_space<vmem>>, vector<1x128x64xbf16>
    %22 = vector.shape_cast %21 : vector<1x128x64xbf16> to vector<128x64xbf16>
    %cst_27 = arith.constant dense<0.000000e+00> : vector<81x64xf32>
    %23 = tpu.matmul %20, %22, %cst_27 {dimension_numbers = #tpu.dot_dimension_numbers<[1], [0], [0], [1], [0, 0, 1, 1], [], []>} : vector<81x128xbf16>, vector<128x64xbf16>, vector<81x64xf32> -> vector<81x64xf32>
    %24 = arith.addf %18, %23 : vector<81x64xf32>
    %c0_28 = arith.constant 0 : index
    %c0_29 = arith.constant 0 : index
    %25 = vector.load %arg3[%c0_28, %c0_29] : memref<1x64xf32, #tpu.memory_space<vmem>>, vector<1x64xf32>
    %26 = vector.broadcast %25 : vector<1x64xf32> to vector<81x64xf32>
    %27 = arith.addf %24, %26 : vector<81x64xf32>
    %cst_30 = arith.constant 0.000000e+00 : f32
    %28 = vector.broadcast %cst_30 : f32 to vector<81x64xf32>
    %29 = arith.maximumf %27, %28 : vector<81x64xf32>
    %30 = vector.shape_cast %29 : vector<81x64xf32> to vector<1x81x64xf32>
    %31 = arith.truncf %30 : vector<1x81x64xf32> to vector<1x81x64xbf16>
    %c0_31 = arith.constant 0 : index
    %c0_32 = arith.constant 0 : index
    %c0_33 = arith.constant 0 : index
    %32 = vector.load %arg4[%c0_31, %c0_32, %c0_33] : memref<1x81x64xbf16, #tpu.memory_space<vmem>>, vector<1x81x64xbf16>
    tpu.vector_store %arg4[%c0_31, %c0_32, %c0_33], %31 {strides = array<i32>} : memref<1x81x64xbf16, #tpu.memory_space<vmem>>, vector<1x81x64xbf16>,
    return
  }
  func.func @transform_0(%arg0: i32) -> (i32, i32, i32, i32) {
    %c0_i32 = arith.constant 0 : i32
    %c0_i32_0 = arith.constant 0 : i32
    %c0_i32_1 = arith.constant 0 : i32
    %c0_i32_2 = arith.constant 0 : i32
    return %arg0, %c0_i32, %c0_i32_0, %c0_i32_1 : i32, i32, i32, i32
  }
  func.func @transform_1(%arg0: i32) -> (i32, i32, i32) {
    %c0_i32 = arith.constant 0 : i32
    %c0_i32_0 = arith.constant 0 : i32
    %c0_i32_1 = arith.constant 0 : i32
    %c0_i32_2 = arith.constant 0 : i32
    return %c0_i32, %c0_i32_0, %c0_i32_1 : i32, i32, i32
  }
  func.func @transform_2(%arg0: i32) -> (i32, i32) {
    %c0_i32 = arith.constant 0 : i32
    %c0_i32_0 = arith.constant 0 : i32
    %c0_i32_1 = arith.constant 0 : i32
    return %c0_i32, %c0_i32_0 : i32, i32
  }
  func.func @transform_3(%arg0: i32) -> (i32, i32, i32) {
    %c0_i32 = arith.constant 0 : i32
    %c0_i32_0 = arith.constant 0 : i32
    %c0_i32_1 = arith.constant 0 : i32
    return %arg0, %c0_i32, %c0_i32_0 : i32, i32, i32
  }
}

module attributes {stable_mosaic.version = 11 : i64} {
  func.func @kernel(%arg0: i32, %arg1: memref<1x9x9x64xbf16, #tpu.memory_space<vmem>>, %arg2: memref<9x64x64xbf16, #tpu.memory_space<vmem>>, %arg3: memref<1x64xf32, #tpu.memory_space<vmem>>, %arg4: memref<1x49x64xbf16, #tpu.memory_space<vmem>>) attributes {dimension_semantics = [#tpu.dimension_semantics<parallel>], iteration_bounds = array<i64: 2>, scalar_prefetch = 0 : i64, scratch_operands = 0 : i64, tpu.core_type = #tpu.core_type<tc>, window_params = [{transform_indices = @transform_0, window_bounds = array<i64: 1, 9, 9, 64>}, {pipeline_mode = #tpu.pipeline_mode<synchronous>, transform_indices = @transform_1, window_bounds = array<i64: 9, 64, 64>}, {pipeline_mode = #tpu.pipeline_mode<synchronous>, transform_indices = @transform_2, window_bounds = array<i64: 1, 64>}, {transform_indices = @transform_3, window_bounds = array<i64: 1, 49, 64>}]} {
    %cst = arith.constant 0.000000e+00 : f32
    %0 = vector.broadcast %cst : f32 to vector<49x64xf32>
    %c0 = arith.constant 0 : index
    %c0_0 = arith.constant 0 : index
    %c0_1 = arith.constant 0 : index
    %c0_2 = arith.constant 0 : index
    %1 = vector.load %arg1[%c0, %c0_0, %c0_1, %c0_2] : memref<1x9x9x64xbf16, #tpu.memory_space<vmem>>, vector<1x7x7x64xbf16>
    %2 = vector.shape_cast %1 : vector<1x7x7x64xbf16> to vector<49x64xbf16>
    %c0_3 = arith.constant 0 : index
    %c0_4 = arith.constant 0 : index
    %c0_5 = arith.constant 0 : index
    %3 = vector.load %arg2[%c0_3, %c0_4, %c0_5] : memref<9x64x64xbf16, #tpu.memory_space<vmem>>, vector<1x64x64xbf16>
    %4 = vector.shape_cast %3 : vector<1x64x64xbf16> to vector<64x64xbf16>
    %cst_6 = arith.constant dense<0.000000e+00> : vector<49x64xf32>
    %5 = tpu.matmul %2, %4, %cst_6 {dimension_numbers = #tpu.dot_dimension_numbers<[1], [0], [0], [1], [0, 0, 1, 1], [], []>} : vector<49x64xbf16>, vector<64x64xbf16>, vector<49x64xf32> -> vector<49x64xf32>
    %6 = arith.addf %0, %5 : vector<49x64xf32>
    %c0_7 = arith.constant 0 : index
    %c0_8 = arith.constant 0 : index
    %c1 = arith.constant 1 : index
    %c0_9 = arith.constant 0 : index
    %7 = vector.load %arg1[%c0_7, %c0_8, %c1, %c0_9] : memref<1x9x9x64xbf16, #tpu.memory_space<vmem>>, vector<1x7x7x64xbf16>
    %8 = vector.shape_cast %7 : vector<1x7x7x64xbf16> to vector<49x64xbf16>
    %c1_10 = arith.constant 1 : index
    %c0_11 = arith.constant 0 : index
    %c0_12 = arith.constant 0 : index
    %9 = vector.load %arg2[%c1_10, %c0_11, %c0_12] : memref<9x64x64xbf16, #tpu.memory_space<vmem>>, vector<1x64x64xbf16>
    %10 = vector.shape_cast %9 : vector<1x64x64xbf16> to vector<64x64xbf16>
    %cst_13 = arith.constant dense<0.000000e+00> : vector<49x64xf32>
    %11 = tpu.matmul %8, %10, %cst_13 {dimension_numbers = #tpu.dot_dimension_numbers<[1], [0], [0], [1], [0, 0, 1, 1], [], []>} : vector<49x64xbf16>, vector<64x64xbf16>, vector<49x64xf32> -> vector<49x64xf32>
    %12 = arith.addf %6, %11 : vector<49x64xf32>
    %c0_14 = arith.constant 0 : index
    %c0_15 = arith.constant 0 : index
    %c2 = arith.constant 2 : index
    %c0_16 = arith.constant 0 : index
    %13 = vector.load %arg1[%c0_14, %c0_15, %c2, %c0_16] : memref<1x9x9x64xbf16, #tpu.memory_space<vmem>>, vector<1x7x7x64xbf16>
    %14 = vector.shape_cast %13 : vector<1x7x7x64xbf16> to vector<49x64xbf16>
    %c2_17 = arith.constant 2 : index
    %c0_18 = arith.constant 0 : index
    %c0_19 = arith.constant 0 : index
    %15 = vector.load %arg2[%c2_17, %c0_18, %c0_19] : memref<9x64x64xbf16, #tpu.memory_space<vmem>>, vector<1x64x64xbf16>
    %16 = vector.shape_cast %15 : vector<1x64x64xbf16> to vector<64x64xbf16>
    %cst_20 = arith.constant dense<0.000000e+00> : vector<49x64xf32>
    %17 = tpu.matmul %14, %16, %cst_20 {dimension_numbers = #tpu.dot_dimension_numbers<[1], [0], [0], [1], [0, 0, 1, 1], [], []>} : vector<49x64xbf16>, vector<64x64xbf16>, vector<49x64xf32> -> vector<49x64xf32>
    %18 = arith.addf %12, %17 : vector<49x64xf32>
    %c0_21 = arith.constant 0 : index
    %c1_22 = arith.constant 1 : index
    %c0_23 = arith.constant 0 : index
    %c0_24 = arith.constant 0 : index
    %19 = vector.load %arg1[%c0_21, %c1_22, %c0_23, %c0_24] : memref<1x9x9x64xbf16, #tpu.memory_space<vmem>>, vector<1x7x7x64xbf16>
    %20 = vector.shape_cast %19 : vector<1x7x7x64xbf16> to vector<49x64xbf16>
    %c3 = arith.constant 3 : index
    %c0_25 = arith.constant 0 : index
    %c0_26 = arith.constant 0 : index
    %21 = vector.load %arg2[%c3, %c0_25, %c0_26] : memref<9x64x64xbf16, #tpu.memory_space<vmem>>, vector<1x64x64xbf16>
    %22 = vector.shape_cast %21 : vector<1x64x64xbf16> to vector<64x64xbf16>
    %cst_27 = arith.constant dense<0.000000e+00> : vector<49x64xf32>
    %23 = tpu.matmul %20, %22, %cst_27 {dimension_numbers = #tpu.dot_dimension_numbers<[1], [0], [0], [1], [0, 0, 1, 1], [], []>} : vector<49x64xbf16>, vector<64x64xbf16>, vector<49x64xf32> -> vector<49x64xf32>
    %24 = arith.addf %18, %23 : vector<49x64xf32>
    %c0_28 = arith.constant 0 : index
    %c1_29 = arith.constant 1 : index
    %c1_30 = arith.constant 1 : index
    %c0_31 = arith.constant 0 : index
    %25 = vector.load %arg1[%c0_28, %c1_29, %c1_30, %c0_31] : memref<1x9x9x64xbf16, #tpu.memory_space<vmem>>, vector<1x7x7x64xbf16>
    %26 = vector.shape_cast %25 : vector<1x7x7x64xbf16> to vector<49x64xbf16>
    %c4 = arith.constant 4 : index
    %c0_32 = arith.constant 0 : index
    %c0_33 = arith.constant 0 : index
    %27 = vector.load %arg2[%c4, %c0_32, %c0_33] : memref<9x64x64xbf16, #tpu.memory_space<vmem>>, vector<1x64x64xbf16>
    %28 = vector.shape_cast %27 : vector<1x64x64xbf16> to vector<64x64xbf16>
    %cst_34 = arith.constant dense<0.000000e+00> : vector<49x64xf32>
    %29 = tpu.matmul %26, %28, %cst_34 {dimension_numbers = #tpu.dot_dimension_numbers<[1], [0], [0], [1], [0, 0, 1, 1], [], []>} : vector<49x64xbf16>, vector<64x64xbf16>, vector<49x64xf32> -> vector<49x64xf32>
    %30 = arith.addf %24, %29 : vector<49x64xf32>
    %c0_35 = arith.constant 0 : index
    %c1_36 = arith.constant 1 : index
    %c2_37 = arith.constant 2 : index
    %c0_38 = arith.constant 0 : index
    %31 = vector.load %arg1[%c0_35, %c1_36, %c2_37, %c0_38] : memref<1x9x9x64xbf16, #tpu.memory_space<vmem>>, vector<1x7x7x64xbf16>
    %32 = vector.shape_cast %31 : vector<1x7x7x64xbf16> to vector<49x64xbf16>
    %c5 = arith.constant 5 : index
    %c0_39 = arith.constant 0 : index
    %c0_40 = arith.constant 0 : index
    %33 = vector.load %arg2[%c5, %c0_39, %c0_40] : memref<9x64x64xbf16, #tpu.memory_space<vmem>>, vector<1x64x64xbf16>
    %34 = vector.shape_cast %33 : vector<1x64x64xbf16> to vector<64x64xbf16>
    %cst_41 = arith.constant dense<0.000000e+00> : vector<49x64xf32>
    %35 = tpu.matmul %32, %34, %cst_41 {dimension_numbers = #tpu.dot_dimension_numbers<[1], [0], [0], [1], [0, 0, 1, 1], [], []>} : vector<49x64xbf16>, vector<64x64xbf16>, vector<49x64xf32> -> vector<49x64xf32>
    %36 = arith.addf %30, %35 : vector<49x64xf32>
    %c0_42 = arith.constant 0 : index
    %c2_43 = arith.constant 2 : index
    %c0_44 = arith.constant 0 : index
    %c0_45 = arith.constant 0 : index
    %37 = vector.load %arg1[%c0_42, %c2_43, %c0_44, %c0_45] : memref<1x9x9x64xbf16, #tpu.memory_space<vmem>>, vector<1x7x7x64xbf16>
    %38 = vector.shape_cast %37 : vector<1x7x7x64xbf16> to vector<49x64xbf16>
    %c6 = arith.constant 6 : index
    %c0_46 = arith.constant 0 : index
    %c0_47 = arith.constant 0 : index
    %39 = vector.load %arg2[%c6, %c0_46, %c0_47] : memref<9x64x64xbf16, #tpu.memory_space<vmem>>, vector<1x64x64xbf16>
    %40 = vector.shape_cast %39 : vector<1x64x64xbf16> to vector<64x64xbf16>
    %cst_48 = arith.constant dense<0.000000e+00> : vector<49x64xf32>
    %41 = tpu.matmul %38, %40, %cst_48 {dimension_numbers = #tpu.dot_dimension_numbers<[1], [0], [0], [1], [0, 0, 1, 1], [], []>} : vector<49x64xbf16>, vector<64x64xbf16>, vector<49x64xf32> -> vector<49x64xf32>
    %42 = arith.addf %36, %41 : vector<49x64xf32>
    %c0_49 = arith.constant 0 : index
    %c2_50 = arith.constant 2 : index
    %c1_51 = arith.constant 1 : index
    %c0_52 = arith.constant 0 : index
    %43 = vector.load %arg1[%c0_49, %c2_50, %c1_51, %c0_52] : memref<1x9x9x64xbf16, #tpu.memory_space<vmem>>, vector<1x7x7x64xbf16>
    %44 = vector.shape_cast %43 : vector<1x7x7x64xbf16> to vector<49x64xbf16>
    %c7 = arith.constant 7 : index
    %c0_53 = arith.constant 0 : index
    %c0_54 = arith.constant 0 : index
    %45 = vector.load %arg2[%c7, %c0_53, %c0_54] : memref<9x64x64xbf16, #tpu.memory_space<vmem>>, vector<1x64x64xbf16>
    %46 = vector.shape_cast %45 : vector<1x64x64xbf16> to vector<64x64xbf16>
    %cst_55 = arith.constant dense<0.000000e+00> : vector<49x64xf32>
    %47 = tpu.matmul %44, %46, %cst_55 {dimension_numbers = #tpu.dot_dimension_numbers<[1], [0], [0], [1], [0, 0, 1, 1], [], []>} : vector<49x64xbf16>, vector<64x64xbf16>, vector<49x64xf32> -> vector<49x64xf32>
    %48 = arith.addf %42, %47 : vector<49x64xf32>
    %c0_56 = arith.constant 0 : index
    %c2_57 = arith.constant 2 : index
    %c2_58 = arith.constant 2 : index
    %c0_59 = arith.constant 0 : index
    %49 = vector.load %arg1[%c0_56, %c2_57, %c2_58, %c0_59] : memref<1x9x9x64xbf16, #tpu.memory_space<vmem>>, vector<1x7x7x64xbf16>
    %50 = vector.shape_cast %49 : vector<1x7x7x64xbf16> to vector<49x64xbf16>
    %c8 = arith.constant 8 : index
    %c0_60 = arith.constant 0 : index
    %c0_61 = arith.constant 0 : index
    %51 = vector.load %arg2[%c8, %c0_60, %c0_61] : memref<9x64x64xbf16, #tpu.memory_space<vmem>>, vector<1x64x64xbf16>
    %52 = vector.shape_cast %51 : vector<1x64x64xbf16> to vector<64x64xbf16>
    %cst_62 = arith.constant dense<0.000000e+00> : vector<49x64xf32>
    %53 = tpu.matmul %50, %52, %cst_62 {dimension_numbers = #tpu.dot_dimension_numbers<[1], [0], [0], [1], [0, 0, 1, 1], [], []>} : vector<49x64xbf16>, vector<64x64xbf16>, vector<49x64xf32> -> vector<49x64xf32>
    %54 = arith.addf %48, %53 : vector<49x64xf32>
    %c0_63 = arith.constant 0 : index
    %c0_64 = arith.constant 0 : index
    %55 = vector.load %arg3[%c0_63, %c0_64] : memref<1x64xf32, #tpu.memory_space<vmem>>, vector<1x64xf32>
    %56 = vector.broadcast %55 : vector<1x64xf32> to vector<49x64xf32>
    %57 = arith.addf %54, %56 : vector<49x64xf32>
    %cst_65 = arith.constant 0.000000e+00 : f32
    %58 = vector.broadcast %cst_65 : f32 to vector<49x64xf32>
    %59 = arith.maximumf %57, %58 : vector<49x64xf32>
    %60 = vector.shape_cast %59 : vector<49x64xf32> to vector<1x49x64xf32>
    %61 = arith.truncf %60 : vector<1x49x64xf32> to vector<1x49x64xbf16>
    %c0_66 = arith.constant 0 : index
    %c0_67 = arith.constant 0 : index
    %c0_68 = arith.constant 0 : index
    %62 = vector.load %arg4[%c0_66, %c0_67, %c0_68] : memref<1x49x64xbf16, #tpu.memory_space<vmem>>, vector<1x49x64xbf16>
    tpu.vector_store %arg4[%c0_66, %c0_67, %c0_68], %61 {strides = array<i32>} : memref<1x49x64xbf16, #tpu.memory_space<vmem>>, vector<1x49x64xbf16>,
    return
  }
  func.func @transform_0(%arg0: i32) -> (i32, i32, i32, i32) {
    %c0_i32 = arith.constant 0 : i32
    %c0_i32_0 = arith.constant 0 : i32
    %c0_i32_1 = arith.constant 0 : i32
    %c0_i32_2 = arith.constant 0 : i32
    return %arg0, %c0_i32, %c0_i32_0, %c0_i32_1 : i32, i32, i32, i32
  }
  func.func @transform_1(%arg0: i32) -> (i32, i32, i32) {
    %c0_i32 = arith.constant 0 : i32
    %c0_i32_0 = arith.constant 0 : i32
    %c0_i32_1 = arith.constant 0 : i32
    %c0_i32_2 = arith.constant 0 : i32
    return %c0_i32, %c0_i32_0, %c0_i32_1 : i32, i32, i32
  }
  func.func @transform_2(%arg0: i32) -> (i32, i32) {
    %c0_i32 = arith.constant 0 : i32
    %c0_i32_0 = arith.constant 0 : i32
    %c0_i32_1 = arith.constant 0 : i32
    return %c0_i32, %c0_i32_0 : i32, i32
  }
  func.func @transform_3(%arg0: i32) -> (i32, i32, i32) {
    %c0_i32 = arith.constant 0 : i32
    %c0_i32_0 = arith.constant 0 : i32
    %c0_i32_1 = arith.constant 0 : i32
    return %arg0, %c0_i32, %c0_i32_0 : i32, i32, i32
  }
}

module attributes {stable_mosaic.version = 11 : i64} {
  func.func @_fc_tail_kernel(%arg0: i32, %arg1: memref<2x3136xbf16, #tpu.memory_space<vmem>>, %arg2: memref<3136x512xbf16, #tpu.memory_space<vmem>>, %arg3: memref<1x512xf32, #tpu.memory_space<vmem>>, %arg4: memref<512x128xbf16, #tpu.memory_space<vmem>>, %arg5: memref<1x128xf32, #tpu.memory_space<vmem>>, %arg6: memref<2x128xf32, #tpu.memory_space<vmem>>) attributes {dimension_semantics = [#tpu.dimension_semantics<parallel>], iteration_bounds = array<i64: 1>, scalar_prefetch = 0 : i64, scratch_operands = 0 : i64, tpu.core_type = #tpu.core_type<tc>, window_params = [{transform_indices = @transform_0, window_bounds = array<i64: 2, 3136>}, {pipeline_mode = #tpu.pipeline_mode<synchronous>, transform_indices = @transform_1, window_bounds = array<i64: 3136, 512>}, {pipeline_mode = #tpu.pipeline_mode<synchronous>, transform_indices = @transform_2, window_bounds = array<i64: 1, 512>}, {pipeline_mode = #tpu.pipeline_mode<synchronous>, transform_indices = @transform_3, window_bounds = array<i64: 512, 128>}, {pipeline_mode = #tpu.pipeline_mode<synchronous>, transform_indices = @transform_4, window_bounds = array<i64: 1, 128>}, {transform_indices = @transform_5, window_bounds = array<i64: 2, 128>}]} {
    %c0 = arith.constant 0 : index
    %c0_0 = arith.constant 0 : index
    %0 = vector.load %arg1[%c0, %c0_0] : memref<2x3136xbf16, #tpu.memory_space<vmem>>, vector<2x3136xbf16>
    %c0_1 = arith.constant 0 : index
    %c0_2 = arith.constant 0 : index
    %1 = vector.load %arg2[%c0_1, %c0_2] : memref<3136x512xbf16, #tpu.memory_space<vmem>>, vector<3136x512xbf16>
    %cst = arith.constant dense<0.000000e+00> : vector<2x512xf32>
    %2 = tpu.matmul %0, %1, %cst {dimension_numbers = #tpu.dot_dimension_numbers<[1], [0], [0], [1], [0, 0, 1, 1], [], []>} : vector<2x3136xbf16>, vector<3136x512xbf16>, vector<2x512xf32> -> vector<2x512xf32>
    %c0_3 = arith.constant 0 : index
    %c0_4 = arith.constant 0 : index
    %3 = vector.load %arg3[%c0_3, %c0_4] : memref<1x512xf32, #tpu.memory_space<vmem>>, vector<1x512xf32>
    %4 = vector.broadcast %3 : vector<1x512xf32> to vector<2x512xf32>
    %5 = arith.addf %2, %4 : vector<2x512xf32>
    %cst_5 = arith.constant 0.000000e+00 : f32
    %6 = vector.broadcast %cst_5 : f32 to vector<2x512xf32>
    %7 = arith.maximumf %5, %6 : vector<2x512xf32>
    %8 = arith.truncf %7 : vector<2x512xf32> to vector<2x512xbf16>
    %c0_6 = arith.constant 0 : index
    %c0_7 = arith.constant 0 : index
    %9 = vector.load %arg4[%c0_6, %c0_7] : memref<512x128xbf16, #tpu.memory_space<vmem>>, vector<512x128xbf16>
    %cst_8 = arith.constant dense<0.000000e+00> : vector<2x128xf32>
    %10 = tpu.matmul %8, %9, %cst_8 {dimension_numbers = #tpu.dot_dimension_numbers<[1], [0], [0], [1], [0, 0, 1, 1], [], []>} : vector<2x512xbf16>, vector<512x128xbf16>, vector<2x128xf32> -> vector<2x128xf32>
    %c0_9 = arith.constant 0 : index
    %c0_10 = arith.constant 0 : index
    %11 = vector.load %arg5[%c0_9, %c0_10] : memref<1x128xf32, #tpu.memory_space<vmem>>, vector<1x128xf32>
    %12 = vector.broadcast %11 : vector<1x128xf32> to vector<2x128xf32>
    %13 = arith.addf %10, %12 : vector<2x128xf32>
    %c0_11 = arith.constant 0 : index
    %c0_12 = arith.constant 0 : index
    %14 = vector.load %arg6[%c0_11, %c0_12] : memref<2x128xf32, #tpu.memory_space<vmem>>, vector<2x128xf32>
    tpu.vector_store %arg6[%c0_11, %c0_12], %13 {strides = array<i32>} : memref<2x128xf32, #tpu.memory_space<vmem>>, vector<2x128xf32>,
    return
  }
  func.func @transform_0(%arg0: i32) -> (i32, i32) {
    %c0_i32 = arith.constant 0 : i32
    %c0_i32_0 = arith.constant 0 : i32
    return %arg0, %c0_i32 : i32, i32
  }
  func.func @transform_1(%arg0: i32) -> (i32, i32) {
    %c0_i32 = arith.constant 0 : i32
    %c0_i32_0 = arith.constant 0 : i32
    %c0_i32_1 = arith.constant 0 : i32
    return %c0_i32, %c0_i32_0 : i32, i32
  }
  func.func @transform_2(%arg0: i32) -> (i32, i32) {
    %c0_i32 = arith.constant 0 : i32
    %c0_i32_0 = arith.constant 0 : i32
    %c0_i32_1 = arith.constant 0 : i32
    return %c0_i32, %c0_i32_0 : i32, i32
  }
  func.func @transform_3(%arg0: i32) -> (i32, i32) {
    %c0_i32 = arith.constant 0 : i32
    %c0_i32_0 = arith.constant 0 : i32
    %c0_i32_1 = arith.constant 0 : i32
    return %c0_i32, %c0_i32_0 : i32, i32
  }
  func.func @transform_4(%arg0: i32) -> (i32, i32) {
    %c0_i32 = arith.constant 0 : i32
    %c0_i32_0 = arith.constant 0 : i32
    %c0_i32_1 = arith.constant 0 : i32
    return %c0_i32, %c0_i32_0 : i32, i32
  }
  func.func @transform_5(%arg0: i32) -> (i32, i32) {
    %c0_i32 = arith.constant 0 : i32
    %c0_i32_0 = arith.constant 0 : i32
    return %arg0, %c0_i32 : i32, i32
  }
}

</mosaic_0001>

<bundles_post_ra>
// kernel: convolutional_qnet_forward.4
= control target key start
LH: loop header
LB: loop body
LE: loop exit
PB: predicated region body
PF: predicated region fallthrough
CT: control target
= control target key end

     0   :  { %s9055_s12 = smov 0   ;;  %s11281_s0 = inlined_call_operand.vmem [shape: bf16[2,21,21,64], index: 0, kind: input, shape index: {}]   ;;  %s11282_s1 = inlined_call_operand.vmem [shape: bf16[4,64,32], index: 1, kind: input, shape index: {}]   ;;  %s11283_s2 = inlined_call_operand.vmem [shape: f32[1,32], index: 2, kind: input, shape index: {}]   ;;  %s11284_s3 = inlined_call_operand.vmem [shape: bf16[2,400,32], index: 3, kind: output, shape index: {}]  }
   0x1 LB: > { %s7877_s13 = sadd.s32 4294967295, %s9030_s12   ;;  %p7881_p0 = scmp.ge.s32.totalorder %s9030_s12, 1  ;;  %s9030_s12 = sphi %s9055_s12, %s13_s12  }
   0x2   : > { %p137_p1 = scmp.lt.s32.totalorder %s9030_s12, 3 }
   0x4   : > { %p138_p2 = pnand %p7881_p0, %p137_p1 }
   0x6   : > { %141 = sbr.rel (%p138_p2) target bundleno = 788 (0x314), region = 32 }
   0xd   : > { %v9008_v0 = vld [vmem:[%s11282_s1 + $0x20] sm:$0xff]   ;;  %v11285_v1 = vmov 0.0   ;;  %v9010_v3 = vld [vmem:[%s11282_s1 + $0x28] sm:$0xff]   ;;  %vm9033_vm0 = vmmov 0   ;;  %p161_p3 = scmp.lt.s32.totalorder %s7877_s13, 1  ;;  %v2061_v5 = vlaneseq  ;;  %v9012_v6 = vld [vmem:[%s11282_s1 + $0x30] sm:$0xff]  }
   0xe   : > { %8563 = vmatprep.subr.bf16.mxu0 %v11285_v1  ;;  %8671 = vmatprep.subr.bf16.mxu1 %v11285_v1  ;;  %v9009_v2 = vld [vmem:[%s11282_s1] sm:$0xff]   ;;  %v9011_v4 = vld [vmem:[%s11282_s1 + $0x8] sm:$0xff]   ;;  %v9013_v7 = vld [vmem:[%s11282_s1 + $0x10] sm:$0xff]   ;;  %vm2505_vm1 = vcmask 523264   ;;  %vm960_vm2 = vsmask.f32 1280 }
   0xf   : > { %8564 = vmatpush3.bf16.msra.mxu0 %v9008_v0  ;;  %8679 = vmatprep.mubr.msk.bf16.mxu1 %vm9033_vm0, %v11285_v1  ;;  %s11377_s13 = smov (!%p161_p3, %s7877_s13), 1  ;;  %v2062_v8 = vshrl.u32 %v2061_v5, 7  ;;  %v9014_v9 = vld [vmem:[%s11282_s1 + $0x38] sm:$0xff]   ;;  %vm961_vm3 = vsmask.f32 3336  ;;  %v9017_v45 = vld [vmem:[%s11282_s1 + $0x60] sm:$0xff]  }
  0x10   : > { %8672 = vmatpush3.bf16.msra.mxu1 %v9009_v2  ;;  %8565 = vmatprep.subr.bf16.mxu0 %v11285_v1  ;;  %s8995_s24 = smul.u32 252, %s11377_s13  ;;  %v9034_v11 = vmov 1983009808   ;;  %vm9103_vm4 = vmor %vm960_vm2, %vm961_vm3  ;;  %vm963_vm5 = vsmask.f32 5392  ;;  %v9015_v18 = vld [vmem:[%s11282_s1 + $0x18] sm:$0xff]  }
  0x11   : > { %8673 = vmatprep.subr.bf16.mxu1 %v11285_v1  ;;  %8571 = vmatprep.mubr.msk.bf16.mxu0 %vm9033_vm0, %v11285_v1  ;;  %v2059_v12 = vunpack.c.l.s4 %v9034_v11  ;;  %vm9119_vm6 = vmor %vm9103_vm4, %vm963_vm5  ;;  %vm965_vm7 = vsmask.f32 7448  ;;  %v9019_v0 = vld [vmem:[%s11282_s1 + $0x68] sm:$0xff]   ;;  %vm7771_vm9 = vcmask 257024   ;;  %s8996_s27 = smul.u32 200, %s11377_s13 }
  0x12   : > { %s9100_s4 = scalar_lea.vmem %s11281_s0, %s8995_s24  ;;  %vm9131_vm8 = vmor %vm9119_vm6, %vm965_vm7 }
  0x13   : > { %8566 = vmatpush3.bf16.msra.mxu0 %v9010_v3  ;;  %v7884_v10 = vld.sshfl [vmem:[%s9100_s4] sm:$0x33 pattern:$0x76325410]  ;;  %v2060_v21 = vunpack.c.0.s8 %v2059_v12  ;;  %s11082_s29 = scalar_lea.vmem %s11284_s3, %s8996_s27 }
  0x14   : > { %8674 = vmatpush3.bf16.msra.mxu1 %v9011_v4  ;;  %8567 = vmatprep.subr.bf16.mxu0 %v11285_v1  ;;  %v7885_v14 = vld.sshfl [vmem:[%s9100_s4 + $0x4] sm:$0x33 pattern:$0x76325410]  ;;  %v299_v15 = vcombine.high %v7884_v10, %v7884_v10  ;;  %v968_v16 = vshrl.u32 %v7884_v10, 16  ;;  %v971_v17 = vshll.u32 %v7884_v10, 16 }
  0x15   : > { %8675 = vmatprep.subr.bf16.mxu1 %v11285_v1  ;;  %v307_v19 = vcombine.high %v7885_v14, %v7885_v14  ;;  %v991_v20 = vshrl.u32 %v7885_v14, 16  ;;  %v987_v22 = vshll.u32 %v7885_v14, 16  ;;  %v9114_v24 = vld.sshfl [vmem:[%s9100_s4 + $0x8] sm:$0x13 pattern:$0x76325410]  ;;  %v9123_v28 = vsub.s32 %v2060_v21, %v2062_v8 }
  0x16   : > { %v2814_v23 = vcombine.low %v7884_v10, %v299_v15  ;;  %v970_v26 = vrot.slane %v968_v16, 6  ;;  %v973_v27 = vrot.slane %v971_v17, 7  ;;  %v977_v30 = vshll.u32 %v299_v15, 16 }
  0x17   : > { %8568 = vmatpush3.bf16.msra.mxu0 %v9012_v6  ;;  %v2815_v29 = vcombine.low %v7885_v14, %v307_v19  ;;  %v981_v31 = vshrl.u32 %v299_v15, 16  ;;  %v989_v33 = vrot.slane %v987_v22, 7  ;;  %v993_v34 = vrot.slane %v991_v20, 6 }
  0x18   : > { %8676 = vmatpush3.bf16.msra.mxu1 %v9013_v7  ;;  %8569 = vmatprep.subr.bf16.mxu0 %v11285_v1  ;;  %v974_v32 = vor.u32 %v973_v27, %v970_v26  ;;  %v997_v35 = vshll.u32 %v307_v19, 16  ;;  %v2822_v36 = vrot.slane %v2814_v23, %v9123_v28  ;;  %v979_v39 = vrot.slane %v977_v30, 7  ;;  %v7886_v49 = vld.sshfl [vmem:[%s9100_s4 + $0x8] sm:$0x3 pattern:$0x76325410] }
  0x19   : > { %8677 = vmatprep.subr.bf16.mxu1 %v11285_v1  ;;  %v2829_v37 = vrot.slane %v2815_v29, %v9123_v28  ;;  %v983_v40 = vrot.slane %v981_v31, 6  ;;  %v994_v42 = vor.u32 %v993_v34, %v989_v33  ;;  %v1001_v44 = vshrl.u32 %v307_v19, 16  ;;  %v7887_v53 = vld.sshfl [vmem:[%s9100_s4 + $0xc] sm:$0x33 pattern:$0x76325410] }
  0x1a   : > { %v975_v41 = vrot.slane %v974_v32, 2  ;;  %v999_v43 = vrot.slane %v997_v35, 7  ;;  %v1007_v48 = vshll.u32 %v9114_v24, 16  ;;  %v807_v54 = vcombine.high %v9114_v24, %v9114_v24 }
  0x1b   : > { %8570 = vmatpush3.bf16.msra.mxu0 %v9014_v9  ;;  %v2830_v46 = vcombine.low %v2822_v36, %v2829_v37  ;;  %v984_v47 = vor.u32 %v983_v40, %v979_v39  ;;  %v995_v51 = vrot.slane %v994_v42, 2  ;;  %v1003_v52 = vrot.slane %v1001_v44, 6  ;;  %v7888_v57 = vld.sshfl [vmem:[%s9100_s4 + $0x10] sm:$0x33 pattern:$0x76325410] }
  0x1c   : > { %8678 = vmatpush3.bf16.msra.mxu1 %v9015_v18  ;;  %8779 = vmatprep.subr.bf16.mxu0 %v11285_v1  ;;  %v980_v50 = vsel %vm9131_vm8, %v975_v41, %v979_v39  ;;  %v1009_v56 = vrot.slane %v1007_v48, 7  ;;  %v322_v58 = vcombine.high %v7887_v53, %v7887_v53  ;;  %v2831_v59 = vcombine.low %v7886_v49, %v7887_v53  ;;  %v7890_v22 = vld.sshfl [vmem:[%s9100_s4 + $0x18] sm:$0x33 pattern:$0x76325410] }
  0x1d   : > { %8887 = vmatprep.subr.bf16.mxu1 %v11285_v1  ;;  %v985_v55 = vrot.slane %v984_v47, 2  ;;  %v1000_v60 = vsel %vm9131_vm8, %v995_v51, %v999_v43  ;;  %v1004_v61 = vor.u32 %v1003_v52, %v999_v43  ;;  %v9152_v62 = vcombine.high %v7888_v57, %v7888_v57  ;;  %v7889_v27 = vld.sshfl [vmem:[%s9100_s4 + $0x14] sm:$0x3 pattern:$0x76325410]  ;;  %v9018_v52 = vld [vmem:[%s11282_s1 + $0x48] sm:$0xff]  }
  0x1e   : > { %v1022_v63 = vshrl.u32 %v7887_v53, 16  ;;  %v1025_v3 = vshll.u32 %v7887_v53, 16  ;;  %v1045_v4 = vshrl.u32 %v7888_v57, 16  ;;  %v2832_v5 = vcombine.low %v322_v58, %v7888_v57 }
  0x1f   : > { %8680 = vmatmul.mubr.msk.bf16.vlgmr.msra.gmra.mrb[0].mxu1 %vm2505_vm1, %v2830_v46  ;;  %v990_v2 = vsel %vm9131_vm8, %v985_v55, %v989_v33  ;;  %v1005_v6 = vrot.slane %v1004_v61, 2  ;;  %v2839_v8 = vrot.slane %v2831_v59, %v9123_v28  ;;  %v1011_v9 = vshrl.u32 %v9114_v24, 16  ;;  %v9016_v33 = vld [vmem:[%s11282_s1 + $0x40] sm:$0xff]   ;;  %v9021_v61 = vld [vmem:[%s11282_s1 + $0x70] sm:$0xff]  }
  0x20   : > { %8888 = vmatpush3.bf16.msra.mxu1 %v9017_v45  ;;  %8683 = vmatprep.mubr.msk.bf16.mxu1 %vm9033_vm0, %v11285_v1  ;;  %v2056_v7 = vcombine.low %v980_v50, %v990_v2  ;;  %v2846_v10 = vrot.slane %v2832_v5, %v9123_v28  ;;  %v1017_v11 = vshll.u32 %v807_v54, 16  ;;  %v1024_v12 = vrot.slane %v1022_v63, 6  ;;  %v7945_v43 = vld.sshfl [vmem:[%s9100_s4 + $0x14] sm:$0x13 pattern:$0x76325410] }
  0x21   : > { %8889 = vmatprep.subr.bf16.mxu1 %v11285_v1  ;;  %v1027_v13 = vrot.slane %v1025_v3, 7  ;;  %v1010_v14 = vsel %vm9131_vm8, %v1005_v6, %v1009_v56  ;;  %v1013_v16 = vrot.slane %v1011_v9, 6  ;;  %v1031_v17 = vshll.u32 %v322_v58, 16 }
  0x22   : > { %v2064_v15 = vrot.slane %v2056_v7, %v9123_v28  ;;  %v2057_v18 = vcombine.low %v1000_v60, %v1010_v14  ;;  %v2847_v19 = vcombine.low %v2839_v8, %v2846_v10  ;;  %v1019_v20 = vrot.slane %v1017_v11, 7  ;;  %v7891_v5 = vld.sshfl [vmem:[%s9100_s4 + $0x1c] sm:$0x33 pattern:$0x76325410] }
  0x23   : > { %v1028_v21 = vor.u32 %v1027_v13, %v1024_v12  ;;  %v1014_v23 = vor.u32 %v1013_v16, %v1009_v56  ;;  %v1033_v24 = vrot.slane %v1031_v17, 7  ;;  %v1035_v25 = vshrl.u32 %v322_v58, 16  ;;  %v9020_v12 = vld [vmem:[%s11282_s1 + $0x50] sm:$0xff]  }
  0x24   : > { %8890 = vmatpush3.bf16.msra.mxu1 %v9019_v0  ;;  %v1041_v26 = vshll.u32 %v7888_v57, 16  ;;  %v2071_v29 = vrot.slane %v2057_v18, %v9123_v28  ;;  %v1047_v31 = vrot.slane %v1045_v4, 6  ;;  %v1051_v32 = vshll.u32 %v9152_v62, 16 }
  0x25   : > { %8891 = vmatprep.subr.bf16.mxu1 %v11285_v1  ;;  %v1029_v30 = vrot.slane %v1028_v21, 2  ;;  %v1015_v34 = vrot.slane %v1014_v23, 2  ;;  %v1037_v35 = vrot.slane %v1035_v25, 6  ;;  %v345_v37 = vcombine.high %v7890_v22, %v7890_v22 }
  0x26   : > { %v1043_v36 = vrot.slane %v1041_v26, 7  ;;  %v2072_v39 = vcombine.low %v2064_v15, %v2071_v29  ;;  %v1053_v41 = vrot.slane %v1051_v32, 7  ;;  %v1076_v42 = vshrl.u32 %v7890_v22, 16 }
  0x27   : > { %8684 = vmatmul.mubr.msk.bf16.gmra.mrb[4].mxu1 %vm2505_vm1, %v2847_v19  ;;  %v1034_v40 = vsel %vm9131_vm8, %v1029_v30, %v1033_v24  ;;  %v1020_v44 = vsel %vm9131_vm8, %v1015_v34, %v1019_v20  ;;  %v1038_v45 = vor.u32 %v1037_v35, %v1033_v24  ;;  %v1079_v47 = vshll.u32 %v7890_v22, 16  ;;  %v7893_v17 = vld.sshfl [vmem:[%s9100_s4 + $0x24] sm:$0x33 pattern:$0x76325410] }
  0x28   : > { %8687 = vmatprep.mubr.msk.bf16.mxu1 %vm9033_vm0, %v11285_v1  ;;  %v1048_v46 = vor.u32 %v1047_v31, %v1043_v36  ;;  %8572 = vmatmul.mubr.msk.bf16.vlgmr.msra.gmra.mrb[0].mxu0 %vm2505_vm1, %v2072_v39  ;;  %v2073_v48 = vcombine.low %v1020_v44, %v1034_v40  ;;  %v2848_v49 = vcombine.low %v9152_v62, %v7889_v27  ;;  %v1055_v55 = vshrl.u32 %v9152_v62, 16  ;;  %v7892_v25 = vld.sshfl [vmem:[%s9100_s4 + $0x20] sm:$0x3 pattern:$0x76325410] }
  0x29   : > { %v2849_v50 = vcombine.low %v7890_v22, %v345_v37  ;;  %v815_v51 = vcombine.high %v7945_v43, %v7945_v43  ;;  %8780 = vmatpush3.bf16.msra.mxu0 %v9016_v33  ;;  %8575 = vmatprep.mubr.msk.bf16.mxu0 %vm9033_vm0, %v11285_v1  ;;  %v1039_v53 = vrot.slane %v1038_v45, 2  ;;  %v1061_v56 = vshll.u32 %v7945_v43, 16 }
  0x2a   : > { %v1049_v54 = vrot.slane %v1048_v46, 2  ;;  %v2081_v57 = vrot.slane %v2073_v48, %v9123_v28  ;;  %v2856_v58 = vrot.slane %v2848_v49, %v9123_v28  ;;  %v1065_v60 = vshrl.u32 %v7945_v43, 16  ;;  %8781 = vmatprep.subr.bf16.mxu0 %v11285_v1  ;;  %8892 = vmatpush3.bf16.msra.mxu1 %v9021_v61 }
  0x2b   : > { %v2863_v59 = vrot.slane %v2849_v50, %v9123_v28  ;;  %v1044_v63 = vsel %vm9131_vm8, %v1039_v53, %v1043_v36  ;;  %v1057_v0 = vrot.slane %v1055_v55, 6  ;;  %v1063_v2 = vrot.slane %v1061_v56, 7  ;;  %8893 = vmatprep.subr.bf16.mxu1 %v11285_v1 }
  0x2c   : > { %v1054_v62 = vsel %vm9131_vm8, %v1049_v54, %v1053_v41  ;;  %v1067_v6 = vrot.slane %v1065_v60, 6  ;;  %v1071_v7 = vshll.u32 %v815_v51, 16  ;;  %v1078_v9 = vrot.slane %v1076_v42, 6 }
  0x2d   : > { %v2074_v3 = vcombine.low %v1044_v63, %v1054_v62  ;;  %v2864_v4 = vcombine.low %v2856_v58, %v2863_v59  ;;  %v1058_v8 = vor.u32 %v1057_v0, %v1053_v41  ;;  %v1081_v10 = vrot.slane %v1079_v47, 7  ;;  %8782 = vmatpush3.bf16.msra.mxu0 %v9018_v52  ;;  %v7946_v41 = vld.sshfl [vmem:[%s9100_s4 + $0x20] sm:$0x13 pattern:$0x76325410] }
  0x2e   : > { %v1085_v11 = vshll.u32 %v345_v37, 16  ;;  %v1068_v14 = vor.u32 %v1067_v6, %v1063_v2  ;;  %v1073_v15 = vrot.slane %v1071_v7, 7  ;;  %v1089_v16 = vshrl.u32 %v345_v37, 16  ;;  %8783 = vmatprep.subr.bf16.mxu0 %v11285_v1 }
  0x2f   : > { %v2088_v13 = vrot.slane %v2074_v3, %v9123_v28  ;;  %8688 = vmatmul.mubr.msk.bf16.gmra.mrb[8].mxu1 %vm2505_vm1, %v2864_v4  ;;  %v1059_v18 = vrot.slane %v1058_v8, 2  ;;  %v1082_v19 = vor.u32 %v1081_v10, %v1078_v9  ;;  %v1095_v21 = vshll.u32 %v7891_v5, 16  ;;  %v7894_v58 = vld.sshfl [vmem:[%s9100_s4 + $0x28] sm:$0x33 pattern:$0x76325410] }
  0x30   : > { %v1087_v20 = vrot.slane %v1085_v11, 7  ;;  %8691 = vmatprep.mubr.msk.bf16.mxu1 %vm9033_vm0, %v11285_v1  ;;  %v1069_v23 = vrot.slane %v1068_v14, 2  ;;  %v1091_v24 = vrot.slane %v1089_v16, 6  ;;  %v353_v26 = vcombine.high %v7891_v5, %v7891_v5 }
  0x31   : > { %v2089_v22 = vcombine.low %v2081_v57, %v2088_v13  ;;  %v1064_v27 = vsel %vm9131_vm8, %v1059_v18, %v1063_v2  ;;  %v1083_v29 = vrot.slane %v1082_v19, 2  ;;  %v1097_v30 = vrot.slane %v1095_v21, 7  ;;  %8784 = vmatpush3.bf16.msra.mxu0 %v9020_v12  ;;  %v7895_v4 = vld.sshfl [vmem:[%s9100_s4 + $0x2c] sm:$0x3 pattern:$0x76325410] }
  0x32   : > { %v9215_v31 = vcombine.high %v7893_v17, %v7893_v17  ;;  %v1074_v32 = vsel %vm9131_vm8, %v1069_v23, %v1073_v15  ;;  %v1092_v33 = vor.u32 %v1091_v24, %v1087_v20  ;;  %v1130_v34 = vshrl.u32 %v7893_v17, 16  ;;  %8785 = vmatprep.subr.bf16.mxu0 %v11285_v1  ;;  %v7947_v21 = vld.sshfl [vmem:[%s9100_s4 + $0x2c] sm:$0x13 pattern:$0x76325410] }
  0x33   : > { %8576 = vmatmul.mubr.msk.bf16.gmra.mrb[4].mxu0 %vm2505_vm1, %v2089_v22  ;;  %v1133_v35 = vshll.u32 %v7893_v17, 16  ;;  %v1088_v36 = vsel %vm9131_vm8, %v1083_v29, %v1087_v20  ;;  %v2090_v37 = vcombine.low %v1064_v27, %v1074_v32  ;;  %v2865_v39 = vcombine.low %v7891_v5, %v353_v26 }
  0x34   : > { %8579 = vmatprep.mubr.msk.bf16.mxu0 %vm9033_vm0, %v11285_v1  ;;  %v2866_v40 = vcombine.low %v7892_v25, %v7893_v17  ;;  %v1093_v42 = vrot.slane %v1092_v33, 2  ;;  %v823_v43 = vcombine.high %v7946_v41, %v7946_v41  ;;  %v1099_v44 = vshrl.u32 %v7891_v5, 16 }
  0x35   : > { %v1105_v45 = vshll.u32 %v353_v26, 16  ;;  %v2098_v46 = vrot.slane %v2090_v37, %v9123_v28  ;;  %v2873_v47 = vrot.slane %v2865_v39, %v9123_v28  ;;  %v1109_v49 = vshrl.u32 %v353_v26, 16 }
  0x36   : > { %v2880_v48 = vrot.slane %v2866_v40, %v9123_v28  ;;  %v1098_v50 = vsel %vm9131_vm8, %v1093_v42, %v1097_v30  ;;  %v1101_v51 = vrot.slane %v1099_v44, 6  ;;  %v1115_v53 = vshll.u32 %v7946_v41, 16 }
  0x37   : > { %v1107_v52 = vrot.slane %v1105_v45, 7  ;;  %v2091_v54 = vcombine.low %v1088_v36, %v1098_v50  ;;  %v1111_v56 = vrot.slane %v1109_v49, 6  ;;  %v1119_v57 = vshrl.u32 %v7946_v41, 16 }
  0x38   : > { %v2881_v55 = vcombine.low %v2873_v47, %v2880_v48  ;;  %v1102_v59 = vor.u32 %v1101_v51, %v1097_v30  ;;  %v1117_v60 = vrot.slane %v1115_v53, 7  ;;  %v1125_v61 = vshll.u32 %v823_v43, 16  ;;  %v7896_v36 = vld.sshfl [vmem:[%s9100_s4 + $0x30] sm:$0x33 pattern:$0x76325410] }
  0x39   : > { %v1132_v63 = vrot.slane %v1130_v34, 6  ;;  %v2105_v62 = vrot.slane %v2091_v54, %v9123_v28  ;;  %v1112_v0 = vor.u32 %v1111_v56, %v1107_v52  ;;  %v1121_v2 = vrot.slane %v1119_v57, 6  ;;  %v7897_v45 = vld.sshfl [vmem:[%s9100_s4 + $0x34] sm:$0x33 pattern:$0x76325410] }
  0x3a   : > { %8692 = vmatmul.mubr.msk.bf16.gmra.mrb[12].mxu1 %vm2505_vm1, %v2881_v55  ;;  %v1135_v3 = vrot.slane %v1133_v35, 7  ;;  %v1103_v5 = vrot.slane %v1102_v59, 2  ;;  %v1127_v6 = vrot.slane %v1125_v61, 7  ;;  %v1139_v7 = vshll.u32 %v9215_v31, 16 }
  0x3b   : > { %8695 = vmatprep.mubr.msk.bf16.mxu1 %vm9033_vm0, %v11285_v1  ;;  %v376_v8 = vcombine.high %v7894_v58, %v7894_v58  ;;  %v2106_v9 = vcombine.low %v2098_v46, %v2105_v62  ;;  %v1113_v10 = vrot.slane %v1112_v0, 2  ;;  %v1122_v11 = vor.u32 %v1121_v2, %v1117_v60 }
  0x3c   : > { %v1136_v12 = vor.u32 %v1135_v3, %v1132_v63  ;;  %v1108_v13 = vsel %vm9131_vm8, %v1103_v5, %v1107_v52  ;;  %v1141_v14 = vrot.slane %v1139_v7, 7  ;;  %v1153_v15 = vshrl.u32 %v7894_v58, 16 }
  0x3d   : > { %v2882_v16 = vcombine.low %v9215_v31, %v7894_v58  ;;  %8580 = vmatmul.mubr.msk.bf16.gmra.mrb[8].mxu0 %vm2505_vm1, %v2106_v9  ;;  %v1118_v17 = vsel %vm9131_vm8, %v1113_v10, %v1117_v60  ;;  %v1123_v18 = vrot.slane %v1122_v11, 2  ;;  %v2883_v20 = vcombine.low %v376_v8, %v7895_v4 }
  0x3e   : > { %v1137_v19 = vrot.slane %v1136_v12, 2  ;;  %8583 = vmatprep.mubr.msk.bf16.mxu0 %vm9033_vm0, %v11285_v1  ;;  %v2107_v22 = vcombine.low %v1108_v13, %v1118_v17  ;;  %v831_v24 = vcombine.high %v7947_v21, %v7947_v21  ;;  %v1143_v25 = vshrl.u32 %v9215_v31, 16 }
  0x3f   : > { %v2890_v23 = vrot.slane %v2882_v16, %v9123_v28  ;;  %v1128_v26 = vsel %vm9131_vm8, %v1123_v18, %v1127_v6  ;;  %v2897_v29 = vrot.slane %v2883_v20, %v9123_v28  ;;  %v1149_v30 = vshll.u32 %v7894_v58, 16  ;;  %v7899_v20 = vld.sshfl [vmem:[%s9100_s4 + $0x3c] sm:$0x33 pattern:$0x76325410] }
  0x40   : > { %v1142_v27 = vsel %vm9131_vm8, %v1137_v19, %v1141_v14  ;;  %v2115_v33 = vrot.slane %v2107_v22, %v9123_v28  ;;  %v1145_v34 = vrot.slane %v1143_v25, 6  ;;  %v1155_v35 = vrot.slane %v1153_v15, 6  ;;  %v7948_v15 = vld.sshfl [vmem:[%s9100_s4 + $0x38] sm:$0x13 pattern:$0x76325410] }
  0x41   : > { %v2108_v32 = vcombine.low %v1128_v26, %v1142_v27  ;;  %v2898_v37 = vcombine.low %v2890_v23, %v2897_v29  ;;  %v1151_v39 = vrot.slane %v1149_v30, 7  ;;  %v1159_v40 = vshll.u32 %v376_v8, 16  ;;  %v9278_v25 = vld.sshfl [vmem:[%s9100_s4 + $0x40] sm:$0x33 pattern:$0x76325410] }
  0x42   : > { %v1163_v31 = vshrl.u32 %v376_v8, 16  ;;  %v1146_v42 = vor.u32 %v1145_v34, %v1141_v14  ;;  %v1169_v43 = vshll.u32 %v7947_v21, 16  ;;  %v1173_v44 = vshrl.u32 %v7947_v21, 16 }
  0x43   : > { %v2122_v41 = vrot.slane %v2108_v32, %v9123_v28  ;;  %8696 = vmatmul.mubr.msk.bf16.gmra.mrb[16].mxu1 %vm2505_vm1, %v2898_v37  ;;  %v1156_v46 = vor.u32 %v1155_v35, %v1151_v39  ;;  %v1161_v47 = vrot.slane %v1159_v40, 7  ;;  %v1179_v49 = vshll.u32 %v831_v24, 16 }
  0x44   : > { %v1165_v48 = vrot.slane %v1163_v31, 6  ;;  %v1147_v51 = vrot.slane %v1146_v42, 2  ;;  %v1171_v52 = vrot.slane %v1169_v43, 7  ;;  %v1175_v53 = vrot.slane %v1173_v44, 6  ;;  %8699 = vmatprep.mubr.msk.bf16.mxu1 %vm9033_vm0, %v11285_v1 }
  0x45   : > { %v2123_v50 = vcombine.low %v2115_v33, %v2122_v41  ;;  %v1157_v54 = vrot.slane %v1156_v46, 2  ;;  %v1181_v56 = vrot.slane %v1179_v49, 7  ;;  %v391_v57 = vcombine.high %v7896_v36, %v7896_v36  ;;  %v7898_v31 = vld.sshfl [vmem:[%s9100_s4 + $0x38] sm:$0x3 pattern:$0x76325410] }
  0x46   : > { %v1166_v55 = vor.u32 %v1165_v48, %v1161_v47  ;;  %v1152_v58 = vsel %vm9131_vm8, %v1147_v51, %v1151_v39  ;;  %v1176_v59 = vor.u32 %v1175_v53, %v1171_v52  ;;  %v399_v60 = vcombine.high %v7897_v45, %v7897_v45 }
  0x47   : > { %8584 = vmatmul.mubr.msk.bf16.gmra.mrb[12].mxu0 %vm2505_vm1, %v2123_v50  ;;  %v1184_v61 = vshrl.u32 %v7896_v36, 16  ;;  %v1162_v63 = vsel %vm9131_vm8, %v1157_v54, %v1161_v47  ;;  %v1187_v0 = vshll.u32 %v7896_v36, 16  ;;  %v1207_v2 = vshrl.u32 %v7897_v45, 16 }
  0x48   : > { %8587 = vmatprep.mubr.msk.bf16.mxu0 %vm9033_vm0, %v11285_v1  ;;  %v1167_v62 = vrot.slane %v1166_v55, 2  ;;  %v1177_v3 = vrot.slane %v1176_v59, 2  ;;  %v2124_v4 = vcombine.low %v1152_v58, %v1162_v63  ;;  %v2899_v5 = vcombine.low %v7896_v36, %v391_v57 }
  0x49   : > { %v2900_v6 = vcombine.low %v7897_v45, %v399_v60  ;;  %v1186_v8 = vrot.slane %v1184_v61, 6  ;;  %v1189_v9 = vrot.slane %v1187_v0, 7  ;;  %v1193_v10 = vshll.u32 %v391_v57, 16 }
  0x4a   : > { %v1172_v7 = vsel %vm9131_vm8, %v1167_v62, %v1171_v52  ;;  %v1182_v11 = vsel %vm9131_vm8, %v1177_v3, %v1181_v56  ;;  %v2132_v12 = vrot.slane %v2124_v4, %v9123_v28  ;;  %v2907_v13 = vrot.slane %v2899_v5, %v9123_v28 }
  0x4b   : > { %v2914_v14 = vrot.slane %v2900_v6, %v9123_v28  ;;  %v2125_v16 = vcombine.low %v1172_v7, %v1182_v11  ;;  %v1190_v17 = vor.u32 %v1189_v9, %v1186_v8  ;;  %v1195_v18 = vrot.slane %v1193_v10, 7  ;;  %v7901_v10 = vld.sshfl [vmem:[%s9100_s4 + $0x44] sm:$0x3 pattern:$0x76325410] }
  0x4c   : > { %v1197_v19 = vshrl.u32 %v391_v57, 16  ;;  %v1203_v22 = vshll.u32 %v7897_v45, 16  ;;  %v1209_v23 = vrot.slane %v1207_v2, 6  ;;  %v1213_v24 = vshll.u32 %v399_v60, 16 }
  0x4d   : > { %v2915_v21 = vcombine.low %v2907_v13, %v2914_v14  ;;  %v2139_v26 = vrot.slane %v2125_v16, %v9123_v28  ;;  %v1191_v27 = vrot.slane %v1190_v17, 2  ;;  %v1217_v30 = vshrl.u32 %v399_v60, 16  ;;  %v7902_v11 = vld.sshfl [vmem:[%s9100_s4 + $0x48] sm:$0x33 pattern:$0x76325410] }
  0x4e   : > { %v1199_v29 = vrot.slane %v1197_v19, 6  ;;  %v1205_v32 = vrot.slane %v1203_v22, 7  ;;  %v1215_v33 = vrot.slane %v1213_v24, 7  ;;  %v1223_v34 = vshll.u32 %v7948_v15, 16 }
  0x4f   : > { %8700 = vmatmul.mubr.msk.bf16.gmra.mrb[20].mxu1 %vm2505_vm1, %v2915_v21  ;;  %v414_v35 = vcombine.high %v7899_v20, %v7899_v20  ;;  %v2140_v36 = vcombine.low %v2132_v12, %v2139_v26  ;;  %v1196_v37 = vsel %vm9131_vm8, %v1191_v27, %v1195_v18  ;;  %v1219_v40 = vrot.slane %v1217_v30, 6 }
  0x50   : > { %v1200_v39 = vor.u32 %v1199_v29, %v1195_v18  ;;  %8703 = vmatprep.mubr.msk.bf16.mxu1 %vm9033_vm0, %v11285_v1  ;;  %v1210_v41 = vor.u32 %v1209_v23, %v1205_v32  ;;  %v1225_v42 = vrot.slane %v1223_v34, 7  ;;  %v9289_v43 = vcombine.high %v9278_v25, %v9278_v25  ;;  %v7949_v29 = vld.sshfl [vmem:[%s9100_s4 + $0x44] sm:$0x13 pattern:$0x76325410] }
  0x51   : > { %v1238_v44 = vshrl.u32 %v7899_v20, 16  ;;  %8588 = vmatmul.mubr.msk.bf16.gmra.mrb[16].mxu0 %vm2505_vm1, %v2140_v36  ;;  %v1220_v46 = vor.u32 %v1219_v40, %v1215_v33  ;;  %v1241_v47 = vshll.u32 %v7899_v20, 16  ;;  %v1261_v48 = vshrl.u32 %v9278_v25, 16 }
  0x52   : > { %v1201_v45 = vrot.slane %v1200_v39, 2  ;;  %8591 = vmatprep.mubr.msk.bf16.mxu0 %vm9033_vm0, %v11285_v1  ;;  %v1211_v49 = vrot.slane %v1210_v41, 2  ;;  %v2916_v50 = vcombine.low %v7898_v31, %v7899_v20  ;;  %v2917_v51 = vcombine.low %v414_v35, %v9278_v25 }
  0x53   : > { %v839_v52 = vcombine.high %v7948_v15, %v7948_v15  ;;  %v1221_v54 = vrot.slane %v1220_v46, 2  ;;  %v1227_v55 = vshrl.u32 %v7948_v15, 16  ;;  %v1240_v56 = vrot.slane %v1238_v44, 6 }
  0x54   : > { %v1206_v53 = vsel %vm9131_vm8, %v1201_v45, %v1205_v32  ;;  %v1216_v57 = vsel %vm9131_vm8, %v1211_v49, %v1215_v33  ;;  %v2924_v59 = vrot.slane %v2916_v50, %v9123_v28  ;;  %v2931_v60 = vrot.slane %v2917_v51, %v9123_v28  ;;  %v7903_v46 = vld.sshfl [vmem:[%s9100_s4 + $0x4c] sm:$0x33 pattern:$0x76325410] }
  0x55   : > { %v2141_v58 = vcombine.low %v1196_v37, %v1206_v53  ;;  %v1226_v61 = vsel %vm9131_vm8, %v1221_v54, %v1225_v42  ;;  %v1229_v63 = vrot.slane %v1227_v55, 6  ;;  %v1233_v62 = vshll.u32 %v839_v52, 16 }
  0x56   : > { %v1243_v0 = vrot.slane %v1241_v47, 7  ;;  %v2142_v2 = vcombine.low %v1216_v57, %v1226_v61  ;;  %v2932_v4 = vcombine.low %v2924_v59, %v2931_v60  ;;  %v1247_v5 = vshll.u32 %v414_v35, 16 }
  0x57   : > { %v2149_v3 = vrot.slane %v2141_v58, %v9123_v28  ;;  %v1230_v6 = vor.u32 %v1229_v63, %v1225_v42  ;;  %v1235_v7 = vrot.slane %v1233_v62, 7  ;;  %v1251_v9 = vshrl.u32 %v414_v35, 16 }
  0x58   : > { %v1244_v8 = vor.u32 %v1243_v0, %v1240_v56  ;;  %v2156_v12 = vrot.slane %v2142_v2, %v9123_v28  ;;  %8704 = vmatmul.mubr.msk.bf16.gmra.mrb[24].mxu1 %vm2505_vm1, %v2932_v4  ;;  %v1249_v13 = vrot.slane %v1247_v5, 7  ;;  %v1257_v14 = vshll.u32 %v9278_v25, 16  ;;  %v7905_v0 = vld.sshfl [vmem:[%s9100_s4 + $0x54] sm:$0x33 pattern:$0x76325410] }
  0x59   : > { %v1263_v15 = vrot.slane %v1261_v48, 6  ;;  %v1231_v16 = vrot.slane %v1230_v6, 2  ;;  %v1253_v18 = vrot.slane %v1251_v9, 6  ;;  %v1267_v19 = vshll.u32 %v9289_v43, 16  ;;  %8707 = vmatprep.mubr.msk.bf16.mxu1 %vm9033_vm0, %v11285_v1 }
  0x5a   : > { %v1245_v17 = vrot.slane %v1244_v8, 2  ;;  %v2157_v20 = vcombine.low %v2149_v3, %v2156_v12  ;;  %v1259_v21 = vrot.slane %v1257_v14, 7  ;;  %v437_v22 = vcombine.high %v7902_v11, %v7902_v11  ;;  %v7904_v5 = vld.sshfl [vmem:[%s9100_s4 + $0x50] sm:$0x3 pattern:$0x76325410] }
  0x5b   : > { %v1292_v23 = vshrl.u32 %v7902_v11, 16  ;;  %v1236_v24 = vsel %vm9131_vm8, %v1231_v16, %v1235_v7  ;;  %v1254_v25 = vor.u32 %v1253_v18, %v1249_v13  ;;  %v1269_v27 = vrot.slane %v1267_v19, 7  ;;  %v7950_v19 = vld.sshfl [vmem:[%s9100_s4 + $0x50] sm:$0x13 pattern:$0x76325410] }
  0x5c   : > { %v1250_v26 = vsel %vm9131_vm8, %v1245_v17, %v1249_v13  ;;  %8592 = vmatmul.mubr.msk.bf16.gmra.mrb[20].mxu0 %vm2505_vm1, %v2157_v20  ;;  %v1264_v30 = vor.u32 %v1263_v15, %v1259_v21  ;;  %v1295_v33 = vshll.u32 %v7902_v11, 16  ;;  %v2933_v34 = vcombine.low %v9289_v43, %v7901_v10  ;;  %v9022_v20 = vld [vmem:[%s11282_s1 + $0x58] sm:$0xff]  }
  0x5d   : > { %v2158_v32 = vcombine.low %v1236_v24, %v1250_v26  ;;  %8595 = vmatprep.mubr.msk.bf16.mxu0 %vm9033_vm0, %v11285_v1  ;;  %v1255_v35 = vrot.slane %v1254_v25, 2  ;;  %v2934_v36 = vcombine.low %v7902_v11, %v437_v22  ;;  %v847_v37 = vcombine.high %v7949_v29, %v7949_v29  ;;  %8786 = vmatpush3.bf16.msra.mxu0 %v9022_v20 }
  0x5e   : > { %v1271_v39 = vshrl.u32 %v9289_v43, 16  ;;  %v1265_v40 = vrot.slane %v1264_v30, 2  ;;  %v2941_v41 = vrot.slane %v2933_v34, %v9123_v28  ;;  %v1277_v42 = vshll.u32 %v7949_v29, 16 }
  0x5f   : > { %v2166_v31 = vrot.slane %v2158_v32, %v9123_v28  ;;  %v1260_v44 = vsel %vm9131_vm8, %v1255_v35, %v1259_v21  ;;  %v2948_v45 = vrot.slane %v2934_v36, %v9123_v28  ;;  %v1281_v48 = vshrl.u32 %v7949_v29, 16 }
  0x60   : > { %v1273_v47 = vrot.slane %v1271_v39, 6  ;;  %v1270_v49 = vsel %vm9131_vm8, %v1265_v40, %v1269_v27  ;;  %v1279_v50 = vrot.slane %v1277_v42, 7  ;;  %v1287_v43 = vshll.u32 %v847_v37, 16 }
  0x61   : > { %v1294_v51 = vrot.slane %v1292_v23, 6  ;;  %v2159_v52 = vcombine.low %v1260_v44, %v1270_v49  ;;  %v2949_v53 = vcombine.low %v2941_v41, %v2948_v45  ;;  %v1283_v55 = vrot.slane %v1281_v48, 6  ;;  %v7906_v40 = vld.sshfl [vmem:[%s9100_s4 + $0x58] sm:$0x33 pattern:$0x76325410] }
  0x62   : > { %v1274_v54 = vor.u32 %v1273_v47, %v1269_v27  ;;  %v1289_v56 = vrot.slane %v1287_v43, 7  ;;  %v1297_v57 = vrot.slane %v1295_v33, 7  ;;  %v1301_v58 = vshll.u32 %v437_v22, 16 }
  0x63   : > { %v1305_v59 = vshrl.u32 %v437_v22, 16  ;;  %v2173_v60 = vrot.slane %v2159_v52, %v9123_v28  ;;  %8708 = vmatmul.mubr.msk.bf16.gmra.mrb[28].mxu1 %vm2505_vm1, %v2949_v53  ;;  %v1284_v63 = vor.u32 %v1283_v55, %v1279_v50  ;;  %v1311_v62 = vshll.u32 %v7903_v46, 16  ;;  %v7907_v49 = vld.sshfl [vmem:[%s9100_s4 + $0x5c] sm:$0x3 pattern:$0x76325410] }
  0x64   : > { %v1275_v61 = vrot.slane %v1274_v54, 2  ;;  %v1298_v2 = vor.u32 %v1297_v57, %v1294_v51  ;;  %v1303_v3 = vrot.slane %v1301_v58, 7  ;;  %8711 = vmatprep.mubr.msk.bf16.mxu1 %vm9033_vm0, %v11285_v1  ;;  %v445_v6 = vcombine.high %v7903_v46, %v7903_v46  ;;  %v9023_v57 = vld [vmem:[%s11282_s1 + $0x78] sm:$0xff]  }
  0x65   : > { %v1307_v4 = vrot.slane %v1305_v59, 6  ;;  %v2174_v7 = vcombine.low %v2166_v31, %v2173_v60  ;;  %v1285_v9 = vrot.slane %v1284_v63, 2  ;;  %v1313_v10 = vrot.slane %v1311_v62, 7  ;;  %8894 = vmatpush3.bf16.msra.mxu1 %v9023_v57 }
  0x66   : > { %v1280_v8 = vsel %vm9131_vm8, %v1275_v61, %v1279_v50  ;;  %v1299_v11 = vrot.slane %v1298_v2, 2  ;;  %v9339_v13 = vcombine.high %v7905_v0, %v7905_v0  ;;  %v1346_v14 = vshrl.u32 %v7905_v0, 16 }
  0x67   : > { %v1308_v12 = vor.u32 %v1307_v4, %v1303_v3  ;;  %8596 = vmatmul.mubr.msk.bf16.gmra.mrb[24].mxu0 %vm2505_vm1, %v2174_v7  ;;  %v1290_v15 = vsel %vm9131_vm8, %v1285_v9, %v1289_v56  ;;  %v1349_v16 = vshll.u32 %v7905_v0, 16  ;;  %v2950_v17 = vcombine.low %v7903_v46, %v445_v6 }
  0x68   : > { %v2951_v18 = vcombine.low %v7904_v5, %v7905_v0  ;;  %8599 = vmatprep.mubr.msk.bf16.mxu0 %vm9033_vm0, %v11285_v1  ;;  %v1304_v21 = vsel %vm9131_vm8, %v1299_v11, %v1303_v3  ;;  %v2175_v23 = vcombine.low %v1280_v8, %v1290_v15  ;;  %v855_v24 = vcombine.high %v7950_v19, %v7950_v19  ;;  %v7951_v3 = vld.sshfl [vmem:[%s9100_s4 + $0x5c] sm:$0x13 pattern:$0x76325410] }
  0x69   : > { %v1309_v22 = vrot.slane %v1308_v12, 2  ;;  %v2958_v26 = vrot.slane %v2950_v17, %v9123_v28  ;;  %v1315_v27 = vshrl.u32 %v7903_v46, 16  ;;  %v1321_v29 = vshll.u32 %v445_v6, 16 }
  0x6a   : > { %v2965_v25 = vrot.slane %v2951_v18, %v9123_v28  ;;  %v2183_v32 = vrot.slane %v2175_v23, %v9123_v28  ;;  %v1325_v33 = vshrl.u32 %v445_v6, 16  ;;  %v1331_v34 = vshll.u32 %v7950_v19, 16  ;;  %v7908_v17 = vld.sshfl [vmem:[%s9100_s4 + $0x60] sm:$0x33 pattern:$0x76325410] }
  0x6b   : > { %v1314_v30 = vsel %vm9131_vm8, %v1309_v22, %v1313_v10  ;;  %v1317_v37 = vrot.slane %v1315_v27, 6  ;;  %v1323_v39 = vrot.slane %v1321_v29, 7  ;;  %v1335_v42 = vshrl.u32 %v7950_v19, 16 }
  0x6c   : > { %v2176_v35 = vcombine.low %v1304_v21, %v1314_v30  ;;  %v2966_v36 = vcombine.low %v2958_v26, %v2965_v25  ;;  %v1327_v31 = vrot.slane %v1325_v33, 6  ;;  %v1333_v41 = vrot.slane %v1331_v34, 7  ;;  %v7909_v21 = vld.sshfl [vmem:[%s9100_s4 + $0x64] sm:$0x33 pattern:$0x76325410] }
  0x6d   : > { %v1341_v44 = vshll.u32 %v855_v24, 16  ;;  %v1318_v46 = vor.u32 %v1317_v37, %v1313_v10  ;;  %v1348_v47 = vrot.slane %v1346_v14, 6  ;;  %v1351_v48 = vrot.slane %v1349_v16, 7 }
  0x6e   : > { %v2190_v45 = vrot.slane %v2176_v35, %v9123_v28  ;;  %8712 = vmatmul.mubr.msk.bf16.gmra.mrb[32].mxu1 %vm2505_vm1, %v2966_v36  ;;  %v1328_v50 = vor.u32 %v1327_v31, %v1323_v39  ;;  %v1337_v43 = vrot.slane %v1335_v42, 6  ;;  %v1355_v52 = vshll.u32 %v9339_v13, 16 }
  0x6f   : > { %v1343_v51 = vrot.slane %v1341_v44, 7  ;;  %8715 = vmatprep.mubr.msk.bf16.mxu1 %vm9033_vm0, %v11285_v1  ;;  %v1319_v54 = vrot.slane %v1318_v46, 2  ;;  %v1352_v55 = vor.u32 %v1351_v48, %v1348_v47  ;;  %v468_v56 = vcombine.high %v7906_v40, %v7906_v40 }
  0x70   : > { %v2191_v53 = vcombine.low %v2183_v32, %v2190_v45  ;;  %v1329_v58 = vrot.slane %v1328_v50, 2  ;;  %v1338_v59 = vor.u32 %v1337_v43, %v1333_v41  ;;  %v1357_v60 = vrot.slane %v1355_v52, 7 }
  0x71   : > { %v1369_v61 = vshrl.u32 %v7906_v40, 16  ;;  %v1324_v63 = vsel %vm9131_vm8, %v1319_v54, %v1323_v39  ;;  %v1353_v62 = vrot.slane %v1352_v55, 2  ;;  %v2967_v0 = vcombine.low %v9339_v13, %v7906_v40 }
  0x72   : > { %8600 = vmatmul.mubr.msk.bf16.gmra.mrb[28].mxu0 %vm2505_vm1, %v2191_v53  ;;  %v2968_v2 = vcombine.low %v468_v56, %v7907_v49  ;;  %v1334_v4 = vsel %vm9131_vm8, %v1329_v58, %v1333_v41  ;;  %v1339_v5 = vrot.slane %v1338_v59, 2  ;;  %v863_v6 = vcombine.high %v7951_v3, %v7951_v3 }
  0x73   : > { %8603 = vmatprep.mubr.msk.bf16.mxu0 %vm9033_vm0, %v11285_v1  ;;  %v1359_v7 = vshrl.u32 %v9339_v13, 16  ;;  %v1358_v8 = vsel %vm9131_vm8, %v1353_v62, %v1357_v60  ;;  %v2192_v9 = vcombine.low %v1324_v63, %v1334_v4  ;;  %v2975_v10 = vrot.slane %v2967_v0, %v9123_v28  ;;  %v7952_v63 = vld.sshfl [vmem:[%s9100_s4 + $0x68] sm:$0x13 pattern:$0x76325410] }
  0x74   : > { %v2982_v11 = vrot.slane %v2968_v2, %v9123_v28  ;;  %v1344_v12 = vsel %vm9131_vm8, %v1339_v5, %v1343_v51  ;;  %v1365_v15 = vshll.u32 %v7906_v40, 16  ;;  %v1371_v16 = vrot.slane %v1369_v61, 6 }
  0x75   : > { %v1361_v14 = vrot.slane %v1359_v7, 6  ;;  %v2193_v18 = vcombine.low %v1344_v12, %v1358_v8  ;;  %v2200_v19 = vrot.slane %v2192_v9, %v9123_v28  ;;  %v1375_v13 = vshll.u32 %v468_v56, 16 }
  0x76   : > { %v2983_v20 = vcombine.low %v2975_v10, %v2982_v11  ;;  %v1367_v23 = vrot.slane %v1365_v15, 7  ;;  %v1379_v24 = vshrl.u32 %v468_v56, 16  ;;  %v1385_v26 = vshll.u32 %v7951_v3, 16 }
  0x77   : > { %v1362_v22 = vor.u32 %v1361_v14, %v1357_v60  ;;  %v2207_v25 = vrot.slane %v2193_v18, %v9123_v28  ;;  %v1377_v27 = vrot.slane %v1375_v13, 7  ;;  %v1389_v29 = vshrl.u32 %v7951_v3, 16  ;;  %v7910_v11 = vld.sshfl [vmem:[%s9100_s4 + $0x68] sm:$0x3 pattern:$0x76325410] }
  0x78   : > { %8716 = vmatmul.mubr.msk.bf16.gmra.mrb[36].mxu1 %vm2505_vm1, %v2983_v20  ;;  %v1395_v30 = vshll.u32 %v863_v6, 16  ;;  %v1372_v33 = vor.u32 %v1371_v16, %v1367_v23  ;;  %v1381_v34 = vrot.slane %v1379_v24, 6  ;;  %v1387_v35 = vrot.slane %v1385_v26, 7 }
  0x79   : > { %v1363_v32 = vrot.slane %v1362_v22, 2  ;;  %8719 = vmatprep.mubr.msk.bf16.mxu1 %vm9033_vm0, %v11285_v1  ;;  %v2208_v36 = vcombine.low %v2200_v19, %v2207_v25  ;;  %v1391_v37 = vrot.slane %v1389_v29, 6  ;;  %v483_v40 = vcombine.high %v7908_v17, %v7908_v17  ;;  %v7911_v6 = vld.sshfl [vmem:[%s9100_s4 + $0x6c] sm:$0x33 pattern:$0x76325410] }
  0x7a   : > { %v1397_v39 = vrot.slane %v1395_v30, 7  ;;  %v1373_v41 = vrot.slane %v1372_v33, 2  ;;  %v1382_v42 = vor.u32 %v1381_v34, %v1377_v27  ;;  %v491_v44 = vcombine.high %v7909_v21, %v7909_v21  ;;  %v7912_v20 = vld.sshfl [vmem:[%s9100_s4 + $0x70] sm:$0x33 pattern:$0x76325410] }
  0x7b   : > { %v1368_v31 = vsel %vm9131_vm8, %v1363_v32, %v1367_v23  ;;  %8604 = vmatmul.mubr.msk.bf16.gmra.mrb[32].mxu0 %vm2505_vm1, %v2208_v36  ;;  %v1392_v45 = vor.u32 %v1391_v37, %v1387_v35  ;;  %v1400_v46 = vshrl.u32 %v7908_v17, 16  ;;  %v1403_v47 = vshll.u32 %v7908_v17, 16 }
  0x7c   : > { %v1423_v48 = vshrl.u32 %v7909_v21, 16  ;;  %8607 = vmatprep.mubr.msk.bf16.mxu0 %vm9033_vm0, %v11285_v1  ;;  %v1378_v49 = vsel %vm9131_vm8, %v1373_v41, %v1377_v27  ;;  %v1383_v50 = vrot.slane %v1382_v42, 2  ;;  %v2984_v43 = vcombine.low %v7908_v17, %v483_v40 }
  0x7d   : > { %v2985_v51 = vcombine.low %v7909_v21, %v491_v44  ;;  %v1393_v52 = vrot.slane %v1392_v45, 2  ;;  %v2209_v53 = vcombine.low %v1368_v31, %v1378_v49  ;;  %v1402_v54 = vrot.slane %v1400_v46, 6 }
  0x7e   : > { %v1405_v55 = vrot.slane %v1403_v47, 7  ;;  %v1388_v56 = vsel %vm9131_vm8, %v1383_v50, %v1387_v35  ;;  %v2992_v57 = vrot.slane %v2984_v43, %v9123_v28  ;;  %v1409_v59 = vshll.u32 %v483_v40, 16 }
  0x7f   : > { %v2999_v58 = vrot.slane %v2985_v51, %v9123_v28  ;;  %v1398_v60 = vsel %vm9131_vm8, %v1393_v52, %v1397_v39  ;;  %v2217_v61 = vrot.slane %v2209_v53, %v9123_v28  ;;  %v1413_v0 = vshrl.u32 %v483_v40, 16 }
  0x80   : > { %v1406_v62 = vor.u32 %v1405_v55, %v1402_v54  ;;  %v2210_v2 = vcombine.low %v1388_v56, %v1398_v60  ;;  %v1411_v4 = vrot.slane %v1409_v59, 7  ;;  %v1419_v5 = vshll.u32 %v7909_v21, 16  ;;  %v7914_v55 = vld.sshfl [vmem:[%s9100_s4 + $0x78] sm:$0x33 pattern:$0x76325410] }
  0x81   : > { %v3000_v3 = vcombine.low %v2992_v57, %v2999_v58  ;;  %v1415_v8 = vrot.slane %v1413_v0, 6  ;;  %v1425_v9 = vrot.slane %v1423_v48, 6  ;;  %v1429_v10 = vshll.u32 %v491_v44, 16 }
  0x82   : > { %v1407_v7 = vrot.slane %v1406_v62, 2  ;;  %v2224_v12 = vrot.slane %v2210_v2, %v9123_v28  ;;  %v1421_v14 = vrot.slane %v1419_v5, 7  ;;  %v1433_v15 = vshrl.u32 %v491_v44, 16 }
  0x83   : > { %8720 = vmatmul.mubr.msk.bf16.gmra.mrb[40].mxu1 %vm2505_vm1, %v3000_v3  ;;  %v1439_v16 = vshll.u32 %v7952_v63, 16  ;;  %v1416_v18 = vor.u32 %v1415_v8, %v1411_v4  ;;  %v1431_v19 = vrot.slane %v1429_v10, 7  ;;  %v506_v13 = vcombine.high %v7911_v6, %v7911_v6  ;;  %v7913_v60 = vld.sshfl [vmem:[%s9100_s4 + $0x74] sm:$0x3 pattern:$0x76325410] }
  0x84   : > { %v1412_v17 = vsel %vm9131_vm8, %v1407_v7, %v1411_v4  ;;  %8723 = vmatprep.mubr.msk.bf16.mxu1 %vm9033_vm0, %v11285_v1  ;;  %v2225_v21 = vcombine.low %v2217_v61, %v2224_v12  ;;  %v1426_v22 = vor.u32 %v1425_v9, %v1421_v14  ;;  %v1435_v23 = vrot.slane %v1433_v15, 6  ;;  %v7953_v10 = vld.sshfl [vmem:[%s9100_s4 + $0x74] sm:$0x13 pattern:$0x76325410] }
  0x85   : > { %v1441_v24 = vrot.slane %v1439_v16, 7  ;;  %v1417_v26 = vrot.slane %v1416_v18, 2  ;;  %v9414_v25 = vcombine.high %v7912_v20, %v7912_v20  ;;  %v1454_v27 = vshrl.u32 %v7911_v6, 16 }
  0x86   : > { %v1457_v29 = vshll.u32 %v7911_v6, 16  ;;  %8608 = vmatmul.mubr.msk.bf16.gmra.mrb[36].mxu0 %vm2505_vm1, %v2225_v21  ;;  %v1427_v30 = vrot.slane %v1426_v22, 2  ;;  %v1436_v32 = vor.u32 %v1435_v23, %v1431_v19  ;;  %v1477_v33 = vshrl.u32 %v7912_v20, 16 }
  0x87   : > { %v3001_v34 = vcombine.low %v7910_v11, %v7911_v6  ;;  %8611 = vmatprep.mubr.msk.bf16.mxu0 %vm9033_vm0, %v11285_v1  ;;  %v1422_v35 = vsel %vm9131_vm8, %v1417_v26, %v1421_v14  ;;  %v3002_v36 = vcombine.low %v506_v13, %v7912_v20  ;;  %v871_v37 = vcombine.high %v7952_v63, %v7952_v63 }
  0x88   : > { %v1443_v39 = vshrl.u32 %v7952_v63, 16  ;;  %v1432_v40 = vsel %vm9131_vm8, %v1427_v30, %v1431_v19  ;;  %v1437_v31 = vrot.slane %v1436_v32, 2  ;;  %v2226_v41 = vcombine.low %v1412_v17, %v1422_v35 }
  0x89   : > { %v3009_v42 = vrot.slane %v3001_v34, %v9123_v28  ;;  %v3016_v44 = vrot.slane %v3002_v36, %v9123_v28  ;;  %v1449_v46 = vshll.u32 %v871_v37, 16  ;;  %v1456_v47 = vrot.slane %v1454_v27, 6 }
  0x8a   : > { %v1445_v45 = vrot.slane %v1443_v39, 6  ;;  %v1442_v48 = vsel %vm9131_vm8, %v1437_v31, %v1441_v24  ;;  %v2234_v49 = vrot.slane %v2226_v41, %v9123_v28  ;;  %v1459_v50 = vrot.slane %v1457_v29, 7 }
  0x8b   : > { %v1463_v43 = vshll.u32 %v506_v13, 16  ;;  %v2227_v51 = vcombine.low %v1432_v40, %v1442_v48  ;;  %v3017_v52 = vcombine.low %v3009_v42, %v3016_v44  ;;  %v1451_v54 = vrot.slane %v1449_v46, 7 }
  0x8c   : > { %v1446_v53 = vor.u32 %v1445_v45, %v1441_v24  ;;  %v1460_v56 = vor.u32 %v1459_v50, %v1456_v47  ;;  %v1467_v58 = vshrl.u32 %v506_v13, 16  ;;  %v1473_v59 = vshll.u32 %v7912_v20, 16  ;;  %v7917_v47 = vld.sshfl [vmem:[%s9100_s4 + $0x84] sm:$0x33 pattern:$0x76325410] }
  0x8d   : > { %v1465_v57 = vrot.slane %v1463_v43, 7  ;;  %v2241_v61 = vrot.slane %v2227_v51, %v9123_v28  ;;  %8724 = vmatmul.mubr.msk.bf16.gmra.mrb[44].mxu1 %vm2505_vm1, %v3017_v52  ;;  %v1479_v62 = vrot.slane %v1477_v33, 6  ;;  %v1483_v0 = vshll.u32 %v9414_v25, 16 }
  0x8e   : > { %v1447_v63 = vrot.slane %v1446_v53, 2  ;;  %v1461_v2 = vrot.slane %v1460_v56, 2  ;;  %v1469_v3 = vrot.slane %v1467_v58, 6  ;;  %v1475_v4 = vrot.slane %v1473_v59, 7  ;;  %8727 = vmatprep.mubr.msk.bf16.mxu1 %vm9033_vm0, %v11285_v1 }
  0x8f   : > { %v529_v5 = vcombine.high %v7914_v55, %v7914_v55  ;;  %v2242_v6 = vcombine.low %v2234_v49, %v2241_v61  ;;  %v1485_v8 = vrot.slane %v1483_v0, 7  ;;  %v1508_v9 = vshrl.u32 %v7914_v55, 16 }
  0x90   : > { %v1452_v7 = vsel %vm9131_vm8, %v1447_v63, %v1451_v54  ;;  %v1466_v11 = vsel %vm9131_vm8, %v1461_v2, %v1465_v57  ;;  %v1470_v12 = vor.u32 %v1469_v3, %v1465_v57  ;;  %v1480_v14 = vor.u32 %v1479_v62, %v1475_v4  ;;  %v7916_v54 = vld.sshfl [vmem:[%s9100_s4 + $0x80] sm:$0x3 pattern:$0x76325410] }
  0x91   : > { %v1511_v15 = vshll.u32 %v7914_v55, 16  ;;  %8612 = vmatmul.mubr.msk.bf16.gmra.mrb[40].mxu0 %vm2505_vm1, %v2242_v6  ;;  %v2243_v16 = vcombine.low %v1452_v7, %v1466_v11  ;;  %v3018_v17 = vcombine.low %v9414_v25, %v7913_v60  ;;  %v3019_v18 = vcombine.low %v7914_v55, %v529_v5 }
  0x92   : > { %v879_v19 = vcombine.high %v7953_v10, %v7953_v10  ;;  %8615 = vmatprep.mubr.msk.bf16.mxu0 %vm9033_vm0, %v11285_v1  ;;  %v1471_v20 = vrot.slane %v1470_v12, 2  ;;  %v1481_v13 = vrot.slane %v1480_v14, 2  ;;  %v1487_v21 = vshrl.u32 %v9414_v25, 16 }
  0x93   : > { %v1493_v22 = vshll.u32 %v7953_v10, 16  ;;  %v2251_v23 = vrot.slane %v2243_v16, %v9123_v28  ;;  %v3026_v24 = vrot.slane %v3018_v17, %v9123_v28  ;;  %v3033_v26 = vrot.slane %v3019_v18, %v9123_v28  ;;  %v7915_v25 = vld.sshfl [vmem:[%s9100_s4 + $0x7c] sm:$0x33 pattern:$0x76325410] }
  0x94   : > { %v1497_v27 = vshrl.u32 %v7953_v10, 16  ;;  %v1476_v29 = vsel %vm9131_vm8, %v1471_v20, %v1475_v4  ;;  %v1486_v30 = vsel %vm9131_vm8, %v1481_v13, %v1485_v8  ;;  %v1489_v32 = vrot.slane %v1487_v21, 6 }
  0x95   : > { %v1495_v33 = vrot.slane %v1493_v22, 7  ;;  %v2244_v34 = vcombine.low %v1476_v29, %v1486_v30  ;;  %v3034_v35 = vcombine.low %v3026_v24, %v3033_v26  ;;  %v1503_v37 = vshll.u32 %v879_v19, 16  ;;  %v7918_v22 = vld.sshfl [vmem:[%s9100_s4 + $0x88] sm:$0x33 pattern:$0x76325410] }
  0x96   : > { %v1499_v36 = vrot.slane %v1497_v27, 6  ;;  %v1490_v39 = vor.u32 %v1489_v32, %v1485_v8  ;;  %v1510_v40 = vrot.slane %v1508_v9, 6  ;;  %v1513_v31 = vrot.slane %v1511_v15, 7 }
  0x97   : > { %v1517_v41 = vshll.u32 %v529_v5, 16  ;;  %v2258_v42 = vrot.slane %v2244_v34, %v9123_v28  ;;  %8728 = vmatmul.mubr.msk.bf16.gmra.mrb[48].mxu1 %vm2505_vm1, %v3034_v35  ;;  %v1505_v45 = vrot.slane %v1503_v37, 7  ;;  %v1521_v46 = vshrl.u32 %v529_v5, 16 }
  0x98   : > { %v1500_v44 = vor.u32 %v1499_v36, %v1495_v33  ;;  %v1491_v48 = vrot.slane %v1490_v39, 2  ;;  %v1514_v49 = vor.u32 %v1513_v31, %v1510_v40  ;;  %v1527_v43 = vshll.u32 %v7915_v25, 16  ;;  %8731 = vmatprep.mubr.msk.bf16.mxu1 %vm9033_vm0, %v11285_v1  ;;  %v7954_v5 = vld.sshfl [vmem:[%s9100_s4 + $0x80] sm:$0x13 pattern:$0x76325410] }
  0x99   : > { %v1519_v50 = vrot.slane %v1517_v41, 7  ;;  %v2259_v51 = vcombine.low %v2251_v23, %v2258_v42  ;;  %v1523_v53 = vrot.slane %v1521_v46, 6  ;;  %v537_v55 = vcombine.high %v7915_v25, %v7915_v25  ;;  %v7919_v34 = vld.sshfl [vmem:[%s9100_s4 + $0x8c] sm:$0x3 pattern:$0x76325410] }
  0x9a   : > { %v1501_v52 = vrot.slane %v1500_v44, 2  ;;  %v1496_v56 = vsel %vm9131_vm8, %v1491_v48, %v1495_v33  ;;  %v1515_v57 = vrot.slane %v1514_v49, 2  ;;  %v1529_v58 = vrot.slane %v1527_v43, 7 }
  0x9b   : > { %v9461_v59 = vcombine.high %v7917_v47, %v7917_v47  ;;  %8616 = vmatmul.mubr.msk.bf16.gmra.mrb[44].mxu0 %vm2505_vm1, %v2259_v51  ;;  %v1524_v61 = vor.u32 %v1523_v53, %v1519_v50  ;;  %v1562_v63 = vshrl.u32 %v7917_v47, 16  ;;  %v1565_v62 = vshll.u32 %v7917_v47, 16  ;;  %v7955_v43 = vld.sshfl [vmem:[%s9100_s4 + $0x8c] sm:$0x13 pattern:$0x76325410] }
  0x9c   : > { %v1506_v60 = vsel %vm9131_vm8, %v1501_v52, %v1505_v45  ;;  %8619 = vmatprep.mubr.msk.bf16.mxu0 %vm9033_vm0, %v11285_v1  ;;  %v1520_v0 = vsel %vm9131_vm8, %v1515_v57, %v1519_v50  ;;  %v3035_v3 = vcombine.low %v7915_v25, %v537_v55  ;;  %v3036_v4 = vcombine.low %v7916_v54, %v7917_v47 }
  0x9d   : > { %v2260_v2 = vcombine.low %v1496_v56, %v1506_v60  ;;  %v1525_v6 = vrot.slane %v1524_v61, 2  ;;  %v887_v7 = vcombine.high %v7954_v5, %v7954_v5  ;;  %v1531_v8 = vshrl.u32 %v7915_v25, 16 }
  0x9e   : > { %v1537_v9 = vshll.u32 %v537_v55, 16  ;;  %v3043_v11 = vrot.slane %v3035_v3, %v9123_v28  ;;  %v3050_v12 = vrot.slane %v3036_v4, %v9123_v28  ;;  %v1541_v14 = vshrl.u32 %v537_v55, 16 }
  0x9f   : > { %v2268_v10 = vrot.slane %v2260_v2, %v9123_v28  ;;  %v1530_v15 = vsel %vm9131_vm8, %v1525_v6, %v1529_v58  ;;  %v1533_v16 = vrot.slane %v1531_v8, 6  ;;  %v1547_v18 = vshll.u32 %v7954_v5, 16 }
  0xa0   : > { %v1539_v17 = vrot.slane %v1537_v9, 7  ;;  %v2261_v19 = vcombine.low %v1520_v0, %v1530_v15  ;;  %v3051_v20 = vcombine.low %v3043_v11, %v3050_v12  ;;  %v1543_v13 = vrot.slane %v1541_v14, 6  ;;  %v7920_v0 = vld.sshfl [vmem:[%s9100_s4 + $0x90] sm:$0x33 pattern:$0x76325410] }
  0xa1   : > { %v1551_v21 = vshrl.u32 %v7954_v5, 16  ;;  %v1534_v23 = vor.u32 %v1533_v16, %v1529_v58  ;;  %v1549_v24 = vrot.slane %v1547_v18, 7  ;;  %v1557_v26 = vshll.u32 %v887_v7, 16 }
  0xa2   : > { %v1564_v27 = vrot.slane %v1562_v63, 6  ;;  %v2275_v29 = vrot.slane %v2261_v19, %v9123_v28  ;;  %8732 = vmatmul.mubr.msk.bf16.gmra.mrb[52].mxu1 %vm2505_vm1, %v3051_v20  ;;  %v1544_v30 = vor.u32 %v1543_v13, %v1539_v17  ;;  %v1567_v33 = vrot.slane %v1565_v62, 7  ;;  %v7921_v9 = vld.sshfl [vmem:[%s9100_s4 + $0x94] sm:$0x33 pattern:$0x76325410] }
  0xa3   : > { %v1553_v32 = vrot.slane %v1551_v21, 6  ;;  %v1535_v35 = vrot.slane %v1534_v23, 2  ;;  %v1559_v25 = vrot.slane %v1557_v26, 7  ;;  %v1571_v36 = vshll.u32 %v9461_v59, 16  ;;  %8735 = vmatprep.mubr.msk.bf16.mxu1 %vm9033_vm0, %v11285_v1 }
  0xa4   : > { %v560_v37 = vcombine.high %v7918_v22, %v7918_v22  ;;  %v2276_v39 = vcombine.low %v2268_v10, %v2275_v29  ;;  %v1545_v40 = vrot.slane %v1544_v30, 2  ;;  %v1568_v41 = vor.u32 %v1567_v33, %v1564_v27 }
  0xa5   : > { %v1554_v31 = vor.u32 %v1553_v32, %v1549_v24  ;;  %v1540_v42 = vsel %vm9131_vm8, %v1535_v35, %v1539_v17  ;;  %v1573_v44 = vrot.slane %v1571_v36, 7  ;;  %v1585_v45 = vshrl.u32 %v7918_v22, 16 }
  0xa6   : > { %v3052_v46 = vcombine.low %v9461_v59, %v7918_v22  ;;  %8620 = vmatmul.mubr.msk.bf16.gmra.mrb[48].mxu0 %vm2505_vm1, %v2276_v39  ;;  %v1550_v47 = vsel %vm9131_vm8, %v1545_v40, %v1549_v24  ;;  %v1569_v49 = vrot.slane %v1568_v41, 2  ;;  %v3053_v50 = vcombine.low %v560_v37, %v7919_v34 }
  0xa7   : > { %v1555_v48 = vrot.slane %v1554_v31, 2  ;;  %8623 = vmatprep.mubr.msk.bf16.mxu0 %vm9033_vm0, %v11285_v1  ;;  %v2277_v51 = vcombine.low %v1540_v42, %v1550_v47  ;;  %v895_v53 = vcombine.high %v7955_v43, %v7955_v43  ;;  %v1575_v54 = vshrl.u32 %v9461_v59, 16 }
  0xa8   : > { %v3060_v52 = vrot.slane %v3052_v46, %v9123_v28  ;;  %v1574_v56 = vsel %vm9131_vm8, %v1569_v49, %v1573_v44  ;;  %v3067_v57 = vrot.slane %v3053_v50, %v9123_v28  ;;  %v1581_v58 = vshll.u32 %v7918_v22, 16  ;;  %v7923_v50 = vld.sshfl [vmem:[%s9100_s4 + $0x9c] sm:$0x33 pattern:$0x76325410] }
  0xa9   : > { %v1560_v55 = vsel %vm9131_vm8, %v1555_v48, %v1559_v25  ;;  %v2285_v61 = vrot.slane %v2277_v51, %v9123_v28  ;;  %v1577_v63 = vrot.slane %v1575_v54, 6  ;;  %v1587_v62 = vrot.slane %v1585_v45, 6  ;;  %v7956_v45 = vld.sshfl [vmem:[%s9100_s4 + $0x98] sm:$0x13 pattern:$0x76325410] }
  0xaa   : > { %v2278_v60 = vcombine.low %v1560_v55, %v1574_v56  ;;  %v3068_v2 = vcombine.low %v3060_v52, %v3067_v57  ;;  %v1583_v3 = vrot.slane %v1581_v58, 7  ;;  %v1591_v4 = vshll.u32 %v560_v37, 16  ;;  %v9523_v54 = vld.sshfl [vmem:[%s9100_s4 + $0xa0] sm:$0x33 pattern:$0x76325410] }
  0xab   : > { %v1595_v59 = vshrl.u32 %v560_v37, 16  ;;  %v1578_v6 = vor.u32 %v1577_v63, %v1573_v44  ;;  %v1601_v7 = vshll.u32 %v7955_v43, 16  ;;  %v1605_v8 = vshrl.u32 %v7955_v43, 16 }
  0xac   : > { %v2292_v5 = vrot.slane %v2278_v60, %v9123_v28  ;;  %8736 = vmatmul.mubr.msk.bf16.gmra.mrb[56].mxu1 %vm2505_vm1, %v3068_v2  ;;  %v1588_v10 = vor.u32 %v1587_v62, %v1583_v3  ;;  %v1593_v11 = vrot.slane %v1591_v4, 7  ;;  %v1611_v14 = vshll.u32 %v895_v53, 16 }
  0xad   : > { %v1597_v12 = vrot.slane %v1595_v59, 6  ;;  %v1579_v16 = vrot.slane %v1578_v6, 2  ;;  %v1603_v17 = vrot.slane %v1601_v7, 7  ;;  %v1607_v18 = vrot.slane %v1605_v8, 6  ;;  %8739 = vmatprep.mubr.msk.bf16.mxu1 %vm9033_vm0, %v11285_v1 }
  0xae   : > { %v2293_v15 = vcombine.low %v2285_v61, %v2292_v5  ;;  %v1589_v19 = vrot.slane %v1588_v10, 2  ;;  %v1613_v13 = vrot.slane %v1611_v14, 7  ;;  %v575_v21 = vcombine.high %v7920_v0, %v7920_v0  ;;  %v7922_v59 = vld.sshfl [vmem:[%s9100_s4 + $0x98] sm:$0x3 pattern:$0x76325410] }
  0xaf   : > { %v1598_v20 = vor.u32 %v1597_v12, %v1593_v11  ;;  %v1584_v22 = vsel %vm9131_vm8, %v1579_v16, %v1583_v3  ;;  %v1608_v23 = vor.u32 %v1607_v18, %v1603_v17  ;;  %v583_v24 = vcombine.high %v7921_v9, %v7921_v9 }
  0xb0   : > { %8624 = vmatmul.mubr.msk.bf16.gmra.mrb[52].mxu0 %vm2505_vm1, %v2293_v15  ;;  %v1616_v26 = vshrl.u32 %v7920_v0, 16  ;;  %v1594_v27 = vsel %vm9131_vm8, %v1589_v19, %v1593_v11  ;;  %v1619_v30 = vshll.u32 %v7920_v0, 16  ;;  %v1639_v32 = vshrl.u32 %v7921_v9, 16 }
  0xb1   : > { %8627 = vmatprep.mubr.msk.bf16.mxu0 %vm9033_vm0, %v11285_v1  ;;  %v1599_v29 = vrot.slane %v1598_v20, 2  ;;  %v1609_v33 = vrot.slane %v1608_v23, 2  ;;  %v2294_v34 = vcombine.low %v1584_v22, %v1594_v27  ;;  %v3069_v35 = vcombine.low %v7920_v0, %v575_v21 }
  0xb2   : > { %v3070_v25 = vcombine.low %v7921_v9, %v583_v24  ;;  %v1618_v37 = vrot.slane %v1616_v26, 6  ;;  %v1621_v39 = vrot.slane %v1619_v30, 7  ;;  %v1625_v40 = vshll.u32 %v575_v21, 16 }
  0xb3   : > { %v1604_v36 = vsel %vm9131_vm8, %v1599_v29, %v1603_v17  ;;  %v1614_v31 = vsel %vm9131_vm8, %v1609_v33, %v1613_v13  ;;  %v2302_v41 = vrot.slane %v2294_v34, %v9123_v28  ;;  %v3077_v42 = vrot.slane %v3069_v35, %v9123_v28 }
  0xb4   : > { %v3084_v44 = vrot.slane %v3070_v25, %v9123_v28  ;;  %v2295_v46 = vcombine.low %v1604_v36, %v1614_v31  ;;  %v1622_v47 = vor.u32 %v1621_v39, %v1618_v37  ;;  %v1627_v48 = vrot.slane %v1625_v40, 7  ;;  %v7925_v40 = vld.sshfl [vmem:[%s9100_s4 + $0xa4] sm:$0x3 pattern:$0x76325410] }
  0xb5   : > { %v1629_v49 = vshrl.u32 %v575_v21, 16  ;;  %v1635_v51 = vshll.u32 %v7921_v9, 16  ;;  %v1641_v52 = vrot.slane %v1639_v32, 6  ;;  %v1645_v53 = vshll.u32 %v583_v24, 16 }
  0xb6   : > { %v3085_v43 = vcombine.low %v3077_v42, %v3084_v44  ;;  %v2309_v55 = vrot.slane %v2295_v46, %v9123_v28  ;;  %v1623_v56 = vrot.slane %v1622_v47, 2  ;;  %v1649_v58 = vshrl.u32 %v583_v24, 16  ;;  %v7926_v31 = vld.sshfl [vmem:[%s9100_s4 + $0xa8] sm:$0x33 pattern:$0x76325410] }
  0xb7   : > { %v1631_v57 = vrot.slane %v1629_v49, 6  ;;  %v1637_v60 = vrot.slane %v1635_v51, 7  ;;  %v1647_v61 = vrot.slane %v1645_v53, 7  ;;  %v1655_v63 = vshll.u32 %v7956_v45, 16 }
  0xb8   : > { %8740 = vmatmul.mubr.msk.bf16.gmra.mrb[60].mxu1 %vm2505_vm1, %v3085_v43  ;;  %v598_v62 = vcombine.high %v7923_v50, %v7923_v50  ;;  %v2310_v0 = vcombine.low %v2302_v41, %v2309_v55  ;;  %v1628_v2 = vsel %vm9131_vm8, %v1623_v56, %v1627_v48  ;;  %v1651_v4 = vrot.slane %v1649_v58, 6 }
  0xb9   : > { %v1632_v3 = vor.u32 %v1631_v57, %v1627_v48  ;;  %8743 = vmatprep.mubr.msk.bf16.mxu1 %vm9033_vm0, %v11285_v1  ;;  %v1642_v5 = vor.u32 %v1641_v52, %v1637_v60  ;;  %v1657_v6 = vrot.slane %v1655_v63, 7  ;;  %v9534_v7 = vcombine.high %v9523_v54, %v9523_v54  ;;  %v7957_v57 = vld.sshfl [vmem:[%s9100_s4 + $0xa4] sm:$0x13 pattern:$0x76325410] }
  0xba   : > { %v1670_v8 = vshrl.u32 %v7923_v50, 16  ;;  %8628 = vmatmul.mubr.msk.bf16.gmra.mrb[56].mxu0 %vm2505_vm1, %v2310_v0  ;;  %v1652_v10 = vor.u32 %v1651_v4, %v1647_v61  ;;  %v1673_v11 = vshll.u32 %v7923_v50, 16  ;;  %v1693_v12 = vshrl.u32 %v9523_v54, 16 }
  0xbb   : > { %v1633_v9 = vrot.slane %v1632_v3, 2  ;;  %8631 = vmatprep.mubr.msk.bf16.mxu0 %vm9033_vm0, %v11285_v1  ;;  %v1643_v14 = vrot.slane %v1642_v5, 2  ;;  %v3086_v15 = vcombine.low %v7922_v59, %v7923_v50  ;;  %v3087_v16 = vcombine.low %v598_v62, %v9523_v54 }
  0xbc   : > { %v903_v17 = vcombine.high %v7956_v45, %v7956_v45  ;;  %v1653_v19 = vrot.slane %v1652_v10, 2  ;;  %v1659_v20 = vshrl.u32 %v7956_v45, 16  ;;  %v1672_v13 = vrot.slane %v1670_v8, 6 }
  0xbd   : > { %v1638_v18 = vsel %vm9131_vm8, %v1633_v9, %v1637_v60  ;;  %v1648_v21 = vsel %vm9131_vm8, %v1643_v14, %v1647_v61  ;;  %v3094_v23 = vrot.slane %v3086_v15, %v9123_v28  ;;  %v3101_v24 = vrot.slane %v3087_v16, %v9123_v28  ;;  %v7927_v10 = vld.sshfl [vmem:[%s9100_s4 + $0xac] sm:$0x33 pattern:$0x76325410] }
  0xbe   : > { %v2311_v22 = vcombine.low %v1628_v2, %v1638_v18  ;;  %v1658_v26 = vsel %vm9131_vm8, %v1653_v19, %v1657_v6  ;;  %v1661_v27 = vrot.slane %v1659_v20, 6  ;;  %v1665_v29 = vshll.u32 %v903_v17, 16 }
  0xbf   : > { %v1675_v30 = vrot.slane %v1673_v11, 7  ;;  %v2312_v32 = vcombine.low %v1648_v21, %v1658_v26  ;;  %v3102_v34 = vcombine.low %v3094_v23, %v3101_v24  ;;  %v1679_v35 = vshll.u32 %v598_v62, 16 }
  0xc0   : > { %v2319_v33 = vrot.slane %v2311_v22, %v9123_v28  ;;  %v1662_v25 = vor.u32 %v1661_v27, %v1657_v6  ;;  %v1667_v36 = vrot.slane %v1665_v29, 7  ;;  %v1683_v39 = vshrl.u32 %v598_v62, 16 }
  0xc1   : > { %v1676_v37 = vor.u32 %v1675_v30, %v1672_v13  ;;  %v2326_v41 = vrot.slane %v2312_v32, %v9123_v28  ;;  %8744 = vmatmul.mubr.msk.bf16.gmra.mrb[64].mxu1 %vm2505_vm1, %v3102_v34  ;;  %v1681_v42 = vrot.slane %v1679_v35, 7  ;;  %v1689_v44 = vshll.u32 %v9523_v54, 16  ;;  %v7929_v30 = vld.sshfl [vmem:[%s9100_s4 + $0xb4] sm:$0x33 pattern:$0x76325410] }
  0xc2   : > { %v1695_v45 = vrot.slane %v1693_v12, 6  ;;  %v1663_v46 = vrot.slane %v1662_v25, 2  ;;  %v1685_v48 = vrot.slane %v1683_v39, 6  ;;  %v1699_v49 = vshll.u32 %v9534_v7, 16  ;;  %8747 = vmatprep.mubr.msk.bf16.mxu1 %vm9033_vm0, %v11285_v1 }
  0xc3   : > { %v1677_v47 = vrot.slane %v1676_v37, 2  ;;  %v2327_v50 = vcombine.low %v2319_v33, %v2326_v41  ;;  %v1691_v43 = vrot.slane %v1689_v44, 7  ;;  %v621_v51 = vcombine.high %v7926_v31, %v7926_v31  ;;  %v7928_v35 = vld.sshfl [vmem:[%s9100_s4 + $0xb0] sm:$0x3 pattern:$0x76325410] }
  0xc4   : > { %v1724_v52 = vshrl.u32 %v7926_v31, 16  ;;  %v1668_v53 = vsel %vm9131_vm8, %v1663_v46, %v1667_v36  ;;  %v1686_v54 = vor.u32 %v1685_v48, %v1681_v42  ;;  %v1701_v56 = vrot.slane %v1699_v49, 7  ;;  %v7958_v49 = vld.sshfl [vmem:[%s9100_s4 + $0xb0] sm:$0x13 pattern:$0x76325410] }
  0xc5   : > { %v1682_v55 = vsel %vm9131_vm8, %v1677_v47, %v1681_v42  ;;  %8632 = vmatmul.mubr.msk.bf16.gmra.mrb[60].mxu0 %vm2505_vm1, %v2327_v50  ;;  %v1696_v58 = vor.u32 %v1695_v45, %v1691_v43  ;;  %v1727_v61 = vshll.u32 %v7926_v31, 16  ;;  %v3103_v63 = vcombine.low %v9534_v7, %v7925_v40 }
  0xc6   : > { %v2328_v60 = vcombine.low %v1668_v53, %v1682_v55  ;;  %8635 = vmatprep.mubr.msk.bf16.mxu0 %vm9033_vm0, %v11285_v1  ;;  %v1687_v62 = vrot.slane %v1686_v54, 2  ;;  %v3104_v0 = vcombine.low %v7926_v31, %v621_v51  ;;  %v911_v2 = vcombine.high %v7957_v57, %v7957_v57 }
  0xc7   : > { %v1703_v3 = vshrl.u32 %v9534_v7, 16  ;;  %v1697_v4 = vrot.slane %v1696_v58, 2  ;;  %v3111_v5 = vrot.slane %v3103_v63, %v9123_v28  ;;  %v1709_v6 = vshll.u32 %v7957_v57, 16 }
  0xc8   : > { %v2336_v59 = vrot.slane %v2328_v60, %v9123_v28  ;;  %v1692_v8 = vsel %vm9131_vm8, %v1687_v62, %v1691_v43  ;;  %v3118_v9 = vrot.slane %v3104_v0, %v9123_v28  ;;  %v1713_v12 = vshrl.u32 %v7957_v57, 16 }
  0xc9   : > { %v1705_v11 = vrot.slane %v1703_v3, 6  ;;  %v1702_v14 = vsel %vm9131_vm8, %v1697_v4, %v1701_v56  ;;  %v1711_v15 = vrot.slane %v1709_v6, 7  ;;  %v1719_v7 = vshll.u32 %v911_v2, 16 }
  0xca   : > { %v1726_v16 = vrot.slane %v1724_v52, 6  ;;  %v2329_v17 = vcombine.low %v1692_v8, %v1702_v14  ;;  %v3119_v18 = vcombine.low %v3111_v5, %v3118_v9  ;;  %v1715_v20 = vrot.slane %v1713_v12, 6  ;;  %v7930_v3 = vld.sshfl [vmem:[%s9100_s4 + $0xb8] sm:$0x33 pattern:$0x76325410] }
  0xcb   : > { %v1706_v19 = vor.u32 %v1705_v11, %v1701_v56  ;;  %v1721_v13 = vrot.slane %v1719_v7, 7  ;;  %v1729_v21 = vrot.slane %v1727_v61, 7  ;;  %v1733_v22 = vshll.u32 %v621_v51, 16 }
  0xcc   : > { %v1737_v23 = vshrl.u32 %v621_v51, 16  ;;  %v2343_v24 = vrot.slane %v2329_v17, %v9123_v28  ;;  %8748 = vmatmul.mubr.msk.bf16.gmra.mrb[68].mxu1 %vm2505_vm1, %v3119_v18  ;;  %v1716_v27 = vor.u32 %v1715_v20, %v1711_v15  ;;  %v1743_v29 = vshll.u32 %v7927_v10, 16  ;;  %v7931_v12 = vld.sshfl [vmem:[%s9100_s4 + $0xbc] sm:$0x3 pattern:$0x76325410] }
  0xcd   : > { %v1707_v26 = vrot.slane %v1706_v19, 2  ;;  %v1730_v32 = vor.u32 %v1729_v21, %v1726_v16  ;;  %v1735_v33 = vrot.slane %v1733_v22, 7  ;;  %8751 = vmatprep.mubr.msk.bf16.mxu1 %vm9033_vm0, %v11285_v1  ;;  %v629_v25 = vcombine.high %v7927_v10, %v7927_v10 }
  0xce   : > { %v1739_v34 = vrot.slane %v1737_v23, 6  ;;  %v2344_v36 = vcombine.low %v2336_v59, %v2343_v24  ;;  %v1717_v39 = vrot.slane %v1716_v27, 2  ;;  %v1745_v40 = vrot.slane %v1743_v29, 7 }
  0xcf   : > { %v1712_v37 = vsel %vm9131_vm8, %v1707_v26, %v1711_v15  ;;  %v1731_v31 = vrot.slane %v1730_v32, 2  ;;  %v9584_v42 = vcombine.high %v7929_v30, %v7929_v30  ;;  %v1778_v44 = vshrl.u32 %v7929_v30, 16 }
  0xd0   : > { %v1740_v41 = vor.u32 %v1739_v34, %v1735_v33  ;;  %8636 = vmatmul.mubr.msk.bf16.gmra.mrb[64].mxu0 %vm2505_vm1, %v2344_v36  ;;  %v1722_v45 = vsel %vm9131_vm8, %v1717_v39, %v1721_v13  ;;  %v1781_v46 = vshll.u32 %v7929_v30, 16  ;;  %v3120_v47 = vcombine.low %v7927_v10, %v629_v25 }
  0xd1   : > { %v3121_v48 = vcombine.low %v7928_v35, %v7929_v30  ;;  %8639 = vmatprep.mubr.msk.bf16.mxu0 %vm9033_vm0, %v11285_v1  ;;  %v1736_v50 = vsel %vm9131_vm8, %v1731_v31, %v1735_v33  ;;  %v2345_v51 = vcombine.low %v1712_v37, %v1722_v45  ;;  %v919_v52 = vcombine.high %v7958_v49, %v7958_v49  ;;  %v7959_v30 = vld.sshfl [vmem:[%s9100_s4 + $0xbc] sm:$0x13 pattern:$0x76325410] }
  0xd2   : > { %v1741_v43 = vrot.slane %v1740_v41, 2  ;;  %v3128_v53 = vrot.slane %v3120_v47, %v9123_v28  ;;  %v1747_v54 = vshrl.u32 %v7927_v10, 16  ;;  %v1753_v56 = vshll.u32 %v629_v25, 16 }
  0xd3   : > { %v3135_v55 = vrot.slane %v3121_v48, %v9123_v28  ;;  %v2353_v58 = vrot.slane %v2345_v51, %v9123_v28  ;;  %v1757_v60 = vshrl.u32 %v629_v25, 16  ;;  %v1763_v61 = vshll.u32 %v7958_v49, 16  ;;  %v7932_v45 = vld.sshfl [vmem:[%s9100_s4 + $0xc0] sm:$0x33 pattern:$0x76325410] }
  0xd4   : > { %v1746_v57 = vsel %vm9131_vm8, %v1741_v43, %v1745_v40  ;;  %v1749_v0 = vrot.slane %v1747_v54, 6  ;;  %v1755_v2 = vrot.slane %v1753_v56, 7  ;;  %v1767_v5 = vshrl.u32 %v7958_v49, 16 }
  0xd5   : > { %v2346_v63 = vcombine.low %v1736_v50, %v1746_v57  ;;  %v3136_v62 = vcombine.low %v3128_v53, %v3135_v55  ;;  %v1759_v4 = vrot.slane %v1757_v60, 6  ;;  %v1765_v59 = vrot.slane %v1763_v61, 7  ;;  %v7933_v49 = vld.sshfl [vmem:[%s9100_s4 + $0xc4] sm:$0x33 pattern:$0x76325410] }
  0xd6   : > { %v1773_v6 = vshll.u32 %v919_v52, 16  ;;  %v1750_v9 = vor.u32 %v1749_v0, %v1745_v40  ;;  %v1780_v10 = vrot.slane %v1778_v44, 6  ;;  %v1783_v11 = vrot.slane %v1781_v46, 7 }
  0xd7   : > { %v2360_v8 = vrot.slane %v2346_v63, %v9123_v28  ;;  %8752 = vmatmul.mubr.msk.bf16.gmra.mrb[72].mxu1 %vm2505_vm1, %v3136_v62  ;;  %v1760_v14 = vor.u32 %v1759_v4, %v1755_v2  ;;  %v1769_v15 = vrot.slane %v1767_v5, 6  ;;  %v1787_v16 = vshll.u32 %v9584_v42, 16 }
  0xd8   : > { %v1775_v7 = vrot.slane %v1773_v6, 7  ;;  %8755 = vmatprep.mubr.msk.bf16.mxu1 %vm9033_vm0, %v11285_v1  ;;  %v1751_v18 = vrot.slane %v1750_v9, 2  ;;  %v1784_v19 = vor.u32 %v1783_v11, %v1780_v10  ;;  %v652_v20 = vcombine.high %v7930_v3, %v7930_v3 }
  0xd9   : > { %v2361_v17 = vcombine.low %v2353_v58, %v2360_v8  ;;  %v1761_v13 = vrot.slane %v1760_v14, 2  ;;  %v1770_v21 = vor.u32 %v1769_v15, %v1765_v59  ;;  %v1789_v22 = vrot.slane %v1787_v16, 7 }
  0xda   : > { %v1801_v23 = vshrl.u32 %v7930_v3, 16  ;;  %v1756_v24 = vsel %vm9131_vm8, %v1751_v18, %v1755_v2  ;;  %v1785_v26 = vrot.slane %v1784_v19, 2  ;;  %v3137_v27 = vcombine.low %v9584_v42, %v7930_v3 }
  0xdb   : > { %8640 = vmatmul.mubr.msk.bf16.gmra.mrb[68].mxu0 %vm2505_vm1, %v2361_v17  ;;  %v3138_v29 = vcombine.low %v652_v20, %v7931_v12  ;;  %v1766_v32 = vsel %vm9131_vm8, %v1761_v13, %v1765_v59  ;;  %v1771_v33 = vrot.slane %v1770_v21, 2  ;;  %v927_v34 = vcombine.high %v7959_v30, %v7959_v30 }
  0xdc   : > { %8643 = vmatprep.mubr.msk.bf16.mxu0 %vm9033_vm0, %v11285_v1  ;;  %v1791_v35 = vshrl.u32 %v9584_v42, 16  ;;  %v1790_v25 = vsel %vm9131_vm8, %v1785_v26, %v1789_v22  ;;  %v2362_v36 = vcombine.low %v1756_v24, %v1766_v32  ;;  %v3145_v37 = vrot.slane %v3137_v27, %v9123_v28  ;;  %v7960_v24 = vld.sshfl [vmem:[%s9100_s4 + $0xc8] sm:$0x13 pattern:$0x76325410] }
  0xdd   : > { %v3152_v39 = vrot.slane %v3138_v29, %v9123_v28  ;;  %v1776_v40 = vsel %vm9131_vm8, %v1771_v33, %v1775_v7  ;;  %v1797_v41 = vshll.u32 %v7930_v3, 16  ;;  %v1803_v44 = vrot.slane %v1801_v23, 6 }
  0xde   : > { %v1793_v31 = vrot.slane %v1791_v35, 6  ;;  %v2363_v46 = vcombine.low %v1776_v40, %v1790_v25  ;;  %v2370_v47 = vrot.slane %v2362_v36, %v9123_v28  ;;  %v1807_v42 = vshll.u32 %v652_v20, 16 }
  0xdf   : > { %v3153_v48 = vcombine.low %v3145_v37, %v3152_v39  ;;  %v1799_v43 = vrot.slane %v1797_v41, 7  ;;  %v1811_v51 = vshrl.u32 %v652_v20, 16  ;;  %v1817_v52 = vshll.u32 %v7959_v30, 16 }
  0xe0   : > { %v1794_v50 = vor.u32 %v1793_v31, %v1789_v22  ;;  %v2377_v53 = vrot.slane %v2363_v46, %v9123_v28  ;;  %v1809_v55 = vrot.slane %v1807_v42, 7  ;;  %v1821_v54 = vshrl.u32 %v7959_v30, 16  ;;  %v7934_v39 = vld.sshfl [vmem:[%s9100_s4 + $0xc8] sm:$0x3 pattern:$0x76325410] }
  0xe1   : > { %8756 = vmatmul.mubr.msk.bf16.gmra.mrb[76].mxu1 %vm2505_vm1, %v3153_v48  ;;  %v1827_v56 = vshll.u32 %v927_v34, 16  ;;  %v1804_v58 = vor.u32 %v1803_v44, %v1799_v43  ;;  %v1813_v60 = vrot.slane %v1811_v51, 6  ;;  %v1819_v61 = vrot.slane %v1817_v52, 7 }
  0xe2   : > { %v1795_v57 = vrot.slane %v1794_v50, 2  ;;  %8759 = vmatprep.mubr.msk.bf16.mxu1 %vm9033_vm0, %v11285_v1  ;;  %v2378_v63 = vcombine.low %v2370_v47, %v2377_v53  ;;  %v1823_v62 = vrot.slane %v1821_v54, 6  ;;  %v667_v2 = vcombine.high %v7932_v45, %v7932_v45  ;;  %v7935_v34 = vld.sshfl [vmem:[%s9100_s4 + $0xcc] sm:$0x33 pattern:$0x76325410] }
  0xe3   : > { %v1829_v0 = vrot.slane %v1827_v56, 7  ;;  %v1805_v4 = vrot.slane %v1804_v58, 2  ;;  %v1814_v59 = vor.u32 %v1813_v60, %v1809_v55  ;;  %v675_v5 = vcombine.high %v7933_v49, %v7933_v49  ;;  %v7936_v48 = vld.sshfl [vmem:[%s9100_s4 + $0xd0] sm:$0x33 pattern:$0x76325410] }
  0xe4   : > { %v1800_v3 = vsel %vm9131_vm8, %v1795_v57, %v1799_v43  ;;  %8644 = vmatmul.mubr.msk.bf16.gmra.mrb[72].mxu0 %vm2505_vm1, %v2378_v63  ;;  %v1824_v6 = vor.u32 %v1823_v62, %v1819_v61  ;;  %v1832_v8 = vshrl.u32 %v7932_v45, 16  ;;  %v1835_v9 = vshll.u32 %v7932_v45, 16 }
  0xe5   : > { %v1855_v10 = vshrl.u32 %v7933_v49, 16  ;;  %8647 = vmatprep.mubr.msk.bf16.mxu0 %vm9033_vm0, %v11285_v1  ;;  %v1810_v11 = vsel %vm9131_vm8, %v1805_v4, %v1809_v55  ;;  %v1815_v12 = vrot.slane %v1814_v59, 2  ;;  %v3154_v14 = vcombine.low %v7932_v45, %v667_v2 }
  0xe6   : > { %v3155_v15 = vcombine.low %v7933_v49, %v675_v5  ;;  %v1825_v7 = vrot.slane %v1824_v6, 2  ;;  %v2379_v16 = vcombine.low %v1800_v3, %v1810_v11  ;;  %v1834_v17 = vrot.slane %v1832_v8, 6 }
  0xe7   : > { %v1837_v18 = vrot.slane %v1835_v9, 7  ;;  %v1820_v19 = vsel %vm9131_vm8, %v1815_v12, %v1819_v61  ;;  %v3162_v20 = vrot.slane %v3154_v14, %v9123_v28  ;;  %v1841_v21 = vshll.u32 %v667_v2, 16 }
  0xe8   : > { %v3169_v13 = vrot.slane %v3155_v15, %v9123_v28  ;;  %v1830_v22 = vsel %vm9131_vm8, %v1825_v7, %v1829_v0  ;;  %v2387_v23 = vrot.slane %v2379_v16, %v9123_v28  ;;  %v1845_v27 = vshrl.u32 %v667_v2, 16 }
  0xe9   : > { %v1838_v26 = vor.u32 %v1837_v18, %v1834_v17  ;;  %v2380_v29 = vcombine.low %v1820_v19, %v1830_v22  ;;  %v1843_v32 = vrot.slane %v1841_v21, 7  ;;  %v1851_v33 = vshll.u32 %v7933_v49, 16  ;;  %v7938_v21 = vld.sshfl [vmem:[%s9100_s4 + $0xd8] sm:$0x33 pattern:$0x76325410] }
  0xea   : > { %v3170_v30 = vcombine.low %v3162_v20, %v3169_v13  ;;  %v1847_v25 = vrot.slane %v1845_v27, 6  ;;  %v1857_v36 = vrot.slane %v1855_v10, 6  ;;  %v1861_v37 = vshll.u32 %v675_v5, 16 }
  0xeb   : > { %v1839_v35 = vrot.slane %v1838_v26, 2  ;;  %v2394_v40 = vrot.slane %v2380_v29, %v9123_v28  ;;  %v1853_v31 = vrot.slane %v1851_v33, 7  ;;  %v1865_v41 = vshrl.u32 %v675_v5, 16 }
  0xec   : > { %8760 = vmatmul.mubr.msk.bf16.gmra.mrb[80].mxu1 %vm2505_vm1, %v3170_v30  ;;  %v1871_v44 = vshll.u32 %v7960_v24, 16  ;;  %v1848_v46 = vor.u32 %v1847_v25, %v1843_v32  ;;  %v1863_v47 = vrot.slane %v1861_v37, 7  ;;  %v690_v42 = vcombine.high %v7935_v34, %v7935_v34  ;;  %v7937_v27 = vld.sshfl [vmem:[%s9100_s4 + $0xd4] sm:$0x3 pattern:$0x76325410] }
  0xed   : > { %v1844_v45 = vsel %vm9131_vm8, %v1839_v35, %v1843_v32  ;;  %8763 = vmatprep.mubr.msk.bf16.mxu1 %vm9033_vm0, %v11285_v1  ;;  %v2395_v49 = vcombine.low %v2387_v23, %v2394_v40  ;;  %v1858_v50 = vor.u32 %v1857_v36, %v1853_v31  ;;  %v1867_v43 = vrot.slane %v1865_v41, 6 }
  0xee   : > { %v1873_v51 = vrot.slane %v1871_v44, 7  ;;  %v1849_v52 = vrot.slane %v1848_v46, 2  ;;  %v9653_v53 = vcombine.high %v7936_v48, %v7936_v48  ;;  %v1886_v55 = vshrl.u32 %v7935_v34, 16 }
  0xef   : > { %v1889_v54 = vshll.u32 %v7935_v34, 16  ;;  %8648 = vmatmul.mubr.msk.bf16.gmra.mrb[76].mxu0 %vm2505_vm1, %v2395_v49  ;;  %v1859_v56 = vrot.slane %v1858_v50, 2  ;;  %v1868_v57 = vor.u32 %v1867_v43, %v1863_v47  ;;  %v1909_v58 = vshrl.u32 %v7936_v48, 16 }
  0xf0   : > { %v3171_v60 = vcombine.low %v7934_v39, %v7935_v34  ;;  %8651 = vmatprep.mubr.msk.bf16.mxu0 %vm9033_vm0, %v11285_v1  ;;  %v1854_v63 = vsel %vm9131_vm8, %v1849_v52, %v1853_v31  ;;  %v3172_v62 = vcombine.low %v690_v42, %v7936_v48  ;;  %v935_v0 = vcombine.high %v7960_v24, %v7960_v24  ;;  %v7961_v34 = vld.sshfl [vmem:[%s9100_s4 + $0xd4] sm:$0x13 pattern:$0x76325410] }
  0xf1   : > { %v1875_v2 = vshrl.u32 %v7960_v24, 16  ;;  %v1864_v4 = vsel %vm9131_vm8, %v1859_v56, %v1863_v47  ;;  %v1869_v59 = vrot.slane %v1868_v57, 2  ;;  %v2396_v5 = vcombine.low %v1844_v45, %v1854_v63 }
  0xf2   : > { %v9656_v61 = vpop.f32.mrb[0].mxu1  ;;  %v3179_v6 = vrot.slane %v3171_v60, %v9123_v28  ;;  %v3186_v9 = vrot.slane %v3172_v62, %v9123_v28  ;;  %v1881_v11 = vshll.u32 %v935_v0, 16  ;;  %v1888_v12 = vrot.slane %v1886_v55, 6 }
  0xf3   : > { %v8681_v3 = vpop.f32.mrb[1].mxu1  ;;  %v1877_v10 = vrot.slane %v1875_v2, 6  ;;  %v1874_v15 = vsel %vm9131_vm8, %v1869_v59, %v1873_v51  ;;  %v2404_v7 = vrot.slane %v2396_v5, %v9123_v28  ;;  %v1891_v16 = vrot.slane %v1889_v54, 7 }
  0xf4   : > { %v9665_v8 = vpop.f32.mrb[2].mxu1  ;;  %v1895_v17 = vshll.u32 %v690_v42, 16  ;;  %v2397_v18 = vcombine.low %v1864_v4, %v1874_v15  ;;  %v3187_v19 = vcombine.low %v3179_v6, %v3186_v9  ;;  %v1883_v13 = vrot.slane %v1881_v11, 7 }
  0xf5   : > { %v8682_v14 = vpop.f32.mrb[3].mxu1  ;;  %v1878_v20 = vor.u32 %v1877_v10, %v1873_v51  ;;  %v1892_v22 = vor.u32 %v1891_v16, %v1888_v12  ;;  %v1899_v24 = vshrl.u32 %v690_v42, 16  ;;  %v1905_v26 = vshll.u32 %v7936_v48, 16 }
  0xf6   : > { %v1897_v23 = vrot.slane %v1895_v17, 7  ;;  %v2411_v29 = vrot.slane %v2397_v18, %v9123_v28  ;;  %8764 = vmatmul.mubr.msk.bf16.gmra.mrb[84].mxu1 %vm2505_vm1, %v3187_v19  ;;  %v1911_v32 = vrot.slane %v1909_v58, 6  ;;  %v1915_v33 = vshll.u32 %v9653_v53, 16 }
  0xf7   : > { %v1879_v30 = vrot.slane %v1878_v20, 2  ;;  %v1893_v35 = vrot.slane %v1892_v22, 2  ;;  %v1901_v25 = vrot.slane %v1899_v24, 6  ;;  %v1907_v36 = vrot.slane %v1905_v26, 7  ;;  %8767 = vmatprep.mubr.msk.bf16.mxu1 %vm9033_vm0, %v11285_v1 }
  0xf8   : > { %v713_v37 = vcombine.high %v7938_v21, %v7938_v21  ;;  %v2412_v40 = vcombine.low %v2404_v7, %v2411_v29  ;;  %v1917_v41 = vrot.slane %v1915_v33, 7  ;;  %v1940_v44 = vshrl.u32 %v7938_v21, 16  ;;  %v9698_v2 = vld.sshfl [vmem:[%s9100_s4 + $0xdc] sm:$0x33 pattern:$0x76325410] }
  0xf9   : > { %v1884_v31 = vsel %vm9131_vm8, %v1879_v30, %v1883_v13  ;;  %v1898_v46 = vsel %vm9131_vm8, %v1893_v35, %v1897_v23  ;;  %v1902_v47 = vor.u32 %v1901_v25, %v1897_v23  ;;  %v1912_v48 = vor.u32 %v1911_v32, %v1907_v36  ;;  %v9707_v19 = vld.sshfl [vmem:[%s9100_s4 + $0xe4] sm:$0x33 pattern:$0x76325410] }
  0xfa   : > { %v9679_v39 = vpop.f32.mrb[4].mxu1  ;;  %v1943_v42 = vshll.u32 %v7938_v21, 16  ;;  %8652 = vmatmul.mubr.msk.bf16.gmra.mrb[80].mxu0 %vm2505_vm1, %v2412_v40  ;;  %v2413_v50 = vcombine.low %v1884_v31, %v1898_v46  ;;  %v3188_v43 = vcombine.low %v9653_v53, %v7937_v27  ;;  %v3189_v51 = vcombine.low %v7938_v21, %v713_v37  ;;  %v7940_v23 = vld.sshfl [vmem:[%s9100_s4 + $0xe0] sm:$0x3 pattern:$0x76325410] }
  0xfb   : > { %v8685_v45 = vpop.f32.mrb[5].mxu1  ;;  %v943_v52 = vcombine.high %v7961_v34, %v7961_v34  ;;  %8655 = vmatprep.mubr.msk.bf16.mxu0 %vm9033_vm0, %v11285_v1  ;;  %v1903_v54 = vrot.slane %v1902_v47, 2  ;;  %v1913_v56 = vrot.slane %v1912_v48, 2  ;;  %v1919_v57 = vshrl.u32 %v9653_v53, 16  ;;  %v9692_v60 = vpop.f32.mrb[0].mxu0 }
  0xfc   : > { %v9685_v49 = vpop.f32.mrb[6].mxu1  ;;  %v1925_v58 = vshll.u32 %v7961_v34, 16  ;;  %v2421_v63 = vrot.slane %v2413_v50, %v9123_v28  ;;  %v3196_v62 = vrot.slane %v3188_v43, %v9123_v28  ;;  %v3203_v0 = vrot.slane %v3189_v51, %v9123_v28  ;;  %v8573_v4 = vpop.f32.mrb[1].mxu0 }
  0xfd   : > { %v8686_v55 = vpop.f32.mrb[7].mxu1  ;;  %v1929_v3 = vshrl.u32 %v7961_v34, 16  ;;  %v1908_v59 = vsel %vm9131_vm8, %v1903_v54, %v1907_v36  ;;  %v1918_v53 = vsel %vm9131_vm8, %v1913_v56, %v1917_v41  ;;  %v1921_v5 = vrot.slane %v1919_v57, 6  ;;  %v9704_v9 = vpop.f32.mrb[2].mxu0 }
  0xfe   : > { %v1927_v6 = vrot.slane %v1925_v58, 7  ;;  %v2414_v10 = vcombine.low %v1908_v59, %v1918_v53  ;;  %v3204_v11 = vcombine.low %v3196_v62, %v3203_v0  ;;  %v1935_v14 = vshll.u32 %v943_v52, 16  ;;  %v8574_v15 = vpop.f32.mrb[3].mxu0 }
  0xff   : > { %v1931_v12 = vrot.slane %v1929_v3, 6  ;;  %v1922_v7 = vor.u32 %v1921_v5, %v1917_v41  ;;  %v1942_v16 = vrot.slane %v1940_v44, 6  ;;  %v1945_v17 = vrot.slane %v1943_v42, 7 }
 0x100   : > { %v1949_v18 = vshll.u32 %v713_v37, 16  ;;  %v2428_v20 = vrot.slane %v2414_v10, %v9123_v28  ;;  %8768 = vmatmul.mubr.msk.bf16.gmra.mrb[88].mxu1 %vm2505_vm1, %v3204_v11  ;;  %v1937_v21 = vrot.slane %v1935_v14, 7  ;;  %v1953_v22 = vshrl.u32 %v713_v37, 16 }
 0x101   : > { %v1932_v13 = vor.u32 %v1931_v12, %v1927_v6  ;;  %v1923_v24 = vrot.slane %v1922_v7, 2  ;;  %v1946_v26 = vor.u32 %v1945_v17, %v1942_v16  ;;  %v1959_v29 = vshll.u32 %v9698_v2, 16  ;;  %8771 = vmatprep.mubr.msk.bf16.mxu1 %vm9033_vm0, %v11285_v1  ;;  %v7962_v52 = vld.sshfl [vmem:[%s9100_s4 + $0xe0] sm:$0x13 pattern:$0x76325410] }
 0x102   : > { %v1951_v27 = vrot.slane %v1949_v18, 7  ;;  %v9715_v30 = vpop.f32.mrb[8].mxu1  ;;  %v2429_v32 = vcombine.low %v2421_v63, %v2428_v20  ;;  %v1955_v34 = vrot.slane %v1953_v22, 6  ;;  %v721_v35 = vcombine.high %v9698_v2, %v9698_v2 }
 0x103   : > { %v1933_v33 = vrot.slane %v1932_v13, 2  ;;  %v8689_v25 = vpop.f32.mrb[9].mxu1  ;;  %v1928_v36 = vsel %vm9131_vm8, %v1923_v24, %v1927_v6  ;;  %v1947_v37 = vrot.slane %v1946_v26, 2  ;;  %v1961_v40 = vrot.slane %v1959_v29, 7 }
 0x104   : > { %v9723_v31 = vcombine.high %v9707_v19, %v9707_v19  ;;  %v9725_v41 = vpop.f32.mrb[10].mxu1  ;;  %8656 = vmatmul.mubr.msk.bf16.gmra.mrb[84].mxu0 %vm2505_vm1, %v2429_v32  ;;  %v1956_v45 = vor.u32 %v1955_v34, %v1951_v27  ;;  %v1994_v46 = vshrl.u32 %v9707_v19, 16  ;;  %v1997_v47 = vshll.u32 %v9707_v19, 16 }
 0x105   : > { %v1938_v44 = vsel %vm9131_vm8, %v1933_v33, %v1937_v21  ;;  %v8690_v48 = vpop.f32.mrb[11].mxu1  ;;  %8659 = vmatprep.mubr.msk.bf16.mxu0 %vm9033_vm0, %v11285_v1  ;;  %v1952_v42 = vsel %vm9131_vm8, %v1947_v37, %v1951_v27  ;;  %v3205_v43 = vcombine.low %v9698_v2, %v721_v35  ;;  %v3206_v51 = vcombine.low %v7940_v23, %v9707_v19  ;;  %v7942_v7 = vld.sshfl [vmem:[%s9100_s4 + $0xe8] sm:$0x33 pattern:$0x76325410] }
 0x106   : > { %v2430_v50 = vcombine.low %v1928_v36, %v1938_v44  ;;  %v9739_v55 = vpop.f32.mrb[4].mxu0  ;;  %v1957_v54 = vrot.slane %v1956_v45, 2  ;;  %v951_v56 = vcombine.high %v7962_v52, %v7962_v52  ;;  %v1963_v57 = vshrl.u32 %v9698_v2, 16 }
 0x107   : > { %v1969_v58 = vshll.u32 %v721_v35, 16  ;;  %v8577_v63 = vpop.f32.mrb[5].mxu0  ;;  %v3213_v0 = vrot.slane %v3205_v43, %v9123_v28  ;;  %v3220_v3 = vrot.slane %v3206_v51, %v9123_v28  ;;  %v1973_v4 = vshrl.u32 %v721_v35, 16 }
 0x108   : > { %v2438_v62 = vrot.slane %v2430_v50, %v9123_v28  ;;  %v9745_v59 = vpop.f32.mrb[6].mxu0  ;;  %v1962_v53 = vsel %vm9131_vm8, %v1957_v54, %v1961_v40  ;;  %v1965_v5 = vrot.slane %v1963_v57, 6  ;;  %v1979_v10 = vshll.u32 %v7962_v52, 16 }
 0x109   : > { %v1971_v6 = vrot.slane %v1969_v58, 7  ;;  %v8578_v2 = vpop.f32.mrb[7].mxu0  ;;  %v2431_v11 = vcombine.low %v1952_v42, %v1962_v53  ;;  %v3221_v12 = vcombine.low %v3213_v0, %v3220_v3  ;;  %v1975_v14 = vrot.slane %v1973_v4, 6 }
 0x10a   : > { %v1983_v15 = vshrl.u32 %v7962_v52, 16  ;;  %v1966_v16 = vor.u32 %v1965_v5, %v1961_v40  ;;  %v1981_v17 = vrot.slane %v1979_v10, 7  ;;  %v1989_v18 = vshll.u32 %v951_v56, 16 }
 0x10b   : > { %v1996_v19 = vrot.slane %v1994_v46, 6  ;;  %v2445_v20 = vrot.slane %v2431_v11, %v9123_v28  ;;  %8772 = vmatmul.mubr.msk.bf16.gmra.mrb[92].mxu1 %vm2505_vm1, %v3221_v12  ;;  %v1976_v13 = vor.u32 %v1975_v14, %v1971_v6  ;;  %v1999_v22 = vrot.slane %v1997_v47, 7  ;;  %v7943_v23 = vld.sshfl [vmem:[%s9100_s4 + $0xec] sm:$0x3 pattern:$0x76325410] }
 0x10c   : > { %v1985_v21 = vrot.slane %v1983_v15, 6  ;;  %v1967_v24 = vrot.slane %v1966_v16, 2  ;;  %v1991_v26 = vrot.slane %v1989_v18, 7  ;;  %v2003_v27 = vshll.u32 %v9723_v31, 16  ;;  %8775 = vmatprep.mubr.msk.bf16.mxu1 %vm9033_vm0, %v11285_v1 }
 0x10d   : > { %v744_v29 = vcombine.high %v7942_v7, %v7942_v7  ;;  %v9756_v32 = vpop.f32.mrb[12].mxu1  ;;  %v2446_v33 = vcombine.low %v2438_v62, %v2445_v20  ;;  %v1977_v34 = vrot.slane %v1976_v13, 2  ;;  %v2000_v25 = vor.u32 %v1999_v22, %v1996_v19  ;;  %v7963_v36 = vld.sshfl [vmem:[%s9100_s4 + $0xec] sm:$0x13 pattern:$0x76325410] }
 0x10e   : > { %v1986_v35 = vor.u32 %v1985_v21, %v1981_v17  ;;  %v8693_v37 = vpop.f32.mrb[13].mxu1  ;;  %v1972_v40 = vsel %vm9131_vm8, %v1967_v24, %v1971_v6  ;;  %v2005_v44 = vrot.slane %v2003_v27, 7  ;;  %v2017_v45 = vshrl.u32 %v7942_v7, 16 }
 0x10f   : > { %v3222_v46 = vcombine.low %v9723_v31, %v7942_v7  ;;  %v9762_v47 = vpop.f32.mrb[14].mxu1  ;;  %8660 = vmatmul.mubr.msk.bf16.gmra.mrb[88].mxu0 %vm2505_vm1, %v2446_v33  ;;  %v1982_v48 = vsel %vm9131_vm8, %v1977_v34, %v1981_v17  ;;  %v2001_v50 = vrot.slane %v2000_v25, 2  ;;  %v3223_v43 = vcombine.low %v744_v29, %v7943_v23  ;;  %v9780_v2 = vld.sshfl [vmem:[%s9100_s4 + $0xc] sm:$0x33 pattern:$0x76325410] }
 0x110   : > { %v1987_v42 = vrot.slane %v1986_v35, 2  ;;  %v8694_v51 = vpop.f32.mrb[15].mxu1  ;;  %8663 = vmatprep.mubr.msk.bf16.mxu0 %vm9033_vm0, %v11285_v1  ;;  %v2447_v52 = vcombine.low %v1972_v40, %v1982_v48  ;;  %v959_v56 = vcombine.high %v7963_v36, %v7963_v36  ;;  %v2007_v57 = vshrl.u32 %v9723_v31, 16  ;;  %v9771_v58 = vpop.f32.mrb[8].mxu0 }
 0x111   : > { %v3230_v54 = vrot.slane %v3222_v46, %v9123_v28  ;;  %v2006_v62 = vsel %vm9131_vm8, %v2001_v50, %v2005_v44  ;;  %v3237_v0 = vrot.slane %v3223_v43, %v9123_v28  ;;  %v2013_v3 = vshll.u32 %v7942_v7, 16  ;;  %v8581_v4 = vpop.f32.mrb[9].mxu0  ;;  %v9786_v20 = vld.sshfl [vmem:[%s9100_s4 + $0x10] sm:$0x33 pattern:$0x76325410] }
 0x112   : > { %v1992_v63 = vsel %vm9131_vm8, %v1987_v42, %v1991_v26  ;;  %v2455_v5 = vrot.slane %v2447_v52, %v9123_v28  ;;  %v2009_v6 = vrot.slane %v2007_v57, 6  ;;  %v2019_v10 = vrot.slane %v2017_v45, 6  ;;  %v9782_v31 = vpop.f32.mrb[10].mxu0 }
 0x113   : > { %v2448_v53 = vcombine.low %v1992_v63, %v2006_v62  ;;  %v3238_v11 = vcombine.low %v3230_v54, %v3237_v0  ;;  %v2015_v12 = vrot.slane %v2013_v3, 7  ;;  %v2023_v14 = vshll.u32 %v744_v29, 16  ;;  %v8582_v16 = vpop.f32.mrb[11].mxu0 }
 0x114   : > { %v2027_v15 = vshrl.u32 %v744_v29, 16  ;;  %v2010_v18 = vor.u32 %v2009_v6, %v2005_v44  ;;  %v2033_v7 = vshll.u32 %v7963_v36, 16  ;;  %v2037_v19 = vshrl.u32 %v7963_v36, 16 }
 0x115   : > { %v2462_v17 = vrot.slane %v2448_v53, %v9123_v28  ;;  %8776 = vmatmul.mubr.msk.bf16.gmra.mrb[96].mxu1 %vm2505_vm1, %v3238_v11  ;;  %v2020_v13 = vor.u32 %v2019_v10, %v2015_v12  ;;  %v2025_v21 = vrot.slane %v2023_v14, 7  ;;  %v2043_v23 = vshll.u32 %v959_v56, 16  ;;  %v9808_v43 = vld.sshfl [vmem:[%s9100_s4 + $0x14] sm:$0x13 pattern:$0x76325410] }
 0x116   : > { %v2029_v22 = vrot.slane %v2027_v15, 6  ;;  %v2011_v26 = vrot.slane %v2010_v18, 2  ;;  %v2035_v27 = vrot.slane %v2033_v7, 7  ;;  %v2039_v33 = vrot.slane %v2037_v19, 6  ;;  %8895 = vmatprep.mubr.msk.bf16.mxu1 %vm9033_vm0, %v11285_v1  ;;  %v9791_v29 = vpop.f32.mrb[16].mxu1 }
 0x117   : > { %v2463_v24 = vcombine.low %v2455_v5, %v2462_v17  ;;  %v2021_v34 = vrot.slane %v2020_v13, 2  ;;  %v2045_v25 = vrot.slane %v2043_v23, 7  ;;  %v5095_v36 = vcombine.high %v9780_v2, %v9780_v2  ;;  %v8697_v37 = vpop.f32.mrb[17].mxu1 }
 0x118   : > { %v2030_v35 = vor.u32 %v2029_v22, %v2025_v21  ;;  %v2016_v40 = vsel %vm9131_vm8, %v2011_v26, %v2015_v12  ;;  %v2040_v44 = vor.u32 %v2039_v33, %v2035_v27  ;;  %v5103_v45 = vcombine.high %v9786_v20, %v9786_v20  ;;  %v9801_v48 = vpop.f32.mrb[18].mxu1 }
 0x119   : > { %8664 = vmatmul.mubr.msk.bf16.gmra.mrb[92].mxu0 %vm2505_vm1, %v2463_v24  ;;  %v5569_v46 = vshrl.u32 %v9780_v2, 16  ;;  %v2026_v42 = vsel %vm9131_vm8, %v2021_v34, %v2025_v21  ;;  %v5572_v51 = vshll.u32 %v9780_v2, 16  ;;  %v5578_v52 = vshll.u32 %v5095_v36, 16  ;;  %v8698_v56 = vpop.f32.mrb[19].mxu1 }
 0x11a   : > { %8667 = vmatprep.mubr.msk.bf16.mxu0 %vm9033_vm0, %v11285_v1  ;;  %v2031_v50 = vrot.slane %v2030_v35, 2  ;;  %v9811_v54 = vpop.f32.mrb[12].mxu0  ;;  %v2041_v57 = vrot.slane %v2040_v44, 2  ;;  %v2464_v63 = vcombine.low %v2016_v40, %v2026_v42  ;;  %v5582_v0 = vshrl.u32 %v5095_v36, 16 }
 0x11b   : > { %v5571_v62 = vrot.slane %v5569_v46, 6  ;;  %v8585_v3 = vpop.f32.mrb[13].mxu0  ;;  %v5574_v53 = vrot.slane %v5572_v51, 7  ;;  %v5580_v5 = vrot.slane %v5578_v52, 7  ;;  %v5588_v6 = vshll.u32 %v9786_v20, 16 }
 0x11c   : > { %v2036_v4 = vsel %vm9131_vm8, %v2031_v50, %v2035_v27  ;;  %v9816_v10 = vpop.f32.mrb[14].mxu0  ;;  %v2046_v11 = vsel %vm9131_vm8, %v2041_v57, %v2045_v25  ;;  %v2472_v12 = vrot.slane %v2464_v63, %v9123_v28  ;;  %v5584_v14 = vrot.slane %v5582_v0, 6  ;;  %v9826_v34 = vld.sshfl [vmem:[%s9100_s4 + $0x18] sm:$0x33 pattern:$0x76325410] }
 0x11d   : > { %v5592_v15 = vshrl.u32 %v9786_v20, 16  ;;  %v8586_v16 = vpop.f32.mrb[15].mxu0  ;;  %v2465_v17 = vcombine.low %v2036_v4, %v2046_v11  ;;  %v5575_v18 = vor.u32 %v5574_v53, %v5571_v62  ;;  %v5590_v7 = vrot.slane %v5588_v6, 7 }
 0x11e   : > { %v5598_v19 = vshll.u32 %v5103_v45, 16  ;;  %v5585_v13 = vor.u32 %v5584_v14, %v5580_v5  ;;  %v5602_v22 = vshrl.u32 %v5103_v45, 16  ;;  %v5608_v23 = vshll.u32 %v9808_v43, 16 }
 0x11f   : > { %v5594_v21 = vrot.slane %v5592_v15, 6  ;;  %v2479_v24 = vrot.slane %v2465_v17, %v9123_v28  ;;  %v5576_v26 = vrot.slane %v5575_v18, 2  ;;  %v4161_v33 = vcombine.low %v9780_v2, %v5095_v36  ;;  %v9837_v56 = vld.sshfl [vmem:[%s9100_s4 + $0x1c] sm:$0x33 pattern:$0x76325410] }
 0x120   : > { %v5600_v27 = vrot.slane %v5598_v19, 7  ;;  %v5586_v35 = vrot.slane %v5585_v13, 2  ;;  %v5604_v37 = vrot.slane %v5602_v22, 6  ;;  %v5610_v40 = vrot.slane %v5608_v23, 7 }
 0x121   : > { %v5595_v25 = vor.u32 %v5594_v21, %v5590_v7  ;;  %v2480_v44 = vcombine.low %v2472_v12, %v2479_v24  ;;  %v5581_v46 = vsel %vm9131_vm8, %v5576_v26, %v5580_v5  ;;  %v4162_v42 = vcombine.low %v9786_v20, %v5103_v45  ;;  %v8092_v18 = vld.sshfl [vmem:[%s9100_s4 + $0x14] sm:$0x3 pattern:$0x76325410] }
 0x122   : > { %v4169_v50 = vrot.slane %v4161_v33, %v9123_v28  ;;  %v9832_v51 = vpop.f32.mrb[20].mxu1  ;;  %v5591_v52 = vsel %vm9131_vm8, %v5586_v35, %v5590_v7  ;;  %v5605_v36 = vor.u32 %v5604_v37, %v5600_v27  ;;  %v5111_v57 = vcombine.high %v9808_v43, %v9808_v43 }
 0x123   : > { %v5596_v2 = vrot.slane %v5595_v25, 2  ;;  %v8701_v63 = vpop.f32.mrb[21].mxu1  ;;  %8668 = vmatmul.mubr.msk.bf16.gmra.mrb[96].mxu0 %vm2505_vm1, %v2480_v44  ;;  %v6657_v62 = vcombine.low %v5581_v46, %v5591_v52  ;;  %v4176_v20 = vrot.slane %v4162_v42, %v9123_v28  ;;  %v5119_v45 = vcombine.high %v9826_v34, %v9826_v34 }
 0x124   : > { %v9847_v0 = vcombine.high %v9837_v56, %v9837_v56  ;;  %v9849_v3 = vpop.f32.mrb[22].mxu1  ;;  %8787 = vmatprep.mubr.msk.bf16.mxu0 %vm9033_vm0, %v11285_v1  ;;  %v5606_v53 = vrot.slane %v5605_v36, 2  ;;  %v5612_v5 = vshrl.u32 %v9808_v43, 16  ;;  %v5618_v6 = vshll.u32 %v5111_v57, 16  ;;  %v9856_v11 = vpop.f32.mrb[16].mxu0 }
 0x125   : > { %v5601_v4 = vsel %vm9131_vm8, %v5596_v2, %v5600_v27  ;;  %v8702_v12 = vpop.f32.mrb[23].mxu1  ;;  %v6665_v14 = vrot.slane %v6657_v62, %v9123_v28  ;;  %v4177_v15 = vcombine.low %v4169_v50, %v4176_v20  ;;  %v5623_v16 = vshrl.u32 %v9826_v34, 16  ;;  %v8589_v7 = vpop.f32.mrb[17].mxu0 }
 0x126   : > { %v5626_v17 = vshll.u32 %v9826_v34, 16  ;;  %v5611_v19 = vsel %vm9131_vm8, %v5606_v53, %v5610_v40  ;;  %v5614_v13 = vrot.slane %v5612_v5, 6  ;;  %v5620_v21 = vrot.slane %v5618_v6, 7  ;;  %v9864_v43 = vpop.f32.mrb[18].mxu0 }
 0x127   : > { %v5632_v22 = vshll.u32 %v5119_v45, 16  ;;  %v6658_v23 = vcombine.low %v5601_v4, %v5611_v19  ;;  %v5625_v24 = vrot.slane %v5623_v16, 6  ;;  %v5636_v27 = vshrl.u32 %v5119_v45, 16  ;;  %v8590_v33 = vpop.f32.mrb[19].mxu0 }
 0x128   : > { %v5628_v26 = vrot.slane %v5626_v17, 7  ;;  %v5615_v35 = vor.u32 %v5614_v13, %v5610_v40  ;;  %v5642_v37 = vshll.u32 %v9837_v56, 16  ;;  %v5646_v44 = vshrl.u32 %v9837_v56, 16 }
 0x129   : > { %v5634_v25 = vrot.slane %v5632_v22, 7  ;;  %v6672_v46 = vrot.slane %v6658_v23, %v9123_v28  ;;  %v5638_v50 = vrot.slane %v5636_v27, 6  ;;  %v5652_v52 = vshll.u32 %v9847_v0, 16 }
 0x12a   : > { %v5629_v42 = vor.u32 %v5628_v26, %v5625_v24  ;;  %v5616_v2 = vrot.slane %v5615_v35, 2  ;;  %v5644_v36 = vrot.slane %v5642_v37, 7  ;;  %v5648_v57 = vrot.slane %v5646_v44, 6 }
 0x12b   : > { %v4178_v63 = vcombine.low %v8092_v18, %v9826_v34  ;;  %v9872_v62 = vld.sshfl [vmem:[%s9100_s4 + $0x24] sm:$0x33 pattern:$0x76325410]  ;;  %v6673_v40 = vcombine.low %v6665_v14, %v6672_v46  ;;  %8788 = vmatmul.mubr.msk.bf16.vlgmr.msra.gmra.mrb[100].mxu0 %vm2505_vm1, %v4177_v15  ;;  %v5639_v4 = vor.u32 %v5638_v50, %v5634_v25  ;;  %v5654_v53 = vrot.slane %v5652_v52, 7  ;;  %v9875_v5 = vpop.f32.mrb[24].mxu1 }
 0x12c   : > { %v5630_v20 = vrot.slane %v5629_v42, 2  ;;  %8791 = vmatprep.mubr.msk.bf16.mxu0 %vm9033_vm0, %v11285_v1  ;;  %v5621_v6 = vsel %vm9131_vm8, %v5616_v2, %v5620_v21  ;;  %v5649_v12 = vor.u32 %v5648_v57, %v5644_v36  ;;  %v4179_v16 = vcombine.low %v5119_v45, %v9837_v56  ;;  %v8252_v17 = vld.sshfl [vmem:[%s9100_s4 + $0x20] sm:$0x13 pattern:$0x76325410]  ;;  %v8705_v14 = vpop.f32.mrb[25].mxu1 }
 0x12d   : > { %v4186_v34 = vrot.slane %v4178_v63, %v9123_v28  ;;  %8896 = vmatmul.mubr.msk.bf16.vlgmr.msra.gmra.mrb[100].mxu1 %vm2505_vm1, %v6673_v40  ;;  %v5640_v18 = vrot.slane %v5639_v4, 2  ;;  %v9889_v7 = vadd.f32 %v9656_v61, %v9692_v60  ;;  %v9893_v19 = vadd.f32 %v9665_v8, %v9704_v9  ;;  %v9895_v56 = vpop.f32.mrb[26].mxu1  ;;  %v9911_v35 = vld.sshfl [vmem:[%s9100_s4 + $0x28] sm:$0x33 pattern:$0x76325410] }
 0x12e   : > { %v5635_v15 = vsel %vm9131_vm8, %v5630_v20, %v5634_v25  ;;  %8899 = vmatprep.mubr.msk.bf16.mxu1 %vm9033_vm0, %v11285_v1  ;;  %v5650_v45 = vrot.slane %v5649_v12, 2  ;;  %v4193_v21 = vrot.slane %v4179_v16, %v9123_v28  ;;  %v5135_v22 = vcombine.high %v8252_v17, %v8252_v17  ;;  %v8706_v23 = vpop.f32.mrb[27].mxu1  ;;  %v8095_v16 = vld.sshfl [vmem:[%s9100_s4 + $0x20] sm:$0x3 pattern:$0x76325410] }
 0x12f   : > { %v6674_v13 = vcombine.low %v5621_v6, %v5635_v15  ;;  %v5645_v61 = vsel %vm9131_vm8, %v5640_v18, %v5644_v36  ;;  %v5143_v60 = vcombine.high %v9872_v62, %v9872_v62  ;;  %v5656_v8 = vshrl.u32 %v9847_v0, 16  ;;  %v9905_v24 = vpop.f32.mrb[20].mxu0 }
 0x130   : > { %v5662_v9 = vshll.u32 %v8252_v17, 16  ;;  %v5655_v26 = vsel %vm9131_vm8, %v5650_v45, %v5654_v53  ;;  %v4194_v33 = vcombine.low %v4186_v34, %v4193_v21  ;;  %v5666_v25 = vshrl.u32 %v8252_v17, 16  ;;  %v8593_v37 = vpop.f32.mrb[21].mxu0 }
 0x131   : > { %v6682_v27 = vrot.slane %v6674_v13, %v9123_v28  ;;  %v6675_v44 = vcombine.low %v5645_v61, %v5655_v26  ;;  %v5658_v46 = vrot.slane %v5656_v8, 6  ;;  %v5672_v50 = vshll.u32 %v5135_v22, 16  ;;  %v9913_v52 = vpop.f32.mrb[22].mxu0 }
 0x132   : > { %v5664_v42 = vrot.slane %v5662_v9, 7  ;;  %v5668_v2 = vrot.slane %v5666_v25, 6  ;;  %v5677_v36 = vshrl.u32 %v9872_v62, 16  ;;  %v5680_v57 = vshll.u32 %v9872_v62, 16  ;;  %v8594_v40 = vpop.f32.mrb[23].mxu0 }
 0x133   : > { %v5686_v63 = vshll.u32 %v5143_v60, 16  ;;  %v6689_v20 = vrot.slane %v6675_v44, %v9123_v28  ;;  %8792 = vmatmul.mubr.msk.bf16.gmra.mrb[104].mxu0 %vm2505_vm1, %v4194_v33  ;;  %v5659_v4 = vor.u32 %v5658_v46, %v5654_v53  ;;  %v5674_v6 = vrot.slane %v5672_v50, 7  ;;  %v8255_v44 = vld.sshfl [vmem:[%s9100_s4 + $0x2c] sm:$0x13 pattern:$0x76325410] }
 0x134   : > { %v5690_v12 = vshrl.u32 %v5143_v60, 16  ;;  %8795 = vmatprep.mubr.msk.bf16.mxu0 %vm9033_vm0, %v11285_v1  ;;  %v5669_v34 = vor.u32 %v5668_v2, %v5664_v42  ;;  %v5679_v17 = vrot.slane %v5677_v36, 6  ;;  %v5682_v14 = vrot.slane %v5680_v57, 7 }
 0x135   : > { %v5688_v15 = vrot.slane %v5686_v63, 7  ;;  %v6690_v18 = vcombine.low %v6682_v27, %v6689_v20  ;;  %v5660_v45 = vrot.slane %v5659_v4, 2  ;;  %v5696_v21 = vshll.u32 %v9911_v35, 16 }
 0x136   : > { %v5692_v13 = vrot.slane %v5690_v12, 6  ;;  %v5670_v22 = vrot.slane %v5669_v34, 2  ;;  %v5683_v23 = vor.u32 %v5682_v14, %v5679_v17  ;;  %v4195_v53 = vcombine.low %v9847_v0, %v8095_v16  ;;  %v9925_v8 = vpop.f32.mrb[28].mxu1 }
 0x137   : > { %v4196_v61 = vcombine.low %v9872_v62, %v5143_v60  ;;  %8900 = vmatmul.mubr.msk.bf16.gmra.mrb[104].mxu1 %vm2505_vm1, %v6690_v18  ;;  %v5665_v9 = vsel %vm9131_vm8, %v5660_v45, %v5664_v42  ;;  %v5698_v27 = vrot.slane %v5696_v21, 7  ;;  %v9932_v33 = vadd.f32 %v9679_v39, %v9739_v55  ;;  %v8709_v25 = vpop.f32.mrb[29].mxu1  ;;  %v8256_v55 = vld.sshfl [vmem:[%s9100_s4 + $0x30] sm:$0x33 pattern:$0x76325410] }
 0x138   : > { %v5693_v26 = vor.u32 %v5692_v13, %v5688_v15  ;;  %8903 = vmatprep.mubr.msk.bf16.mxu1 %vm9033_vm0, %v11285_v1  ;;  %v5675_v0 = vsel %vm9131_vm8, %v5670_v22, %v5674_v6  ;;  %v5684_v62 = vrot.slane %v5683_v23, 2  ;;  %v4203_v60 = vrot.slane %v4195_v53, %v9123_v28  ;;  %v9941_v46 = vpop.f32.mrb[30].mxu1  ;;  %v8098_v18 = vld.sshfl [vmem:[%s9100_s4 + $0x2c] sm:$0x3 pattern:$0x76325410] }
 0x139   : > { %v4210_v37 = vrot.slane %v4196_v61, %v9123_v28  ;;  %v6691_v50 = vcombine.low %v5665_v9, %v5675_v0  ;;  %v9945_v39 = vadd.f32 %v9685_v49, %v9745_v59  ;;  %v5151_v2 = vcombine.high %v9911_v35, %v9911_v35  ;;  %v8710_v36 = vpop.f32.mrb[31].mxu1 }
 0x13a   : > { %v5694_v42 = vrot.slane %v5693_v26, 2  ;;  %v5689_v57 = vsel %vm9131_vm8, %v5684_v62, %v5688_v15  ;;  %v5159_v40 = vcombine.high %v8255_v44, %v8255_v44  ;;  %v9952_v20 = vcombine.high %v8256_v55, %v8256_v55  ;;  %v9954_v4 = vpop.f32.mrb[24].mxu0 }
 0x13b   : > { %v4211_v63 = vcombine.low %v4203_v60, %v4210_v37  ;;  %v6699_v49 = vrot.slane %v6691_v50, %v9123_v28  ;;  %v5700_v59 = vshrl.u32 %v9911_v35, 16  ;;  %v5706_v12 = vshll.u32 %v5151_v2, 16  ;;  %v8597_v16 = vpop.f32.mrb[25].mxu0 }
 0x13c   : > { %v5699_v6 = vsel %vm9131_vm8, %v5694_v42, %v5698_v27  ;;  %v5710_v17 = vshrl.u32 %v5151_v2, 16  ;;  %v5716_v14 = vshll.u32 %v8255_v44, 16  ;;  %v5720_v15 = vshrl.u32 %v8255_v44, 16  ;;  %v9962_v45 = vpop.f32.mrb[26].mxu0 }
 0x13d   : > { %v6692_v34 = vcombine.low %v5689_v57, %v5699_v6  ;;  %8796 = vmatmul.mubr.msk.bf16.gmra.mrb[108].mxu0 %vm2505_vm1, %v4211_v63  ;;  %v5702_v13 = vrot.slane %v5700_v59, 6  ;;  %v5708_v21 = vrot.slane %v5706_v12, 7  ;;  %v5726_v22 = vshll.u32 %v5159_v40, 16  ;;  %v8598_v53 = vpop.f32.mrb[27].mxu0 }
 0x13e   : > { %8799 = vmatprep.mubr.msk.bf16.mxu0 %vm9033_vm0, %v11285_v1  ;;  %v5731_v23 = vshrl.u32 %v8256_v55, 16  ;;  %v5712_v9 = vrot.slane %v5710_v17, 6  ;;  %v5718_v26 = vrot.slane %v5716_v14, 7  ;;  %v5722_v25 = vrot.slane %v5720_v15, 6 }
 0x13f   : > { %v6706_v61 = vrot.slane %v6692_v34, %v9123_v28  ;;  %v5703_v0 = vor.u32 %v5702_v13, %v5698_v27  ;;  %v5728_v62 = vrot.slane %v5726_v22, 7  ;;  %v5734_v37 = vshll.u32 %v8256_v55, 16  ;;  %v9969_v57 = vld.sshfl [vmem:[%s9100_s4 + $0x34] sm:$0x33 pattern:$0x76325410] }
 0x140   : > { %v5733_v60 = vrot.slane %v5731_v23, 6  ;;  %v5713_v42 = vor.u32 %v5712_v9, %v5708_v21  ;;  %v5723_v50 = vor.u32 %v5722_v25, %v5718_v26  ;;  %v5740_v36 = vshll.u32 %v9952_v20, 16  ;;  %v8258_v22 = vld.sshfl [vmem:[%s9100_s4 + $0x38] sm:$0x13 pattern:$0x76325410] }
 0x141   : > { %v6707_v44 = vcombine.low %v6699_v49, %v6706_v61  ;;  %v9971_v63 = vpop.f32.mrb[32].mxu1  ;;  %v5704_v40 = vrot.slane %v5703_v0, 2  ;;  %v5736_v6 = vrot.slane %v5734_v37, 7  ;;  %v4212_v59 = vcombine.low %v9911_v35, %v5151_v2 }
 0x142   : > { %v4213_v12 = vcombine.low %v8098_v18, %v8256_v55  ;;  %v8713_v16 = vpop.f32.mrb[33].mxu1  ;;  %v5714_v27 = vrot.slane %v5713_v42, 2  ;;  %v5724_v34 = vrot.slane %v5723_v50, 2  ;;  %v5742_v49 = vrot.slane %v5740_v36, 7 }
 0x143   : > { %8904 = vmatmul.mubr.msk.bf16.gmra.mrb[108].mxu1 %vm2505_vm1, %v6707_v44  ;;  %v9977_v17 = vadd.f32 %v9715_v30, %v9771_v58  ;;  %v9979_v14 = vpop.f32.mrb[34].mxu1  ;;  %v5709_v35 = vsel %vm9131_vm8, %v5704_v40, %v5708_v21  ;;  %v5737_v55 = vor.u32 %v5736_v6, %v5733_v60  ;;  %v4220_v2 = vrot.slane %v4212_v59, %v9123_v28 }
 0x144   : > { %8907 = vmatprep.mubr.msk.bf16.mxu1 %vm9033_vm0, %v11285_v1  ;;  %v4227_v15 = vrot.slane %v4213_v12, %v9123_v28  ;;  %v8714_v18 = vpop.f32.mrb[35].mxu1  ;;  %v5719_v13 = vsel %vm9131_vm8, %v5714_v27, %v5718_v26  ;;  %v5729_v30 = vsel %vm9131_vm8, %v5724_v34, %v5728_v62  ;;  %v9993_v58 = vadd.f32 %v9725_v41, %v9782_v31  ;;  %v8101_v41 = vld.sshfl [vmem:[%s9100_s4 + $0x38] sm:$0x3 pattern:$0x76325410] }
 0x145   : > { %v5175_v21 = vcombine.high %v9969_v57, %v9969_v57  ;;  %v9998_v23 = vpop.f32.mrb[28].mxu0  ;;  %v5738_v53 = vrot.slane %v5737_v55, 2  ;;  %v6708_v61 = vcombine.low %v5709_v35, %v5719_v13  ;;  %v5183_v25 = vcombine.high %v8258_v22, %v8258_v22 }
 0x146   : > { %11293 = vst [vmem:[#allocation2_spill] sm:$0xff] %v9993_v58  ;;  %v4228_v9 = vcombine.low %v4220_v2, %v4227_v15  ;;  %v8601_v0 = vpop.f32.mrb[29].mxu0  ;;  %v5744_v26 = vshrl.u32 %v9952_v20, 16  ;;  %v5750_v60 = vshll.u32 %v9969_v57, 16  ;;  %v5754_v62 = vshrl.u32 %v9969_v57, 16 }
 0x147   : > { %v5760_v37 = vshll.u32 %v5175_v21, 16  ;;  %v10004_v31 = vpop.f32.mrb[30].mxu0  ;;  %v5743_v44 = vsel %vm9131_vm8, %v5738_v53, %v5742_v49  ;;  %v6716_v42 = vrot.slane %v6708_v61, %v9123_v28  ;;  %v5764_v50 = vshrl.u32 %v5175_v21, 16 }
 0x148   : > { %8800 = vmatmul.mubr.msk.bf16.gmra.mrb[112].mxu0 %vm2505_vm1, %v4228_v9  ;;  %v5770_v36 = vshll.u32 %v8258_v22, 16  ;;  %v8602_v40 = vpop.f32.mrb[31].mxu0  ;;  %v6709_v6 = vcombine.low %v5729_v30, %v5743_v44  ;;  %v5746_v59 = vrot.slane %v5744_v26, 6  ;;  %v5752_v12 = vrot.slane %v5750_v60, 7 }
 0x149   : > { %8803 = vmatprep.mubr.msk.bf16.mxu0 %vm9033_vm0, %v11285_v1  ;;  %v5756_v16 = vrot.slane %v5754_v62, 6  ;;  %v5762_v27 = vrot.slane %v5760_v37, 7  ;;  %v5766_v34 = vrot.slane %v5764_v50, 6  ;;  %v5774_v55 = vshrl.u32 %v8258_v22, 16 }
 0x14a   : > { %v5772_v35 = vrot.slane %v5770_v36, 7  ;;  %v6723_v2 = vrot.slane %v6709_v6, %v9123_v28  ;;  %v5747_v15 = vor.u32 %v5746_v59, %v5742_v49  ;;  %v5780_v13 = vshll.u32 %v5183_v25, 16  ;;  %v10018_v26 = vld.sshfl [vmem:[%s9100_s4 + $0x3c] sm:$0x33 pattern:$0x76325410] }
 0x14b   : > { %v5757_v18 = vor.u32 %v5756_v16, %v5752_v12  ;;  %v10013_v53 = vpop.f32.mrb[36].mxu1  ;;  %v5767_v30 = vor.u32 %v5766_v34, %v5762_v27  ;;  %v5776_v61 = vrot.slane %v5774_v55, 6  ;;  %v4229_v9 = vcombine.low %v9952_v20, %v9969_v57  ;;  %v10025_v6 = vld.sshfl [vmem:[%s9100_s4 + $0x40] sm:$0x33 pattern:$0x76325410] }
 0x14c   : > { %v4230_v0 = vcombine.low %v5175_v21, %v8101_v41  ;;  %v8717_v60 = vpop.f32.mrb[37].mxu1  ;;  %v6724_v62 = vcombine.low %v6716_v42, %v6723_v2  ;;  %v5748_v37 = vrot.slane %v5747_v15, 2  ;;  %v5782_v44 = vrot.slane %v5780_v13, 7 }
 0x14d   : > { %v5758_v22 = vrot.slane %v5757_v18, 2  ;;  %v10020_v50 = vpop.f32.mrb[38].mxu1  ;;  %v5768_v49 = vrot.slane %v5767_v30, 2  ;;  %v5777_v25 = vor.u32 %v5776_v61, %v5772_v35  ;;  %v4237_v36 = vrot.slane %v4229_v9, %v9123_v28 }
 0x14e   : > { %v4244_v40 = vrot.slane %v4230_v0, %v9123_v28  ;;  %v8718_v20 = vpop.f32.mrb[39].mxu1  ;;  %8908 = vmatmul.mubr.msk.bf16.gmra.mrb[112].mxu1 %vm2505_vm1, %v6724_v62  ;;  %v5753_v57 = vsel %vm9131_vm8, %v5748_v37, %v5752_v12  ;;  %v10034_v41 = vadd.f32 %v9756_v32, %v9811_v54  ;;  %v10038_v42 = vadd.f32 %v9762_v47, %v9816_v10  ;;  %v10040_v59 = vpop.f32.mrb[32].mxu0  ;;  %v10047_v2 = vld.sshfl [vmem:[%s9100_s4 + $0x44] sm:$0x13 pattern:$0x76325410] }
 0x14f   : > { %v5763_v21 = vsel %vm9131_vm8, %v5758_v22, %v5762_v27  ;;  %8911 = vmatprep.mubr.msk.bf16.mxu1 %vm9033_vm0, %v11285_v1  ;;  %v5773_v16 = vsel %vm9131_vm8, %v5768_v49, %v5772_v35  ;;  %v5778_v12 = vrot.slane %v5777_v25, 2  ;;  %v8605_v27 = vpop.f32.mrb[33].mxu0  ;;  %v5191_v32 = vcombine.high %v10018_v26, %v10018_v26 }
 0x150   : > { %11294 = vst [vmem:[#allocation3_spill] sm:$0xff] %v10034_v41  ;;  %11295 = vst [vmem:[#allocation4_spill] sm:$0xff] %v10038_v42  ;;  %v6725_v34 = vcombine.low %v5753_v57, %v5763_v21  ;;  %v4245_v55 = vcombine.low %v4237_v36, %v4244_v40  ;;  %v5199_v47 = vcombine.high %v10025_v6, %v10025_v6  ;;  %v5785_v54 = vshrl.u32 %v10018_v26, 16  ;;  %v10055_v15 = vpop.f32.mrb[34].mxu0 }
 0x151   : > { %v5788_v10 = vshll.u32 %v10018_v26, 16  ;;  %v5783_v35 = vsel %vm9131_vm8, %v5778_v12, %v5782_v44  ;;  %v5804_v13 = vshll.u32 %v10025_v6, 16  ;;  %v5808_v30 = vshrl.u32 %v10025_v6, 16  ;;  %v8606_v61 = vpop.f32.mrb[35].mxu0 }
 0x152   : > { %v6733_v18 = vrot.slane %v6725_v34, %v9123_v28  ;;  %8804 = vmatmul.mubr.msk.bf16.gmra.mrb[116].mxu0 %vm2505_vm1, %v4245_v55  ;;  %v6726_v9 = vcombine.low %v5773_v16, %v5783_v35  ;;  %v5787_v0 = vrot.slane %v5785_v54, 6  ;;  %v5794_v62 = vshll.u32 %v5191_v32, 16  ;;  %v10068_v34 = vld.sshfl [vmem:[%s9100_s4 + $0x48] sm:$0x33 pattern:$0x76325410] }
 0x153   : > { %8807 = vmatprep.mubr.msk.bf16.mxu0 %vm9033_vm0, %v11285_v1  ;;  %v5790_v60 = vrot.slane %v5788_v10, 7  ;;  %v5798_v37 = vshrl.u32 %v5191_v32, 16  ;;  %v5806_v22 = vrot.slane %v5804_v13, 7  ;;  %v5810_v44 = vrot.slane %v5808_v30, 6 }
 0x154   : > { %v5814_v49 = vshll.u32 %v5199_v47, 16  ;;  %v6740_v25 = vrot.slane %v6726_v9, %v9123_v28  ;;  %v5796_v40 = vrot.slane %v5794_v62, 7  ;;  %v5818_v20 = vshrl.u32 %v5199_v47, 16 }
 0x155   : > { %v5791_v36 = vor.u32 %v5790_v60, %v5787_v0  ;;  %v5800_v57 = vrot.slane %v5798_v37, 6  ;;  %v5811_v21 = vor.u32 %v5810_v44, %v5806_v22  ;;  %v5824_v16 = vshll.u32 %v10047_v2, 16 }
 0x156   : > { %v5816_v12 = vrot.slane %v5814_v49, 7  ;;  %v10070_v55 = vpop.f32.mrb[40].mxu1  ;;  %v6741_v27 = vcombine.low %v6733_v18, %v6740_v25  ;;  %v5820_v10 = vrot.slane %v5818_v20, 6  ;;  %v4246_v35 = vcombine.low %v10018_v26, %v5191_v32 }
 0x157   : > { %v5792_v54 = vrot.slane %v5791_v36, 2  ;;  %v8721_v13 = vpop.f32.mrb[41].mxu1  ;;  %v5801_v30 = vor.u32 %v5800_v57, %v5796_v40  ;;  %v5812_v61 = vrot.slane %v5811_v21, 2  ;;  %v5826_v9 = vrot.slane %v5824_v16, 7 }
 0x158   : > { %v4247_v0 = vcombine.low %v10025_v6, %v5199_v47  ;;  %v10074_v60 = vpop.f32.mrb[42].mxu1  ;;  %8912 = vmatmul.mubr.msk.bf16.gmra.mrb[116].mxu1 %vm2505_vm1, %v6741_v27  ;;  %v5821_v37 = vor.u32 %v5820_v10, %v5816_v12  ;;  %v4254_v18 = vrot.slane %v4246_v35, %v9123_v28  ;;  %v10082_v26 = vadd.f32 %v9791_v29, %v9856_v11  ;;  %v10094_v25 = vld.sshfl [vmem:[%s9100_s4 + $0x4c] sm:$0x33 pattern:$0x76325410] }
 0x159   : > { %v5797_v62 = vsel %vm9131_vm8, %v5792_v54, %v5796_v40  ;;  %v8722_v32 = vpop.f32.mrb[43].mxu1  ;;  %8915 = vmatprep.mubr.msk.bf16.mxu1 %vm9033_vm0, %v11285_v1  ;;  %v5802_v44 = vrot.slane %v5801_v30, 2  ;;  %v5817_v6 = vsel %vm9131_vm8, %v5812_v61, %v5816_v12  ;;  %v10091_v49 = vadd.f32 %v9801_v48, %v9864_v43  ;;  %v10096_v36 = vpop.f32.mrb[36].mxu0 }
 0x15a   : > { %11296 = vst [vmem:[#allocation5_spill] sm:$0xff] %v10082_v26  ;;  %v4261_v47 = vrot.slane %v4247_v0, %v9123_v28  ;;  %v5822_v29 = vrot.slane %v5821_v37, 2  ;;  %v5207_v11 = vcombine.high %v10047_v2, %v10047_v2  ;;  %v5215_v40 = vcombine.high %v10068_v34, %v10068_v34  ;;  %v8609_v57 = vpop.f32.mrb[37].mxu0 }
 0x15b   : > { %11297 = vst [vmem:[#allocation6_spill] sm:$0xff] %v10091_v49  ;;  %v10104_v20 = vcombine.high %v10094_v25, %v10094_v25  ;;  %v5807_v48 = vsel %vm9131_vm8, %v5802_v44, %v5806_v22  ;;  %v5828_v21 = vshrl.u32 %v10047_v2, 16  ;;  %v5839_v12 = vshrl.u32 %v10068_v34, 16  ;;  %v10110_v16 = vpop.f32.mrb[38].mxu0 }
 0x15c   : > { %v4262_v43 = vcombine.low %v4254_v18, %v4261_v47  ;;  %v5827_v27 = vsel %vm9131_vm8, %v5822_v29, %v5826_v9  ;;  %v6742_v54 = vcombine.low %v5797_v62, %v5807_v48  ;;  %v5834_v10 = vshll.u32 %v5207_v11, 16  ;;  %v8104_v13 = vld.sshfl [vmem:[%s9100_s4 + $0x44] sm:$0x3 pattern:$0x76325410]  ;;  %v8610_v30 = vpop.f32.mrb[39].mxu0 }
 0x15d   : > { %v5842_v35 = vshll.u32 %v10068_v34, 16  ;;  %v6743_v61 = vcombine.low %v5817_v6, %v5827_v27  ;;  %v5830_v22 = vrot.slane %v5828_v21, 6  ;;  %v5841_v0 = vrot.slane %v5839_v12, 6 }
 0x15e   : > { %8808 = vmatmul.mubr.msk.bf16.gmra.mrb[120].mxu0 %vm2505_vm1, %v4262_v43  ;;  %v5848_v2 = vshll.u32 %v5215_v40, 16  ;;  %v6750_v37 = vrot.slane %v6742_v54, %v9123_v28  ;;  %v5836_v18 = vrot.slane %v5834_v10, 7  ;;  %v5852_v62 = vshrl.u32 %v5215_v40, 16 }
 0x15f   : > { %8811 = vmatprep.mubr.msk.bf16.mxu0 %vm9033_vm0, %v11285_v1  ;;  %v5844_v32 = vrot.slane %v5842_v35, 7  ;;  %v6757_v44 = vrot.slane %v6743_v61, %v9123_v28  ;;  %v5831_v47 = vor.u32 %v5830_v22, %v5826_v9  ;;  %v5858_v6 = vshll.u32 %v10094_v25, 16  ;;  %v10125_v21 = vld.sshfl [vmem:[%s9100_s4 + $0x54] sm:$0x33 pattern:$0x76325410] }
 0x160   : > { %v5850_v29 = vrot.slane %v5848_v2, 7  ;;  %v5854_v57 = vrot.slane %v5852_v62, 6  ;;  %v5862_v48 = vshrl.u32 %v10094_v25, 16  ;;  %v5868_v43 = vshll.u32 %v10104_v20, 16  ;;  %v10127_v12 = vpop.f32.mrb[44].mxu1 }
 0x161   : > { %v5845_v11 = vor.u32 %v5844_v32, %v5841_v0  ;;  %v6758_v27 = vcombine.low %v6750_v37, %v6757_v44  ;;  %v5832_v54 = vrot.slane %v5831_v47, 2  ;;  %v5860_v10 = vrot.slane %v5858_v6, 7  ;;  %v8725_v9 = vpop.f32.mrb[45].mxu1 }
 0x162   : > { %v4263_v35 = vcombine.low %v8104_v13, %v10068_v34  ;;  %v5855_v61 = vor.u32 %v5854_v57, %v5850_v29  ;;  %v5864_v22 = vrot.slane %v5862_v48, 6  ;;  %v5870_v0 = vrot.slane %v5868_v43, 7  ;;  %v10130_v2 = vpop.f32.mrb[46].mxu1 }
 0x163   : > { %v5846_v30 = vrot.slane %v5845_v11, 2  ;;  %8916 = vmatmul.mubr.msk.bf16.gmra.mrb[120].mxu1 %vm2505_vm1, %v6758_v27  ;;  %v5837_v32 = vsel %vm9131_vm8, %v5832_v54, %v5836_v18  ;;  %v4264_v62 = vcombine.low %v5215_v40, %v10094_v25  ;;  %v10139_v44 = vadd.f32 %v9832_v51, %v9905_v24  ;;  %v8264_v34 = vld.sshfl [vmem:[%s9100_s4 + $0x50] sm:$0x13 pattern:$0x76325410]  ;;  %v8726_v13 = vpop.f32.mrb[47].mxu1 }
 0x164   : > { %v4271_v37 = vrot.slane %v4263_v35, %v9123_v28  ;;  %8919 = vmatprep.mubr.msk.bf16.mxu1 %vm9033_vm0, %v11285_v1  ;;  %v5856_v6 = vrot.slane %v5855_v61, 2  ;;  %v5865_v11 = vor.u32 %v5864_v22, %v5860_v10  ;;  %v10148_v25 = vadd.f32 %v9849_v3, %v9913_v52  ;;  %v10150_v40 = vpop.f32.mrb[40].mxu0  ;;  %v10158_v27 = vld.sshfl [vmem:[%s9100_s4 + $0x58] sm:$0x33 pattern:$0x76325410] }
 0x165   : > { %11298 = vst [vmem:[#allocation7_spill] sm:$0xff] %v10139_v44  ;;  %v5851_v47 = vsel %vm9131_vm8, %v5846_v30, %v5850_v29  ;;  %v4278_v24 = vrot.slane %v4264_v62, %v9123_v28  ;;  %v5231_v18 = vcombine.high %v8264_v34, %v8264_v34  ;;  %v5239_v57 = vcombine.high %v10125_v21, %v10125_v21  ;;  %v8613_v48 = vpop.f32.mrb[41].mxu0  ;;  %v8107_v22 = vld.sshfl [vmem:[%s9100_s4 + $0x50] sm:$0x3 pattern:$0x76325410] }
 0x166   : > { %11299 = vst [vmem:[#allocation8_spill] sm:$0xff] %v10148_v25  ;;  %v6759_v51 = vcombine.low %v5837_v32, %v5851_v47  ;;  %v5861_v29 = vsel %vm9131_vm8, %v5856_v6, %v5860_v10  ;;  %v5866_v43 = vrot.slane %v5865_v11, 2  ;;  %v5872_v3 = vshrl.u32 %v10104_v20, 16  ;;  %v10161_v54 = vpop.f32.mrb[42].mxu0 }
 0x167   : > { %v5878_v52 = vshll.u32 %v8264_v34, 16  ;;  %v4279_v9 = vcombine.low %v4271_v37, %v4278_v24  ;;  %v5882_v30 = vshrl.u32 %v8264_v34, 16  ;;  %v5888_v61 = vshll.u32 %v5231_v18, 16  ;;  %v8614_v32 = vpop.f32.mrb[43].mxu0 }
 0x168   : > { %v6767_v35 = vrot.slane %v6759_v51, %v9123_v28  ;;  %v5871_v62 = vsel %vm9131_vm8, %v5866_v43, %v5870_v0  ;;  %v5874_v13 = vrot.slane %v5872_v3, 6  ;;  %v5893_v47 = vshrl.u32 %v10125_v21, 16 }
 0x169   : > { %v5880_v10 = vrot.slane %v5878_v52, 7  ;;  %v6760_v6 = vcombine.low %v5861_v29, %v5871_v62  ;;  %8812 = vmatmul.mubr.msk.bf16.gmra.mrb[124].mxu0 %vm2505_vm1, %v4279_v9  ;;  %v5884_v11 = vrot.slane %v5882_v30, 6  ;;  %v5890_v48 = vrot.slane %v5888_v61, 7 }
 0x16a   : > { %v5896_v1 = vshll.u32 %v10125_v21, 16  ;;  %v11300_v51 = vmov 0.0   ;;  %v5875_v37 = vor.u32 %v5874_v13, %v5870_v0  ;;  %v5895_v34 = vrot.slane %v5893_v47, 6  ;;  %v10172_v32 = vpop.f32.mrb[48].mxu1 }
 0x16b   : > { %8815 = vmatprep.mubr.msk.bf16.mxu0 %vm9033_vm0, %v11300_v51  ;;  %v5902_v24 = vshll.u32 %v5239_v57, 16  ;;  %v5906_v18 = vshrl.u32 %v5239_v57, 16  ;;  %v6774_v43 = vrot.slane %v6760_v6, %v9123_v28  ;;  %v5885_v3 = vor.u32 %v5884_v11, %v5880_v10  ;;  %v8729_v9 = vpop.f32.mrb[49].mxu1 }
 0x16c   : > { %v5898_v52 = vrot.slane %v5896_v1, 7  ;;  %v5912_v29 = vshll.u32 %v10158_v27, 16  ;;  %v5876_v30 = vrot.slane %v5875_v37, 2  ;;  %v4280_v25 = vcombine.low %v10104_v20, %v8107_v22  ;;  %v10177_v44 = vpop.f32.mrb[50].mxu1 }
 0x16d   : > { %v5904_v61 = vrot.slane %v5902_v24, 7  ;;  %v5908_v62 = vrot.slane %v5906_v18, 6  ;;  %v6775_v0 = vcombine.low %v6767_v35, %v6774_v43  ;;  %v5886_v13 = vrot.slane %v5885_v3, 2  ;;  %v8730_v26 = vpop.f32.mrb[51].mxu1 }
 0x16e   : > { %v5899_v47 = vor.u32 %v5898_v52, %v5895_v34  ;;  %v5914_v49 = vrot.slane %v5912_v29, 7  ;;  %v5881_v6 = vsel %vm9131_vm8, %v5876_v30, %v5880_v10  ;;  %v4281_v11 = vcombine.low %v10125_v21, %v5239_v57  ;;  %v10183_v24 = vpop.f32.mrb[44].mxu0  ;;  %v8267_v10 = vld.sshfl [vmem:[%s9100_s4 + $0x5c] sm:$0x13 pattern:$0x76325410] }
 0x16f   : > { %v5909_v1 = vor.u32 %v5908_v62, %v5904_v61  ;;  %v4288_v37 = vrot.slane %v4280_v25, %v9123_v28  ;;  %8920 = vmatmul.mubr.msk.bf16.gmra.mrb[124].mxu1 %vm2505_vm1, %v6775_v0  ;;  %v5891_v20 = vsel %vm9131_vm8, %v5886_v13, %v5890_v48  ;;  %v10190_v26 = vadd.f32 %v9875_v5, %v9954_v4  ;;  %v8617_v21 = vpop.f32.mrb[45].mxu0  ;;  %v8268_v18 = vld.sshfl [vmem:[%s9100_s4 + $0x60] sm:$0x33 pattern:$0x76325410] }
 0x170   : > { %v5900_v35 = vrot.slane %v5899_v47, 2  ;;  %v10194_v22 = vadd.f32 %v9895_v56, %v9962_v45  ;;  %8923 = vmatprep.mubr.msk.bf16.mxu1 %vm9033_vm0, %v11300_v51  ;;  %v6776_v57 = vcombine.low %v5881_v6, %v5891_v20  ;;  %v4295_v34 = vrot.slane %v4281_v11, %v9123_v28  ;;  %v10203_v5 = vpop.f32.mrb[46].mxu0  ;;  %v8110_v6 = vld.sshfl [vmem:[%s9100_s4 + $0x5c] sm:$0x3 pattern:$0x76325410] }
 0x171   : > { %11301 = vst [vmem:[#allocation9_spill] sm:$0xff] %v10190_v26  ;;  %v5910_v25 = vrot.slane %v5909_v1, 2  ;;  %v5247_v48 = vcombine.high %v10158_v27, %v10158_v27  ;;  %v5255_v4 = vcombine.high %v8267_v10, %v8267_v10  ;;  %v10207_v45 = vcombine.high %v8268_v18, %v8268_v18  ;;  %v8618_v3 = vpop.f32.mrb[47].mxu0 }
 0x172   : > { %11302 = vst [vmem:[#allocation10_spill] sm:$0xff] %v10194_v22  ;;  %v5905_v56 = vsel %vm9131_vm8, %v5900_v35, %v5904_v61  ;;  %v5916_v43 = vshrl.u32 %v10158_v27, 16  ;;  %v6784_v29 = vrot.slane %v6776_v57, %v9123_v28  ;;  %v4296_v9 = vcombine.low %v4288_v37, %v4295_v34 }
 0x173   : > { %v5915_v52 = vsel %vm9131_vm8, %v5910_v25, %v5914_v49  ;;  %v5922_v30 = vshll.u32 %v5247_v48, 16  ;;  %v5926_v13 = vshrl.u32 %v5247_v48, 16  ;;  %v5932_v47 = vshll.u32 %v8267_v10, 16 }
 0x174   : > { %v6777_v62 = vcombine.low %v5905_v56, %v5915_v52  ;;  %v5918_v0 = vrot.slane %v5916_v43, 6  ;;  %8816 = vmatmul.mubr.msk.bf16.gmra.mrb[128].mxu0 %vm2505_vm1, %v4296_v9  ;;  %v5936_v1 = vshrl.u32 %v8267_v10, 16  ;;  %v5942_v11 = vshll.u32 %v5255_v4, 16 }
 0x175   : > { %v5924_v61 = vrot.slane %v5922_v30, 7  ;;  %v5947_v20 = vshrl.u32 %v8268_v18, 16  ;;  %8819 = vmatprep.mubr.msk.bf16.mxu0 %vm9033_vm0, %v11300_v51  ;;  %v5928_v25 = vrot.slane %v5926_v13, 6  ;;  %v5934_v37 = vrot.slane %v5932_v47, 7  ;;  %v10218_v57 = vpop.f32.mrb[52].mxu1 }
 0x176   : > { %v6791_v35 = vrot.slane %v6777_v62, %v9123_v28  ;;  %v5919_v21 = vor.u32 %v5918_v0, %v5914_v49  ;;  %v5938_v34 = vrot.slane %v5936_v1, 6  ;;  %v5944_v56 = vrot.slane %v5942_v11, 7  ;;  %v8733_v52 = vpop.f32.mrb[53].mxu1 }
 0x177   : > { %v5949_v43 = vrot.slane %v5947_v20, 6  ;;  %v5950_v3 = vshll.u32 %v8268_v18, 16  ;;  %v5929_v4 = vor.u32 %v5928_v25, %v5924_v61  ;;  %v5956_v30 = vshll.u32 %v10207_v45, 16  ;;  %v10221_v62 = vpop.f32.mrb[54].mxu1 }
 0x178   : > { %v6792_v9 = vcombine.low %v6784_v29, %v6791_v35  ;;  %v5920_v10 = vrot.slane %v5919_v21, 2  ;;  %v5939_v22 = vor.u32 %v5938_v34, %v5934_v37  ;;  %v4297_v49 = vcombine.low %v10158_v27, %v5247_v48  ;;  %v10225_v13 = vld.sshfl [vmem:[%s9100_s4 + $0x64] sm:$0x33 pattern:$0x76325410]  ;;  %v8734_v47 = vpop.f32.mrb[55].mxu1 }
 0x179   : > { %v5952_v26 = vrot.slane %v5950_v3, 7  ;;  %v4298_v0 = vcombine.low %v8110_v6, %v8268_v18  ;;  %v5930_v1 = vrot.slane %v5929_v4, 2  ;;  %v5958_v11 = vrot.slane %v5956_v30, 7  ;;  %v10234_v35 = vpop.f32.mrb[48].mxu0 }
 0x17a   : > { %8924 = vmatmul.mubr.msk.bf16.gmra.mrb[128].mxu1 %vm2505_vm1, %v6792_v9  ;;  %v5925_v29 = vsel %vm9131_vm8, %v5920_v10, %v5924_v61  ;;  %v10232_v20 = vadd.f32 %v9925_v8, %v9998_v23  ;;  %v5940_v27 = vrot.slane %v5939_v22, 2  ;;  %v4305_v48 = vrot.slane %v4297_v49, %v9123_v28  ;;  %v8270_v21 = vld.sshfl [vmem:[%s9100_s4 + $0x68] sm:$0x13 pattern:$0x76325410]  ;;  %v8621_v25 = vpop.f32.mrb[49].mxu0 }
 0x17b   : > { %8927 = vmatprep.mubr.msk.bf16.mxu1 %vm9033_vm0, %v11300_v51  ;;  %v5953_v18 = vor.u32 %v5952_v26, %v5949_v43  ;;  %v4312_v6 = vrot.slane %v4298_v0, %v9123_v28  ;;  %v5935_v61 = vsel %vm9131_vm8, %v5930_v1, %v5934_v37  ;;  %v10245_v8 = vadd.f32 %v9941_v46, %v10004_v31  ;;  %v10249_v22 = vpop.f32.mrb[50].mxu0  ;;  %v8113_v0 = vld.sshfl [vmem:[%s9100_s4 + $0x68] sm:$0x3 pattern:$0x76325410] }
 0x17c   : > { %11303 = vst [vmem:[#allocation11_spill] sm:$0xff] %v10232_v20  ;;  %v5271_v23 = vcombine.high %v10225_v13, %v10225_v13  ;;  %v5279_v34 = vcombine.high %v8270_v21, %v8270_v21  ;;  %v5945_v26 = vsel %vm9131_vm8, %v5940_v27, %v5944_v56  ;;  %v6793_v3 = vcombine.low %v5925_v29, %v5935_v61  ;;  %v8622_v9 = vpop.f32.mrb[51].mxu0  ;;  %v10271_v20 = vld.sshfl [vmem:[%s9100_s4 + $0x6c] sm:$0x33 pattern:$0x76325410] }
 0x17d   : > { %11304 = vst [vmem:[#allocation12_spill] sm:$0xff] %v10245_v8  ;;  %v5954_v43 = vrot.slane %v5953_v18, 2  ;;  %v4313_v52 = vcombine.low %v4305_v48, %v4312_v6  ;;  %v5960_v37 = vshrl.u32 %v10207_v45, 16  ;;  %v5966_v10 = vshll.u32 %v10225_v13, 16 }
 0x17e   : > { %v5970_v46 = vshrl.u32 %v10225_v13, 16  ;;  %v5976_v31 = vshll.u32 %v5271_v23, 16  ;;  %v6801_v30 = vrot.slane %v6793_v3, %v9123_v28  ;;  %v5980_v49 = vshrl.u32 %v5271_v23, 16 }
 0x17f   : > { %v5959_v4 = vsel %vm9131_vm8, %v5954_v43, %v5958_v11  ;;  %8820 = vmatmul.mubr.msk.bf16.gmra.mrb[132].mxu0 %vm2505_vm1, %v4313_v52  ;;  %v5986_v56 = vshll.u32 %v8270_v21, 16  ;;  %v5962_v29 = vrot.slane %v5960_v37, 6  ;;  %v5968_v1 = vrot.slane %v5966_v10, 7  ;;  %v10263_v18 = vpop.f32.mrb[56].mxu1 }
 0x180   : > { %v6794_v47 = vcombine.low %v5945_v26, %v5959_v4  ;;  %8823 = vmatprep.mubr.msk.bf16.mxu0 %vm9033_vm0, %v11300_v51  ;;  %v5972_v27 = vrot.slane %v5970_v46, 6  ;;  %v5978_v48 = vrot.slane %v5976_v31, 7  ;;  %v5982_v6 = vrot.slane %v5980_v49, 6  ;;  %v8737_v43 = vpop.f32.mrb[57].mxu1 }
 0x181   : > { %v5988_v25 = vrot.slane %v5986_v56, 7  ;;  %v5990_v61 = vshrl.u32 %v8270_v21, 16  ;;  %v5963_v52 = vor.u32 %v5962_v29, %v5958_v11  ;;  %v5996_v8 = vshll.u32 %v5279_v34, 16  ;;  %v10266_v26 = vpop.f32.mrb[58].mxu1 }
 0x182   : > { %v6808_v3 = vrot.slane %v6794_v47, %v9123_v28  ;;  %v5973_v9 = vor.u32 %v5972_v27, %v5968_v1  ;;  %v5983_v4 = vor.u32 %v5982_v6, %v5978_v48  ;;  %v4314_v10 = vcombine.low %v10207_v45, %v10225_v13  ;;  %v8738_v21 = vpop.f32.mrb[59].mxu1  ;;  %v10278_v43 = vld.sshfl [vmem:[%s9100_s4 + $0x70] sm:$0x33 pattern:$0x76325410] }
 0x183   : > { %v5992_v37 = vrot.slane %v5990_v61, 6  ;;  %v4315_v46 = vcombine.low %v5271_v23, %v8113_v0  ;;  %v10273_v31 = vpop.f32.mrb[52].mxu0  ;;  %v5964_v56 = vrot.slane %v5963_v52, 2  ;;  %v5998_v11 = vrot.slane %v5996_v8, 7 }
 0x184   : > { %v6809_v49 = vcombine.low %v6801_v30, %v6808_v3  ;;  %v5974_v47 = vrot.slane %v5973_v9, 2  ;;  %v8625_v29 = vpop.f32.mrb[53].mxu0  ;;  %v5984_v34 = vrot.slane %v5983_v4, 2  ;;  %v4322_v6 = vrot.slane %v4314_v10, %v9123_v28 }
 0x185   : > { %v5993_v27 = vor.u32 %v5992_v37, %v5988_v25  ;;  %v4329_v61 = vrot.slane %v4315_v46, %v9123_v28  ;;  %v10280_v45 = vpop.f32.mrb[54].mxu0  ;;  %v5969_v13 = vsel %vm9131_vm8, %v5964_v56, %v5968_v1  ;;  %v10289_v8 = vadd.f32 %v9971_v63, %v10040_v59 }
 0x186   : > { %8928 = vmatmul.mubr.msk.bf16.gmra.mrb[132].mxu1 %vm2505_vm1, %v6809_v49  ;;  %v5979_v23 = vsel %vm9131_vm8, %v5974_v47, %v5978_v48  ;;  %v10293_v30 = vadd.f32 %v9979_v14, %v10055_v15  ;;  %v8626_v0 = vpop.f32.mrb[55].mxu0  ;;  %v5989_v3 = vsel %vm9131_vm8, %v5984_v34, %v5988_v25  ;;  %v5287_v48 = vcombine.high %v10271_v20, %v10271_v20  ;;  %v10310_v25 = vld.sshfl [vmem:[%s9100_s4 + $0x74] sm:$0x13 pattern:$0x76325410] }
 0x187   : > { %11305 = vst [vmem:[#allocation13_spill] sm:$0xff] %v10289_v8  ;;  %8931 = vmatprep.mubr.msk.bf16.mxu1 %vm9033_vm0, %v11300_v51  ;;  %v5994_v1 = vrot.slane %v5993_v27, 2  ;;  %v6810_v52 = vcombine.low %v5969_v13, %v5979_v23  ;;  %v4330_v9 = vcombine.low %v4322_v6, %v4329_v61  ;;  %v5295_v63 = vcombine.high %v10278_v43, %v10278_v43 }
 0x188   : > { %11306 = vst [vmem:[#allocation14_spill] sm:$0xff] %v10293_v30  ;;  %v6001_v59 = vshrl.u32 %v10271_v20, 16  ;;  %v6004_v14 = vshll.u32 %v10271_v20, 16  ;;  %v6020_v37 = vshll.u32 %v10278_v43, 16  ;;  %v6024_v10 = vshrl.u32 %v10278_v43, 16 }
 0x189   : > { %v5999_v15 = vsel %vm9131_vm8, %v5994_v1, %v5998_v11  ;;  %v6818_v4 = vrot.slane %v6810_v52, %v9123_v28  ;;  %8824 = vmatmul.mubr.msk.bf16.gmra.mrb[136].mxu0 %vm2505_vm1, %v4330_v9  ;;  %v6010_v56 = vshll.u32 %v5287_v48, 16  ;;  %v6014_v47 = vshrl.u32 %v5287_v48, 16 }
 0x18a   : > { %v6811_v46 = vcombine.low %v5989_v3, %v5999_v15  ;;  %8827 = vmatprep.mubr.msk.bf16.mxu0 %vm9033_vm0, %v11300_v51  ;;  %v6003_v21 = vrot.slane %v6001_v59, 6  ;;  %v6006_v49 = vrot.slane %v6004_v14, 7  ;;  %v6022_v11 = vrot.slane %v6020_v37, 7 }
 0x18b   : > { %v6026_v29 = vrot.slane %v6024_v10, 6  ;;  %v6030_v34 = vshll.u32 %v5295_v63, 16  ;;  %v10316_v27 = vpop.f32.mrb[60].mxu1  ;;  %v6012_v13 = vrot.slane %v6010_v56, 7  ;;  %v6034_v23 = vshrl.u32 %v5295_v63, 16 }
 0x18c   : > { %v6825_v6 = vrot.slane %v6811_v46, %v9123_v28  ;;  %v6007_v61 = vor.u32 %v6006_v49, %v6003_v21  ;;  %v8741_v0 = vpop.f32.mrb[61].mxu1  ;;  %v6016_v3 = vrot.slane %v6014_v47, 6  ;;  %v6040_v9 = vshll.u32 %v10310_v25, 16 }
 0x18d   : > { %v6027_v1 = vor.u32 %v6026_v29, %v6022_v11  ;;  %v6032_v52 = vrot.slane %v6030_v34, 7  ;;  %v10321_v59 = vld.sshfl [vmem:[%s9100_s4 + $0x78] sm:$0x33 pattern:$0x76325410]  ;;  %v10323_v14 = vpop.f32.mrb[62].mxu1  ;;  %v4331_v30 = vcombine.low %v10271_v20, %v5287_v48  ;;  %v4332_v47 = vcombine.low %v10278_v43, %v5295_v63 }
 0x18e   : > { %v6826_v15 = vcombine.low %v6818_v4, %v6825_v6  ;;  %v6008_v37 = vrot.slane %v6007_v61, 2  ;;  %v6036_v10 = vrot.slane %v6034_v23, 6  ;;  %v10326_v8 = vpop.f32.mrb[56].mxu0  ;;  %v8742_v46 = vpop.f32.mrb[63].mxu1  ;;  %v6017_v21 = vor.u32 %v6016_v3, %v6012_v13 }
 0x18f   : > { %v6028_v49 = vrot.slane %v6027_v1, 2  ;;  %v6042_v56 = vrot.slane %v6040_v9, 7  ;;  %v8629_v29 = vpop.f32.mrb[57].mxu0  ;;  %v4339_v6 = vrot.slane %v4331_v30, %v9123_v28  ;;  %v10335_v20 = vadd.f32 %v10013_v53, %v10096_v36 }
 0x190   : > { %8932 = vmatmul.mubr.msk.bf16.gmra.mrb[136].mxu1 %vm2505_vm1, %v6826_v15  ;;  %v6013_v34 = vsel %vm9131_vm8, %v6008_v37, %v6012_v13  ;;  %v6037_v4 = vor.u32 %v6036_v10, %v6032_v52  ;;  %v10337_v48 = vpop.f32.mrb[58].mxu0  ;;  %v6018_v61 = vrot.slane %v6017_v21, 2  ;;  %v4346_v63 = vrot.slane %v4332_v47, %v9123_v28  ;;  %v10349_v30 = vld.sshfl [vmem:[%s9100_s4 + $0x7c] sm:$0x33 pattern:$0x76325410] }
 0x191   : > { %11307 = vst [vmem:[#allocation15_spill] sm:$0xff] %v10335_v20  ;;  %8935 = vmatprep.mubr.msk.bf16.mxu1 %vm9033_vm0, %v11300_v51  ;;  %v6033_v43 = vsel %vm9131_vm8, %v6028_v49, %v6032_v52  ;;  %v10346_v13 = vadd.f32 %v10020_v50, %v10110_v16  ;;  %v8630_v53 = vpop.f32.mrb[59].mxu0  ;;  %v5303_v23 = vcombine.high %v10310_v25, %v10310_v25  ;;  %v6044_v50 = vshrl.u32 %v10310_v25, 16 }
 0x192   : > { %v6038_v36 = vrot.slane %v6037_v4, 2  ;;  %v5311_v0 = vcombine.high %v10321_v59, %v10321_v59  ;;  %v10357_v3 = vcombine.high %v10349_v30, %v10349_v30  ;;  %v6023_v1 = vsel %vm9131_vm8, %v6018_v61, %v6022_v11  ;;  %v8116_v46 = vld.sshfl [vmem:[%s9100_s4 + $0x74] sm:$0x3 pattern:$0x76325410] }
 0x193   : > { %11308 = vst [vmem:[#allocation16_spill] sm:$0xff] %v10346_v13  ;;  %v4347_v52 = vcombine.low %v4339_v6, %v4346_v63  ;;  %v6055_v16 = vshrl.u32 %v10321_v59, 16  ;;  %v6827_v15 = vcombine.low %v6013_v34, %v6023_v1  ;;  %v6050_v37 = vshll.u32 %v5303_v23, 16 }
 0x194   : > { %v6043_v9 = vsel %vm9131_vm8, %v6038_v36, %v6042_v56  ;;  %v6058_v10 = vshll.u32 %v10321_v59, 16  ;;  %v6046_v49 = vrot.slane %v6044_v50, 6  ;;  %v6064_v29 = vshll.u32 %v5311_v0, 16  ;;  %v10368_v11 = vpop.f32.mrb[64].mxu1 }
 0x195   : > { %v6828_v21 = vcombine.low %v6033_v43, %v6043_v9  ;;  %8828 = vmatmul.mubr.msk.bf16.gmra.mrb[140].mxu0 %vm2505_vm1, %v4347_v52  ;;  %v6057_v47 = vrot.slane %v6055_v16, 6  ;;  %v6835_v25 = vrot.slane %v6827_v15, %v9123_v28  ;;  %v6052_v4 = vrot.slane %v6050_v37, 7  ;;  %v8745_v61 = vpop.f32.mrb[65].mxu1 }
 0x196   : > { %8831 = vmatprep.mubr.msk.bf16.mxu0 %vm9033_vm0, %v11300_v51  ;;  %v6060_v34 = vrot.slane %v6058_v10, 7  ;;  %v6068_v6 = vshrl.u32 %v5311_v0, 16  ;;  %v6047_v43 = vor.u32 %v6046_v49, %v6042_v56  ;;  %v6066_v53 = vrot.slane %v6064_v29, 7  ;;  %v10375_v23 = vpop.f32.mrb[66].mxu1 }
 0x197   : > { %v6842_v63 = vrot.slane %v6828_v21, %v9123_v28  ;;  %v6074_v36 = vshll.u32 %v10349_v30, 16  ;;  %v6078_v50 = vshrl.u32 %v10349_v30, 16  ;;  %v6084_v16 = vshll.u32 %v10357_v3, 16  ;;  %v8746_v15 = vpop.f32.mrb[67].mxu1 }
 0x198   : > { %v6061_v1 = vor.u32 %v6060_v34, %v6057_v47  ;;  %v6070_v52 = vrot.slane %v6068_v6, 6  ;;  %v10380_v9 = vld.sshfl [vmem:[%s9100_s4 + $0x84] sm:$0x33 pattern:$0x76325410]  ;;  %v6048_v10 = vrot.slane %v6047_v43, 2  ;;  %v4348_v56 = vcombine.low %v8116_v46, %v10321_v59 }
 0x199   : > { %v6843_v37 = vcombine.low %v6835_v25, %v6842_v63  ;;  %v6076_v61 = vrot.slane %v6074_v36, 7  ;;  %v10383_v21 = vpop.f32.mrb[60].mxu0  ;;  %v6080_v13 = vrot.slane %v6078_v50, 6  ;;  %v6086_v47 = vrot.slane %v6084_v16, 7 }
 0x19a   : > { %v6062_v49 = vrot.slane %v6061_v1, 2  ;;  %v6071_v29 = vor.u32 %v6070_v52, %v6066_v53  ;;  %v8633_v34 = vpop.f32.mrb[61].mxu0  ;;  %v6053_v6 = vsel %vm9131_vm8, %v6048_v10, %v6052_v4  ;;  %v4349_v15 = vcombine.low %v5311_v0, %v10349_v30  ;;  %v8276_v46 = vld.sshfl [vmem:[%s9100_s4 + $0x80] sm:$0x13 pattern:$0x76325410] }
 0x19b   : > { %8936 = vmatmul.mubr.msk.bf16.gmra.mrb[140].mxu1 %vm2505_vm1, %v6843_v37  ;;  %v4356_v25 = vrot.slane %v4348_v56, %v9123_v28  ;;  %v10392_v59 = vadd.f32 %v10070_v55, %v10150_v40  ;;  %v10395_v63 = vpop.f32.mrb[62].mxu0  ;;  %v6081_v4 = vor.u32 %v6080_v13, %v6076_v61  ;;  %v10403_v30 = vadd.f32 %v10074_v60, %v10161_v54 }
 0x19c   : > { %8939 = vmatprep.mubr.msk.bf16.mxu1 %vm9033_vm0, %v11300_v51  ;;  %v6067_v43 = vsel %vm9131_vm8, %v6062_v49, %v6066_v53  ;;  %v6072_v36 = vrot.slane %v6071_v29, 2  ;;  %v8634_v0 = vpop.f32.mrb[63].mxu0  ;;  %v4363_v55 = vrot.slane %v4349_v15, %v9123_v28  ;;  %v5327_v40 = vcombine.high %v8276_v46, %v8276_v46  ;;  %v10411_v53 = vld.sshfl [vmem:[%s9100_s4 + $0x88] sm:$0x33 pattern:$0x76325410] }
 0x19d   : > { %11309 = vst [vmem:[#allocation17_spill] sm:$0xff] %v10392_v59  ;;  %11310 = vst [vmem:[#allocation18_spill] sm:$0xff] %v10403_v30  ;;  %v6844_v1 = vcombine.low %v6053_v6, %v6067_v43  ;;  %v5335_v52 = vcombine.high %v10380_v9, %v10380_v9  ;;  %v6082_v16 = vrot.slane %v6081_v4, 2  ;;  %v6088_v13 = vshrl.u32 %v10357_v3, 16 }
 0x19e   : > { %v6077_v50 = vsel %vm9131_vm8, %v6072_v36, %v6076_v61  ;;  %v6094_v37 = vshll.u32 %v8276_v46, 16  ;;  %v4364_v54 = vcombine.low %v4356_v25, %v4363_v55  ;;  %v6098_v10 = vshrl.u32 %v8276_v46, 16  ;;  %v8119_v49 = vld.sshfl [vmem:[%s9100_s4 + $0x80] sm:$0x3 pattern:$0x76325410] }
 0x19f   : > { %v6852_v60 = vrot.slane %v6844_v1, %v9123_v28  ;;  %v6104_v56 = vshll.u32 %v5327_v40, 16  ;;  %v6087_v29 = vsel %vm9131_vm8, %v6082_v16, %v6086_v47  ;;  %v6090_v34 = vrot.slane %v6088_v13, 6  ;;  %v10419_v61 = vpop.f32.mrb[68].mxu1 }
 0x1a0   : > { %v6096_v6 = vrot.slane %v6094_v37, 7  ;;  %v6109_v15 = vshrl.u32 %v10380_v9, 16  ;;  %v6845_v43 = vcombine.low %v6077_v50, %v6087_v29  ;;  %8832 = vmatmul.mubr.msk.bf16.gmra.mrb[144].mxu0 %vm2505_vm1, %v4364_v54  ;;  %v6100_v36 = vrot.slane %v6098_v10, 6  ;;  %v8749_v25 = vpop.f32.mrb[69].mxu1 }
 0x1a1   : > { %v6106_v4 = vrot.slane %v6104_v56, 7  ;;  %v6112_v0 = vshll.u32 %v10380_v9, 16  ;;  %8835 = vmatprep.mubr.msk.bf16.mxu0 %vm9033_vm0, %v11300_v51  ;;  %v6091_v46 = vor.u32 %v6090_v34, %v6086_v47  ;;  %v6118_v55 = vshll.u32 %v5335_v52, 16  ;;  %v10425_v16 = vpop.f32.mrb[70].mxu1 }
 0x1a2   : > { %v6111_v1 = vrot.slane %v6109_v15, 6  ;;  %v6122_v40 = vshrl.u32 %v5335_v52, 16  ;;  %v6859_v13 = vrot.slane %v6845_v43, %v9123_v28  ;;  %v6101_v37 = vor.u32 %v6100_v36, %v6096_v6  ;;  %v8750_v10 = vpop.f32.mrb[71].mxu1 }
 0x1a3   : > { %v6114_v50 = vrot.slane %v6112_v0, 7  ;;  %v6128_v54 = vshll.u32 %v10411_v53, 16  ;;  %v6092_v56 = vrot.slane %v6091_v46, 2  ;;  %v6120_v29 = vrot.slane %v6118_v55, 7  ;;  %v10430_v59 = vpop.f32.mrb[64].mxu0 }
 0x1a4   : > { %v6124_v30 = vrot.slane %v6122_v40, 6  ;;  %v4365_v25 = vcombine.low %v10357_v3, %v8119_v49  ;;  %v6860_v47 = vcombine.low %v6852_v60, %v6859_v13  ;;  %v6102_v34 = vrot.slane %v6101_v37, 2  ;;  %v8637_v42 = vpop.f32.mrb[65].mxu0 }
 0x1a5   : > { %v6115_v15 = vor.u32 %v6114_v50, %v6111_v1  ;;  %v6130_v20 = vrot.slane %v6128_v54, 7  ;;  %v6097_v43 = vsel %vm9131_vm8, %v6092_v56, %v6096_v6  ;;  %v4366_v0 = vcombine.low %v10380_v9, %v5335_v52  ;;  %v10436_v55 = vpop.f32.mrb[66].mxu0 }
 0x1a6   : > { %v6125_v36 = vor.u32 %v6124_v30, %v6120_v29  ;;  %v4373_v46 = vrot.slane %v4365_v25, %v9123_v28  ;;  %8940 = vmatmul.mubr.msk.bf16.gmra.mrb[144].mxu1 %vm2505_vm1, %v6860_v47  ;;  %v6107_v3 = vsel %vm9131_vm8, %v6102_v34, %v6106_v4  ;;  %v10443_v42 = vadd.f32 %v10127_v12, %v10183_v24  ;;  %v8279_v30 = vld.sshfl [vmem:[%s9100_s4 + $0x8c] sm:$0x13 pattern:$0x76325410]  ;;  %v8638_v9 = vpop.f32.mrb[67].mxu0 }
 0x1a7   : > { %v6116_v60 = vrot.slane %v6115_v15, 2  ;;  %v10447_v49 = vadd.f32 %v10130_v2, %v10203_v5  ;;  %8943 = vmatprep.mubr.msk.bf16.mxu1 %vm9033_vm0, %v11300_v51  ;;  %v6861_v6 = vcombine.low %v6097_v43, %v6107_v3  ;;  %v4380_v1 = vrot.slane %v4366_v0, %v9123_v28  ;;  %v8280_v4 = vld.sshfl [vmem:[%s9100_s4 + $0x90] sm:$0x33 pattern:$0x76325410] }
 0x1a8   : > { %11311 = vst [vmem:[#allocation19_spill] sm:$0xff] %v10443_v42  ;;  %v6126_v52 = vrot.slane %v6125_v36, 2  ;;  %v5343_v40 = vcombine.high %v10411_v53, %v10411_v53  ;;  %v5351_v24 = vcombine.high %v8279_v30, %v8279_v30  ;;  %v10458_v2 = vcombine.high %v8280_v4, %v8280_v4  ;;  %v8122_v15 = vld.sshfl [vmem:[%s9100_s4 + $0x8c] sm:$0x3 pattern:$0x76325410] }
 0x1a9   : > { %11312 = vst [vmem:[#allocation20_spill] sm:$0xff] %v10447_v49  ;;  %v6121_v12 = vsel %vm9131_vm8, %v6116_v60, %v6120_v29  ;;  %v6132_v5 = vshrl.u32 %v10411_v53, 16  ;;  %v6869_v37 = vrot.slane %v6861_v6, %v9123_v28  ;;  %v4381_v50 = vcombine.low %v4373_v46, %v4380_v1 }
 0x1aa   : > { %v6131_v13 = vsel %vm9131_vm8, %v6126_v52, %v6130_v20  ;;  %v6138_v54 = vshll.u32 %v5343_v40, 16  ;;  %v10464_v10 = vpop.f32.mrb[72].mxu1  ;;  %v6142_v47 = vshrl.u32 %v5343_v40, 16  ;;  %v6148_v34 = vshll.u32 %v8279_v30, 16 }
 0x1ab   : > { %v6862_v56 = vcombine.low %v6121_v12, %v6131_v13  ;;  %v6134_v25 = vrot.slane %v6132_v5, 6  ;;  %v8753_v29 = vpop.f32.mrb[73].mxu1  ;;  %8836 = vmatmul.mubr.msk.bf16.gmra.mrb[148].mxu0 %vm2505_vm1, %v4381_v50  ;;  %v6152_v36 = vshrl.u32 %v8279_v30, 16  ;;  %v6158_v0 = vshll.u32 %v5351_v24, 16 }
 0x1ac   : > { %v6140_v43 = vrot.slane %v6138_v54, 7  ;;  %v6163_v3 = vshrl.u32 %v8280_v4, 16  ;;  %v10468_v60 = vpop.f32.mrb[74].mxu1  ;;  %8839 = vmatprep.mubr.msk.bf16.mxu0 %vm9033_vm0, %v11300_v51  ;;  %v6144_v52 = vrot.slane %v6142_v47, 6  ;;  %v6150_v6 = vrot.slane %v6148_v34, 7 }
 0x1ad   : > { %v6876_v9 = vrot.slane %v6862_v56, %v9123_v28  ;;  %v6135_v46 = vor.u32 %v6134_v25, %v6130_v20  ;;  %v8754_v1 = vpop.f32.mrb[75].mxu1  ;;  %v6154_v12 = vrot.slane %v6152_v36, 6  ;;  %v6160_v5 = vrot.slane %v6158_v0, 7 }
 0x1ae   : > { %v6165_v13 = vrot.slane %v6163_v3, 6  ;;  %v6166_v50 = vshll.u32 %v8280_v4, 16  ;;  %v10473_v54 = vpop.f32.mrb[68].mxu0  ;;  %v6145_v29 = vor.u32 %v6144_v52, %v6140_v43  ;;  %v6172_v49 = vshll.u32 %v10458_v2, 16 }
 0x1af   : > { %v6877_v30 = vcombine.low %v6869_v37, %v6876_v9  ;;  %v6136_v24 = vrot.slane %v6135_v46, 2  ;;  %v8641_v56 = vpop.f32.mrb[69].mxu0  ;;  %v6155_v42 = vor.u32 %v6154_v12, %v6150_v6  ;;  %v4382_v20 = vcombine.low %v10411_v53, %v5343_v40  ;;  %v10478_v47 = vld.sshfl [vmem:[%s9100_s4 + $0x94] sm:$0x33 pattern:$0x76325410] }
 0x1b0   : > { %v6168_v41 = vrot.slane %v6166_v50, 7  ;;  %v4383_v25 = vcombine.low %v8122_v15, %v8280_v4  ;;  %v10480_v34 = vpop.f32.mrb[70].mxu0  ;;  %v6146_v36 = vrot.slane %v6145_v29, 2  ;;  %v6174_v0 = vrot.slane %v6172_v49, 7 }
 0x1b1   : > { %8944 = vmatmul.mubr.msk.bf16.gmra.mrb[148].mxu1 %vm2505_vm1, %v6877_v30  ;;  %v6141_v37 = vsel %vm9131_vm8, %v6136_v24, %v6140_v43  ;;  %v10487_v3 = vadd.f32 %v10172_v32, %v10234_v35  ;;  %v8642_v9 = vpop.f32.mrb[71].mxu0  ;;  %v6156_v53 = vrot.slane %v6155_v42, 2  ;;  %v4390_v40 = vrot.slane %v4382_v20, %v9123_v28  ;;  %v8282_v46 = vld.sshfl [vmem:[%s9100_s4 + $0x98] sm:$0x13 pattern:$0x76325410] }
 0x1b2   : > { %8947 = vmatprep.mubr.msk.bf16.mxu1 %vm9033_vm0, %v11300_v51  ;;  %v6169_v4 = vor.u32 %v6168_v41, %v6165_v13  ;;  %v4397_v15 = vrot.slane %v4383_v25, %v9123_v28  ;;  %v6151_v43 = vsel %vm9131_vm8, %v6146_v36, %v6150_v6  ;;  %v10498_v49 = vadd.f32 %v10177_v44, %v10249_v22  ;;  %v8125_v22 = vld.sshfl [vmem:[%s9100_s4 + $0x98] sm:$0x3 pattern:$0x76325410] }
 0x1b3   : > { %11313 = vst [vmem:[#allocation21_spill] sm:$0xff] %v10487_v3  ;;  %v5367_v32 = vcombine.high %v10478_v47, %v10478_v47  ;;  %v5375_v35 = vcombine.high %v8282_v46, %v8282_v46  ;;  %v6161_v41 = vsel %vm9131_vm8, %v6156_v53, %v6160_v5  ;;  %v6878_v52 = vcombine.low %v6141_v37, %v6151_v43 }
 0x1b4   : > { %11314 = vst [vmem:[#allocation22_spill] sm:$0xff] %v10498_v49  ;;  %v6170_v42 = vrot.slane %v6169_v4, 2  ;;  %v4398_v1 = vcombine.low %v4390_v40, %v4397_v15  ;;  %v10504_v12 = vpop.f32.mrb[76].mxu1  ;;  %v6176_v13 = vshrl.u32 %v10458_v2, 16  ;;  %v6182_v6 = vshll.u32 %v10478_v47, 16 }
 0x1b5   : > { %v6186_v50 = vshrl.u32 %v10478_v47, 16  ;;  %v6192_v44 = vshll.u32 %v5367_v32, 16  ;;  %v8757_v30 = vpop.f32.mrb[77].mxu1  ;;  %v6886_v29 = vrot.slane %v6878_v52, %v9123_v28  ;;  %v6196_v5 = vshrl.u32 %v5367_v32, 16 }
 0x1b6   : > { %v6175_v24 = vsel %vm9131_vm8, %v6170_v42, %v6174_v0  ;;  %8840 = vmatmul.mubr.msk.bf16.gmra.mrb[152].mxu0 %vm2505_vm1, %v4398_v1  ;;  %v6202_v56 = vshll.u32 %v8282_v46, 16  ;;  %v10514_v20 = vpop.f32.mrb[78].mxu1  ;;  %v6178_v37 = vrot.slane %v6176_v13, 6  ;;  %v6184_v36 = vrot.slane %v6182_v6, 7 }
 0x1b7   : > { %v6879_v25 = vcombine.low %v6161_v41, %v6175_v24  ;;  %8843 = vmatprep.mubr.msk.bf16.mxu0 %vm9033_vm0, %v11300_v51  ;;  %v6188_v9 = vrot.slane %v6186_v50, 6  ;;  %v8758_v53 = vpop.f32.mrb[79].mxu1  ;;  %v6194_v4 = vrot.slane %v6192_v44, 7  ;;  %v6198_v40 = vrot.slane %v6196_v5, 6  ;;  %v10518_v42 = vpop.f32.mrb[72].mxu0 }
 0x1b8   : > { %v6204_v15 = vrot.slane %v6202_v56, 7  ;;  %v6206_v43 = vshrl.u32 %v8282_v46, 16  ;;  %v6179_v1 = vor.u32 %v6178_v37, %v6174_v0  ;;  %v6212_v49 = vshll.u32 %v5375_v35, 16  ;;  %v8645_v41 = vpop.f32.mrb[73].mxu0 }
 0x1b9   : > { %v6893_v52 = vrot.slane %v6879_v25, %v9123_v28  ;;  %v6189_v30 = vor.u32 %v6188_v9, %v6184_v36  ;;  %v6199_v24 = vor.u32 %v6198_v40, %v6194_v4  ;;  %v4399_v13 = vcombine.low %v10458_v2, %v10478_v47  ;;  %v10524_v50 = vld.sshfl [vmem:[%s9100_s4 + $0x9c] sm:$0x33 pattern:$0x76325410]  ;;  %v10526_v44 = vpop.f32.mrb[74].mxu0 }
 0x1ba   : > { %v6208_v3 = vrot.slane %v6206_v43, 6  ;;  %v4400_v6 = vcombine.low %v5367_v32, %v8125_v22  ;;  %v6180_v5 = vrot.slane %v6179_v1, 2  ;;  %v6214_v53 = vrot.slane %v6212_v49, 7  ;;  %v8646_v25 = vpop.f32.mrb[75].mxu0 }
 0x1bb   : > { %v6894_v46 = vcombine.low %v6886_v29, %v6893_v52  ;;  %v6190_v56 = vrot.slane %v6189_v30, 2  ;;  %v6200_v0 = vrot.slane %v6199_v24, 2  ;;  %v4407_v37 = vrot.slane %v4399_v13, %v9123_v28  ;;  %v10531_v40 = vld.sshfl [vmem:[%s9100_s4 + $0xa0] sm:$0x33 pattern:$0x76325410] }
 0x1bc   : > { %v6209_v35 = vor.u32 %v6208_v3, %v6204_v15  ;;  %v4414_v9 = vrot.slane %v4400_v6, %v9123_v28  ;;  %v6185_v2 = vsel %vm9131_vm8, %v6180_v5, %v6184_v36  ;;  %v10540_v49 = vadd.f32 %v10218_v57, %v10273_v31  ;;  %v10551_v43 = vld.sshfl [vmem:[%s9100_s4 + $0xa4] sm:$0x13 pattern:$0x76325410] }
 0x1bd   : > { %8948 = vmatmul.mubr.msk.bf16.gmra.mrb[152].mxu1 %vm2505_vm1, %v6894_v46  ;;  %v6195_v47 = vsel %vm9131_vm8, %v6190_v56, %v6194_v4  ;;  %v10544_v3 = vadd.f32 %v10221_v62, %v10280_v45  ;;  %v6205_v32 = vsel %vm9131_vm8, %v6200_v0, %v6204_v15  ;;  %v5383_v4 = vcombine.high %v10524_v50, %v10524_v50 }
 0x1be   : > { %11315 = vst [vmem:[#allocation23_spill] sm:$0xff] %v10540_v49  ;;  %8951 = vmatprep.mubr.msk.bf16.mxu1 %vm9033_vm0, %v11300_v51  ;;  %v6210_v22 = vrot.slane %v6209_v35, 2  ;;  %v6895_v29 = vcombine.low %v6185_v2, %v6195_v47  ;;  %v4415_v36 = vcombine.low %v4407_v37, %v4414_v9  ;;  %v5391_v57 = vcombine.high %v10531_v40, %v10531_v40 }
 0x1bf   : > { %11316 = vst [vmem:[#allocation24_spill] sm:$0xff] %v10544_v3  ;;  %v6217_v62 = vshrl.u32 %v10524_v50, 16  ;;  %v6220_v31 = vshll.u32 %v10524_v50, 16  ;;  %v10559_v45 = vpop.f32.mrb[80].mxu1  ;;  %v6236_v1 = vshll.u32 %v10531_v40, 16  ;;  %v6240_v30 = vshrl.u32 %v10531_v40, 16 }
 0x1c0   : > { %v6215_v15 = vsel %vm9131_vm8, %v6210_v22, %v6214_v53  ;;  %v6903_v52 = vrot.slane %v6895_v29, %v9123_v28  ;;  %8844 = vmatmul.mubr.msk.bf16.gmra.mrb[156].mxu0 %vm2505_vm1, %v4415_v36  ;;  %v8761_v41 = vpop.f32.mrb[81].mxu1  ;;  %v6226_v46 = vshll.u32 %v5383_v4, 16  ;;  %v6230_v56 = vshrl.u32 %v5383_v4, 16 }
 0x1c1   : > { %v6896_v24 = vcombine.low %v6205_v32, %v6215_v15  ;;  %8847 = vmatprep.mubr.msk.bf16.mxu0 %vm9033_vm0, %v11300_v51  ;;  %v6219_v13 = vrot.slane %v6217_v62, 6  ;;  %v6222_v6 = vrot.slane %v6220_v31, 7  ;;  %v10569_v5 = vpop.f32.mrb[82].mxu1  ;;  %v6238_v53 = vrot.slane %v6236_v1, 7 }
 0x1c2   : > { %v6242_v25 = vrot.slane %v6240_v30, 6  ;;  %v6246_v0 = vshll.u32 %v5391_v57, 16  ;;  %v8762_v35 = vpop.f32.mrb[83].mxu1  ;;  %v6228_v2 = vrot.slane %v6226_v46, 7  ;;  %v6250_v47 = vshrl.u32 %v5391_v57, 16  ;;  %v10572_v32 = vpop.f32.mrb[76].mxu0 }
 0x1c3   : > { %v6910_v37 = vrot.slane %v6896_v24, %v9123_v28  ;;  %v6223_v9 = vor.u32 %v6222_v6, %v6219_v13  ;;  %v6232_v22 = vrot.slane %v6230_v56, 6  ;;  %v6256_v62 = vshll.u32 %v10551_v43, 16  ;;  %v10576_v31 = vld.sshfl [vmem:[%s9100_s4 + $0xa8] sm:$0x33 pattern:$0x76325410] }
 0x1c4   : > { %v6243_v29 = vor.u32 %v6242_v25, %v6238_v53  ;;  %v6248_v36 = vrot.slane %v6246_v0, 7  ;;  %v8649_v15 = vpop.f32.mrb[77].mxu0  ;;  %v6252_v30 = vrot.slane %v6250_v47, 6  ;;  %v4416_v35 = vcombine.low %v10524_v50, %v5383_v4 }
 0x1c5   : > { %v6911_v41 = vcombine.low %v6903_v52, %v6910_v37  ;;  %v6224_v1 = vrot.slane %v6223_v9, 2  ;;  %v10579_v3 = vpop.f32.mrb[78].mxu0  ;;  %v6233_v24 = vor.u32 %v6232_v22, %v6228_v2  ;;  %v6258_v6 = vrot.slane %v6256_v62, 7 }
 0x1c6   : > { %v6244_v13 = vrot.slane %v6243_v29, 2  ;;  %v4417_v46 = vcombine.low %v10531_v40, %v5391_v57  ;;  %v8650_v56 = vpop.f32.mrb[79].mxu0  ;;  %v6253_v0 = vor.u32 %v6252_v30, %v6248_v36  ;;  %v4424_v52 = vrot.slane %v4416_v35, %v9123_v28  ;;  %v8287_v9 = vld.sshfl [vmem:[%s9100_s4 + $0xac] sm:$0x33 pattern:$0x76325410] }
 0x1c7   : > { %8952 = vmatmul.mubr.msk.bf16.gmra.mrb[156].mxu1 %vm2505_vm1, %v6911_v41  ;;  %v6229_v25 = vsel %vm9131_vm8, %v6224_v1, %v6228_v2  ;;  %v10588_v50 = vadd.f32 %v10263_v18, %v10326_v8  ;;  %v6234_v4 = vrot.slane %v6233_v24, 2  ;;  %v10597_v37 = vadd.f32 %v10266_v26, %v10337_v48  ;;  %v8128_v30 = vld.sshfl [vmem:[%s9100_s4 + $0xa4] sm:$0x3 pattern:$0x76325410] }
 0x1c8   : > { %8955 = vmatprep.mubr.msk.bf16.mxu1 %vm9033_vm0, %v11300_v51  ;;  %v6249_v40 = vsel %vm9131_vm8, %v6244_v13, %v6248_v36  ;;  %v4431_v57 = vrot.slane %v4417_v46, %v9123_v28  ;;  %v6254_v2 = vrot.slane %v6253_v0, 2  ;;  %v5399_v18 = vcombine.high %v10551_v43, %v10551_v43 }
 0x1c9   : > { %11317 = vst [vmem:[#allocation25_spill] sm:$0xff] %v10588_v50  ;;  %11318 = vst [vmem:[#allocation26_spill] sm:$0xff] %v10597_v37  ;;  %v5407_v8 = vcombine.high %v10576_v31, %v10576_v31  ;;  %v10604_v47 = vcombine.high %v8287_v9, %v8287_v9  ;;  %v6239_v22 = vsel %vm9131_vm8, %v6234_v4, %v6238_v53  ;;  %v6260_v36 = vshrl.u32 %v10551_v43, 16  ;;  %v10610_v26 = vpop.f32.mrb[84].mxu1 }
 0x1ca   : > { %v4432_v29 = vcombine.low %v4424_v52, %v4431_v57  ;;  %v6271_v62 = vshrl.u32 %v10576_v31, 16  ;;  %v6259_v48 = vsel %vm9131_vm8, %v6254_v2, %v6258_v6  ;;  %v6912_v15 = vcombine.low %v6229_v25, %v6239_v22  ;;  %v8765_v35 = vpop.f32.mrb[85].mxu1 }
 0x1cb   : > { %v6266_v41 = vshll.u32 %v5399_v18, 16  ;;  %v6274_v1 = vshll.u32 %v10576_v31, 16  ;;  %v6913_v24 = vcombine.low %v6249_v40, %v6259_v48  ;;  %v6262_v53 = vrot.slane %v6260_v36, 6  ;;  %v10617_v43 = vpop.f32.mrb[86].mxu1 }
 0x1cc   : > { %8848 = vmatmul.mubr.msk.bf16.gmra.mrb[160].mxu0 %vm2505_vm1, %v4432_v29  ;;  %v6273_v13 = vrot.slane %v6271_v62, 6  ;;  %v6280_v46 = vshll.u32 %v5407_v8, 16  ;;  %v6920_v56 = vrot.slane %v6912_v15, %v9123_v28  ;;  %v6284_v52 = vshrl.u32 %v5407_v8, 16  ;;  %v8766_v4 = vpop.f32.mrb[87].mxu1 }
 0x1cd   : > { %8851 = vmatprep.mubr.msk.bf16.mxu0 %vm9033_vm0, %v11300_v51  ;;  %v6268_v25 = vrot.slane %v6266_v41, 7  ;;  %v6276_v0 = vrot.slane %v6274_v1, 7  ;;  %v6927_v57 = vrot.slane %v6913_v24, %v9123_v28  ;;  %v6263_v40 = vor.u32 %v6262_v53, %v6258_v6  ;;  %v10623_v22 = vpop.f32.mrb[80].mxu0 }
 0x1ce   : > { %v6282_v2 = vrot.slane %v6280_v46, 7  ;;  %v6290_v18 = vshll.u32 %v8287_v9, 16  ;;  %v6286_v36 = vrot.slane %v6284_v52, 6  ;;  %v6294_v62 = vshrl.u32 %v8287_v9, 16  ;;  %v8653_v35 = vpop.f32.mrb[81].mxu0 }
 0x1cf   : > { %v6277_v29 = vor.u32 %v6276_v0, %v6273_v13  ;;  %v6300_v48 = vshll.u32 %v10604_v47, 16  ;;  %v10627_v15 = vld.sshfl [vmem:[%s9100_s4 + $0xb4] sm:$0x33 pattern:$0x76325410]  ;;  %v6928_v41 = vcombine.low %v6920_v56, %v6927_v57  ;;  %v6264_v1 = vrot.slane %v6263_v40, 2 }
 0x1d0   : > { %v6292_v37 = vrot.slane %v6290_v18, 7  ;;  %v4433_v4 = vcombine.low %v8128_v30, %v10576_v31  ;;  %v10630_v24 = vpop.f32.mrb[82].mxu0  ;;  %v6287_v53 = vor.u32 %v6286_v36, %v6282_v2  ;;  %v6296_v46 = vrot.slane %v6294_v62, 6 }
 0x1d1   : > { %v6278_v6 = vrot.slane %v6277_v29, 2  ;;  %v6302_v50 = vrot.slane %v6300_v48, 7  ;;  %v8654_v13 = vpop.f32.mrb[83].mxu0  ;;  %8956 = vmatmul.mubr.msk.bf16.gmra.mrb[160].mxu1 %vm2505_vm1, %v6928_v41  ;;  %v6269_v0 = vsel %vm9131_vm8, %v6264_v1, %v6268_v25  ;;  %v4434_v52 = vcombine.low %v5407_v8, %v8287_v9 }
 0x1d2   : > { %v4441_v56 = vrot.slane %v4433_v4, %v9123_v28  ;;  %v10638_v57 = vadd.f32 %v10316_v27, %v10383_v21  ;;  %v8288_v31 = vld.sshfl [vmem:[%s9100_s4 + $0xb0] sm:$0x13 pattern:$0x76325410]  ;;  %8959 = vmatprep.mubr.msk.bf16.mxu1 %vm9033_vm0, %v11300_v51  ;;  %v6288_v40 = vrot.slane %v6287_v53, 2  ;;  %v6297_v18 = vor.u32 %v6296_v46, %v6292_v37 }
 0x1d3   : > { %v6283_v30 = vsel %vm9131_vm8, %v6278_v6, %v6282_v2  ;;  %v10647_v25 = vadd.f32 %v10323_v14, %v10395_v63  ;;  %v4448_v8 = vrot.slane %v4434_v52, %v9123_v28  ;;  %v5423_v29 = vcombine.high %v8288_v31, %v8288_v31  ;;  %v10652_v21 = vpop.f32.mrb[88].mxu1  ;;  %v10657_v62 = vld.sshfl [vmem:[%s9100_s4 + $0xb8] sm:$0x33 pattern:$0x76325410] }
 0x1d4   : > { %11319 = vst [vmem:[#allocation27_spill] sm:$0xff] %v10638_v57  ;;  %v6929_v9 = vcombine.low %v6269_v0, %v6283_v30  ;;  %v5431_v27 = vcombine.high %v10627_v15, %v10627_v15  ;;  %v6293_v36 = vsel %vm9131_vm8, %v6288_v40, %v6292_v37  ;;  %v6298_v2 = vrot.slane %v6297_v18, 2  ;;  %v8769_v63 = vpop.f32.mrb[89].mxu1 }
 0x1d5   : > { %11320 = vst [vmem:[#allocation28_spill] sm:$0xff] %v10647_v25  ;;  %v6304_v48 = vshrl.u32 %v10604_v47, 16  ;;  %v6310_v14 = vshll.u32 %v8288_v31, 16  ;;  %v4449_v41 = vcombine.low %v4441_v56, %v4448_v8  ;;  %v6314_v1 = vshrl.u32 %v8288_v31, 16  ;;  %v10662_v53 = vpop.f32.mrb[90].mxu1 }
 0x1d6   : > { %v6937_v35 = vrot.slane %v6929_v9, %v9123_v28  ;;  %v6320_v4 = vshll.u32 %v5423_v29, 16  ;;  %v8131_v6 = vld.sshfl [vmem:[%s9100_s4 + $0xb0] sm:$0x3 pattern:$0x76325410]  ;;  %v6303_v46 = vsel %vm9131_vm8, %v6298_v2, %v6302_v50  ;;  %v6325_v0 = vshrl.u32 %v10627_v15, 16 }
 0x1d7   : > { %v6306_v13 = vrot.slane %v6304_v48, 6  ;;  %v6312_v37 = vrot.slane %v6310_v14, 7  ;;  %v8770_v52 = vpop.f32.mrb[91].mxu1  ;;  %v6930_v30 = vcombine.low %v6293_v36, %v6303_v46  ;;  %8852 = vmatmul.mubr.msk.bf16.gmra.mrb[164].mxu0 %vm2505_vm1, %v4449_v41  ;;  %v6316_v40 = vrot.slane %v6314_v1, 6  ;;  %v10669_v31 = vpop.f32.mrb[84].mxu0 }
 0x1d8   : > { %v6322_v18 = vrot.slane %v6320_v4, 7  ;;  %v6328_v56 = vshll.u32 %v10627_v15, 16  ;;  %8855 = vmatprep.mubr.msk.bf16.mxu0 %vm9033_vm0, %v11300_v51  ;;  %v6327_v8 = vrot.slane %v6325_v0, 6  ;;  %v6334_v29 = vshll.u32 %v5431_v27, 16  ;;  %v8657_v48 = vpop.f32.mrb[85].mxu0 }
 0x1d9   : > { %v6307_v9 = vor.u32 %v6306_v13, %v6302_v50  ;;  %v6338_v2 = vshrl.u32 %v5431_v27, 16  ;;  %v6944_v14 = vrot.slane %v6930_v30, %v9123_v28  ;;  %v6317_v63 = vor.u32 %v6316_v40, %v6312_v37  ;;  %v10675_v1 = vpop.f32.mrb[86].mxu0 }
 0x1da   : > { %v6330_v36 = vrot.slane %v6328_v56, 7  ;;  %v6344_v41 = vshll.u32 %v10657_v62, 16  ;;  %v6336_v46 = vrot.slane %v6334_v29, 7  ;;  %v4450_v25 = vcombine.low %v10604_v47, %v8131_v6  ;;  %v8658_v57 = vpop.f32.mrb[87].mxu0 }
 0x1db   : > { %v6308_v4 = vrot.slane %v6307_v9, 2  ;;  %v6340_v52 = vrot.slane %v6338_v2, 6  ;;  %v6945_v50 = vcombine.low %v6937_v35, %v6944_v14  ;;  %v6318_v13 = vrot.slane %v6317_v63, 2 }
 0x1dc   : > { %v6331_v0 = vor.u32 %v6330_v36, %v6327_v8  ;;  %v6346_v48 = vrot.slane %v6344_v41, 7  ;;  %v4451_v56 = vcombine.low %v10627_v15, %v5431_v27  ;;  %v4458_v49 = vrot.slane %v4450_v25, %v9123_v28  ;;  %v8291_v6 = vld.sshfl [vmem:[%s9100_s4 + $0xbc] sm:$0x13 pattern:$0x76325410] }
 0x1dd   : > { %v6313_v30 = vsel %vm9131_vm8, %v6308_v4, %v6312_v37  ;;  %v6341_v40 = vor.u32 %v6340_v52, %v6336_v46  ;;  %8960 = vmatmul.mubr.msk.bf16.gmra.mrb[164].mxu1 %vm2505_vm1, %v6945_v50  ;;  %v6323_v9 = vsel %vm9131_vm8, %v6318_v13, %v6322_v18  ;;  %v10687_v57 = vadd.f32 %v10368_v11, %v10430_v59  ;;  %v8292_v37 = vld.sshfl [vmem:[%s9100_s4 + $0xc0] sm:$0x33 pattern:$0x76325410] }
 0x1de   : > { %v6332_v47 = vrot.slane %v6331_v0, 2  ;;  %v10691_v35 = vadd.f32 %v10375_v23, %v10436_v55  ;;  %8963 = vmatprep.mubr.msk.bf16.mxu1 %vm9033_vm0, %v11300_v51  ;;  %v6946_v25 = vcombine.low %v6313_v30, %v6323_v9  ;;  %v4465_v27 = vrot.slane %v4451_v56, %v9123_v28  ;;  %v10700_v8 = vpop.f32.mrb[92].mxu1 }
 0x1df   : > { %11321 = vst [vmem:[#allocation29_spill] sm:$0xff] %v10687_v57  ;;  %v6342_v15 = vrot.slane %v6341_v40, 2  ;;  %v5439_v18 = vcombine.high %v10657_v62, %v10657_v62  ;;  %v5447_v23 = vcombine.high %v8291_v6, %v8291_v6  ;;  %v10704_v59 = vcombine.high %v8292_v37, %v8292_v37  ;;  %v8773_v29 = vpop.f32.mrb[93].mxu1 }
 0x1e0   : > { %11322 = vst [vmem:[#allocation30_spill] sm:$0xff] %v10691_v35  ;;  %v6337_v11 = vsel %vm9131_vm8, %v6332_v47, %v6336_v46  ;;  %v6348_v55 = vshrl.u32 %v10657_v62, 16  ;;  %v6954_v14 = vrot.slane %v6946_v25, %v9123_v28  ;;  %v4466_v63 = vcombine.low %v4458_v49, %v4465_v27  ;;  %v10710_v41 = vpop.f32.mrb[94].mxu1 }
 0x1e1   : > { %v6347_v2 = vsel %vm9131_vm8, %v6342_v15, %v6346_v48  ;;  %v6354_v36 = vshll.u32 %v5439_v18, 16  ;;  %v6358_v50 = vshrl.u32 %v5439_v18, 16  ;;  %v6364_v13 = vshll.u32 %v8291_v6, 16  ;;  %v8774_v0 = vpop.f32.mrb[95].mxu1 }
 0x1e2   : > { %v6947_v4 = vcombine.low %v6337_v11, %v6347_v2  ;;  %v6350_v52 = vrot.slane %v6348_v55, 6  ;;  %v8134_v46 = vld.sshfl [vmem:[%s9100_s4 + $0xbc] sm:$0x3 pattern:$0x76325410]  ;;  %8856 = vmatmul.mubr.msk.bf16.gmra.mrb[168].mxu0 %vm2505_vm1, %v4466_v63  ;;  %v6368_v40 = vshrl.u32 %v8291_v6, 16 }
 0x1e3   : > { %v6356_v30 = vrot.slane %v6354_v36, 7  ;;  %v6374_v56 = vshll.u32 %v5447_v23, 16  ;;  %v6379_v9 = vshrl.u32 %v8292_v37, 16  ;;  %v10714_v47 = vpop.f32.mrb[88].mxu0  ;;  %8859 = vmatprep.mubr.msk.bf16.mxu0 %vm9033_vm0, %v11300_v51  ;;  %v6360_v25 = vrot.slane %v6358_v50, 6 }
 0x1e4   : > { %v6961_v15 = vrot.slane %v6947_v4, %v9123_v28  ;;  %v6351_v49 = vor.u32 %v6350_v52, %v6346_v48  ;;  %v6366_v27 = vrot.slane %v6364_v13, 7  ;;  %v8661_v11 = vpop.f32.mrb[89].mxu0  ;;  %v6370_v55 = vrot.slane %v6368_v40, 6 }
 0x1e5   : > { %v6376_v29 = vrot.slane %v6374_v56, 7  ;;  %v6381_v2 = vrot.slane %v6379_v9, 6  ;;  %v6382_v63 = vshll.u32 %v8292_v37, 16  ;;  %v10719_v36 = vpop.f32.mrb[90].mxu0  ;;  %v6361_v0 = vor.u32 %v6360_v25, %v6356_v30 }
 0x1e6   : > { %v6962_v6 = vcombine.low %v6954_v14, %v6961_v15  ;;  %v6352_v23 = vrot.slane %v6351_v49, 2  ;;  %v6388_v35 = vshll.u32 %v10704_v59, 16  ;;  %v8662_v4 = vpop.f32.mrb[91].mxu0  ;;  %v6371_v57 = vor.u32 %v6370_v55, %v6366_v27 }
 0x1e7   : > { %v6384_v58 = vrot.slane %v6382_v63, 7  ;;  %v4467_v48 = vcombine.low %v10657_v62, %v5439_v18  ;;  %v4468_v52 = vcombine.low %v8134_v46, %v8292_v37  ;;  %v10724_v50 = vld.sshfl [vmem:[%s9100_s4 + $0xc4] sm:$0x33 pattern:$0x76325410]  ;;  %v6362_v40 = vrot.slane %v6361_v0, 2 }
 0x1e8   : > { %8964 = vmatmul.mubr.msk.bf16.gmra.mrb[168].mxu1 %vm2505_vm1, %v6962_v6  ;;  %v6357_v13 = vsel %vm9131_vm8, %v6352_v23, %v6356_v30  ;;  %v6390_v14 = vrot.slane %v6388_v35, 7  ;;  %v10731_v56 = vadd.f32 %v10419_v61, %v10473_v54  ;;  %v6372_v9 = vrot.slane %v6371_v57, 2  ;;  %v8294_v18 = vld.sshfl [vmem:[%s9100_s4 + $0xc8] sm:$0x13 pattern:$0x76325410] }
 0x1e9   : > { %8967 = vmatprep.mubr.msk.bf16.mxu1 %vm9033_vm0, %v11300_v51  ;;  %v6385_v15 = vor.u32 %v6384_v58, %v6381_v2  ;;  %v4475_v62 = vrot.slane %v4467_v48, %v9123_v28  ;;  %v4482_v37 = vrot.slane %v4468_v52, %v9123_v28  ;;  %v10738_v46 = vpop.f32.mrb[96].mxu1  ;;  %v6367_v35 = vsel %vm9131_vm8, %v6362_v40, %v6366_v27  ;;  %v8137_v63 = vld.sshfl [vmem:[%s9100_s4 + $0xc8] sm:$0x3 pattern:$0x76325410] }
 0x1ea   : > { %11323 = vst [vmem:[#allocation31_spill] sm:$0xff] %v10731_v56  ;;  %v10744_v61 = vadd.f32 %v10425_v16, %v10480_v34  ;;  %v5463_v54 = vcombine.high %v10724_v50, %v10724_v50  ;;  %v5471_v57 = vcombine.high %v8294_v18, %v8294_v18  ;;  %v8777_v58 = vpop.f32.mrb[97].mxu1  ;;  %v6377_v30 = vsel %vm9131_vm8, %v6372_v9, %v6376_v29 }
 0x1eb   : > { %v6386_v49 = vrot.slane %v6385_v15, 2  ;;  %v6963_v25 = vcombine.low %v6357_v13, %v6367_v35  ;;  %v4483_v11 = vcombine.low %v4475_v62, %v4482_v37  ;;  %v10750_v55 = vpop.f32.mrb[98].mxu1  ;;  %v6392_v2 = vshrl.u32 %v10704_v59, 16 }
 0x1ec   : > { %11324 = vst [vmem:[#allocation32_spill] sm:$0xff] %v10744_v61  ;;  %v6398_v27 = vshll.u32 %v10724_v50, 16  ;;  %v6402_v16 = vshrl.u32 %v10724_v50, 16  ;;  %v6408_v34 = vshll.u32 %v5463_v54, 16  ;;  %v10756_v6 = vpop.f32.mrb[92].mxu0  ;;  %v8778_v23 = vpop.f32.mrb[99].mxu1 }
 0x1ed   : > { %v6391_v0 = vsel %vm9131_vm8, %v6386_v49, %v6390_v14  ;;  %v6971_v29 = vrot.slane %v6963_v25, %v9123_v28  ;;  %8860 = vmatmul.mubr.msk.bf16.gmra.mrb[172].mxu0 %vm2505_vm1, %v4483_v11  ;;  %v6412_v4 = vshrl.u32 %v5463_v54, 16  ;;  %v6418_v48 = vshll.u32 %v8294_v18, 16  ;;  %v8665_v52 = vpop.f32.mrb[93].mxu0 }
 0x1ee   : > { %v6964_v13 = vcombine.low %v6377_v30, %v6391_v0  ;;  %8863 = vmatprep.mubr.msk.bf16.mxu0 %vm9033_vm0, %v11300_v51  ;;  %v6394_v40 = vrot.slane %v6392_v2, 6  ;;  %v6400_v9 = vrot.slane %v6398_v27, 7  ;;  %v6404_v15 = vrot.slane %v6402_v16, 6  ;;  %v10764_v62 = vpop.f32.mrb[94].mxu0 }
 0x1ef   : > { %v6410_v37 = vrot.slane %v6408_v34, 7  ;;  %v6414_v35 = vrot.slane %v6412_v4, 6  ;;  %v6420_v58 = vrot.slane %v6418_v48, 7  ;;  %v6422_v49 = vshrl.u32 %v8294_v18, 16  ;;  %v8666_v25 = vpop.f32.mrb[95].mxu0 }
 0x1f0   : > { %v6978_v11 = vrot.slane %v6964_v13, %v9123_v28  ;;  %v6395_v23 = vor.u32 %v6394_v40, %v6390_v14  ;;  %v6405_v52 = vor.u32 %v6404_v15, %v6400_v9  ;;  %v6428_v30 = vshll.u32 %v5471_v57, 16  ;;  %v10770_v16 = vld.sshfl [vmem:[%s9100_s4 + $0xcc] sm:$0x33 pattern:$0x76325410] }
 0x1f1   : > { %v6415_v0 = vor.u32 %v6414_v35, %v6410_v37  ;;  %v6424_v61 = vrot.slane %v6422_v49, 6  ;;  %v4484_v2 = vcombine.low %v10704_v59, %v10724_v50  ;;  %v4485_v27 = vcombine.low %v5463_v54, %v8137_v63  ;;  %v8296_v57 = vld.sshfl [vmem:[%s9100_s4 + $0xd0] sm:$0x33 pattern:$0x76325410] }
 0x1f2   : > { %v6979_v56 = vcombine.low %v6971_v29, %v6978_v11  ;;  %v6396_v34 = vrot.slane %v6395_v23, 2  ;;  %v6406_v4 = vrot.slane %v6405_v52, 2  ;;  %v6430_v48 = vrot.slane %v6428_v30, 7 }
 0x1f3   : > { %v6416_v18 = vrot.slane %v6415_v0, 2  ;;  %v6425_v25 = vor.u32 %v6424_v61, %v6420_v58  ;;  %v4492_v14 = vrot.slane %v4484_v2, %v9123_v28  ;;  %v4499_v13 = vrot.slane %v4485_v27, %v9123_v28 }
 0x1f4   : > { %8968 = vmatmul.mubr.msk.bf16.gmra.mrb[172].mxu1 %vm2505_vm1, %v6979_v56  ;;  %v6401_v59 = vsel %vm9131_vm8, %v6396_v34, %v6400_v9  ;;  %v6411_v50 = vsel %vm9131_vm8, %v6406_v4, %v6410_v37  ;;  %v10782_v54 = vadd.f32 %v10464_v10, %v10518_v42  ;;  %v10786_v61 = vadd.f32 %v10468_v60, %v10526_v44  ;;  %v10793_v9 = vld.sshfl [vmem:[%s9100_s4 + $0xd4] sm:$0x13 pattern:$0x76325410] }
 0x1f5   : > { %8971 = vmatprep.mubr.msk.bf16.mxu1 %vm9033_vm0, %v11300_v51  ;;  %v6421_v56 = vsel %vm9131_vm8, %v6416_v18, %v6420_v58  ;;  %v6426_v63 = vrot.slane %v6425_v25, 2  ;;  %v6980_v29 = vcombine.low %v6401_v59, %v6411_v50  ;;  %v4500_v40 = vcombine.low %v4492_v14, %v4499_v13 }
 0x1f6   : > { %11325 = vst [vmem:[#allocation33_spill] sm:$0xff] %v10782_v54  ;;  %11326 = vst [vmem:[#allocation34_spill] sm:$0xff] %v10786_v61  ;;  %v5479_v15 = vcombine.high %v10770_v16, %v10770_v16  ;;  %v5487_v10 = vcombine.high %v8296_v57, %v8296_v57  ;;  %v6433_v42 = vshrl.u32 %v10770_v16, 16  ;;  %v6436_v60 = vshll.u32 %v10770_v16, 16  ;;  %v10803_v49 = vpop.f32.mrb[96].mxu0 }
 0x1f7   : > { %v6431_v44 = vsel %vm9131_vm8, %v6426_v63, %v6430_v48  ;;  %v6988_v37 = vrot.slane %v6980_v29, %v9123_v28  ;;  %8864 = vmatmul.mubr.msk.bf16.gmra.mrb[176].mxu0 %vm2505_vm1, %v4500_v40  ;;  %v6452_v35 = vshll.u32 %v8296_v57, 16  ;;  %v6456_v58 = vshrl.u32 %v8296_v57, 16  ;;  %v8669_v0 = vpop.f32.mrb[97].mxu0 }
 0x1f8   : > { %v6981_v11 = vcombine.low %v6421_v56, %v6431_v44  ;;  %8867 = vmatprep.mubr.msk.bf16.mxu0 %vm9033_vm0, %v11300_v51  ;;  %v6435_v23 = vrot.slane %v6433_v42, 6  ;;  %v6438_v52 = vrot.slane %v6436_v60, 7  ;;  %v6442_v30 = vshll.u32 %v5479_v15, 16  ;;  %v10807_v48 = vpop.f32.mrb[98].mxu0 }
 0x1f9   : > { %v6446_v2 = vshrl.u32 %v5479_v15, 16  ;;  %v6454_v27 = vrot.slane %v6452_v35, 7  ;;  %v6458_v34 = vrot.slane %v6456_v58, 6  ;;  %v6462_v4 = vshll.u32 %v5487_v10, 16  ;;  %v8670_v59 = vpop.f32.mrb[99].mxu0 }
 0x1fa   : > { %v6995_v18 = vrot.slane %v6981_v11, %v9123_v28  ;;  %v6439_v25 = vor.u32 %v6438_v52, %v6435_v23  ;;  %v6444_v14 = vrot.slane %v6442_v30, 7  ;;  %v6466_v13 = vshrl.u32 %v5487_v10, 16  ;;  %v10813_v23 = vld.sshfl [vmem:[%s9100_s4 + $0xd8] sm:$0x33 pattern:$0x76325410] }
 0x1fb   : > { %v6448_v50 = vrot.slane %v6446_v2, 6  ;;  %v6459_v56 = vor.u32 %v6458_v34, %v6454_v27  ;;  %v6464_v63 = vrot.slane %v6462_v4, 7  ;;  %v6472_v29 = vshll.u32 %v10793_v9, 16 }
 0x1fc   : > { %v6996_v40 = vcombine.low %v6988_v37, %v6995_v18  ;;  %v6440_v42 = vrot.slane %v6439_v25, 2  ;;  %v6468_v60 = vrot.slane %v6466_v13, 6  ;;  %v4501_v44 = vcombine.low %v10770_v16, %v5479_v15  ;;  %v10833_v34 = vld.sshfl [vmem:[%s9100_s4 + $0xdc] sm:$0x33 pattern:$0x76325410] }
 0x1fd   : > { %v6449_v35 = vor.u32 %v6448_v50, %v6444_v14  ;;  %v6460_v58 = vrot.slane %v6459_v56, 2  ;;  %v6474_v0 = vrot.slane %v6472_v29, 7  ;;  %v4502_v11 = vcombine.low %v8296_v57, %v5487_v10 }
 0x1fe   : > { %8972 = vmatmul.mubr.msk.bf16.gmra.mrb[176].mxu1 %vm2505_vm1, %v6996_v40  ;;  %v6445_v52 = vsel %vm9131_vm8, %v6440_v42, %v6444_v14  ;;  %v6469_v30 = vor.u32 %v6468_v60, %v6464_v63  ;;  %v4509_v2 = vrot.slane %v4501_v44, %v9123_v28  ;;  %v10821_v37 = vadd.f32 %v10504_v12, %v10572_v32  ;;  %v10835_v4 = vpop.f32.mrb[100].mxu0  ;;  %v8140_v60 = vld.sshfl [vmem:[%s9100_s4 + $0xd4] sm:$0x3 pattern:$0x76325410] }
 0x1ff   : > { %8975 = vmatprep.mubr.msk.bf16.mxu1 %vm9033_vm0, %v11300_v51  ;;  %v6450_v16 = vrot.slane %v6449_v35, 2  ;;  %v6465_v57 = vsel %vm9131_vm8, %v6460_v58, %v6464_v63  ;;  %v4516_v15 = vrot.slane %v4502_v11, %v9123_v28  ;;  %v10830_v10 = vadd.f32 %v10514_v20, %v10579_v3  ;;  %v8789_v14 = vpop.f32.mrb[101].mxu0 }
 0x200   : > { %11327 = vst [vmem:[#allocation35_spill] sm:$0xff] %v10821_v37  ;;  %v6470_v12 = vrot.slane %v6469_v30, 2  ;;  %v5495_v32 = vcombine.high %v10793_v9, %v10793_v9  ;;  %v5503_v18 = vcombine.high %v10813_v23, %v10813_v23  ;;  %v10843_v25 = vcombine.high %v10833_v34, %v10833_v34  ;;  %v10849_v50 = vpop.f32.mrb[100].mxu1  ;;  %v10851_v56 = vpop.f32.mrb[102].mxu0 }
 0x201   : > { %11328 = vst [vmem:[#allocation36_spill] sm:$0xff] %v10830_v10  ;;  %v6455_v20 = vsel %vm9131_vm8, %v6450_v16, %v6454_v27  ;;  %v4517_v3 = vcombine.low %v4509_v2, %v4516_v15  ;;  %v6476_v13 = vshrl.u32 %v10793_v9, 16  ;;  %v6487_v59 = vshrl.u32 %v10813_v23, 16  ;;  %v8897_v44 = vpop.f32.mrb[101].mxu1  ;;  %v8790_v35 = vpop.f32.mrb[103].mxu0 }
 0x202   : > { %v6475_v63 = vsel %vm9131_vm8, %v6470_v12, %v6474_v0  ;;  %v6997_v29 = vcombine.low %v6445_v52, %v6455_v20  ;;  %v6482_v40 = vshll.u32 %v5495_v32, 16  ;;  %v6490_v42 = vshll.u32 %v10813_v23, 16  ;;  %v10858_v30 = vpop.f32.mrb[102].mxu1 }
 0x203   : > { %v6998_v27 = vcombine.low %v6465_v57, %v6475_v63  ;;  %8868 = vmatmul.mubr.msk.bf16.gmra.mrb[180].mxu0 %vm2505_vm1, %v4517_v3  ;;  %v6478_v9 = vrot.slane %v6476_v13, 6  ;;  %v6489_v58 = vrot.slane %v6487_v59, 6  ;;  %v6496_v11 = vshll.u32 %v5503_v18, 16  ;;  %v8898_v12 = vpop.f32.mrb[103].mxu1 }
 0x204   : > { %v7005_v2 = vrot.slane %v6997_v29, %v9123_v28  ;;  %8871 = vmatprep.mubr.msk.bf16.mxu0 %vm9033_vm0, %v11300_v51  ;;  %v6484_v52 = vrot.slane %v6482_v40, 7  ;;  %v6492_v16 = vrot.slane %v6490_v42, 7  ;;  %v6500_v15 = vshrl.u32 %v5503_v18, 16 }
 0x205   : > { %v7012_v32 = vrot.slane %v6998_v27, %v9123_v28  ;;  %v6479_v57 = vor.u32 %v6478_v9, %v6474_v0  ;;  %v6498_v14 = vrot.slane %v6496_v11, 7  ;;  %v6506_v20 = vshll.u32 %v10833_v34, 16  ;;  %v10868_v29 = vld.sshfl [vmem:[%s9100_s4 + $0xe4] sm:$0x33 pattern:$0x76325410] }
 0x206   : > { %v6493_v3 = vor.u32 %v6492_v16, %v6489_v58  ;;  %v6502_v13 = vrot.slane %v6500_v15, 6  ;;  %v6510_v59 = vshrl.u32 %v10833_v34, 16  ;;  %v6516_v63 = vshll.u32 %v10843_v25, 16  ;;  %v10871_v12 = vpop.f32.mrb[104].mxu0 }
 0x207   : > { %v7013_v44 = vcombine.low %v7005_v2, %v7012_v32  ;;  %v6480_v40 = vrot.slane %v6479_v57, 2  ;;  %v6508_v42 = vrot.slane %v6506_v20, 7  ;;  %v4518_v35 = vcombine.low %v8140_v60, %v10813_v23  ;;  %v8793_v58 = vpop.f32.mrb[105].mxu0 }
 0x208   : > { %v6494_v0 = vrot.slane %v6493_v3, 2  ;;  %v6503_v27 = vor.u32 %v6502_v13, %v6498_v14  ;;  %v6512_v9 = vrot.slane %v6510_v59, 6  ;;  %v6518_v11 = vrot.slane %v6516_v63, 7  ;;  %v10883_v60 = vpop.f32.mrb[106].mxu0 }
 0x209   : > { %8976 = vmatmul.mubr.msk.bf16.gmra.mrb[180].mxu1 %vm2505_vm1, %v7013_v44  ;;  %v6485_v16 = vsel %vm9131_vm8, %v6480_v40, %v6484_v52  ;;  %v4519_v15 = vcombine.low %v5503_v18, %v10833_v34  ;;  %v4526_v2 = vrot.slane %v4518_v35, %v9123_v28  ;;  %v10880_v32 = vadd.f32 %v10559_v45, %v10623_v22  ;;  %v8300_v23 = vld.sshfl [vmem:[%s9100_s4 + $0xe0] sm:$0x13 pattern:$0x76325410]  ;;  %v8794_v18 = vpop.f32.mrb[107].mxu0 }
 0x20a   : > { %8979 = vmatprep.mubr.msk.bf16.mxu1 %vm9033_vm0, %v11300_v51  ;;  %v6499_v57 = vsel %vm9131_vm8, %v6494_v0, %v6498_v14  ;;  %v6504_v20 = vrot.slane %v6503_v27, 2  ;;  %v6513_v52 = vor.u32 %v6512_v9, %v6508_v42  ;;  %v10891_v34 = vadd.f32 %v10569_v5, %v10630_v24  ;;  %v10896_v59 = vpop.f32.mrb[104].mxu1  ;;  %v10901_v44 = vld.sshfl [vmem:[%s9100_s4 + $0xe8] sm:$0x33 pattern:$0x76325410] }
 0x20b   : > { %11329 = vst [vmem:[#allocation37_spill] sm:$0xff] %v10880_v32  ;;  %v7014_v45 = vcombine.low %v6485_v16, %v6499_v57  ;;  %v4533_v22 = vrot.slane %v4519_v15, %v9123_v28  ;;  %v5519_v3 = vcombine.high %v8300_v23, %v8300_v23  ;;  %v5527_v13 = vcombine.high %v10868_v29, %v10868_v29  ;;  %v8901_v40 = vpop.f32.mrb[105].mxu1  ;;  %v8143_v58 = vld.sshfl [vmem:[%s9100_s4 + $0xe0] sm:$0x3 pattern:$0x76325410] }
 0x20c   : > { %11330 = vst [vmem:[#allocation38_spill] sm:$0xff] %v10891_v34  ;;  %v6509_v14 = vsel %vm9131_vm8, %v6504_v20, %v6508_v42  ;;  %v6514_v63 = vrot.slane %v6513_v52, 2  ;;  %v6520_v5 = vshrl.u32 %v10843_v25, 16  ;;  %v6526_v24 = vshll.u32 %v8300_v23, 16  ;;  %v10906_v16 = vpop.f32.mrb[106].mxu1 }
 0x20d   : > { %v7022_v35 = vrot.slane %v7014_v45, %v9123_v28  ;;  %v4534_v0 = vcombine.low %v4526_v2, %v4533_v22  ;;  %v6530_v27 = vshrl.u32 %v8300_v23, 16  ;;  %v6536_v9 = vshll.u32 %v5519_v3, 16  ;;  %v8902_v52 = vpop.f32.mrb[107].mxu1 }
 0x20e   : > { %v6519_v15 = vsel %vm9131_vm8, %v6514_v63, %v6518_v11  ;;  %v6522_v57 = vrot.slane %v6520_v5, 6  ;;  %v6528_v42 = vrot.slane %v6526_v24, 7  ;;  %v6541_v20 = vshrl.u32 %v10868_v29, 16 }
 0x20f   : > { %v7015_v18 = vcombine.low %v6509_v14, %v6519_v15  ;;  %8872 = vmatmul.mubr.msk.bf16.gmra.mrb[184].mxu0 %vm2505_vm1, %v4534_v0  ;;  %v6532_v40 = vrot.slane %v6530_v27, 6  ;;  %v6538_v34 = vrot.slane %v6536_v9, 7  ;;  %v6544_v2 = vshll.u32 %v10868_v29, 16 }
 0x210   : > { %8875 = vmatprep.mubr.msk.bf16.mxu0 %vm9033_vm0, %v11300_v51  ;;  %v6523_v23 = vor.u32 %v6522_v57, %v6518_v11  ;;  %v6543_v45 = vrot.slane %v6541_v20, 6  ;;  %v6550_v22 = vshll.u32 %v5527_v13, 16  ;;  %v6554_v3 = vshrl.u32 %v5527_v13, 16  ;;  %v10915_v63 = vpop.f32.mrb[108].mxu0 }
 0x211   : > { %v7029_v5 = vrot.slane %v7015_v18, %v9123_v28  ;;  %v6533_v24 = vor.u32 %v6532_v40, %v6528_v42  ;;  %v6546_v52 = vrot.slane %v6544_v2, 7  ;;  %v6560_v14 = vshll.u32 %v10901_v44, 16  ;;  %v8797_v0 = vpop.f32.mrb[109].mxu0 }
 0x212   : > { %v6524_v27 = vrot.slane %v6523_v23, 2  ;;  %v6552_v9 = vrot.slane %v6550_v22, 7  ;;  %v6556_v15 = vrot.slane %v6554_v3, 6  ;;  %v4535_v32 = vcombine.low %v10843_v25, %v8143_v58  ;;  %v10920_v10 = vpop.f32.mrb[110].mxu0 }
 0x213   : > { %v7030_v11 = vcombine.low %v7022_v35, %v7029_v5  ;;  %v6534_v57 = vrot.slane %v6533_v24, 2  ;;  %v6547_v20 = vor.u32 %v6546_v52, %v6543_v45  ;;  %v6562_v37 = vrot.slane %v6560_v14, 7  ;;  %v8798_v61 = vpop.f32.mrb[111].mxu0 }
 0x214   : > { %v6529_v18 = vsel %vm9131_vm8, %v6524_v27, %v6528_v42  ;;  %v6557_v40 = vor.u32 %v6556_v15, %v6552_v9  ;;  %v4536_v2 = vcombine.low %v10868_v29, %v5527_v13  ;;  %v4543_v23 = vrot.slane %v4535_v32, %v9123_v28  ;;  %v8303_v42 = vld.sshfl [vmem:[%s9100_s4 + $0xec] sm:$0x13 pattern:$0x76325410] }
 0x215   : > { %8980 = vmatmul.mubr.msk.bf16.gmra.mrb[184].mxu1 %vm2505_vm1, %v7030_v11  ;;  %v6539_v25 = vsel %vm9131_vm8, %v6534_v57, %v6538_v34  ;;  %v6548_v58 = vrot.slane %v6547_v20, 2  ;;  %v10931_v35 = vadd.f32 %v10610_v26, %v10669_v31  ;;  %v10935_v61 = vadd.f32 %v10617_v43, %v10675_v1  ;;  %v8304_v45 = vld.sshfl [vmem:[%s9100_s4 + $0xf0] sm:$0x33 pattern:$0x76325410] }
 0x216   : > { %8983 = vmatprep.mubr.msk.bf16.mxu1 %vm9033_vm0, %v11300_v51  ;;  %v6558_v29 = vrot.slane %v6557_v40, 2  ;;  %v7031_v32 = vcombine.low %v6529_v18, %v6539_v25  ;;  %v4550_v13 = vrot.slane %v4536_v2, %v9123_v28  ;;  %v5535_v34 = vcombine.high %v10901_v44, %v10901_v44  ;;  %v10944_v22 = vpop.f32.mrb[108].mxu1 }
 0x217   : > { %11331 = vst [vmem:[#allocation39_spill] sm:$0xff] %v10931_v35  ;;  %11332 = vst [vmem:[#allocation40_spill] sm:$0xff] %v10935_v61  ;;  %v6553_v26 = vsel %vm9131_vm8, %v6548_v58, %v6552_v9  ;;  %v5543_v43 = vcombine.high %v8303_v42, %v8303_v42  ;;  %v10948_v31 = vcombine.high %v8304_v45, %v8304_v45  ;;  %v6564_v1 = vshrl.u32 %v10901_v44, 16  ;;  %v8905_v3 = vpop.f32.mrb[109].mxu1 }
 0x218   : > { %v6563_v5 = vsel %vm9131_vm8, %v6558_v29, %v6562_v37  ;;  %v7039_v24 = vrot.slane %v7031_v32, %v9123_v28  ;;  %v4551_v52 = vcombine.low %v4543_v23, %v4550_v13  ;;  %v6570_v14 = vshll.u32 %v5535_v34, 16  ;;  %v10954_v0 = vpop.f32.mrb[110].mxu1  ;;  %v8146_v9 = vld.sshfl [vmem:[%s9100_s4 + $0xec] sm:$0x3 pattern:$0x76325410] }
 0x219   : > { %v7032_v27 = vcombine.low %v6553_v26, %v6563_v5  ;;  %v6566_v15 = vrot.slane %v6564_v1, 6  ;;  %v6574_v11 = vshrl.u32 %v5535_v34, 16  ;;  %v6580_v57 = vshll.u32 %v8303_v42, 16  ;;  %v8906_v20 = vpop.f32.mrb[111].mxu1 }
 0x21a   : > { %8876 = vmatmul.mubr.msk.bf16.gmra.mrb[188].mxu0 %vm2505_vm1, %v4551_v52  ;;  %v6572_v18 = vrot.slane %v6570_v14, 7  ;;  %v6584_v40 = vshrl.u32 %v8303_v42, 16  ;;  %v6590_v2 = vshll.u32 %v5543_v43, 16  ;;  %v6595_v25 = vshrl.u32 %v8304_v45, 16 }
 0x21b   : > { %v7046_v58 = vrot.slane %v7032_v27, %v9123_v28  ;;  %8879 = vmatprep.mubr.msk.bf16.mxu0 %vm9033_vm0, %v11300_v51  ;;  %v6567_v23 = vor.u32 %v6566_v15, %v6562_v37  ;;  %v6576_v29 = vrot.slane %v6574_v11, 6  ;;  %v6582_v32 = vrot.slane %v6580_v57, 7  ;;  %v10961_v13 = vpop.f32.mrb[112].mxu0 }
 0x21c   : > { %v6586_v26 = vrot.slane %v6584_v40, 6  ;;  %v6592_v1 = vrot.slane %v6590_v2, 7  ;;  %v6597_v3 = vrot.slane %v6595_v25, 6  ;;  %v6598_v5 = vshll.u32 %v8304_v45, 16  ;;  %v8801_v52 = vpop.f32.mrb[113].mxu0 }
 0x21d   : > { %v7047_v14 = vcombine.low %v7039_v24, %v7046_v58  ;;  %v6568_v42 = vrot.slane %v6567_v23, 2  ;;  %v6577_v43 = vor.u32 %v6576_v29, %v6572_v18  ;;  %v6604_v20 = vshll.u32 %v10948_v31, 16  ;;  %v10964_v27 = vpop.f32.mrb[114].mxu0 }
 0x21e   : > { %v6587_v61 = vor.u32 %v6586_v26, %v6582_v32  ;;  %v6600_v37 = vrot.slane %v6598_v5, 7  ;;  %v4552_v15 = vcombine.low %v10901_v44, %v5535_v34  ;;  %v4553_v11 = vcombine.low %v8146_v9, %v8304_v45  ;;  %v10968_v57 = vld.sshfl [vmem:[%s9100_s4 + $0xf4] sm:$0x33 pattern:$0x76325410]  ;;  %v8802_v40 = vpop.f32.mrb[115].mxu0 }
 0x21f   : > { %8984 = vmatmul.mubr.msk.bf16.gmra.mrb[188].mxu1 %vm2505_vm1, %v7047_v14  ;;  %v6573_v24 = vsel %vm9131_vm8, %v6568_v42, %v6572_v18  ;;  %v6578_v2 = vrot.slane %v6577_v43, 2  ;;  %v6606_v25 = vrot.slane %v6604_v20, 7  ;;  %v10975_v58 = vadd.f32 %v10652_v21, %v10714_v47  ;;  %v8306_v9 = vld.sshfl [vmem:[%s9100_s4 + $0xf8] sm:$0x13 pattern:$0x76325410] }
 0x220   : > { %8987 = vmatprep.mubr.msk.bf16.mxu1 %vm9033_vm0, %v11300_v51  ;;  %v6588_v23 = vrot.slane %v6587_v61, 2  ;;  %v6601_v44 = vor.u32 %v6600_v37, %v6597_v3  ;;  %v4560_v45 = vrot.slane %v4552_v15, %v9123_v28  ;;  %v4567_v34 = vrot.slane %v4553_v11, %v9123_v28 }
 0x221   : > { %11333 = vst [vmem:[#allocation41_spill] sm:$0xff] %v10975_v58  ;;  %v6583_v18 = vsel %vm9131_vm8, %v6578_v2, %v6582_v32  ;;  %v10986_v29 = vadd.f32 %v10662_v53, %v10719_v36  ;;  %v5559_v21 = vcombine.high %v10968_v57, %v10968_v57  ;;  %v5567_v47 = vcombine.high %v8306_v9, %v8306_v9  ;;  %v10992_v52 = vpop.f32.mrb[112].mxu1  ;;  %v8149_v36 = vld.sshfl [vmem:[%s9100_s4 + $0xf8] sm:$0x3 pattern:$0x76325410] }
 0x222   : > { %v6593_v61 = vsel %vm9131_vm8, %v6588_v23, %v6592_v1  ;;  %v6602_v26 = vrot.slane %v6601_v44, 2  ;;  %v7048_v3 = vcombine.low %v6573_v24, %v6583_v18  ;;  %v4568_v5 = vcombine.low %v4560_v45, %v4567_v34  ;;  %v8909_v43 = vpop.f32.mrb[113].mxu1 }
 0x223   : > { %11334 = vst [vmem:[#allocation42_spill] sm:$0xff] %v10986_v29  ;;  %v6608_v14 = vshrl.u32 %v10948_v31, 16  ;;  %v6614_v32 = vshll.u32 %v10968_v57, 16  ;;  %v6618_v42 = vshrl.u32 %v10968_v57, 16  ;;  %v6624_v53 = vshll.u32 %v5559_v21, 16  ;;  %v11002_v11 = vpop.f32.mrb[114].mxu1 }
 0x224   : > { %v6607_v20 = vsel %vm9131_vm8, %v6602_v26, %v6606_v25  ;;  %v7056_v37 = vrot.slane %v7048_v3, %v9123_v28  ;;  %8880 = vmatmul.mubr.msk.bf16.gmra.mrb[192].mxu0 %vm2505_vm1, %v4568_v5  ;;  %v6628_v1 = vshrl.u32 %v5559_v21, 16  ;;  %v6634_v15 = vshll.u32 %v8306_v9, 16  ;;  %v8910_v44 = vpop.f32.mrb[115].mxu1 }
 0x225   : > { %v7049_v40 = vcombine.low %v6593_v61, %v6607_v20  ;;  %8883 = vmatprep.mubr.msk.bf16.mxu0 %vm9033_vm0, %v11300_v51  ;;  %v6610_v24 = vrot.slane %v6608_v14, 6  ;;  %v6616_v2 = vrot.slane %v6614_v32, 7  ;;  %v6620_v23 = vrot.slane %v6618_v42, 6  ;;  %v11006_v45 = vpop.f32.mrb[116].mxu0 }
 0x226   : > { %v6626_v34 = vrot.slane %v6624_v53, 7  ;;  %v6630_v18 = vrot.slane %v6628_v1, 6  ;;  %v6636_v26 = vrot.slane %v6634_v15, 7  ;;  %v6638_v3 = vshrl.u32 %v8306_v9, 16  ;;  %v8805_v43 = vpop.f32.mrb[117].mxu0 }
 0x227   : > { %v7063_v5 = vrot.slane %v7049_v40, %v9123_v28  ;;  %v6611_v29 = vor.u32 %v6610_v24, %v6606_v25  ;;  %v6621_v58 = vor.u32 %v6620_v23, %v6616_v2  ;;  %v6644_v35 = vshll.u32 %v5567_v47, 16  ;;  %v11009_v61 = vpop.f32.mrb[118].mxu0 }
 0x228   : > { %v6631_v20 = vor.u32 %v6630_v18, %v6626_v34  ;;  %v6640_v54 = vrot.slane %v6638_v3, 6  ;;  %v4569_v14 = vcombine.low %v10948_v31, %v10968_v57  ;;  %v4570_v32 = vcombine.low %v5559_v21, %v8149_v36  ;;  %v8806_v42 = vpop.f32.mrb[119].mxu0 }
 0x229   : > { %v7064_v44 = vcombine.low %v7056_v37, %v7063_v5  ;;  %v6612_v53 = vrot.slane %v6611_v29, 2  ;;  %v6622_v1 = vrot.slane %v6621_v58, 2  ;;  %v6646_v15 = vrot.slane %v6644_v35, 7 }
 0x22a   : > { %v6632_v9 = vrot.slane %v6631_v20, 2  ;;  %v6641_v43 = vor.u32 %v6640_v54, %v6636_v26  ;;  %v4577_v40 = vrot.slane %v4569_v14, %v9123_v28  ;;  %v4584_v25 = vrot.slane %v4570_v32, %v9123_v28 }
 0x22b   : > { %8988 = vmatmul.mubr.msk.bf16.gmra.mrb[192].mxu1 %vm2505_vm1, %v7064_v44  ;;  %v6617_v47 = vsel %vm9131_vm8, %v6612_v53, %v6616_v2  ;;  %v6627_v31 = vsel %vm9131_vm8, %v6622_v1, %v6626_v34  ;;  %v11022_v57 = vadd.f32 %v10700_v8, %v10756_v6  ;;  %v11026_v35 = vadd.f32 %v10710_v41, %v10764_v62  ;;  %v11032_v36 = vpop.f32.mrb[116].mxu1  ;;  %v11337_v53 = vld [vmem:[#allocation4_spill] sm:$0xff] }
 0x22c   : > { %8991 = vmatprep.mubr.msk.bf16.mxu1 %vm9033_vm0, %v11300_v51  ;;  %v6637_v54 = vsel %vm9131_vm8, %v6632_v9, %v6636_v26  ;;  %v6642_v58 = vrot.slane %v6641_v43, 2  ;;  %v7065_v29 = vcombine.low %v6617_v47, %v6627_v31  ;;  %v4585_v21 = vcombine.low %v4577_v40, %v4584_v25  ;;  %v8913_v41 = vpop.f32.mrb[117].mxu1 }
 0x22d   : > { %v11036_v37 = vadd.f32 %v10738_v46, %v10803_v49  ;;  %v11040_v8 = vadd.f32 %v10750_v55, %v10807_v48  ;;  %v4918_v51 = vadd.f32 %v10835_v4, %v9889_v7  ;;  %v11051_v46 = vld [vmem:[%s11283_s2] ss:$0 sm:$0xff]  ;;  %v4919_v55 = vadd.f32 %v10851_v56, %v9893_v19  ;;  %v7250_v49 = vpop.f32.mrb[118].mxu1 }
 0x22e   : > { %v6647_v6 = vsel %vm9131_vm8, %v6642_v58, %v6646_v15  ;;  %v7073_v62 = vrot.slane %v7065_v29, %v9123_v28  ;;  %8884 = vmatmul.mubr.msk.bf16.gmra.mrb[196].mxu0 %vm2505_vm1, %v4585_v21  ;;  %v4920_v7 = vadd.f32 %v10871_v12, %v9932_v33  ;;  %v4921_v4 = vadd.f32 %v10883_v60, %v9945_v39  ;;  %v8914_v2 = vpop.f32.mrb[119].mxu1  ;;  %v11335_v19 = vld [vmem:[#allocation2_spill] sm:$0xff]  ;;  %v11336_v33 = vld [vmem:[#allocation3_spill] sm:$0xff] }
 0x22f   : > { %v7066_v48 = vcombine.low %v6637_v54, %v6647_v6  ;;  %v7414_v38 = vadd.f32 %v10849_v50, %v4918_v51  ;;  %v4922_v24 = vadd.f32 %v10915_v63, %v9977_v17  ;;  %v7415_v23 = vadd.f32 %v10858_v30, %v4919_v55  ;;  %v11338_v54 = vld [vmem:[#allocation5_spill] sm:$0xff]  ;;  %v11339_v51 = vld [vmem:[#allocation6_spill] sm:$0xff]  ;;  %v11340_v6 = vld [vmem:[#allocation7_spill] sm:$0xff] }
 0x230   : > { %v7416_v34 = vadd.f32 %v10896_v59, %v4920_v7  ;;  %v4923_v56 = vadd.f32 %v10920_v10, %v11335_v19  ;;  %v4924_v12 = vadd.f32 %v10961_v13, %v11336_v33  ;;  %v7417_v39 = vadd.f32 %v10906_v16, %v4921_v4 }
 0x231   : > { %v7080_v50 = vrot.slane %v7066_v48, %v9123_v28  ;;  %v7471_v18 = vadd.f32 %v11051_v46, %v7414_v38  ;;  %v7418_v17 = vadd.f32 %v10944_v22, %v4922_v24  ;;  %v4759_v60 = vpop.f32.mrb[120].mxu0  ;;  %v7472_v63 = vadd.f32 %v11051_v46, %v7415_v23  ;;  %v11341_v48 = vld [vmem:[#allocation8_spill] sm:$0xff] }
 0x232   : > { %v7473_v30 = vadd.f32 %v11051_v46, %v7416_v34  ;;  %v7419_v59 = vadd.f32 %v10954_v0, %v4923_v56  ;;  %v7420_v10 = vadd.f32 %v10992_v52, %v4924_v12  ;;  %v8809_v26 = vpop.f32.mrb[121].mxu0  ;;  %v7474_v28 = vadd.f32 %v11051_v46, %v7417_v39  ;;  %v11342_v39 = vld [vmem:[#allocation9_spill] sm:$0xff] }
 0x233   : > { %v7081_v3 = vcombine.low %v7073_v62, %v7080_v50  ;;  %v7521_v13 = vmax.f32 %v7471_v18, 0.0  ;;  %v7475_v5 = vadd.f32 %v11051_v46, %v7418_v17  ;;  %v4762_v20 = vpop.f32.mrb[122].mxu0  ;;  %v7522_v16 = vmax.f32 %v7472_v63, 0.0 }
 0x234   : > { %v7523_v22 = vmax.f32 %v7473_v30, 0.0  ;;  %v7476_v0 = vadd.f32 %v11051_v46, %v7419_v59  ;;  %v7477_v52 = vadd.f32 %v11051_v46, %v7420_v10  ;;  %v8810_v14 = vpop.f32.mrb[123].mxu0  ;;  %v7524_v42 = vmax.f32 %v7474_v28, 0.0 }
 0x235   : > { %8992 = vmatmul.mubr.msk.bf16.gmra.mrb[196].mxu1 %vm2505_vm1, %v7081_v3  ;;  %v8397_v32 = vpack.c.bf16 %v7521_v13, %v7521_v13  ;;  %v7525_v44 = vmax.f32 %v7475_v5, 0.0  ;;  %v4925_v1 = vadd.f32 %v10964_v27, %v11337_v53  ;;  %v8398_v15 = vpack.c.bf16 %v7522_v16, %v7522_v16  ;;  %v11343_v3 = vld [vmem:[#allocation10_spill] sm:$0xff] }
 0x236   : > { %v8399_v9 = vpack.c.bf16 %v7523_v22, %v7523_v22  ;;  %v7526_v43 = vmax.f32 %v7476_v0, 0.0  ;;  %v7527_v40 = vmax.f32 %v7477_v52, 0.0  ;;  %v8400_v25 = vpack.c.bf16 %v7524_v42, %v7524_v42  ;;  %v7255_v29 = vpop.f32.mrb[120].mxu1 }
 0x237   : > { %7772 = vst.msk [vmem:[%s11082_s29] sm:$0xf] %vm7771_vm9, %v8397_v32  ;;  %v8401_v47 = vpack.c.bf16 %v7525_v44, %v7525_v44  ;;  %v7421_v31 = vadd.f32 %v11002_v11, %v4925_v1  ;;  %v4926_v58 = vadd.f32 %v11006_v45, %v11338_v54  ;;  %7773 = vst.msk [vmem:[%s11082_s29 + $0x4] sm:$0xf] %vm7771_vm9, %v8398_v15  ;;  %v8917_v55 = vpop.f32.mrb[121].mxu1  ;;  %v11344_v1 = vld [vmem:[#allocation11_spill] sm:$0xff] }
 0x238   : > { %7774 = vst.msk [vmem:[%s11082_s29 + $0x8] sm:$0xf] %vm7771_vm9, %v8399_v9  ;;  %v8402_v27 = vpack.c.bf16 %v7526_v43, %v7526_v43  ;;  %v8403_v21 = vpack.c.bf16 %v7527_v40, %v7527_v40  ;;  %v4927_v41 = vadd.f32 %v11009_v61, %v11339_v51  ;;  %v4928_v62 = vadd.f32 %v4759_v60, %v11340_v6  ;;  %v7258_v7 = vpop.f32.mrb[122].mxu1 }
 0x239   : > { %7775 = vst.msk [vmem:[%s11082_s29 + $0xc] sm:$0xf] %vm7771_vm9, %v8400_v25  ;;  %7776 = vst.msk [vmem:[%s11082_s29 + $0x10] sm:$0xf] %vm7771_vm9, %v8401_v47  ;;  %v7478_v11 = vadd.f32 %v11051_v46, %v7421_v31  ;;  %v7422_v45 = vadd.f32 %v11032_v36, %v4926_v58  ;;  %v4929_v38 = vadd.f32 %v4762_v20, %v11341_v48  ;;  %v8918_v24 = vpop.f32.mrb[123].mxu1  ;;  %v11345_v47 = vld [vmem:[#allocation12_spill] sm:$0xff] }
 0x23a   : > { %7777 = vst.msk [vmem:[%s11082_s29 + $0x14] sm:$0xf] %vm7771_vm9, %v8402_v27  ;;  %7778 = vst.msk [vmem:[%s11082_s29 + $0x18] sm:$0xf] %vm7771_vm9, %v8403_v21  ;;  %v7423_v4 = vadd.f32 %v7250_v49, %v4927_v41  ;;  %v7424_v61 = vadd.f32 %v7255_v29, %v4928_v62 }
 0x23b   : > { %v7528_v2 = vmax.f32 %v7478_v11, 0.0  ;;  %v7479_v23 = vadd.f32 %v11051_v46, %v7422_v45  ;;  %v7425_v34 = vadd.f32 %v7258_v7, %v4929_v38  ;;  %v11346_v7 = vld [vmem:[#allocation13_spill] sm:$0xff] }
 0x23c   : > { %v7480_v19 = vadd.f32 %v11051_v46, %v7423_v4  ;;  %v7481_v56 = vadd.f32 %v11051_v46, %v7424_v61  ;;  %v4767_v50 = vpop.f32.mrb[124].mxu0 }
 0x23d   : > { %v8404_v36 = vpack.c.bf16 %v7528_v2, %v7528_v2  ;;  %v7529_v33 = vmax.f32 %v7479_v23, 0.0  ;;  %v7482_v12 = vadd.f32 %v11051_v46, %v7425_v34  ;;  %v4930_v17 = vadd.f32 %v4767_v50, %v11342_v39  ;;  %v8813_v60 = vpop.f32.mrb[125].mxu0  ;;  %v11347_v2 = vld [vmem:[#allocation14_spill] sm:$0xff] }
 0x23e   : > { %v7530_v49 = vmax.f32 %v7480_v19, 0.0  ;;  %v7531_v18 = vmax.f32 %v7481_v56, 0.0  ;;  %v4770_v59 = vpop.f32.mrb[126].mxu0 }
 0x23f   : > { %7779 = vst.msk [vmem:[%s11082_s29 + $0x1c] sm:$0xf] %vm7771_vm9, %v8404_v36  ;;  %v8405_v63 = vpack.c.bf16 %v7529_v33, %v7529_v33  ;;  %v7532_v30 = vmax.f32 %v7482_v12, 0.0  ;;  %v4931_v13 = vadd.f32 %v4770_v59, %v11343_v3  ;;  %v8814_v28 = vpop.f32.mrb[127].mxu0 }
 0x240   : > { %v8406_v10 = vpack.c.bf16 %v7530_v49, %v7530_v49  ;;  %v8407_v26 = vpack.c.bf16 %v7531_v18, %v7531_v18 }
 0x241   : > { %7780 = vst.msk [vmem:[%s11082_s29 + $0x20] sm:$0xf] %vm7771_vm9, %v8405_v63  ;;  %v8408_v5 = vpack.c.bf16 %v7532_v30, %v7532_v30 }
 0x242   : > { %7781 = vst.msk [vmem:[%s11082_s29 + $0x24] sm:$0xf] %vm7771_vm9, %v8406_v10  ;;  %7782 = vst.msk [vmem:[%s11082_s29 + $0x28] sm:$0xf] %vm7771_vm9, %v8407_v26  ;;  %v7263_v20 = vpop.f32.mrb[124].mxu1  ;;  %v11349_v26 = vld [vmem:[#allocation16_spill] sm:$0xff] }
 0x243   : > { %7783 = vst.msk [vmem:[%s11082_s29 + $0x2c] sm:$0xf] %vm7771_vm9, %v8408_v5  ;;  %v7426_v16 = vadd.f32 %v7263_v20, %v4930_v17  ;;  %v8921_v22 = vpop.f32.mrb[125].mxu1  ;;  %v11348_v17 = vld [vmem:[#allocation15_spill] sm:$0xff] }
 0x244   : > { %v7266_v0 = vpop.f32.mrb[126].mxu1 }
 0x245   : > { %v7483_v52 = vadd.f32 %v11051_v46, %v7426_v16  ;;  %v7427_v14 = vadd.f32 %v7266_v0, %v4931_v13  ;;  %v8922_v32 = vpop.f32.mrb[127].mxu1 }
 0x247   : > { %v7533_v42 = vmax.f32 %v7483_v52, 0.0  ;;  %v7484_v44 = vadd.f32 %v11051_v46, %v7427_v14  ;;  %v4775_v53 = vpop.f32.mrb[128].mxu0 }
 0x248   : > { %v4932_v15 = vadd.f32 %v4775_v53, %v11344_v1  ;;  %v8817_v9 = vpop.f32.mrb[129].mxu0 }
 0x249   : > { %v8409_v43 = vpack.c.bf16 %v7533_v42, %v7533_v42  ;;  %v7534_v40 = vmax.f32 %v7484_v44, 0.0  ;;  %v4778_v25 = vpop.f32.mrb[130].mxu0 }
 0x24a   : > { %v4933_v31 = vadd.f32 %v4778_v25, %v11345_v47  ;;  %v8818_v54 = vpop.f32.mrb[131].mxu0 }
 0x24b   : > { %7784 = vst.msk [vmem:[%s11082_s29 + $0x30] sm:$0xf] %vm7771_vm9, %v8409_v43  ;;  %v8410_v58 = vpack.c.bf16 %v7534_v40, %v7534_v40 }
 0x24d   : > { %v7271_v29 = vpop.f32.mrb[128].mxu1  ;;  %7785 = vst.msk [vmem:[%s11082_s29 + $0x34] sm:$0xf] %vm7771_vm9, %v8410_v58 }
 0x24e   : > { %v7428_v27 = vadd.f32 %v7271_v29, %v4932_v15  ;;  %v8925_v21 = vpop.f32.mrb[129].mxu1  ;;  %v11350_v15 = vld [vmem:[#allocation17_spill] sm:$0xff] }
 0x24f   : > { %v7274_v51 = vpop.f32.mrb[130].mxu1 }
 0x250   : > { %v7485_v41 = vadd.f32 %v11051_v46, %v7428_v27  ;;  %v7429_v6 = vadd.f32 %v7274_v51, %v4933_v31  ;;  %v8926_v62 = vpop.f32.mrb[131].mxu1  ;;  %v11351_v31 = vld [vmem:[#allocation18_spill] sm:$0xff] }
 0x252   : > { %v7535_v55 = vmax.f32 %v7485_v41, 0.0  ;;  %v7486_v11 = vadd.f32 %v11051_v46, %v7429_v6  ;;  %v4783_v45 = vpop.f32.mrb[132].mxu0 }
 0x253   : > { %v4934_v48 = vadd.f32 %v4783_v45, %v11346_v7  ;;  %v8821_v38 = vpop.f32.mrb[133].mxu0 }
 0x254   : > { %v8411_v4 = vpack.c.bf16 %v7535_v55, %v7535_v55  ;;  %v7536_v61 = vmax.f32 %v7486_v11, 0.0  ;;  %v4786_v24 = vpop.f32.mrb[134].mxu0 }
 0x255   : > { %v4935_v23 = vadd.f32 %v4786_v24, %v11347_v2  ;;  %v8822_v34 = vpop.f32.mrb[135].mxu0 }
 0x256   : > { %7786 = vst.msk [vmem:[%s11082_s29 + $0x38] sm:$0xf] %vm7771_vm9, %v8411_v4  ;;  %v8412_v19 = vpack.c.bf16 %v7536_v61, %v7536_v61  ;;  %v11352_v4 = vld [vmem:[#allocation19_spill] sm:$0xff]  ;;  %v11353_v34 = vld [vmem:[#allocation20_spill] sm:$0xff] }
 0x258   : > { %7787 = vst.msk [vmem:[%s11082_s29 + $0x3c] sm:$0xf] %vm7771_vm9, %v8412_v19 }
 0x259   : > { %v7279_v56 = vpop.f32.mrb[132].mxu1 }
 0x25a   : > { %v7430_v36 = vadd.f32 %v7279_v56, %v4934_v48  ;;  %v8929_v33 = vpop.f32.mrb[133].mxu1 }
 0x25b   : > { %v7282_v12 = vpop.f32.mrb[134].mxu1 }
 0x25c   : > { %v7487_v50 = vadd.f32 %v11051_v46, %v7430_v36  ;;  %v7431_v49 = vadd.f32 %v7282_v12, %v4935_v23  ;;  %v8930_v18 = vpop.f32.mrb[135].mxu1  ;;  %v4791_v39 = vpop.f32.mrb[136].mxu0 }
 0x25d   : > { %v4936_v60 = vadd.f32 %v4791_v39, %v11348_v17  ;;  %v8825_v63 = vpop.f32.mrb[137].mxu0 }
 0x25e   : > { %v7537_v30 = vmax.f32 %v7487_v50, 0.0  ;;  %v7488_v59 = vadd.f32 %v11051_v46, %v7431_v49  ;;  %v4794_v10 = vpop.f32.mrb[138].mxu0 }
 0x25f   : > { %v4937_v3 = vadd.f32 %v4794_v10, %v11349_v26  ;;  %v8826_v13 = vpop.f32.mrb[139].mxu0 }
 0x260   : > { %v8413_v28 = vpack.c.bf16 %v7537_v30, %v7537_v30  ;;  %v7538_v5 = vmax.f32 %v7488_v59, 0.0  ;;  %v11354_v30 = vld [vmem:[#allocation21_spill] sm:$0xff] }
 0x262   : > { %7788 = vst.msk [vmem:[%s11082_s29 + $0x40] sm:$0xf] %vm7771_vm9, %v8413_v28  ;;  %v8414_v20 = vpack.c.bf16 %v7538_v5, %v7538_v5  ;;  %v11355_v28 = vld [vmem:[#allocation22_spill] sm:$0xff] }
 0x263   : > { %v7287_v16 = vpop.f32.mrb[136].mxu1 }
 0x264   : > { %7789 = vst.msk [vmem:[%s11082_s29 + $0x44] sm:$0xf] %vm7771_vm9, %v8414_v20  ;;  %v7432_v22 = vadd.f32 %v7287_v16, %v4936_v60  ;;  %v8933_v0 = vpop.f32.mrb[137].mxu1 }
 0x265   : > { %v7290_v52 = vpop.f32.mrb[138].mxu1 }
 0x266   : > { %v7489_v14 = vadd.f32 %v11051_v46, %v7432_v22  ;;  %v7433_v32 = vadd.f32 %v7290_v52, %v4937_v3  ;;  %v8934_v42 = vpop.f32.mrb[139].mxu1 }
 0x268   : > { %v7539_v44 = vmax.f32 %v7489_v14, 0.0  ;;  %v7490_v53 = vadd.f32 %v11051_v46, %v7433_v32  ;;  %v4799_v1 = vpop.f32.mrb[140].mxu0 }
 0x269   : > { %v4938_v9 = vadd.f32 %v4799_v1, %v11350_v15  ;;  %v8829_v43 = vpop.f32.mrb[141].mxu0 }
 0x26a   : > { %v8415_v40 = vpack.c.bf16 %v7539_v44, %v7539_v44  ;;  %v7540_v25 = vmax.f32 %v7490_v53, 0.0  ;;  %v4802_v47 = vpop.f32.mrb[142].mxu0 }
 0x26b   : > { %v4939_v54 = vadd.f32 %v4802_v47, %v11351_v31  ;;  %v8830_v58 = vpop.f32.mrb[143].mxu0 }
 0x26c   : > { %7790 = vst.msk [vmem:[%s11082_s29 + $0x48] sm:$0xf] %vm7771_vm9, %v8415_v40  ;;  %v8416_v29 = vpack.c.bf16 %v7540_v25, %v7540_v25 }
 0x26e   : > { %7791 = vst.msk [vmem:[%s11082_s29 + $0x4c] sm:$0xf] %vm7771_vm9, %v8416_v29  ;;  %v7295_v27 = vpop.f32.mrb[140].mxu1 }
 0x26f   : > { %v7434_v21 = vadd.f32 %v7295_v27, %v4938_v9  ;;  %v8937_v51 = vpop.f32.mrb[141].mxu1  ;;  %v11356_v9 = vld [vmem:[#allocation23_spill] sm:$0xff] }
 0x270   : > { %v7298_v41 = vpop.f32.mrb[142].mxu1 }
 0x271   : > { %v7491_v6 = vadd.f32 %v11051_v46, %v7434_v21  ;;  %v7435_v62 = vadd.f32 %v7298_v41, %v4939_v54  ;;  %v8938_v55 = vpop.f32.mrb[143].mxu1  ;;  %v11357_v54 = vld [vmem:[#allocation24_spill] sm:$0xff] }
 0x273   : > { %v7541_v11 = vmax.f32 %v7491_v6, 0.0  ;;  %v7492_v45 = vadd.f32 %v11051_v46, %v7435_v62  ;;  %v4807_v7 = vpop.f32.mrb[144].mxu0 }
 0x274   : > { %v4940_v61 = vadd.f32 %v4807_v7, %v11352_v4  ;;  %v8833_v24 = vpop.f32.mrb[145].mxu0  ;;  %v11358_v7 = vld [vmem:[#allocation25_spill] sm:$0xff] }
 0x275   : > { %v8417_v48 = vpack.c.bf16 %v7541_v11, %v7541_v11  ;;  %v7542_v38 = vmax.f32 %v7492_v45, 0.0  ;;  %v4810_v2 = vpop.f32.mrb[146].mxu0 }
 0x276   : > { %v4941_v19 = vadd.f32 %v4810_v2, %v11353_v34  ;;  %v8834_v56 = vpop.f32.mrb[147].mxu0  ;;  %v11359_v2 = vld [vmem:[#allocation26_spill] sm:$0xff] }
 0x277   : > { %7792 = vst.msk [vmem:[%s11082_s29 + $0x50] sm:$0xf] %vm7771_vm9, %v8417_v48  ;;  %v8418_v23 = vpack.c.bf16 %v7542_v38, %v7542_v38 }
 0x279   : > { %7793 = vst.msk [vmem:[%s11082_s29 + $0x54] sm:$0xf] %vm7771_vm9, %v8418_v23  ;;  %v7303_v36 = vpop.f32.mrb[144].mxu1 }
 0x27a   : > { %v7436_v33 = vadd.f32 %v7303_v36, %v4940_v61  ;;  %v8941_v12 = vpop.f32.mrb[145].mxu1 }
 0x27b   : > { %v7306_v50 = vpop.f32.mrb[146].mxu1 }
 0x27c   : > { %v7493_v49 = vadd.f32 %v11051_v46, %v7436_v33  ;;  %v7437_v18 = vadd.f32 %v7306_v50, %v4941_v19  ;;  %v8942_v39 = vpop.f32.mrb[147].mxu1 }
 0x27e   : > { %v7543_v17 = vmax.f32 %v7493_v49, 0.0  ;;  %v7494_v60 = vadd.f32 %v11051_v46, %v7437_v18  ;;  %v4815_v63 = vpop.f32.mrb[148].mxu0 }
 0x27f   : > { %v4942_v59 = vadd.f32 %v4815_v63, %v11354_v30  ;;  %v8837_v10 = vpop.f32.mrb[149].mxu0 }
 0x280   : > { %v8419_v26 = vpack.c.bf16 %v7543_v17, %v7543_v17  ;;  %v7544_v3 = vmax.f32 %v7494_v60, 0.0  ;;  %v4818_v13 = vpop.f32.mrb[150].mxu0 }
 0x281   : > { %v4943_v5 = vadd.f32 %v4818_v13, %v11355_v28  ;;  %v8838_v20 = vpop.f32.mrb[151].mxu0 }
 0x282   : > { %7794 = vst.msk [vmem:[%s11082_s29 + $0x58] sm:$0xf] %vm7771_vm9, %v8419_v26  ;;  %v8420_v16 = vpack.c.bf16 %v7544_v3, %v7544_v3 }
 0x284   : > { %v7311_v22 = vpop.f32.mrb[148].mxu1  ;;  %7795 = vst.msk [vmem:[%s11082_s29 + $0x5c] sm:$0xf] %vm7771_vm9, %v8420_v16 }
 0x285   : > { %v7438_v0 = vadd.f32 %v7311_v22, %v4942_v59  ;;  %v8945_v52 = vpop.f32.mrb[149].mxu1  ;;  %v11360_v59 = vld [vmem:[#allocation27_spill] sm:$0xff] }
 0x286   : > { %v7314_v14 = vpop.f32.mrb[150].mxu1 }
 0x287   : > { %v7495_v32 = vadd.f32 %v11051_v46, %v7438_v0  ;;  %v7439_v42 = vadd.f32 %v7314_v14, %v4943_v5  ;;  %v8946_v44 = vpop.f32.mrb[151].mxu1  ;;  %v11361_v5 = vld [vmem:[#allocation28_spill] sm:$0xff] }
 0x289   : > { %v7545_v53 = vmax.f32 %v7495_v32, 0.0  ;;  %v7496_v1 = vadd.f32 %v11051_v46, %v7439_v42  ;;  %v4823_v15 = vpop.f32.mrb[152].mxu0 }
 0x28a   : > { %v4944_v43 = vadd.f32 %v4823_v15, %v11356_v9  ;;  %v8841_v40 = vpop.f32.mrb[153].mxu0 }
 0x28b   : > { %v8421_v25 = vpack.c.bf16 %v7545_v53, %v7545_v53  ;;  %v7546_v47 = vmax.f32 %v7496_v1, 0.0  ;;  %v4826_v31 = vpop.f32.mrb[154].mxu0 }
 0x28c   : > { %v4945_v58 = vadd.f32 %v4826_v31, %v11357_v54  ;;  %v8842_v29 = vpop.f32.mrb[155].mxu0 }
 0x28d   : > { %7796 = vst.msk [vmem:[%s11082_s29 + $0x60] sm:$0xf] %vm7771_vm9, %v8421_v25  ;;  %v8422_v27 = vpack.c.bf16 %v7546_v47, %v7546_v47  ;;  %v11362_v25 = vld [vmem:[#allocation29_spill] sm:$0xff]  ;;  %v11363_v29 = vld [vmem:[#allocation30_spill] sm:$0xff] }
 0x28f   : > { %7797 = vst.msk [vmem:[%s11082_s29 + $0x64] sm:$0xf] %vm7771_vm9, %v8422_v27 }
 0x290   : > { %v7319_v21 = vpop.f32.mrb[152].mxu1 }
 0x291   : > { %v7440_v51 = vadd.f32 %v7319_v21, %v4944_v43  ;;  %v8949_v41 = vpop.f32.mrb[153].mxu1 }
 0x292   : > { %v7322_v6 = vpop.f32.mrb[154].mxu1 }
 0x293   : > { %v7497_v62 = vadd.f32 %v11051_v46, %v7440_v51  ;;  %v7441_v55 = vadd.f32 %v7322_v6, %v4945_v58  ;;  %v8950_v11 = vpop.f32.mrb[155].mxu1  ;;  %v4831_v45 = vpop.f32.mrb[156].mxu0 }
 0x294   : > { %v4946_v48 = vadd.f32 %v4831_v45, %v11358_v7  ;;  %v8845_v38 = vpop.f32.mrb[157].mxu0 }
 0x295   : > { %v7547_v4 = vmax.f32 %v7497_v62, 0.0  ;;  %v7498_v61 = vadd.f32 %v11051_v46, %v7441_v55  ;;  %v4834_v24 = vpop.f32.mrb[158].mxu0 }
 0x296   : > { %v4947_v23 = vadd.f32 %v4834_v24, %v11359_v2  ;;  %v8846_v34 = vpop.f32.mrb[159].mxu0 }
 0x297   : > { %v8423_v19 = vpack.c.bf16 %v7547_v4, %v7547_v4  ;;  %v7548_v56 = vmax.f32 %v7498_v61, 0.0  ;;  %v11364_v4 = vld [vmem:[#allocation31_spill] sm:$0xff] }
 0x299   : > { %7798 = vst.msk [vmem:[%s11082_s29 + $0x68] sm:$0xf] %vm7771_vm9, %v8423_v19  ;;  %v8424_v36 = vpack.c.bf16 %v7548_v56, %v7548_v56  ;;  %v11365_v19 = vld [vmem:[#allocation32_spill] sm:$0xff] }
 0x29a   : > { %v7327_v33 = vpop.f32.mrb[156].mxu1 }
 0x29b   : > { %7799 = vst.msk [vmem:[%s11082_s29 + $0x6c] sm:$0xf] %vm7771_vm9, %v8424_v36  ;;  %v7442_v12 = vadd.f32 %v7327_v33, %v4946_v48  ;;  %v8953_v50 = vpop.f32.mrb[157].mxu1 }
 0x29c   : > { %v7330_v49 = vpop.f32.mrb[158].mxu1 }
 0x29d   : > { %v7499_v18 = vadd.f32 %v11051_v46, %v7442_v12  ;;  %v7443_v39 = vadd.f32 %v7330_v49, %v4947_v23  ;;  %v8954_v17 = vpop.f32.mrb[159].mxu1 }
 0x29f   : > { %v7549_v60 = vmax.f32 %v7499_v18, 0.0  ;;  %v7500_v63 = vadd.f32 %v11051_v46, %v7443_v39  ;;  %v4839_v30 = vpop.f32.mrb[160].mxu0 }
 0x2a0   : > { %v4948_v10 = vadd.f32 %v4839_v30, %v11360_v59  ;;  %v8849_v26 = vpop.f32.mrb[161].mxu0 }
 0x2a1   : > { %v8425_v3 = vpack.c.bf16 %v7549_v60, %v7549_v60  ;;  %v7550_v13 = vmax.f32 %v7500_v63, 0.0  ;;  %v4842_v28 = vpop.f32.mrb[162].mxu0 }
 0x2a2   : > { %v4949_v20 = vadd.f32 %v4842_v28, %v11361_v5  ;;  %v8850_v16 = vpop.f32.mrb[163].mxu0 }
 0x2a3   : > { %7800 = vst.msk [vmem:[%s11082_s29 + $0x70] sm:$0xf] %vm7771_vm9, %v8425_v3  ;;  %v8426_v22 = vpack.c.bf16 %v7550_v13, %v7550_v13 }
 0x2a4   : > { %v7335_v0 = vpop.f32.mrb[160].mxu1 }
 0x2a5   : > { %7801 = vst.msk [vmem:[%s11082_s29 + $0x74] sm:$0xf] %vm7771_vm9, %v8426_v22  ;;  %v7444_v52 = vadd.f32 %v7335_v0, %v4948_v10  ;;  %v8957_v14 = vpop.f32.mrb[161].mxu1  ;;  %v11366_v10 = vld [vmem:[#allocation33_spill] sm:$0xff] }
 0x2a6   : > { %v7338_v32 = vpop.f32.mrb[162].mxu1 }
 0x2a7   : > { %v7501_v42 = vadd.f32 %v11051_v46, %v7444_v52  ;;  %v7445_v44 = vadd.f32 %v7338_v32, %v4949_v20  ;;  %v8958_v53 = vpop.f32.mrb[163].mxu1  ;;  %v11367_v20 = vld [vmem:[#allocation34_spill] sm:$0xff] }
 0x2a9   : > { %v7551_v1 = vmax.f32 %v7501_v42, 0.0  ;;  %v7502_v15 = vadd.f32 %v11051_v46, %v7445_v44 }
 0x2aa   : > { %v4847_v9 = vpop.f32.mrb[164].mxu0 }
 0x2ab   : > { %v8427_v43 = vpack.c.bf16 %v7551_v1, %v7551_v1  ;;  %v7552_v40 = vmax.f32 %v7502_v15, 0.0  ;;  %v4950_v47 = vadd.f32 %v4847_v9, %v11362_v25  ;;  %v8853_v31 = vpop.f32.mrb[165].mxu0  ;;  %v11368_v9 = vld [vmem:[#allocation35_spill] sm:$0xff] }
 0x2ac   : > { %v4850_v54 = vpop.f32.mrb[166].mxu0 }
 0x2ad   : > { %7802 = vst.msk [vmem:[%s11082_s29 + $0x78] sm:$0xf] %vm7771_vm9, %v8427_v43  ;;  %v8428_v58 = vpack.c.bf16 %v7552_v40, %v7552_v40  ;;  %v4951_v27 = vadd.f32 %v4850_v54, %v11363_v29  ;;  %v8854_v21 = vpop.f32.mrb[167].mxu0  ;;  %v11369_v54 = vld [vmem:[#allocation36_spill] sm:$0xff] }
 0x2af   : > { %7803 = vst.msk [vmem:[%s11082_s29 + $0x7c] sm:$0xf] %vm7771_vm9, %v8428_v58 }
 0x2b0   : > { %v7343_v51 = vpop.f32.mrb[164].mxu1 }
 0x2b1   : > { %v7446_v41 = vadd.f32 %v7343_v51, %v4950_v47  ;;  %v8961_v6 = vpop.f32.mrb[165].mxu1 }
 0x2b2   : > { %v7346_v62 = vpop.f32.mrb[166].mxu1 }
 0x2b3   : > { %v7503_v55 = vadd.f32 %v11051_v46, %v7446_v41  ;;  %v7447_v11 = vadd.f32 %v7346_v62, %v4951_v27  ;;  %v8962_v45 = vpop.f32.mrb[167].mxu1 }
 0x2b5   : > { %v7553_v7 = vmax.f32 %v7503_v55, 0.0  ;;  %v7504_v48 = vadd.f32 %v11051_v46, %v7447_v11  ;;  %v4855_v38 = vpop.f32.mrb[168].mxu0 }
 0x2b6   : > { %v4952_v61 = vadd.f32 %v4855_v38, %v11364_v4  ;;  %v8857_v24 = vpop.f32.mrb[169].mxu0 }
 0x2b7   : > { %v8429_v2 = vpack.c.bf16 %v7553_v7, %v7553_v7  ;;  %v7554_v23 = vmax.f32 %v7504_v48, 0.0  ;;  %v4858_v34 = vpop.f32.mrb[170].mxu0 }
 0x2b8   : > { %v4953_v56 = vadd.f32 %v4858_v34, %v11365_v19  ;;  %v8858_v36 = vpop.f32.mrb[171].mxu0 }
 0x2b9   : > { %7804 = vst.msk [vmem:[%s11082_s29 + $0x80] sm:$0xf] %vm7771_vm9, %v8429_v2  ;;  %v8430_v33 = vpack.c.bf16 %v7554_v23, %v7554_v23 }
 0x2bb   : > { %v7351_v12 = vpop.f32.mrb[168].mxu1  ;;  %7805 = vst.msk [vmem:[%s11082_s29 + $0x84] sm:$0xf] %vm7771_vm9, %v8430_v33 }
 0x2bc   : > { %v7448_v50 = vadd.f32 %v7351_v12, %v4952_v61  ;;  %v8965_v49 = vpop.f32.mrb[169].mxu1  ;;  %v11370_v61 = vld [vmem:[#allocation37_spill] sm:$0xff] }
 0x2bd   : > { %v7354_v18 = vpop.f32.mrb[170].mxu1 }
 0x2be   : > { %v7505_v39 = vadd.f32 %v11051_v46, %v7448_v50  ;;  %v7449_v17 = vadd.f32 %v7354_v18, %v4953_v56  ;;  %v8966_v60 = vpop.f32.mrb[171].mxu1  ;;  %v11371_v56 = vld [vmem:[#allocation38_spill] sm:$0xff] }
 0x2c0   : > { %v7555_v63 = vmax.f32 %v7505_v39, 0.0  ;;  %v7506_v30 = vadd.f32 %v11051_v46, %v7449_v17  ;;  %v4863_v59 = vpop.f32.mrb[172].mxu0 }
 0x2c1   : > { %v4954_v26 = vadd.f32 %v4863_v59, %v11366_v10  ;;  %v8861_v3 = vpop.f32.mrb[173].mxu0 }
 0x2c2   : > { %v8431_v13 = vpack.c.bf16 %v7555_v63, %v7555_v63  ;;  %v7556_v28 = vmax.f32 %v7506_v30, 0.0  ;;  %v4866_v5 = vpop.f32.mrb[174].mxu0 }
 0x2c3   : > { %v4955_v16 = vadd.f32 %v4866_v5, %v11367_v20  ;;  %v8862_v22 = vpop.f32.mrb[175].mxu0 }
 0x2c4   : > { %7806 = vst.msk [vmem:[%s11082_s29 + $0x88] sm:$0xf] %vm7771_vm9, %v8431_v13  ;;  %v8432_v0 = vpack.c.bf16 %v7556_v28, %v7556_v28  ;;  %v11372_v13 = vld [vmem:[#allocation39_spill] sm:$0xff]  ;;  %v11373_v22 = vld [vmem:[#allocation40_spill] sm:$0xff] }
 0x2c6   : > { %7807 = vst.msk [vmem:[%s11082_s29 + $0x8c] sm:$0xf] %vm7771_vm9, %v8432_v0 }
 0x2c7   : > { %v7359_v52 = vpop.f32.mrb[172].mxu1 }
 0x2c8   : > { %v7450_v14 = vadd.f32 %v7359_v52, %v4954_v26  ;;  %v8969_v32 = vpop.f32.mrb[173].mxu1 }
 0x2c9   : > { %v7362_v42 = vpop.f32.mrb[174].mxu1 }
 0x2ca   : > { %v7507_v44 = vadd.f32 %v11051_v46, %v7450_v14  ;;  %v7451_v53 = vadd.f32 %v7362_v42, %v4955_v16  ;;  %v8970_v1 = vpop.f32.mrb[175].mxu1  ;;  %v4871_v15 = vpop.f32.mrb[176].mxu0 }
 0x2cb   : > { %v4956_v43 = vadd.f32 %v4871_v15, %v11368_v9  ;;  %v8865_v40 = vpop.f32.mrb[177].mxu0 }
 0x2cc   : > { %v7557_v25 = vmax.f32 %v7507_v44, 0.0  ;;  %v7508_v47 = vadd.f32 %v11051_v46, %v7451_v53  ;;  %v4874_v31 = vpop.f32.mrb[178].mxu0 }
 0x2cd   : > { %v4957_v58 = vadd.f32 %v4874_v31, %v11369_v54  ;;  %v8866_v29 = vpop.f32.mrb[179].mxu0 }
 0x2ce   : > { %v8433_v27 = vpack.c.bf16 %v7557_v25, %v7557_v25  ;;  %v7558_v21 = vmax.f32 %v7508_v47, 0.0  ;;  %v11374_v25 = vld [vmem:[#allocation41_spill] sm:$0xff] }
 0x2d0   : > { %7808 = vst.msk [vmem:[%s11082_s29 + $0x90] sm:$0xf] %vm7771_vm9, %v8433_v27  ;;  %v8434_v51 = vpack.c.bf16 %v7558_v21, %v7558_v21  ;;  %v11375_v27 = vld [vmem:[#allocation42_spill] sm:$0xff] }
 0x2d1   : > { %v7367_v41 = vpop.f32.mrb[176].mxu1 }
 0x2d2   : > { %7809 = vst.msk [vmem:[%s11082_s29 + $0x94] sm:$0xf] %vm7771_vm9, %v8434_v51  ;;  %v7452_v6 = vadd.f32 %v7367_v41, %v4956_v43  ;;  %v8973_v62 = vpop.f32.mrb[177].mxu1 }
 0x2d3   : > { %v7370_v55 = vpop.f32.mrb[178].mxu1 }
 0x2d4   : > { %v7509_v11 = vadd.f32 %v11051_v46, %v7452_v6  ;;  %v7453_v45 = vadd.f32 %v7370_v55, %v4957_v58  ;;  %v8974_v7 = vpop.f32.mrb[179].mxu1 }
 0x2d6   : > { %v7559_v48 = vmax.f32 %v7509_v11, 0.0  ;;  %v7510_v38 = vadd.f32 %v11051_v46, %v7453_v45  ;;  %v4879_v4 = vpop.f32.mrb[180].mxu0 }
 0x2d7   : > { %v4958_v24 = vadd.f32 %v4879_v4, %v11370_v61  ;;  %v8869_v2 = vpop.f32.mrb[181].mxu0 }
 0x2d8   : > { %v8435_v23 = vpack.c.bf16 %v7559_v48, %v7559_v48  ;;  %v7560_v34 = vmax.f32 %v7510_v38, 0.0  ;;  %v4882_v19 = vpop.f32.mrb[182].mxu0 }
 0x2d9   : > { %v4959_v36 = vadd.f32 %v4882_v19, %v11371_v56  ;;  %v8870_v33 = vpop.f32.mrb[183].mxu0 }
 0x2da   : > { %7810 = vst.msk [vmem:[%s11082_s29 + $0x98] sm:$0xf] %vm7771_vm9, %v8435_v23  ;;  %v8436_v12 = vpack.c.bf16 %v7560_v34, %v7560_v34 }
 0x2dc   : > { %7811 = vst.msk [vmem:[%s11082_s29 + $0x9c] sm:$0xf] %vm7771_vm9, %v8436_v12  ;;  %v7375_v50 = vpop.f32.mrb[180].mxu1 }
 0x2dd   : > { %v7454_v49 = vadd.f32 %v7375_v50, %v4958_v24  ;;  %v8977_v18 = vpop.f32.mrb[181].mxu1 }
 0x2de   : > { %v7378_v39 = vpop.f32.mrb[182].mxu1 }
 0x2df   : > { %v7511_v17 = vadd.f32 %v11051_v46, %v7454_v49  ;;  %v7455_v60 = vadd.f32 %v7378_v39, %v4959_v36  ;;  %v8978_v63 = vpop.f32.mrb[183].mxu1 }
 0x2e1   : > { %v7561_v30 = vmax.f32 %v7511_v17, 0.0  ;;  %v7512_v59 = vadd.f32 %v11051_v46, %v7455_v60 }
 0x2e2   : > { %v4887_v10 = vpop.f32.mrb[184].mxu0 }
 0x2e3   : > { %v8437_v26 = vpack.c.bf16 %v7561_v30, %v7561_v30  ;;  %v7562_v3 = vmax.f32 %v7512_v59, 0.0  ;;  %v4960_v28 = vadd.f32 %v4887_v10, %v11372_v13  ;;  %v8873_v5 = vpop.f32.mrb[185].mxu0 }
 0x2e4   : > { %v4890_v20 = vpop.f32.mrb[186].mxu0 }
 0x2e5   : > { %7812 = vst.msk [vmem:[%s11082_s29 + $0xa0] sm:$0xf] %vm7771_vm9, %v8437_v26  ;;  %v8438_v16 = vpack.c.bf16 %v7562_v3, %v7562_v3  ;;  %v4961_v0 = vadd.f32 %v4890_v20, %v11373_v22  ;;  %v8874_v52 = vpop.f32.mrb[187].mxu0 }
 0x2e7   : > { %7813 = vst.msk [vmem:[%s11082_s29 + $0xa4] sm:$0xf] %vm7771_vm9, %v8438_v16 }
 0x2e8   : > { %v7383_v14 = vpop.f32.mrb[184].mxu1 }
 0x2e9   : > { %v7456_v32 = vadd.f32 %v7383_v14, %v4960_v28  ;;  %v8981_v42 = vpop.f32.mrb[185].mxu1 }
 0x2ea   : > { %v7386_v44 = vpop.f32.mrb[186].mxu1 }
 0x2eb   : > { %v7513_v53 = vadd.f32 %v11051_v46, %v7456_v32  ;;  %v7457_v1 = vadd.f32 %v7386_v44, %v4961_v0  ;;  %v8982_v15 = vpop.f32.mrb[187].mxu1 }
 0x2ed   : > { %v7563_v9 = vmax.f32 %v7513_v53, 0.0  ;;  %v7514_v43 = vadd.f32 %v11051_v46, %v7457_v1  ;;  %v4895_v40 = vpop.f32.mrb[188].mxu0 }
 0x2ee   : > { %v4962_v47 = vadd.f32 %v4895_v40, %v11374_v25  ;;  %v8877_v31 = vpop.f32.mrb[189].mxu0 }
 0x2ef   : > { %v8439_v54 = vpack.c.bf16 %v7563_v9, %v7563_v9  ;;  %v7564_v58 = vmax.f32 %v7514_v43, 0.0  ;;  %v4898_v29 = vpop.f32.mrb[190].mxu0 }
 0x2f0   : > { %v4963_v21 = vadd.f32 %v4898_v29, %v11375_v27  ;;  %v8878_v51 = vpop.f32.mrb[191].mxu0 }
 0x2f1   : > { %7814 = vst.msk [vmem:[%s11082_s29 + $0xa8] sm:$0xf] %vm7771_vm9, %v8439_v54  ;;  %v8440_v41 = vpack.c.bf16 %v7564_v58, %v7564_v58 }
 0x2f2   : > { %v7391_v6 = vpop.f32.mrb[188].mxu1 }
 0x2f3   : > { %7815 = vst.msk [vmem:[%s11082_s29 + $0xac] sm:$0xf] %vm7771_vm9, %v8440_v41  ;;  %v7458_v62 = vadd.f32 %v7391_v6, %v4962_v47  ;;  %v8985_v55 = vpop.f32.mrb[189].mxu1 }
 0x2f4   : > { %v7394_v11 = vpop.f32.mrb[190].mxu1 }
 0x2f5   : > { %v7515_v45 = vadd.f32 %v11051_v46, %v7458_v62  ;;  %v7459_v7 = vadd.f32 %v7394_v11, %v4963_v21  ;;  %v8986_v48 = vpop.f32.mrb[191].mxu1 }
 0x2f7   : > { %v7565_v38 = vmax.f32 %v7515_v45, 0.0  ;;  %v7516_v4 = vadd.f32 %v11051_v46, %v7459_v7  ;;  %v4903_v61 = vpop.f32.mrb[192].mxu0 }
 0x2f8   : > { %v4964_v24 = vadd.f32 %v4903_v61, %v11022_v57  ;;  %v8881_v2 = vpop.f32.mrb[193].mxu0 }
 0x2f9   : > { %v8441_v23 = vpack.c.bf16 %v7565_v38, %v7565_v38  ;;  %v7566_v34 = vmax.f32 %v7516_v4, 0.0  ;;  %v4906_v19 = vpop.f32.mrb[194].mxu0 }
 0x2fa   : > { %v4965_v56 = vadd.f32 %v4906_v19, %v11026_v35  ;;  %v8882_v36 = vpop.f32.mrb[195].mxu0 }
 0x2fb   : > { %7816 = vst.msk [vmem:[%s11082_s29 + $0xb0] sm:$0xf] %vm7771_vm9, %v8441_v23  ;;  %v8442_v33 = vpack.c.bf16 %v7566_v34, %v7566_v34 }
 0x2fd   : > { %7817 = vst.msk [vmem:[%s11082_s29 + $0xb4] sm:$0xf] %vm7771_vm9, %v8442_v33 }
 0x2fe   : > { %v7399_v12 = vpop.f32.mrb[192].mxu1 }
 0x2ff   : > { %v7460_v50 = vadd.f32 %v7399_v12, %v4964_v24  ;;  %v8989_v49 = vpop.f32.mrb[193].mxu1 }
 0x300   : > { %v7402_v18 = vpop.f32.mrb[194].mxu1 }
 0x301   : > { %v7517_v39 = vadd.f32 %v11051_v46, %v7460_v50  ;;  %v7461_v57 = vadd.f32 %v7402_v18, %v4965_v56  ;;  %v8990_v17 = vpop.f32.mrb[195].mxu1  ;;  %v4911_v60 = vpop.f32.mrb[196].mxu0 }
 0x302   : > { %v4966_v63 = vadd.f32 %v4911_v60, %v11036_v37  ;;  %v8885_v35 = vpop.f32.mrb[197].mxu0 }
 0x303   : > { %v7567_v30 = vmax.f32 %v7517_v39, 0.0  ;;  %v7518_v59 = vadd.f32 %v11051_v46, %v7461_v57  ;;  %v4914_v10 = vpop.f32.mrb[198].mxu0 }
 0x304   : > { %v4967_v26 = vadd.f32 %v4914_v10, %v11040_v8  ;;  %v8886_v3 = vpop.f32.mrb[199].mxu0 }
 0x305   : > { %v8443_v13 = vpack.c.bf16 %v7567_v30, %v7567_v30  ;;  %v7568_v28 = vmax.f32 %v7518_v59, 0.0 }
 0x307   : > { %7818 = vst.msk [vmem:[%s11082_s29 + $0xb8] sm:$0xf] %vm7771_vm9, %v8443_v13  ;;  %v8444_v5 = vpack.c.bf16 %v7568_v28, %v7568_v28 }
 0x308   : > { %v7407_v20 = vpop.f32.mrb[196].mxu1 }
 0x309   : > { %7819 = vst.msk [vmem:[%s11082_s29 + $0xbc] sm:$0xf] %vm7771_vm9, %v8444_v5  ;;  %v7462_v16 = vadd.f32 %v7407_v20, %v4966_v63  ;;  %v8993_v37 = vpop.f32.mrb[197].mxu1 }
 0x30a   : > { %v7410_v22 = vpop.f32.mrb[198].mxu1 }
 0x30b   : > { %v7519_v0 = vadd.f32 %v11051_v46, %v7462_v16  ;;  %v7463_v52 = vadd.f32 %v7410_v22, %v4967_v26  ;;  %v8994_v14 = vpop.f32.mrb[199].mxu1 }
 0x30d   : > { %v7569_v32 = vmax.f32 %v7519_v0, 0.0  ;;  %v7520_v8 = vadd.f32 %v11051_v46, %v7463_v52 }
 0x30f   : > { %v8445_v42 = vpack.c.bf16 %v7569_v32, %v7569_v32  ;;  %v7570_v44 = vmax.f32 %v7520_v8, 0.0 }
 0x311   : > { %7820 = vst.msk [vmem:[%s11082_s29 + $0xc0] sm:$0xf] %vm7771_vm9, %v8445_v42  ;;  %v8446_v53 = vpack.c.bf16 %v7570_v44, %v7570_v44 }
 0x313   : > { %7821 = vst.msk [vmem:[%s11082_s29 + $0xc4] sm:$0xf] %vm7771_vm9, %v8446_v53 }
 0x314 PF: > { %s13_s12 = sadd.s32 1, %s9030_s12  }
 0x315   : > { %p10_p4 = scmp.ge.s32.totalorder %s13_s12, 4  }
 0x317   :  { %12 = sbr.rel (!%p10_p4) target bundleno = 1 (0x1), region = 66 }

// kernel: convolutional_qnet_forward.5
= control target key start
LH: loop header
LB: loop body
LE: loop exit
PB: predicated region body
PF: predicated region fallthrough
CT: control target
= control target key end

     0   :  { %s4086_s12 = smov 0   ;;  %s4778_s0 = inlined_call_operand.vmem [shape: bf16[2,10,10,128], index: 0, kind: input, shape index: {}]   ;;  %s4779_s1 = inlined_call_operand.vmem [shape: bf16[4,128,64], index: 1, kind: input, shape index: {}]   ;;  %s4780_s2 = inlined_call_operand.vmem [shape: f32[1,64], index: 2, kind: input, shape index: {}]   ;;  %s4781_s3 = inlined_call_operand.vmem [shape: bf16[2,81,64], index: 3, kind: output, shape index: {}]  }
   0x1 LB: > { %s3530_s13 = sadd.s32 4294967295, %s4063_s12   ;;  %p3534_p0 = scmp.ge.s32.totalorder %s4063_s12, 1  ;;  %s4063_s12 = sphi %s4086_s12, %s13_s12  }
   0x2   : > { %p137_p1 = scmp.lt.s32.totalorder %s4063_s12, 3 }
   0x4   : > { %p138_p2 = pnand %p3534_p0, %p137_p1 }
   0x6   : > { %141 = sbr.rel (%p138_p2) target bundleno = 366 (0x16e), region = 32 }
   0xd   : > { %v4025_v0 = vld [vmem:[%s4779_s1 + $0x40] sm:$0xff]   ;;  %p161_p3 = scmp.lt.s32.totalorder %s3530_s13, 1  ;;  %v4027_v2 = vld [vmem:[%s4779_s1 + $0x48] sm:$0xff]   ;;  %v4029_v4 = vld [vmem:[%s4779_s1 + $0x50] sm:$0xff]   ;;  %v219_v10 = vlaneseq  ;;  %v4065_v14 = vmov 1966171168  }
   0xe   : > { %v4026_v1 = vld [vmem:[%s4779_s1 + $0x80] sm:$0xff]   ;;  %3878 = vmatprep.subr.bf16.mxu1 %v4025_v0  ;;  %v4028_v3 = vld [vmem:[%s4779_s1 + $0x88] sm:$0xff]   ;;  %v4030_v5 = vld [vmem:[%s4779_s1 + $0x90] sm:$0xff]   ;;  %v217_v15 = vunpack.c.l.s4 %v4065_v14  ;;  %vm3458_vm0 = vcmask 519168   ;;  %vm3469_vm1 = vcmask 516096  }
   0xf   : > { %3934 = vmatprep.subr.bf16.mxu0 %v4026_v1  ;;  %3879 = vmatpush3.bf16.msra.mxu1 %v4025_v0  ;;  %s4811_s13 = smov (!%p161_p3, %s3530_s13), 1  ;;  %v4031_v6 = vld [vmem:[%s4779_s1 + $0x58] sm:$0xff]   ;;  %v4033_v8 = vld [vmem:[%s4779_s1 + $0x60] sm:$0xff]   ;;  %v4035_v11 = vld [vmem:[%s4779_s1 + $0x68] sm:$0xff]   ;;  %v220_v16 = vshrl.u32 %v219_v10, 7 }
  0x10   : > { %3935 = vmatpush3.bf16.msra.mxu0 %v4026_v1  ;;  %3880 = vmatprep.subr.bf16.mxu1 %v4027_v2  ;;  %v4032_v7 = vld [vmem:[%s4779_s1 + $0x98] sm:$0xff]   ;;  %s4014_s30 = smul.u32 80, %s4811_s13  ;;  %v4034_v9 = vld [vmem:[%s4779_s1 + $0xa0] sm:$0xff]   ;;  %v4036_v13 = vld [vmem:[%s4779_s1 + $0xa8] sm:$0xff]   ;;  %v218_v22 = vunpack.c.0.s8 %v217_v15  ;;  %vm3470_vm2 = vsmask.f32 256 }
  0x11   : > { %3936 = vmatprep.subr.bf16.mxu0 %v4028_v3  ;;  %v4037_v18 = vld [vmem:[%s4779_s1 + $0x70] sm:$0xff]   ;;  %v4039_v32 = vld [vmem:[%s4779_s1 + $0x78] sm:$0xff]   ;;  %v4198_v51 = vld [vmem:[%s4779_s1] sm:$0xff]   ;;  %s4015_s7 = smul.u32 44, %s4811_s13 }
  0x12   : > { %s4130_s10 = scalar_lea.vmem %s4778_s0, %s4014_s30  ;;  %v4038_v19 = vld [vmem:[%s4779_s1 + $0xb0] sm:$0xff]   ;;  %v4148_v25 = vsub.s32 %v218_v22, %v220_v16  ;;  %v4040_v33 = vld [vmem:[%s4779_s1 + $0xb8] sm:$0xff]   ;;  %v4213_v58 = vld [vmem:[%s4779_s1 + $0xc0] sm:$0xff]  }
  0x13   : > { %3881 = vmatpush3.bf16.msra.mxu1 %v4027_v2  ;;  %v3537_v12 = vld.sshfl [vmem:[%s4130_s10] sm:$0x33 pattern:$0x75316420]  ;;  %s4738_s11 = scalar_lea.vmem %s4781_s3, %s4015_s7  ;;  %vm3471_vm3 = vmand %vm3469_vm1, %vm3470_vm2 }
  0x14   : > { %3937 = vmatpush3.bf16.msra.mxu0 %v4028_v3  ;;  %3882 = vmatprep.subr.bf16.mxu1 %v4029_v4  ;;  %v3538_v17 = vld.sshfl [vmem:[%s4130_s10 + $0x4] sm:$0x1 pattern:$0x75316420]  ;;  %v215_v21 = vcombine.high %v3537_v12, %v3537_v12  ;;  %v4152_v28 = vrot.slane %v3537_v12, %v4148_v25 }
  0x15   : > { %3938 = vmatprep.subr.bf16.mxu0 %v4030_v5  ;;  %v3539_v20 = vld.sshfl [vmem:[%s4130_s10 + $0x8] sm:$0x33 pattern:$0x75316420]  ;;  %v4158_v30 = vrot.slane %v3538_v17, %v4148_v25 }
  0x16   : > { %v253_v23 = vcombine.high %v3539_v20, %v3539_v20  ;;  %v3652_v24 = vld.sshfl [vmem:[%s4130_s10 + $0x10] sm:$0x33 pattern:$0x75316420]  ;;  %v4155_v29 = vrot.slane %v215_v21, %v4148_v25  ;;  %v4161_v31 = vrot.slane %v3539_v20, %v4148_v25  ;;  %v230_v37 = vcombine.high %v4152_v28, %v4152_v28 }
  0x17   : > { %3883 = vmatpush3.bf16.msra.mxu1 %v4029_v4  ;;  %v3651_v26 = vld.sshfl [vmem:[%s4130_s10 + $0xc] sm:$0x1 pattern:$0x75316420]  ;;  %v1623_v27 = vcombine.high %v3652_v24, %v3652_v24  ;;  %v4176_v36 = vrot.slane %v3652_v24, %v4148_v25  ;;  %v551_v39 = vunpack.i.h.s16 %v4152_v28  ;;  %v647_v42 = vunpack.i.h.s16 %v4158_v30 }
  0x18   : > { %3939 = vmatpush3.bf16.msra.mxu0 %v4030_v5  ;;  %3884 = vmatprep.subr.bf16.mxu1 %v4031_v6  ;;  %v4170_v34 = vrot.slane %v253_v23, %v4148_v25  ;;  %v4173_v35 = vrot.slane %v3651_v26, %v4148_v25  ;;  %v231_v38 = vcombine.high %v4155_v29, %v4155_v29  ;;  %v553_v40 = vunpack.i.h.s16 %v4155_v29  ;;  %v3542_v59 = vld.sshfl [vmem:[%s4130_s10 + $0x14] sm:$0x1 pattern:$0x75316420] }
  0x19   : > { %3940 = vmatprep.subr.bf16.mxu0 %v4032_v7  ;;  %v4788_v41 = vunpack.i.h.s16 %v4161_v31  ;;  %v4189_v44 = vrot.slane %v1623_v27, %v4148_v25  ;;  %v555_v45 = vunpack.i.h.s16 %v230_v37  ;;  %v3571_v47 = vpack.i.b16 %v4155_v29, %v551_v39  ;;  %v3543_v4 = vld.sshfl [vmem:[%s4130_s10 + $0x18] sm:$0x33 pattern:$0x75316420] }
  0x1a   : > { %v3591_v43 = vcombine.high %v4161_v31, %v4170_v34  ;;  %v557_v46 = vunpack.i.h.s16 %v231_v38  ;;  %v3572_v48 = vpack.i.b16 %v230_v37, %v553_v40  ;;  %v4202_v52 = vcombine.high %v4176_v36, %v4176_v36  ;;  %v3655_v37 = vld.sshfl [vmem:[%s4130_s10 + $0x1c] sm:$0x1 pattern:$0x75316420] }
  0x1b   : > { %3885 = vmatpush3.bf16.msra.mxu1 %v4031_v6  ;;  %v677_v49 = vpack.i.b16 %v4788_v41, %v647_v42  ;;  %v4786_v53 = vunpack.i.h.s16 %v4176_v36  ;;  %v3573_v54 = vpack.i.b16 %v231_v38, %v555_v45  ;;  %v4208_v57 = vcombine.high %v4189_v44, %v4189_v44 }
  0x1c   : > { %3941 = vmatpush3.bf16.msra.mxu0 %v4032_v7  ;;  %3886 = vmatprep.subr.bf16.mxu1 %v4033_v8  ;;  %v745_v50 = vrot.slane %v3591_v43, %v4148_v25  ;;  %v3574_v55 = vpack.i.b16 %v4158_v30, %v557_v46  ;;  %v714_v56 = vcombine.low %v3571_v47, %v3572_v48  ;;  %v1932_v61 = vunpack.i.h.s16 %v4189_v44  ;;  %v3656_v48 = vld.sshfl [vmem:[%s4130_s10 + $0x20] sm:$0x33 pattern:$0x75316420] }
  0x1d   : > { %3942 = vmatprep.subr.bf16.mxu0 %v4034_v9  ;;  %v716_v60 = vcombine.low %v677_v49, %v4170_v34  ;;  %v1934_v62 = vunpack.i.h.s16 %v4202_v52  ;;  %v3684_v63 = vpack.i.b16 %v4176_v36, %v4173_v35  ;;  %v1936_v2 = vunpack.i.h.s16 %v4208_v57 }
  0x1e   : > { %v715_v0 = vcombine.low %v3573_v54, %v3574_v55  ;;  %v724_v1 = vrot.slane %v714_v56, %v4148_v25  ;;  %v3685_v3 = vpack.i.b16 %v4189_v44, %v4786_v53  ;;  %v3686_v6 = vpack.i.b16 %v4202_v52, %v1932_v61  ;;  %v3546_v56 = vld.sshfl [vmem:[%s4130_s10 + $0x24] sm:$0x1 pattern:$0x75316420] }
  0x1f   : > { %3887 = vmatpush3.bf16.msra.mxu1 %v4033_v8  ;;  %v738_v5 = vrot.slane %v716_v60, %v4148_v25  ;;  %v3687_v7 = vpack.i.b16 %v4208_v57, %v1934_v62  ;;  %v2059_v10 = vcombine.low %v4161_v31, %v4170_v34  ;;  %v4238_v12 = vcombine.high %v4170_v34, %v4170_v34 }
  0x20   : > { %3943 = vmatpush3.bf16.msra.mxu0 %v4034_v9  ;;  %3888 = vmatprep.subr.bf16.mxu1 %v4035_v11  ;;  %v731_v9 = vrot.slane %v715_v0, %v4148_v25  ;;  %v4241_v15 = vrot.slane %v3542_v59, %v4148_v25  ;;  %v329_v16 = vcombine.high %v3543_v4, %v3543_v4 }
  0x21   : > { %3944 = vmatprep.subr.bf16.mxu0 %v4036_v13  ;;  %v2062_v14 = vcombine.low %v3686_v6, %v3687_v7  ;;  %v4246_v20 = vrot.slane %v3543_v4, %v4148_v25  ;;  %v566_v24 = vunpack.i.h.s16 %v4238_v12  ;;  %v763_v46 = vcombine.low %v4173_v35, %v3685_v3  ;;  %v3547_v7 = vld.sshfl [vmem:[%s4130_s10 + $0x28] sm:$0x33 pattern:$0x75316420] }
  0x22   : > { %v746_v17 = vcombine.low %v724_v1, %v731_v9  ;;  %v343_v23 = vrot.slane %v329_v16, %v4148_v25  ;;  %v649_v40 = vunpack.i.h.s16 %v4241_v15  ;;  %v3578_v42 = vpack.i.b16 %v4241_v15, %v1936_v2 }
  0x23   : > { %3889 = vmatpush3.bf16.msra.mxu1 %v4035_v11  ;;  %v2061_v11 = vcombine.low %v3684_v63, %v3685_v3  ;;  %v2090_v22 = vrot.slane %v2062_v14, %v4148_v25  ;;  %v4267_v54 = vpack.i.b16 %v4173_v35, %v566_v24  ;;  %v773_v59 = vrot.slane %v763_v46, %v4148_v25 }
  0x24   : > { %3945 = vmatpush3.bf16.msra.mxu0 %v4036_v13  ;;  %3890 = vmatprep.subr.bf16.mxu1 %v4037_v18  ;;  %v747_v13 = vcombine.low %v738_v5, %v745_v50  ;;  %v754_v26 = vrot.slane %v746_v17, %v4148_v25  ;;  %v580_v39 = vunpack.i.h.s16 %v343_v23  ;;  %v4277_v62 = vcombine.high %v343_v23, %v343_v23 }
  0x25   : > { %3946 = vmatprep.subr.bf16.mxu0 %v4038_v19  ;;  %v4282_v2 = vrot.slane %v3655_v37, %v4148_v25  ;;  %v795_v3 = vcombine.low %v773_v59, %v2090_v22  ;;  %v1699_v4 = vcombine.high %v3656_v48, %v3656_v48  ;;  %v4285_v5 = vrot.slane %v3656_v48, %v4148_v25  ;;  %v3550_v48 = vld.sshfl [vmem:[%s4130_s10 + $0x34] sm:$0x1 pattern:$0x75316420]  ;;  %v4043_v59 = vld [vmem:[%s4779_s1 + $0x8] sm:$0xff]  }
  0x26   : > { %v761_v21 = vrot.slane %v747_v13, %v4148_v25  ;;  %v2108_v6 = vcombine.low %v3578_v42, %v4246_v20 }
  0x27   : > { %3891 = vmatpush3.bf16.msra.mxu1 %v4037_v18  ;;  %v2069_v18 = vrot.slane %v2059_v10, %v4148_v25  ;;  %v4291_v10 = vrot.slane %v3546_v56, %v4148_v25  ;;  %v803_v13 = vrot.slane %v795_v3, %v4148_v25  ;;  %v4295_v14 = vrot.slane %v1699_v4, %v4148_v25 }
  0x28   : > { %3947 = vmatpush3.bf16.msra.mxu0 %v4038_v19  ;;  %3892 = vmatprep.subr.bf16.mxu1 %v4039_v32  ;;  %v2083_v19 = vrot.slane %v2061_v11, %v4148_v25  ;;  %v762_v43 = vcombine.low %v754_v26, %v761_v21  ;;  %v405_v11 = vcombine.high %v3547_v7, %v3547_v7  ;;  %v4785_v17 = vunpack.i.h.s16 %v4285_v5 }
  0x29   : > { %3948 = vmatprep.subr.bf16.mxu0 %v4040_v33  ;;  %v2091_v27 = vcombine.low %v2069_v18, %v745_v50  ;;  %v4299_v16 = vcombine.high %v4285_v5, %v4285_v5  ;;  %v2118_v21 = vrot.slane %v2108_v6, %v4148_v25  ;;  %v4314_v26 = vcombine.high %v4295_v14, %v4295_v14  ;;  %v4341_v6 = vld.sshfl [vmem:[%s4130_s10 + $0x38] sm:$0x33 pattern:$0x75316420] }
  0x2a   : > { %v2092_v38 = vcombine.low %v2083_v19, %v2090_v22  ;;  %3894 = vmatprep.mubr.bf16.mxu1 %v762_v43  ;;  %v3689_v19 = vpack.i.b16 %v4285_v5, %v4282_v2  ;;  %v4306_v22 = vrot.slane %v3547_v7, %v4148_v25  ;;  %v3690_v24 = vpack.i.b16 %v4295_v14, %v4785_v17 }
  0x2b   : > { %3893 = vmatpush3.bf16.msra.mxu1 %v4039_v32  ;;  %v4255_v32 = vcombine.high %v4246_v20, %v4246_v20  ;;  %v2099_v45 = vrot.slane %v2091_v27, %v4148_v25  ;;  %v4317_v27 = vrot.slane %v405_v11, %v4148_v25  ;;  %v812_v4 = vcombine.low %v4277_v62, %v4282_v2 }
  0x2c   : > { %3949 = vmatpush3.bf16.msra.mxu0 %v4040_v33  ;;  %3906 = vmatprep.subr.bf16.mxu1 %v4198_v51  ;;  %v578_v33 = vunpack.i.h.s16 %v4246_v20  ;;  %v2106_v49 = vrot.slane %v2092_v38, %v4148_v25  ;;  %v2110_v38 = vcombine.low %v4277_v62, %v3689_v19  ;;  %v4784_v46 = vunpack.i.h.s16 %v4306_v22 }
  0x2d   : > { %3962 = vmatprep.subr.bf16.mxu0 %v4213_v58  ;;  %v766_v47 = vcombine.low %v343_v23, %v4255_v32  ;;  %v4275_v61 = vpack.i.b16 %v4255_v32, %v580_v39 }
  0x2e   : > { %v686_v50 = vpack.i.b16 %v578_v33, %v649_v40  ;;  %v4269_v55 = vpack.i.b16 %v343_v23, %v578_v33  ;;  %v2107_v63 = vcombine.low %v2099_v45, %v2106_v49  ;;  %v1950_v23 = vunpack.i.h.s16 %v4295_v14  ;;  %v3548_v33 = vld.sshfl [vmem:[%s4130_s10 + $0x2c] sm:$0x1 pattern:$0x75316420] }
  0x2f   : > { %v794_v60 = vrot.slane %v766_v47, %v4148_v25  ;;  %v591_v40 = vunpack.i.h.s16 %v4299_v16  ;;  %v593_v45 = vunpack.i.h.s16 %v4314_v26  ;;  %v651_v47 = vunpack.i.h.s16 %v4291_v10 }
  0x30   : > { %v765_v0 = vcombine.low %v3578_v42, %v686_v50  ;;  %3950 = vmatprep.mubr.bf16.mxu0 %v2107_v63  ;;  %v3549_v42 = vld.sshfl [vmem:[%s4130_s10 + $0x30] sm:$0x33 pattern:$0x75316420]  ;;  %v3691_v43 = vpack.i.b16 %v4299_v16, %v1950_v23  ;;  %v2132_v50 = vrot.slane %v2110_v38, %v4148_v25  ;;  %v4344_v7 = vrot.slane %v3548_v33, %v4148_v25 }
  0x31   : > { %v2140_v39 = vcombine.low %v2118_v21, %v794_v60  ;;  %v695_v3 = vpack.i.b16 %v4784_v46, %v651_v47  ;;  %v4347_v11 = vrot.slane %v3549_v42, %v4148_v25  ;;  %v822_v23 = vrot.slane %v812_v4, %v4148_v25  ;;  %v4051_v46 = vld [vmem:[%s4779_s1 + $0x28] sm:$0xff]  }
  0x32   : > { %v787_v9 = vrot.slane %v765_v0, %v4148_v25  ;;  %v2111_v63 = vcombine.low %v3690_v24, %v3691_v43  ;;  %v3582_v0 = vpack.i.b16 %v4291_v10, %v593_v45  ;;  %v4045_v24 = vld [vmem:[%s4779_s1 + $0x10] sm:$0xff]  }
  0x33   : > { %v2148_v56 = vrot.slane %v2140_v39, %v4148_v25  ;;  %v815_v21 = vcombine.low %v695_v3, %v4317_v27  ;;  %v4782_v38 = vunpack.i.h.s16 %v4347_v11  ;;  %v4047_v3 = vld [vmem:[%s4779_s1 + $0x18] sm:$0xff]  }
  0x34   : > { %v796_v18 = vcombine.low %v787_v9, %v794_v60  ;;  %v3581_v60 = vpack.i.b16 %v4314_v26, %v591_v40  ;;  %v443_v9 = vcombine.high %v3549_v42, %v3549_v42 }
  0x35   : > { %v843_v42 = vrot.slane %v815_v21, %v4148_v25  ;;  %v4044_v21 = vld [vmem:[%s4779_s1 + $0xc8] sm:$0xff]  }
  0x36   : > { %v810_v37 = vrot.slane %v796_v18, %v4148_v25  ;;  %v2139_v18 = vrot.slane %v2111_v63, %v4148_v25  ;;  %v814_v19 = vcombine.low %v3581_v60, %v3582_v0  ;;  %v4360_v33 = vrot.slane %v443_v9, %v4148_v25 }
  0x38   : > { %v811_v49 = vcombine.low %v803_v13, %v810_v37  ;;  %v4350_v13 = vrot.slane %v3550_v48, %v4148_v25  ;;  %v4364_v37 = vcombine.high %v4347_v11, %v4347_v11  ;;  %v2141_v39 = vcombine.low %v2132_v50, %v2139_v18 }
  0x39   : > { %v4372_v40 = vrot.slane %v814_v19, %v4148_v25  ;;  %v844_v43 = vcombine.low %v822_v23, %v2139_v18  ;;  %v4377_v45 = vcombine.high %v4360_v33, %v4360_v33  ;;  %v607_v47 = vunpack.i.h.s16 %v4360_v33 }
  0x3a   : > { %3895 = vmatmul.mubr.bf16.vlgmr.msra.gmra.mrb[0].mxu1 %v811_v49  ;;  %v609_v48 = vunpack.i.h.s16 %v4364_v37  ;;  %v2155_v60 = vrot.slane %v2141_v39, %v4148_v25  ;;  %v653_v0 = vunpack.i.h.s16 %v4350_v13  ;;  %v3583_v9 = vpack.i.b16 %v4360_v33, %v4782_v38 }
  0x3b   : > { %3907 = vmatpush3.bf16.msra.mxu1 %v4198_v51  ;;  %v4368_v51 = vrot.slane %v4341_v6, %v4148_v25  ;;  %v845_v50 = vcombine.low %v4372_v40, %v843_v42  ;;  %v852_v63 = vrot.slane %v844_v43, %v4148_v25  ;;  %v611_v4 = vunpack.i.h.s16 %v4377_v45 }
  0x3c   : > { %3908 = vmatprep.subr.bf16.mxu1 %v4043_v59  ;;  %v3584_v18 = vpack.i.b16 %v4364_v37, %v607_v47  ;;  %v2156_v19 = vcombine.low %v2148_v56, %v2155_v60  ;;  %v3592_v42 = vcombine.high %v4306_v22, %v4317_v27  ;;  %v862_v47 = vcombine.low %v4344_v7, %v3583_v9 }
  0x3d   : > { %v4783_v49 = vunpack.i.h.s16 %v4368_v51  ;;  %v859_v23 = vrot.slane %v845_v50, %v4148_v25  ;;  %v3586_v43 = vpack.i.b16 %v4350_v13, %v611_v4  ;;  %v3694_v60 = vpack.i.b16 %v4347_v11, %v4344_v7 }
  0x3e   : > { %3951 = vmatmul.mubr.bf16.vlgmr.msra.gmra.mrb[0].mxu0 %v2156_v19 }
  0x3f   : > { %3909 = vmatpush3.bf16.msra.mxu1 %v4043_v59  ;;  %v3585_v59 = vpack.i.b16 %v4377_v45, %v609_v48  ;;  %v704_v39 = vpack.i.b16 %v4783_v49, %v653_v0  ;;  %v860_v56 = vcombine.low %v852_v63, %v859_v23  ;;  %v871_v48 = vrot.slane %v3592_v42, %v4148_v25  ;;  %v3663_v63 = vld.sshfl [vmem:[%s4130_s10 + $0x3c] sm:$0x1 pattern:$0x75316420] }
  0x40   : > { %3910 = vmatprep.subr.bf16.mxu1 %v4045_v24  ;;  %3963 = vmatpush3.bf16.msra.mxu0 %v4213_v58  ;;  %v878_v0 = vrot.slane %v862_v47, %v4148_v25  ;;  %v2158_v58 = vcombine.low %v4306_v22, %v4317_v27  ;;  %v3664_v49 = vld.sshfl [vmem:[%s4130_s10 + $0x40] sm:$0x33 pattern:$0x75316420] }
  0x41   : > { %v863_v38 = vcombine.low %v3584_v18, %v3585_v59  ;;  %v864_v50 = vcombine.low %v3586_v43, %v704_v39  ;;  %3964 = vmatprep.subr.bf16.mxu0 %v4044_v21  ;;  %v4046_v18 = vld [vmem:[%s4779_s1 + $0xd0] sm:$0xff]   ;;  %3898 = vmatprep.mubr.bf16.mxu1 %v860_v56  ;;  %v2160_v59 = vcombine.low %v3694_v60, %v3583_v9 }
  0x42   : > { %v893_v23 = vcombine.low %v871_v48, %v878_v0  ;;  %v1813_v39 = vcombine.high %v4341_v6, %v4341_v6  ;;  %v2174_v42 = vrot.slane %v2158_v58, %v4148_v25  ;;  %v4431_v56 = vcombine.high %v4368_v51, %v4368_v51 }
  0x43   : > { %3911 = vmatpush3.bf16.msra.mxu1 %v4045_v24  ;;  %v4411_v4 = vrot.slane %v863_v38, %v4148_v25  ;;  %v4049_v24 = vld [vmem:[%s4779_s1 + $0x20] sm:$0xff]   ;;  %v892_v38 = vrot.slane %v864_v50, %v4148_v25  ;;  %v2188_v47 = vrot.slane %v2160_v59, %v4148_v25  ;;  %v4434_v9 = vrot.slane %v3663_v63, %v4148_v25 }
  0x44   : > { %3912 = vmatprep.subr.bf16.mxu1 %v4047_v3  ;;  %3965 = vmatpush3.bf16.msra.mxu0 %v4044_v21  ;;  %v901_v50 = vrot.slane %v893_v23, %v4148_v25  ;;  %v4443_v58 = vrot.slane %v1813_v39, %v4148_v25  ;;  %v4446_v63 = vrot.slane %v3664_v49, %v4148_v25 }
  0x45   : > { %v894_v60 = vcombine.low %v4411_v4, %v892_v38  ;;  %3966 = vmatprep.subr.bf16.mxu0 %v4046_v18  ;;  %v2190_v0 = vcombine.low %v871_v48, %v2188_v47  ;;  %v2207_v21 = vcombine.low %v3586_v43, %v4368_v51  ;;  %v3554_v38 = vld.sshfl [vmem:[%s4130_s10 + $0x44] sm:$0x1 pattern:$0x75316420]  ;;  %v519_v23 = vcombine.high %v3664_v49, %v3664_v49 }
  0x46   : > { %v4457_v48 = vcombine.high %v4443_v58, %v4443_v58  ;;  %v3699_v39 = vpack.i.b16 %v4446_v63, %v4434_v9  ;;  %v2208_v43 = vcombine.low %v4443_v58, %v4431_v56  ;;  %v2189_v49 = vcombine.low %v4372_v40, %v2174_v42 }
  0x47   : > { %3913 = vmatpush3.bf16.msra.mxu1 %v4047_v3  ;;  %v4048_v3 = vld [vmem:[%s4779_s1 + $0xd8] sm:$0xff]   ;;  %v908_v59 = vrot.slane %v894_v60, %v4148_v25  ;;  %v2204_v17 = vrot.slane %v2190_v0, %v4148_v25  ;;  %v2223_v60 = vrot.slane %v2207_v21, %v4148_v25  ;;  %v4466_v6 = vrot.slane %v519_v23, %v4148_v25  ;;  %v4053_v0 = vld [vmem:[%s4779_s1 + $0x30] sm:$0xff]  }
  0x48   : > { %3914 = vmatprep.subr.bf16.mxu1 %v4049_v24  ;;  %3967 = vmatpush3.bf16.msra.mxu0 %v4046_v18  ;;  %v2209_v1 = vcombine.low %v4457_v48, %v3699_v39  ;;  %v2230_v53 = vrot.slane %v2208_v43, %v4148_v25  ;;  %v4478_v40 = vcombine.high %v4446_v63, %v4446_v63 }
  0x49   : > { %v909_v47 = vcombine.low %v901_v50, %v908_v59  ;;  %3968 = vmatprep.subr.bf16.mxu0 %v4048_v3  ;;  %v4481_v18 = vrot.slane %v3554_v38, %v4148_v25  ;;  %v2197_v42 = vrot.slane %v2189_v49, %v4148_v25  ;;  %v2238_v50 = vcombine.low %v4411_v4, %v2223_v60  ;;  %v3666_v60 = vld.sshfl [vmem:[%s4130_s10 + $0x48] sm:$0x33 pattern:$0x75316420] }
  0x4a   : > { %4793 = vst [vmem:[#allocation2_spill] sm:$0xff] %v4478_v40  ;;  %v4487_v21 = vcombine.high %v4466_v6, %v4466_v6  ;;  %v4787_v59 = vunpack.i.h.s16 %v4446_v63  ;;  %v2237_v23 = vrot.slane %v2209_v1, %v4148_v25  ;;  %v625_v39 = vunpack.i.h.s16 %v4466_v6  ;;  %v4055_v1 = vld [vmem:[%s4779_s1 + $0x38] sm:$0xff]  }
  0x4b   : > { %3915 = vmatpush3.bf16.msra.mxu1 %v4049_v24  ;;  %v4050_v24 = vld [vmem:[%s4779_s1 + $0xe0] sm:$0xff]   ;;  %4794 = vst [vmem:[#allocation3_spill] sm:$0xff] %v4481_v18  ;;  %v627_v38 = vunpack.i.h.s16 %v4478_v40  ;;  %v2205_v43 = vcombine.low %v2197_v42, %v2204_v17  ;;  %v4052_v42 = vld [vmem:[%s4779_s1 + $0xe8] sm:$0xff]   ;;  %v1889_v41 = vcombine.high %v3666_v60, %v3666_v60 }
  0x4c   : > { %3899 = vmatmul.mubr.bf16.gmra.mrb[4].mxu1 %v909_v47  ;;  %4795 = vst [vmem:[#allocation4_spill] sm:$0xff] %v4487_v21  ;;  %3916 = vmatprep.subr.bf16.mxu1 %v4051_v46  ;;  %v2246_v47 = vrot.slane %v2238_v50, %v4148_v25  ;;  %v629_v4 = vunpack.i.h.s16 %v4487_v21  ;;  %v3587_v49 = vpack.i.b16 %v4466_v6, %v4787_v59  ;;  %v655_v59 = vunpack.i.h.s16 %v4481_v18 }
  0x4d   : > { %3969 = vmatpush3.bf16.msra.mxu0 %v4048_v3  ;;  %v2239_v19 = vcombine.low %v2230_v53, %v2237_v23  ;;  %v3589_v17 = vpack.i.b16 %v4487_v21, %v627_v38  ;;  %v911_v3 = vcombine.low %v4457_v48, %v4434_v9  ;;  %3954 = vmatprep.mubr.bf16.mxu0 %v2205_v43 }
  0x4e   : > { %3970 = vmatprep.subr.bf16.mxu0 %v4050_v24  ;;  %v3590_v50 = vpack.i.b16 %v4481_v18, %v629_v4  ;;  %v965_v21 = vrot.slane %v655_v59, %v4148_v25 }
  0x4f   : > { %3917 = vmatpush3.bf16.msra.mxu1 %v4051_v46  ;;  %v3588_v46 = vpack.i.b16 %v4478_v40, %v625_v39  ;;  %v2253_v23 = vrot.slane %v2239_v19, %v4148_v25  ;;  %v927_v39 = vrot.slane %v911_v3, %v4148_v25  ;;  %v4515_v40 = vrot.slane %v3666_v60, %v4148_v25 }
  0x50   : > { %3918 = vmatprep.subr.bf16.mxu1 %v4053_v0  ;;  %v913_v38 = vcombine.low %v3589_v17, %v3590_v50  ;;  %v4519_v19 = vrot.slane %v1889_v41, %v4148_v25  ;;  %v972_v59 = vrot.slane %v965_v21, %v4148_v25  ;;  %v268_v3 = vcombine.high %v4161_v31, %v4161_v31 }
  0x51   : > { %v912_v8 = vcombine.low %v3587_v49, %v3588_v46  ;;  %3971 = vmatpush3.bf16.msra.mxu0 %v4050_v24  ;;  %v2254_v43 = vcombine.low %v2246_v47, %v2253_v23  ;;  %v942_v18 = vcombine.low %v2230_v53, %v927_v39  ;;  %v3667_v49 = vld.sshfl [vmem:[%s4130_s10 + $0x4c] sm:$0x1 pattern:$0x75316420]  ;;  %v2865_v46 = vunpack.i.h.s16 %v4277_v62 }
  0x52   : > { %3972 = vmatprep.subr.bf16.mxu0 %v4052_v42  ;;  %v941_v24 = vrot.slane %v913_v38, %v4148_v25  ;;  %v3706_v53 = vcombine.high %v4515_v40, %v4519_v19  ;;  %v4533_v47 = vrot.slane %v3667_v49, %v4148_v25  ;;  %v564_v39 = vunpack.i.h.s16 %v268_v3 }
  0x53   : > { %3919 = vmatpush3.bf16.msra.mxu1 %v4053_v0  ;;  %v934_v4 = vrot.slane %v912_v8, %v4148_v25  ;;  %v4054_v0 = vld [vmem:[%s4779_s1 + $0xf0] sm:$0xff]   ;;  %3955 = vmatmul.mubr.bf16.gmra.mrb[4].mxu0 %v2254_v43  ;;  %v950_v60 = vrot.slane %v942_v18, %v4148_v25  ;;  %v2257_v8 = vcombine.low %v4515_v40, %v4519_v19  ;;  %v4056_v18 = vld [vmem:[%s4779_s1 + $0xf8] sm:$0xff]   ;;  %v4796_v38 = vunpack.i.h.s16 %v4161_v31 }
  0x54   : > { %3920 = vmatprep.subr.bf16.mxu1 %v4055_v1  ;;  %v2286_v21 = vrot.slane %v3706_v53, %v4148_v25  ;;  %v2000_v50 = vunpack.i.l.s16 %v4533_v47 }
  0x55   : > { %v943_v41 = vcombine.low %v934_v4, %v941_v24  ;;  %3973 = vmatpush3.bf16.msra.mxu0 %v4052_v42  ;;  %v2279_v17 = vrot.slane %v2257_v8, %v4148_v25  ;;  %v3602_v43 = vpack.i.b16 %v4170_v34, %v4796_v38  ;;  %v4797_v24 = vunpack.i.h.s16 %v4170_v34 }
  0x56   : > { %3974 = vmatprep.subr.bf16.mxu0 %v4054_v0  ;;  %v2310_v49 = vrot.slane %v2000_v50, %v4148_v25  ;;  %v4799_v34 = vunpack.i.h.s16 %v4176_v36  ;;  %v3787_v38 = vcombine.high %v4176_v36, %v4189_v44 }
  0x57   : > { %3921 = vmatpush3.bf16.msra.mxu1 %v4055_v1  ;;  %v957_v42 = vrot.slane %v943_v41, %v4148_v25  ;;  %v3601_v1 = vpack.i.b16 %v4161_v31, %v4158_v30  ;;  %v2288_v23 = vcombine.low %v2279_v17, %v2286_v21  ;;  %v3603_v8 = vpack.i.b16 %v268_v3, %v4797_v24 }
  0x58   : > { %v3604_v41 = vpack.i.b16 %v4238_v12, %v564_v39  ;;  %v1148_v30 = vcombine.low %v4152_v28, %v4155_v29  ;;  %v3621_v31 = vcombine.high %v4152_v28, %v4155_v29 }
  0x59   : > { %v958_v4 = vcombine.low %v950_v60, %v957_v42  ;;  %3975 = vmatpush3.bf16.msra.mxu0 %v4054_v0  ;;  %v2302_v53 = vrot.slane %v2288_v23, %v4148_v25  ;;  %v2317_v60 = vrot.slane %v2310_v49, %v4148_v25  ;;  %v1150_v17 = vcombine.low %v3601_v1, %v3602_v43 }
  0x5a   : > { %3976 = vmatprep.subr.bf16.mxu0 %v4056_v18  ;;  %v4798_v0 = vunpack.i.h.s16 %v4173_v35  ;;  %v1151_v3 = vcombine.low %v3603_v8, %v3604_v41  ;;  %v1158_v50 = vrot.slane %v1148_v30, %v4148_v25  ;;  %v1165_v12 = vrot.slane %v3621_v31, %v4148_v25 }
  0x5b   : > { %3902 = vmatprep.mubr.bf16.mxu1 %v958_v4  ;;  %v2980_v23 = vcombine.low %v3602_v43, %v3603_v8  ;;  %v1172_v39 = vrot.slane %v1150_v17, %v4148_v25  ;;  %v2981_v28 = vcombine.low %v3604_v41, %v4267_v54  ;;  %v2303_v4 = vcombine.low %v957_v42, %v2302_v53 }
  0x5c   : > { %v2943_v21 = vpack.i.b16 %v4799_v34, %v4798_v0  ;;  %3903 = vmatmul.mubr.bf16.gmra.mrb[8].mxu1 %v972_v59  ;;  %v1179_v1 = vrot.slane %v1151_v3, %v4148_v25  ;;  %v1180_v35 = vcombine.low %v1158_v50, %v1165_v12  ;;  %v3011_v41 = vrot.slane %v3787_v38, %v4148_v25 }
  0x5d   : > { %3977 = vmatpush3.bf16.msra.mxu0 %v4056_v18  ;;  %v2990_v59 = vrot.slane %v2980_v23, %v4148_v25  ;;  %v2997_v49 = vrot.slane %v2981_v28, %v4148_v25  ;;  %v3606_v18 = vpack.i.b16 %v4246_v20, %v4241_v15  ;;  %v1198_v30 = vcombine.low %v4189_v44, %v4202_v52 }
  0x5e   : > { %v2982_v29 = vcombine.low %v2943_v21, %v4189_v44  ;;  %v1181_v24 = vcombine.low %v1172_v39, %v1179_v1  ;;  %v1188_v8 = vrot.slane %v1180_v35, %v4148_v25  ;;  %3958 = vmatprep.mubr.bf16.mxu0 %v2303_v4  ;;  %v1200_v42 = vcombine.low %v4269_v55, %v4275_v61 }
  0x5f   : > { %v3012_v31 = vcombine.low %v2990_v59, %v2997_v49  ;;  %v1199_v17 = vcombine.low %v4208_v57, %v3606_v18  ;;  %v4800_v53 = vcombine.low %v4267_v54, %v4176_v36  ;;  %3959 = vmatmul.mubr.bf16.gmra.mrb[8].mxu0 %v2317_v60  ;;  %v1214_v21 = vrot.slane %v1198_v30, %v4148_v25 }
  0x60   : > { %v3004_v43 = vrot.slane %v2982_v29, %v4148_v25  ;;  %v1195_v0 = vrot.slane %v1181_v24, %v4148_v25  ;;  %v2867_v44 = vunpack.i.h.s16 %v4282_v2  ;;  %v1228_v3 = vrot.slane %v1200_v42, %v4148_v25 }
  0x61   : > { %v1207_v20 = vrot.slane %v4800_v53, %v4148_v25  ;;  %v3020_v52 = vrot.slane %v3012_v31, %v4148_v25  ;;  %v1221_v57 = vrot.slane %v1199_v17, %v4148_v25  ;;  %v4801_v50 = vunpack.i.h.s16 %v4255_v32 }
  0x62   : > { %v3013_v34 = vcombine.low %v3004_v43, %v3011_v41  ;;  %v1196_v36 = vcombine.low %v1188_v8, %v1195_v0  ;;  %v3774_v23 = vpack.i.b16 %v4282_v2, %v2865_v46  ;;  %v4802_v28 = vunpack.i.h.s16 %v4285_v5 }
  0x63   : > { %v3773_v12 = vpack.i.b16 %v4277_v62, %v4801_v50  ;;  %v1229_v60 = vcombine.low %v1207_v20, %v1214_v21  ;;  %v1230_v39 = vcombine.low %v1221_v57, %v1228_v3  ;;  %v3029_v1 = vcombine.low %v4241_v15, %v4269_v55 }
  0x64   : > { %v3027_v54 = vrot.slane %v3013_v34, %v4148_v25  ;;  %v2952_v29 = vpack.i.b16 %v4802_v28, %v2867_v44  ;;  %3922 = vmatprep.mubr.bf16.mxu1 %v1196_v36  ;;  %v3032_v59 = vcombine.low %v4295_v14, %v4299_v16  ;;  %v3611_v15 = vpack.i.b16 %v4306_v22, %v4291_v10 }
  0x65   : > { %v3030_v35 = vcombine.low %v4275_v61, %v3773_v12  ;;  %v1237_v38 = vrot.slane %v1229_v60, %v4148_v25  ;;  %v1244_v62 = vrot.slane %v1230_v39, %v4148_v25  ;;  %v3039_v2 = vrot.slane %v3029_v1, %v4148_v25 }
  0x66   : > { %v3028_v32 = vcombine.low %v3020_v52, %v3027_v54  ;;  %v3031_v4 = vcombine.low %v3774_v23, %v2952_v29  ;;  %v3060_v49 = vrot.slane %v3032_v59, %v4148_v25  ;;  %v4803_v18 = vunpack.i.h.s16 %v4306_v22 }
  0x67   : > { %v3046_v46 = vrot.slane %v3030_v35, %v4148_v25  ;;  %v1245_v55 = vcombine.low %v1237_v38, %v1244_v62  ;;  %v1247_v24 = vcombine.low %v4285_v5, %v4295_v14  ;;  %v3622_v8 = vcombine.high %v4285_v5, %v4295_v14 }
  0x68   : > { %3978 = vmatprep.mubr.bf16.mxu0 %v3028_v32  ;;  %v3053_v61 = vrot.slane %v3031_v4, %v4148_v25  ;;  %v3612_v16 = vpack.i.b16 %v4317_v27, %v4803_v18  ;;  %v2673_v41 = vcombine.high %v4306_v22, %v4306_v22  ;;  %v2674_v42 = vcombine.high %v4317_v27, %v4317_v27 }
  0x69   : > { %v3061_v43 = vcombine.low %v3039_v2, %v3046_v46  ;;  %3923 = vmatmul.mubr.bf16.vlgmr.msra.gmra.mrb[0].mxu1 %v1245_v55  ;;  %v1246_v53 = vcombine.low %v3773_v12, %v3774_v23  ;;  %v1263_v20 = vrot.slane %v1247_v24, %v4148_v25  ;;  %v1270_v0 = vrot.slane %v3622_v8, %v4148_v25 }
  0x6a   : > { %v3062_v30 = vcombine.low %v3053_v61, %v3060_v49  ;;  %v1249_v17 = vcombine.low %v3611_v15, %v3612_v16  ;;  %v2879_v34 = vunpack.i.h.s16 %v4317_v27  ;;  %v2881_v22 = vunpack.i.h.s16 %v2673_v41 }
  0x6b   : > { %v3069_v31 = vrot.slane %v3061_v43, %v4148_v25  ;;  %v2883_v21 = vunpack.i.h.s16 %v2674_v42  ;;  %v1256_v44 = vrot.slane %v1246_v53, %v4148_v25  ;;  %v2885_v52 = vunpack.i.h.s16 %v4344_v7 }
  0x6c   : > { %v3076_v5 = vrot.slane %v3062_v30, %v4148_v25  ;;  %v1277_v14 = vrot.slane %v1249_v17, %v4148_v25  ;;  %v3776_v57 = vpack.i.b16 %v2673_v41, %v2879_v34  ;;  %v3078_v3 = vcombine.low %v4314_v26, %v4291_v10 }
  0x6d   : > { %v3777_v36 = vpack.i.b16 %v2674_v42, %v2881_v22  ;;  %v3778_v54 = vpack.i.b16 %v4344_v7, %v2883_v21  ;;  %v1278_v27 = vcombine.low %v1256_v44, %v1263_v20  ;;  %v4804_v60 = vunpack.i.h.s16 %v4347_v11 }
  0x6e   : > { %v3077_v50 = vcombine.low %v3069_v31, %v3076_v5  ;;  %v1279_v12 = vcombine.low %v1270_v0, %v1277_v14  ;;  %v3079_v39 = vcombine.low %v3612_v16, %v3776_v57  ;;  %v3088_v28 = vrot.slane %v3078_v3, %v4148_v25 }
  0x6f   : > { %v2961_v23 = vpack.i.b16 %v4804_v60, %v2885_v52  ;;  %v3080_v1 = vcombine.low %v3777_v36, %v3778_v54  ;;  %v1286_v35 = vrot.slane %v1278_v27, %v4148_v25  ;;  %v3616_v7 = vpack.i.b16 %v4368_v51, %v4350_v13  ;;  %v4807_v27 = vld [vmem:[#allocation3_spill] sm:$0xff] }
  0x70   : > { %3979 = vmatmul.mubr.bf16.vlgmr.msra.gmra.mrb[0].mxu0 %v3077_v50  ;;  %v1293_v29 = vrot.slane %v1279_v12, %v4148_v25  ;;  %v3095_v26 = vrot.slane %v3079_v39, %v4148_v25  ;;  %v1297_v4 = vcombine.low %v4360_v33, %v4364_v37  ;;  %v2897_v15 = vunpack.i.h.s16 %v4443_v58 }
  0x71   : > { %v3081_v10 = vcombine.low %v2961_v23, %v4360_v33  ;;  %v3102_v32 = vrot.slane %v3080_v1, %v4148_v25  ;;  %v1298_v2 = vcombine.low %v4377_v45, %v3616_v7  ;;  %v2899_v55 = vunpack.i.h.s16 %v4431_v56 }
  0x72   : > { %v1294_v38 = vcombine.low %v1286_v35, %v1293_v29  ;;  %v3110_v62 = vcombine.low %v3088_v28, %v3095_v26  ;;  %v1295_v61 = vcombine.low %v3776_v57, %v3777_v36  ;;  %v1296_v43 = vcombine.low %v3778_v54, %v4347_v11 }
  0x73   : > { %v3109_v59 = vrot.slane %v3081_v10, %v4148_v25  ;;  %v1319_v18 = vrot.slane %v1297_v4, %v4148_v25  ;;  %v1326_v16 = vrot.slane %v1298_v2, %v4148_v25  ;;  %v2901_v37 = vunpack.i.h.s16 %v4457_v48 }
  0x74   : > { %3926 = vmatprep.mubr.bf16.mxu1 %v1294_v38  ;;  %v3118_v49 = vrot.slane %v3110_v62, %v4148_v25  ;;  %v2903_v45 = vunpack.i.h.s16 %v4434_v9  ;;  %v4805_v8 = vunpack.i.h.s16 %v4368_v51  ;;  %v1305_v30 = vrot.slane %v1295_v61, %v4148_v25 }
  0x75   : > { %v3111_v46 = vcombine.low %v3102_v32, %v3109_v59  ;;  %v1312_v31 = vrot.slane %v1296_v43, %v4148_v25  ;;  %v1328_v17 = vcombine.low %v1319_v18, %v1326_v16  ;;  %v3780_v42 = vpack.i.b16 %v4431_v56, %v2897_v15  ;;  %v4809_v18 = vld [vmem:[#allocation4_spill] sm:$0xff] }
  0x76   : > { %v3779_v41 = vpack.i.b16 %v4443_v58, %v4805_v8  ;;  %v3781_v20 = vpack.i.b16 %v4457_v48, %v2899_v55  ;;  %v3782_v0 = vpack.i.b16 %v4434_v9, %v2901_v37  ;;  %v4806_v34 = vunpack.i.h.s16 %v4446_v63  ;;  %v4808_v55 = vld [vmem:[#allocation2_spill] sm:$0xff] }
  0x77   : > { %v3125_v24 = vrot.slane %v3111_v46, %v4148_v25  ;;  %v1327_v14 = vcombine.low %v1305_v30, %v1312_v31  ;;  %v1342_v51 = vrot.slane %v1328_v17, %v4148_v25  ;;  %v3788_v58 = vcombine.high %v4347_v11, %v4360_v33 }
  0x78   : > { %v2970_v5 = vpack.i.b16 %v4806_v34, %v2903_v45  ;;  %v3128_v22 = vcombine.low %v4350_v13, %v3779_v41  ;;  %v3129_v21 = vcombine.low %v3780_v42, %v3781_v20  ;;  %v1344_v36 = vcombine.low %v3779_v41, %v3780_v42 }
  0x79   : > { %v3126_v53 = vcombine.low %v3118_v49, %v3125_v24  ;;  %v1335_v56 = vrot.slane %v1327_v14, %v4148_v25  ;;  %v3137_v48 = vrot.slane %v3788_v58, %v4148_v25  ;;  %v1346_v11 = vcombine.low %v4446_v63, %v4466_v6 }
  0x7a   : > { %v3130_v44 = vcombine.low %v3782_v0, %v2970_v5  ;;  %v3144_v9 = vrot.slane %v3128_v22, %v4148_v25  ;;  %v3151_v52 = vrot.slane %v3129_v21, %v4148_v25  ;;  %v3623_v13 = vcombine.high %v4446_v63, %v4466_v6 }
  0x7b   : > { %3982 = vmatprep.mubr.bf16.mxu0 %v3126_v53  ;;  %v1343_v3 = vcombine.low %v1335_v56, %v1342_v51  ;;  %v1345_v54 = vcombine.low %v3781_v20, %v3782_v0  ;;  %v630_v60 = vunpack.i.l.s16 %v4807_v27  ;;  %v2825_v23 = vcombine.high %v4515_v40, %v4515_v40 }
  0x7c   : > { %v3158_v57 = vrot.slane %v3130_v44, %v4148_v25  ;;  %v3159_v50 = vcombine.low %v3137_v48, %v3144_v9  ;;  %v1354_v28 = vrot.slane %v1344_v36, %v4148_v25  ;;  %v1368_v29 = vrot.slane %v1346_v11, %v4148_v25 }
  0x7d   : > { %3927 = vmatmul.mubr.bf16.gmra.mrb[4].mxu1 %v1343_v3  ;;  %v1375_v1 = vrot.slane %v3623_v13, %v4148_v25  ;;  %v1361_v35 = vrot.slane %v1345_v54, %v4148_v25  ;;  %v1399_v63 = vrot.slane %v630_v60, %v4148_v25  ;;  %v2826_v10 = vcombine.high %v4519_v19, %v4519_v19  ;;  %v4729_v3 = vld [vmem:[%s4780_s2] ss:$0 sm:$0xff] }
  0x7e   : > { %v3160_v12 = vcombine.low %v3151_v52, %v3158_v57  ;;  %v3167_v33 = vrot.slane %v3159_v50, %v4148_v25  ;;  %v2913_v26 = vunpack.i.h.s16 %v4515_v40  ;;  %v2915_v38 = vunpack.i.h.s16 %v4519_v19 }
  0x7f   : > { %v1377_v7 = vcombine.low %v1368_v29, %v1375_v1  ;;  %v2917_v59 = vunpack.i.h.s16 %v2825_v23  ;;  %v1376_v62 = vcombine.low %v1354_v28, %v1361_v35  ;;  %v2919_v4 = vunpack.i.h.s16 %v2826_v10 }
  0x80   : > { %v3174_v39 = vrot.slane %v3160_v12, %v4148_v25  ;;  %v3783_v2 = vpack.i.b16 %v4519_v19, %v2913_v26  ;;  %v3784_v49 = vpack.i.b16 %v2825_v23, %v2915_v38  ;;  %v3176_v61 = vcombine.low %v4466_v6, %v4808_v55 }
  0x81   : > { %v1391_v46 = vrot.slane %v1377_v7, %v4148_v25  ;;  %v3785_v15 = vpack.i.b16 %v2826_v10, %v2917_v59  ;;  %v1384_v43 = vrot.slane %v1376_v62, %v4148_v25  ;;  %v3786_v40 = vpack.i.b16 %v4533_v47, %v2919_v4 }
  0x82   : > { %v3175_v32 = vcombine.low %v3167_v33, %v3174_v39  ;;  %v3177_v16 = vcombine.low %v4809_v18, %v4807_v27  ;;  %v1406_v24 = vrot.slane %v1399_v63, %v4148_v25  ;;  %v3178_v37 = vcombine.low %v3783_v2, %v3784_v49 }
  0x83   : > { %v3186_v19 = vrot.slane %v3176_v61, %v4148_v25  ;;  %v2921_v45 = vunpack.i.h.s16 %v4533_v47  ;;  %v1392_v8 = vcombine.low %v1384_v43, %v1391_v46  ;;  %v3179_v41 = vcombine.low %v3785_v15, %v3786_v40 }
  0x84   : > { %3983 = vmatmul.mubr.bf16.gmra.mrb[4].mxu0 %v3175_v32  ;;  %v3193_v30 = vrot.slane %v3177_v16, %v4148_v25  ;;  %v3200_v6 = vrot.slane %v3178_v37, %v4148_v25 }
  0x85   : > { %3930 = vmatprep.mubr.bf16.mxu1 %v1392_v8  ;;  %v3207_v31 = vrot.slane %v3179_v41, %v4148_v25  ;;  %v3231_v42 = vrot.slane %v2921_v45, %v4148_v25 }
  0x86   : > { %v3208_v17 = vcombine.low %v3186_v19, %v3193_v30  ;;  %3931 = vmatmul.mubr.bf16.gmra.mrb[12].mxu1 %v1406_v24 }
  0x87   : > { %v3209_v53 = vcombine.low %v3200_v6, %v3207_v31  ;;  %v3238_v47 = vrot.slane %v3231_v42, %v4148_v25 }
  0x88   : > { %v3216_v20 = vrot.slane %v3208_v17, %v4148_v25 }
  0x89   : > { %v3223_v0 = vrot.slane %v3209_v53, %v4148_v25 }
  0x8b   : > { %v3224_v34 = vcombine.low %v3216_v20, %v3223_v0 }
  0x8d   : > { %3986 = vmatprep.mubr.bf16.mxu0 %v3224_v34 }
  0x8e   : > { %3987 = vmatmul.mubr.bf16.gmra.mrb[12].mxu0 %v3238_v47 }
 0x12f   : > { %v3904_v5 = vpop.f32.mrb[8].mxu1 }
 0x130   : > { %v4716_v14 = vpop.f32.mrb[9].mxu1 }
 0x131   : > { %v3905_v51 = vpop.f32.mrb[10].mxu1 }
 0x132   : > { %v4718_v58 = vpop.f32.mrb[11].mxu1  ;;  %v4720_v22 = vpop.f32.mrb[8].mxu0 }
 0x133   : > { %v4722_v21 = vpop.f32.mrb[9].mxu0 }
 0x134   : > { %v3961_v44 = vpop.f32.mrb[10].mxu0 }
 0x135   : > { %v4724_v56 = vpop.f32.mrb[11].mxu0 }
 0x13c   : > { %v3924_v48 = vpop.f32.mrb[0].mxu1 }
 0x13d   : > { %v1495_v9 = vpop.f32.mrb[1].mxu1 }
 0x13e   : > { %v3925_v25 = vpop.f32.mrb[2].mxu1 }
 0x13f   : > { %v1498_v52 = vpop.f32.mrb[3].mxu1 }
 0x143   : > { %v3980_v57 = vpop.f32.mrb[0].mxu0 }
 0x144   : > { %v3990_v50 = vadd.f32 %v3980_v57, %v3924_v48  ;;  %v3327_v12 = vpop.f32.mrb[1].mxu0 }
 0x145   : > { %v3991_v36 = vadd.f32 %v3327_v12, %v1495_v9  ;;  %v3981_v11 = vpop.f32.mrb[2].mxu0  ;;  %v3472_v12 = vld [vmem:[%s4738_s11 + $0x28] sm:$0x1] }
 0x146   : > { %v3393_v13 = vadd.f32 %v3990_v50, %v4729_v3  ;;  %v3992_v33 = vadd.f32 %v3981_v11, %v3925_v25  ;;  %v3330_v54 = vpop.f32.mrb[3].mxu0 }
 0x147   : > { %v3391_v27 = vadd.f32 %v3991_v36, %v4729_v3  ;;  %v3993_v60 = vadd.f32 %v3330_v54, %v1498_v52 }
 0x148   : > { %v3404_v23 = vmax.f32 %v3393_v13, 0.0  ;;  %v3394_v39 = vadd.f32 %v3992_v33, %v4729_v3 }
 0x149   : > { %v3402_v28 = vmax.f32 %v3391_v27, 0.0  ;;  %v3392_v29 = vadd.f32 %v3993_v60, %v4729_v3 }
 0x14a   : > { %v3813_v1 = vpack.c.bf16 %v3404_v23, %v3404_v23  ;;  %v3405_v35 = vmax.f32 %v3394_v39, 0.0 }
 0x14b   : > { %v3811_v63 = vpack.c.bf16 %v3402_v28, %v3402_v28  ;;  %v3403_v10 = vmax.f32 %v3392_v29, 0.0 }
 0x14c   : > { %3461 = vst.msk [vmem:[%s4738_s11 + $0x8] sm:$0xf] %vm3458_vm0, %v3813_v1  ;;  %v3814_v26 = vpack.c.bf16 %v3405_v35, %v3405_v35 }
 0x14d   : > { %3459 = vst.msk [vmem:[%s4738_s11] sm:$0xf] %vm3458_vm0, %v3811_v63  ;;  %v3812_v32 = vpack.c.bf16 %v3403_v10, %v3403_v10 }
 0x14e   : > { %3462 = vst.msk [vmem:[%s4738_s11 + $0xc] sm:$0xf] %vm3458_vm0, %v3814_v26 }
 0x14f   : > { %3460 = vst.msk [vmem:[%s4738_s11 + $0x4] sm:$0xf] %vm3458_vm0, %v3812_v32 }
 0x150   : > { %v3928_v7 = vpop.f32.mrb[4].mxu1 }
 0x151   : > { %v1511_v38 = vpop.f32.mrb[5].mxu1 }
 0x152   : > { %v3929_v59 = vpop.f32.mrb[6].mxu1 }
 0x153   : > { %v1514_v62 = vpop.f32.mrb[7].mxu1 }
 0x157   : > { %v3984_v4 = vpop.f32.mrb[4].mxu0 }
 0x158   : > { %v3994_v2 = vadd.f32 %v3984_v4, %v3928_v7  ;;  %v3343_v46 = vpop.f32.mrb[5].mxu0 }
 0x159   : > { %v3995_v49 = vadd.f32 %v3343_v46, %v1511_v38  ;;  %v3985_v15 = vpop.f32.mrb[6].mxu0  ;;  %v3932_v45 = vpop.f32.mrb[12].mxu1 }
 0x15a   : > { %v3397_v55 = vadd.f32 %v3994_v2, %v4729_v3  ;;  %v3996_v61 = vadd.f32 %v3985_v15, %v3929_v59  ;;  %v3346_v43 = vpop.f32.mrb[7].mxu0  ;;  %v1536_v30 = vadd.f32 %v3932_v45, %v3904_v5  ;;  %v1527_v6 = vpop.f32.mrb[13].mxu1 }
 0x15b   : > { %v3395_v40 = vadd.f32 %v3995_v49, %v4729_v3  ;;  %v3997_v18 = vadd.f32 %v3346_v43, %v1514_v62  ;;  %v1528_v42 = vadd.f32 %v1527_v6, %v4716_v14  ;;  %v3933_v53 = vpop.f32.mrb[14].mxu1 }
 0x15c   : > { %v3408_v16 = vmax.f32 %v3397_v55, 0.0  ;;  %v3398_v24 = vadd.f32 %v3996_v61, %v4729_v3  ;;  %v2462_v0 = vadd.f32 %v4720_v22, %v1536_v30  ;;  %v1530_v47 = vpop.f32.mrb[15].mxu1 }
 0x15d   : > { %v3406_v37 = vmax.f32 %v3395_v40, 0.0  ;;  %v3396_v19 = vadd.f32 %v3997_v18, %v4729_v3  ;;  %v2460_v51 = vadd.f32 %v4722_v21, %v1528_v42  ;;  %v1531_v44 = vadd.f32 %v1530_v47, %v4718_v58 }
 0x15e   : > { %v3817_v8 = vpack.c.bf16 %v3408_v16, %v3408_v16  ;;  %v3409_v41 = vmax.f32 %v3398_v24, 0.0 }
 0x15f   : > { %v3815_v31 = vpack.c.bf16 %v3406_v37, %v3406_v37  ;;  %v3407_v17 = vmax.f32 %v3396_v19, 0.0  ;;  %v2461_v5 = vadd.f32 %v4724_v56, %v1531_v44 }
 0x160   : > { %3465 = vst.msk [vmem:[%s4738_s11 + $0x18] sm:$0xf] %vm3458_vm0, %v3817_v8  ;;  %v3818_v20 = vpack.c.bf16 %v3409_v41, %v3409_v41 }
 0x161   : > { %3463 = vst.msk [vmem:[%s4738_s11 + $0x10] sm:$0xf] %vm3458_vm0, %v3815_v31  ;;  %v3816_v34 = vpack.c.bf16 %v3407_v17, %v3407_v17  ;;  %v3988_v14 = vpop.f32.mrb[12].mxu0 }
 0x162   : > { %3466 = vst.msk [vmem:[%s4738_s11 + $0x1c] sm:$0xf] %vm3458_vm0, %v3818_v20  ;;  %v3383_v48 = vadd.f32 %v3988_v14, %v2462_v0  ;;  %v3359_v9 = vpop.f32.mrb[13].mxu0 }
 0x163   : > { %3464 = vst.msk [vmem:[%s4738_s11 + $0x14] sm:$0xf] %vm3458_vm0, %v3816_v34  ;;  %v3381_v25 = vadd.f32 %v3359_v9, %v2460_v51  ;;  %v3989_v22 = vpop.f32.mrb[14].mxu0 }
 0x164   : > { %v3401_v52 = vadd.f32 %v4729_v3, %v3383_v48  ;;  %v3362_v58 = vpop.f32.mrb[15].mxu0 }
 0x165   : > { %v3399_v21 = vadd.f32 %v4729_v3, %v3381_v25  ;;  %v3382_v57 = vadd.f32 %v3362_v58, %v2461_v5 }
 0x166   : > { %v3412_v50 = vmax.f32 %v3401_v52, 0.0 }
 0x167   : > { %v3410_v56 = vmax.f32 %v3399_v21, 0.0  ;;  %v3400_v36 = vadd.f32 %v4729_v3, %v3382_v57 }
 0x168   : > { %v3821_v11 = vpack.c.bf16 %v3412_v50, %v3412_v50 }
 0x169   : > { %v3819_v13 = vpack.c.bf16 %v3410_v56, %v3410_v56  ;;  %v3411_v33 = vmax.f32 %v3400_v36, 0.0 }
 0x16a   : > { %v3473_v54 = vsel %vm3471_vm3, %v3821_v11, %v3472_v12 }
 0x16b   : > { %3474 = vst [vmem:[%s4738_s11 + $0x28] sm:$0x1] %v3473_v54  ;;  %3467 = vst.msk [vmem:[%s4738_s11 + $0x20] sm:$0xf] %vm3458_vm0, %v3819_v13  ;;  %v3820_v27 = vpack.c.bf16 %v3411_v33, %v3411_v33 }
 0x16d   : > { %3468 = vst.msk [vmem:[%s4738_s11 + $0x24] sm:$0xf] %vm3458_vm0, %v3820_v27 }
 0x16e PF: > { %s13_s12 = sadd.s32 1, %s4063_s12  }
 0x16f   : > { %p10_p4 = scmp.ge.s32.totalorder %s13_s12, 4  }
 0x171   :  { %12 = sbr.rel (!%p10_p4) target bundleno = 1 (0x1), region = 66 }

// kernel: convolutional_qnet_forward.6
= control target key start
LH: loop header
LB: loop body
LE: loop exit
PB: predicated region body
PF: predicated region fallthrough
CT: control target
= control target key end

     0   :  { %s5929_s12 = smov 0   ;;  %s6846_s0 = inlined_call_operand.vmem [shape: bf16[2,9,9,64], index: 0, kind: input, shape index: {}]   ;;  %s6847_s1 = inlined_call_operand.vmem [shape: bf16[9,64,64], index: 1, kind: input, shape index: {}]   ;;  %s6848_s2 = inlined_call_operand.vmem [shape: f32[1,64], index: 2, kind: input, shape index: {}]   ;;  %s6849_s3 = inlined_call_operand.vmem [shape: bf16[2,49,64], index: 3, kind: output, shape index: {}]  }
   0x1 LB: > { %s5187_s13 = sadd.s32 4294967295, %s5906_s12   ;;  %p5191_p0 = scmp.ge.s32.totalorder %s5906_s12, 1  ;;  %s5906_s12 = sphi %s5929_s12, %s13_s12  }
   0x2   : > { %p137_p1 = scmp.lt.s32.totalorder %s5906_s12, 3 }
   0x4   : > { %p138_p2 = pnand %p5191_p0, %p137_p1 }
   0x6   : > { %141 = sbr.rel (%p138_p2) target bundleno = 426 (0x1aa), region = 32 }
   0xd   : > { %v5864_v0 = vld [vmem:[%s6847_s1 + $0x20] sm:$0xff]   ;;  %p161_p3 = scmp.lt.s32.totalorder %s5187_s13, 1  ;;  %v5866_v2 = vld [vmem:[%s6847_s1 + $0x28] sm:$0xff]   ;;  %v197_v4 = vlaneseq  ;;  %v5868_v5 = vld [vmem:[%s6847_s1 + $0x30] sm:$0xff]   ;;  %v5908_v12 = vmov 1966171168  }
   0xe   : > { %v5865_v1 = vld [vmem:[%s6847_s1 + $0x80] sm:$0xff]   ;;  %5669 = vmatprep.subr.bf16.mxu1 %v5864_v0  ;;  %v5867_v3 = vld [vmem:[%s6847_s1 + $0x88] sm:$0xff]   ;;  %v5869_v6 = vld [vmem:[%s6847_s1 + $0x90] sm:$0xff]   ;;  %v195_v13 = vunpack.c.l.s4 %v5908_v12  ;;  %vm637_vm0 = vcmask 523264   ;;  %vm5126_vm1 = vcmask 516096   ;;  %vm5119_vm4 = vcmask 519168  }
   0xf   : > { %s6865_s13 = smov (!%p161_p3, %s5187_s13), 1  ;;  %5670 = vmatpush3.bf16.msra.mxu1 %v5864_v0  ;;  %5733 = vmatprep.subr.bf16.mxu0 %v5865_v1  ;;  %v5870_v7 = vld [vmem:[%s6847_s1 + $0x38] sm:$0xff]   ;;  %v198_v9 = vshrl.u32 %v197_v4, 7  ;;  %v5975_v18 = vld [vmem:[%s6847_s1] sm:$0xff]   ;;  %vm5127_vm2 = vsmask.f32 256 }
  0x10   : > { %5734 = vmatpush3.bf16.msra.mxu0 %v5865_v1  ;;  %5671 = vmatprep.subr.bf16.mxu1 %v5866_v2  ;;  %s5853_s24 = smul.u32 72, %s6865_s13  ;;  %v5871_v8 = vld [vmem:[%s6847_s1 + $0x98] sm:$0xff]   ;;  %v196_v16 = vunpack.c.0.s8 %v195_v13  ;;  %v5981_v20 = vld [vmem:[%s6847_s1 + $0xa0] sm:$0xff]   ;;  %vm6823_vm3 = vmand %vm5126_vm1, %vm5127_vm2 }
  0x11   : > { %5735 = vmatprep.subr.bf16.mxu0 %v5867_v3 }
  0x12   : > { %s5964_s4 = scalar_lea.vmem %s6846_s0, %s5853_s24  ;;  %v5986_v23 = vsub.s32 %v196_v16, %v198_v9 }
  0x13   : > { %5672 = vmatpush3.bf16.msra.mxu1 %v5866_v2  ;;  %v5194_v10 = vld.sshfl [vmem:[%s5964_s4] sm:$0x33 pattern:$0x75316420] }
  0x14   : > { %5736 = vmatpush3.bf16.msra.mxu0 %v5867_v3  ;;  %5673 = vmatprep.subr.bf16.mxu1 %v5868_v5  ;;  %v5195_v11 = vld.sshfl [vmem:[%s5964_s4 + $0x8] sm:$0x33 pattern:$0x75316420]  ;;  %v193_v15 = vcombine.high %v5194_v10, %v5194_v10  ;;  %v5996_v28 = vrot.slane %v5194_v10, %v5986_v23 }
  0x15   : > { %5737 = vmatprep.subr.bf16.mxu0 %v5869_v6  ;;  %v5196_v14 = vld.sshfl [vmem:[%s5964_s4 + $0x10] sm:$0x33 pattern:$0x75316420]  ;;  %v217_v17 = vcombine.high %v5195_v11, %v5195_v11  ;;  %v6002_v30 = vrot.slane %v5195_v11, %v5986_v23 }
  0x16   : > { %v5345_v19 = vld.sshfl [vmem:[%s5964_s4 + $0x18] sm:$0x33 pattern:$0x75316420]  ;;  %v241_v21 = vcombine.high %v5196_v14, %v5196_v14  ;;  %v5999_v29 = vrot.slane %v193_v15, %v5986_v23  ;;  %v6006_v32 = vrot.slane %v5196_v14, %v5986_v23  ;;  %v6017_v35 = vcombine.high %v5996_v28, %v5996_v28 }
  0x17   : > { %5674 = vmatpush3.bf16.msra.mxu1 %v5868_v5  ;;  %v5984_v22 = vld.sshfl [vmem:[%s5964_s4 + $0x20] sm:$0x33 pattern:$0x75316420]  ;;  %v2248_v25 = vcombine.high %v5345_v19, %v5345_v19  ;;  %v231_v31 = vrot.slane %v217_v17, %v5986_v23  ;;  %v6013_v34 = vrot.slane %v5345_v19, %v5986_v23  ;;  %v232_v37 = vcombine.high %v6002_v30, %v6002_v30 }
  0x18   : > { %5738 = vmatpush3.bf16.msra.mxu0 %v5869_v6  ;;  %5675 = vmatprep.subr.bf16.mxu1 %v5870_v7  ;;  %v5989_v24 = vld.sshfl [vmem:[%s5964_s4 + $0x28] sm:$0x33 pattern:$0x75316420]  ;;  %v289_v26 = vcombine.high %v5984_v22, %v5984_v22  ;;  %v6009_v33 = vrot.slane %v241_v21, %v5986_v23  ;;  %v6021_v36 = vcombine.high %v5999_v29, %v5999_v29  ;;  %v355_v39 = vunpack.i.h.s16 %v5996_v28 }
  0x19   : > { %5739 = vmatprep.subr.bf16.mxu0 %v5871_v8  ;;  %v2296_v27 = vcombine.high %v5989_v24, %v5989_v24  ;;  %v233_v38 = vcombine.high %v231_v31, %v231_v31  ;;  %v357_v40 = vunpack.i.h.s16 %v5999_v29  ;;  %v362_v41 = vunpack.i.h.s16 %v6002_v30 }
  0x1a   : > { %v369_v42 = vunpack.i.h.s16 %v6006_v32  ;;  %v359_v43 = vunpack.i.h.s16 %v6017_v35  ;;  %v366_v44 = vunpack.i.h.s16 %v232_v37  ;;  %v411_v45 = vunpack.i.h.s16 %v6021_v36 }
  0x1b   : > { %5676 = vmatpush3.bf16.msra.mxu1 %v5870_v7  ;;  %v454_v46 = vcombine.low %v231_v31, %v232_v37  ;;  %v5209_v47 = vpack.i.b16 %v5999_v29, %v355_v39  ;;  %v5210_v48 = vpack.i.b16 %v6017_v35, %v357_v40  ;;  %v5231_v50 = vpack.i.b16 %v231_v31, %v362_v41 }
  0x1c   : > { %5740 = vmatpush3.bf16.msra.mxu0 %v5871_v8  ;;  %5685 = vmatprep.subr.bf16.mxu1 %v5975_v18  ;;  %v5212_v49 = vpack.i.b16 %v6009_v33, %v369_v42  ;;  %v5211_v51 = vpack.i.b16 %v6021_v36, %v359_v43  ;;  %v430_v52 = vpack.i.b16 %v362_v41, %v411_v45  ;;  %v2363_v62 = vunpack.i.h.s16 %v231_v31 }
  0x1d   : > { %5749 = vmatprep.subr.bf16.mxu0 %v5981_v20  ;;  %v476_v53 = vrot.slane %v454_v46, %v5986_v23  ;;  %v6037_v54 = vpack.i.b16 %v233_v38, %v366_v44  ;;  %v452_v55 = vcombine.low %v5209_v47, %v5210_v48  ;;  %v2239_v57 = vcombine.high %v6006_v32, %v6006_v32 }
  0x1e   : > { %v455_v56 = vcombine.low %v233_v38, %v5212_v49  ;;  %v2240_v58 = vcombine.high %v6009_v33, %v6009_v33  ;;  %v453_v59 = vcombine.low %v5211_v51, %v430_v52  ;;  %v6044_v60 = vrot.slane %v2248_v25, %v5986_v23 }
  0x1f   : > { %v6048_v61 = vcombine.high %v6013_v34, %v6013_v34  ;;  %v462_v63 = vrot.slane %v452_v55, %v5986_v23  ;;  %v2367_v1 = vunpack.i.h.s16 %v233_v38  ;;  %v2375_v2 = vunpack.i.h.s16 %v6013_v34 }
  0x20   : > { %v483_v0 = vrot.slane %v455_v56, %v5986_v23  ;;  %v469_v3 = vrot.slane %v453_v59, %v5986_v23  ;;  %v5359_v4 = vpack.i.b16 %v232_v37, %v2363_v62  ;;  %v2446_v5 = vcombine.low %v6009_v33, %v2239_v57 }
  0x21   : > { %v2422_v7 = vpack.i.b16 %v369_v42, %v2367_v1  ;;  %v6056_v8 = vpack.i.b16 %v6044_v60, %v2375_v2  ;;  %v6063_v12 = vrot.slane %v5984_v22, %v5986_v23  ;;  %v6069_v16 = vrot.slane %v289_v26, %v5986_v23 }
  0x22   : > { %v485_v6 = vcombine.low %v476_v53, %v483_v0  ;;  %v484_v9 = vcombine.low %v462_v63, %v469_v3  ;;  %v2444_v10 = vcombine.low %v5231_v50, %v5359_v4  ;;  %v6059_v11 = vrot.slane %v2446_v5, %v5986_v23 }
  0x23   : > { %v2445_v14 = vcombine.low %v6037_v54, %v2422_v7  ;;  %v2447_v15 = vcombine.low %v2240_v58, %v6056_v8  ;;  %v6077_v21 = vcombine.high %v6063_v12, %v6063_v12  ;;  %v371_v22 = vunpack.i.h.s16 %v6009_v33 }
  0x24   : > { %v499_v13 = vrot.slane %v485_v6, %v5986_v23  ;;  %v492_v17 = vrot.slane %v484_v9, %v5986_v23  ;;  %v6073_v19 = vrot.slane %v2444_v10, %v5986_v23  ;;  %v373_v37 = vunpack.i.h.s16 %v2239_v57 }
  0x25   : > { %v2461_v25 = vrot.slane %v2445_v14, %v5986_v23  ;;  %v2475_v31 = vrot.slane %v2447_v15, %v5986_v23  ;;  %v383_v38 = vunpack.i.h.s16 %v6063_v12  ;;  %v385_v39 = vunpack.i.h.s16 %v6069_v16 }
  0x26   : > { %v500_v26 = vcombine.low %v492_v17, %v499_v13  ;;  %v413_v40 = vunpack.i.h.s16 %v2240_v58  ;;  %v5213_v41 = vpack.i.b16 %v2239_v57, %v371_v22  ;;  %v5214_v44 = vpack.i.b16 %v2240_v58, %v373_v37  ;;  %v5200_v17 = vld.sshfl [vmem:[%s5964_s4 + $0x30] sm:$0x33 pattern:$0x75316420] }
  0x27   : > { %v2476_v42 = vcombine.low %v6073_v19, %v2461_v25  ;;  %v2477_v43 = vcombine.low %v6059_v11, %v2475_v31  ;;  %v5215_v45 = vpack.i.b16 %v6069_v16, %v383_v38  ;;  %v5216_v46 = vpack.i.b16 %v6077_v21, %v385_v39 }
  0x28   : > { %5677 = vmatprep.mubr.msk.bf16.mxu1 %vm637_vm0, %v500_v26  ;;  %v437_v33 = vpack.i.b16 %v2375_v2, %v413_v40  ;;  %v5221_v47 = vcombine.high %v6013_v34, %v6044_v60  ;;  %v5234_v48 = vpack.i.b16 %v6013_v34, %v2240_v58  ;;  %v501_v51 = vcombine.low %v5213_v41, %v5214_v44 }
  0x29   : > { %v2484_v49 = vrot.slane %v2476_v42, %v5986_v23  ;;  %v2491_v50 = vrot.slane %v2477_v43, %v5986_v23  ;;  %v2264_v52 = vcombine.high %v6044_v60, %v6044_v60  ;;  %v504_v55 = vcombine.low %v5215_v45, %v5216_v46  ;;  %v5874_v42 = vld [vmem:[%s6847_s1 + $0x8] sm:$0xff]  }
  0x2a   : > { %v502_v53 = vcombine.low %v437_v33, %v6044_v60  ;;  %v525_v56 = vrot.slane %v5221_v47, %v5986_v23  ;;  %v6099_v57 = vcombine.low %v5234_v48, %v6056_v8  ;;  %v511_v62 = vrot.slane %v501_v51, %v5986_v23 }
  0x2b   : > { %v2492_v59 = vcombine.low %v2484_v49, %v2491_v50  ;;  %v6104_v58 = vrot.slane %v5989_v24, %v5986_v23  ;;  %v2310_v63 = vrot.slane %v2296_v27, %v5986_v23  ;;  %v532_v1 = vrot.slane %v504_v55, %v5986_v23 }
  0x2c   : > { %v518_v0 = vrot.slane %v502_v53, %v5986_v23  ;;  %v2377_v2 = vunpack.i.h.s16 %v6044_v60  ;;  %v2379_v3 = vunpack.i.h.s16 %v6048_v61  ;;  %v2381_v5 = vunpack.i.h.s16 %v2264_v52 }
  0x2d   : > { %5741 = vmatprep.mubr.msk.bf16.mxu0 %vm637_vm0, %v2492_v59  ;;  %v6117_v4 = vcombine.high %v6104_v58, %v6104_v58  ;;  %v2389_v6 = vunpack.i.h.s16 %v6104_v58  ;;  %v2391_v24 = vunpack.i.h.s16 %v2310_v63  ;;  %v534_v7 = vcombine.low %v525_v56, %v532_v1 }
  0x2e   : > { %v533_v27 = vcombine.low %v511_v62, %v518_v0  ;;  %v6121_v9 = vpack.i.b16 %v6048_v61, %v2377_v2  ;;  %v6123_v10 = vpack.i.b16 %v2264_v52, %v2379_v3  ;;  %v2429_v60 = vpack.i.b16 %v383_v38, %v2381_v5  ;;  %v5349_v52 = vld.sshfl [vmem:[%s5964_s4 + $0x38] sm:$0x33 pattern:$0x75316420] }
  0x2f   : > { %v6125_v13 = vpack.i.b16 %v2310_v63, %v2389_v6  ;;  %v6128_v14 = vpack.i.b16 %v6117_v4, %v2391_v24  ;;  %v5370_v15 = vcombine.high %v6063_v12, %v6069_v16  ;;  %v548_v25 = vrot.slane %v534_v7, %v5986_v23 }
  0x30   : > { %v541_v22 = vrot.slane %v533_v27, %v5986_v23  ;;  %v2493_v61 = vcombine.low %v6121_v9, %v6123_v10  ;;  %v6139_v31 = vcombine.high %v6069_v16, %v6069_v16  ;;  %v2494_v37 = vcombine.low %v2429_v60, %v6069_v16 }
  0x31   : > { %v2496_v38 = vcombine.low %v6125_v13, %v6128_v14  ;;  %v2517_v26 = vrot.slane %v5370_v15, %v5986_v23  ;;  %v329_v39 = vcombine.high %v2310_v63, %v2310_v63  ;;  %v337_v43 = vcombine.high %v5200_v17, %v5200_v17  ;;  %v5875_v15 = vld [vmem:[%s6847_s1 + $0xa8] sm:$0xff]  }
  0x32   : > { %v549_v40 = vcombine.low %v541_v22, %v548_v25  ;;  %v6146_v41 = vrot.slane %v2493_v61, %v5986_v23  ;;  %v6152_v44 = vrot.slane %v5200_v17, %v5986_v23  ;;  %v2510_v45 = vrot.slane %v2494_v37, %v5986_v23 }
  0x33   : > { %v6156_v33 = vrot.slane %v2496_v38, %v5986_v23  ;;  %v387_v46 = vunpack.i.h.s16 %v6077_v21  ;;  %v415_v47 = vunpack.i.h.s16 %v6139_v31  ;;  %v6162_v48 = vrot.slane %v337_v43, %v5986_v23 }
  0x34   : > { %5678 = vmatmul.mubr.msk.bf16.vlgmr.msra.gmra.mrb[0].mxu1 %vm637_vm0, %v549_v40  ;;  %v6166_v49 = vcombine.high %v6152_v44, %v6152_v44  ;;  %v397_v50 = vunpack.i.h.s16 %v6152_v44  ;;  %v551_v51 = vcombine.low %v2310_v63, %v6117_v4  ;;  %v2525_v53 = vcombine.low %v6146_v41, %v2510_v45  ;;  %v5878_v40 = vld [vmem:[%s6847_s1 + $0x18] sm:$0xff]  }
  0x35   : > { %5686 = vmatpush3.bf16.msra.mxu1 %v5975_v18  ;;  %v2526_v55 = vcombine.low %v2517_v26, %v6156_v33  ;;  %v5217_v56 = vpack.i.b16 %v6139_v31, %v387_v46  ;;  %v444_v59 = vpack.i.b16 %v2389_v6, %v415_v47  ;;  %v6177_v62 = vcombine.high %v6162_v48, %v6162_v48  ;;  %v5876_v18 = vld [vmem:[%s6847_s1 + $0x10] sm:$0xff]  }
  0x36   : > { %6854 = vst [vmem:[#allocation2_spill] sm:$0xff] %v6166_v49  ;;  %5687 = vmatprep.subr.bf16.mxu1 %v5874_v42  ;;  %v399_v0 = vunpack.i.h.s16 %v6162_v48  ;;  %v401_v1 = vunpack.i.h.s16 %v6166_v49  ;;  %v5218_v63 = vpack.i.b16 %v6162_v48, %v397_v50  ;;  %v2533_v2 = vrot.slane %v2525_v53, %v5986_v23 }
  0x37   : > { %v2540_v3 = vrot.slane %v2526_v55, %v5986_v23  ;;  %v550_v5 = vcombine.low %v5217_v56, %v444_v59  ;;  %v567_v6 = vrot.slane %v551_v51, %v5986_v23  ;;  %v2344_v22 = vcombine.high %v5349_v52, %v5349_v52 }
  0x38   : > { %v5219_v24 = vpack.i.b16 %v6166_v49, %v399_v0  ;;  %v5220_v27 = vpack.i.b16 %v6177_v62, %v401_v1  ;;  %v552_v7 = vcombine.low %v329_v39, %v5218_v63  ;;  %v6195_v25 = vrot.slane %v5349_v52, %v5986_v23  ;;  %v5877_v0 = vld [vmem:[%s6847_s1 + $0xb0] sm:$0xff]   ;;  %v6226_v63 = vld [vmem:[%s6847_s1 + $0x40] sm:$0xff]  }
  0x39   : > { %v2541_v60 = vcombine.low %v2533_v2, %v2540_v3  ;;  %5688 = vmatpush3.bf16.msra.mxu1 %v5874_v42  ;;  %v560_v17 = vrot.slane %v550_v5, %v5986_v23  ;;  %v2393_v38 = vunpack.i.h.s16 %v6117_v4  ;;  %v2395_v26 = vunpack.i.h.s16 %v329_v39 }
  0x3a   : > { %v553_v61 = vcombine.low %v5219_v24, %v5220_v27  ;;  %v574_v37 = vrot.slane %v552_v7, %v5986_v23  ;;  %5689 = vmatprep.subr.bf16.mxu1 %v5876_v18  ;;  %v2358_v43 = vrot.slane %v2344_v22, %v5986_v23  ;;  %v2359_v45 = vcombine.high %v6195_v25, %v6195_v25 }
  0x3b   : > { %5742 = vmatmul.mubr.msk.bf16.vlgmr.msra.gmra.mrb[0].mxu0 %vm637_vm0, %v2541_v60  ;;  %v582_v42 = vcombine.low %v560_v17, %v567_v6  ;;  %v2403_v46 = vunpack.i.h.s16 %v6195_v25  ;;  %v6209_v4 = vpack.i.b16 %v329_v39, %v2393_v38  ;;  %v2436_v51 = vpack.i.b16 %v397_v50, %v2395_v26 }
  0x3c   : > { %5750 = vmatpush3.bf16.msra.mxu0 %v5981_v20  ;;  %v581_v47 = vrot.slane %v553_v61, %v5986_v23  ;;  %v2543_v52 = vcombine.low %v6162_v48, %v6166_v49  ;;  %v2360_v55 = vcombine.high %v2358_v43, %v2358_v43  ;;  %v2405_v56 = vunpack.i.h.s16 %v2358_v43 }
  0x3d   : > { %5751 = vmatprep.subr.bf16.mxu0 %v5875_v15  ;;  %v590_v53 = vrot.slane %v582_v42, %v5986_v23  ;;  %v2407_v59 = vunpack.i.h.s16 %v2359_v45  ;;  %5690 = vmatpush3.bf16.msra.mxu1 %v5876_v18  ;;  %v6217_v1 = vpack.i.b16 %v2358_v43, %v2403_v46  ;;  %v2542_v39 = vcombine.low %v6209_v4, %v2436_v51  ;;  %v5393_v43 = vld.sshfl [vmem:[%s5964_s4 + $0x8] sm:$0x32 pattern:$0x75316420] }
  0x3e   : > { %v583_v20 = vcombine.low %v574_v37, %v581_v47  ;;  %v6221_v50 = vrot.slane %v2543_v52, %v5986_v23  ;;  %5691 = vmatprep.subr.bf16.mxu1 %v5878_v40  ;;  %v6228_v2 = vpack.i.b16 %v2359_v45, %v2405_v56  ;;  %v417_v3 = vunpack.i.h.s16 %v6177_v62  ;;  %v5395_v52 = vld.sshfl [vmem:[%s5964_s4 + $0x10] sm:$0x32 pattern:$0x75316420] }
  0x3f   : > { %6855 = vst [vmem:[#allocation3_spill] sm:$0xff] %v6217_v1  ;;  %v6230_v18 = vpack.i.b16 %v2360_v55, %v2407_v59  ;;  %v2409_v5 = vunpack.i.h.s16 %v2360_v55  ;;  %v2544_v24 = vcombine.low %v6177_v62, %v6217_v1  ;;  %v2552_v27 = vrot.slane %v2542_v39, %v5986_v23 }
  0x40   : > { %6856 = vst [vmem:[#allocation4_spill] sm:$0xff] %v6228_v2  ;;  %5752 = vmatpush3.bf16.msra.mxu0 %v5875_v15  ;;  %v597_v6 = vrot.slane %v583_v20, %v5986_v23  ;;  %v605_v60 = vrot.slane %v417_v3, %v5986_v23  ;;  %v5879_v15 = vld [vmem:[%s6847_s1 + $0xb8] sm:$0xff]   ;;  %v5230_v38 = vpack.i.b16 %v6002_v30, %v6021_v36  ;;  %v5394_v36 = vld.sshfl [vmem:[%s5964_s4 + $0xc] sm:$0x1 pattern:$0x75316420]  ;;  %v402_v55 = vunpack.i.l.s16 %v6177_v62 }
  0x41   : > { %6857 = vst [vmem:[#allocation5_spill] sm:$0xff] %v6230_v18  ;;  %v2545_v7 = vcombine.low %v6228_v2, %v6230_v18  ;;  %v2597_v17 = vrot.slane %v2409_v5, %v5986_v23  ;;  %5753 = vmatprep.subr.bf16.mxu0 %v5877_v0  ;;  %5692 = vmatpush3.bf16.msra.mxu1 %v5878_v40  ;;  %v5251_v2 = vld.sshfl [vmem:[%s5964_s4 + $0x4] sm:$0x1 pattern:$0x75316420] }
  0x42   : > { %v598_v22 = vcombine.low %v590_v53, %v597_v6  ;;  %v2566_v61 = vrot.slane %v2544_v24, %v5986_v23  ;;  %v2574_v37 = vcombine.low %v2552_v27, %v6221_v50  ;;  %5701 = vmatprep.subr.bf16.mxu1 %v6226_v63  ;;  %v612_v40 = vrot.slane %v605_v60, %v5986_v23  ;;  %v6266_v53 = vld [vmem:[%s6847_s1 + $0xc0] sm:$0xff]  }
  0x43   : > { %v2573_v26 = vrot.slane %v2545_v7, %v5986_v23  ;;  %v2604_v42 = vrot.slane %v2597_v17, %v5986_v23  ;;  %v739_v46 = vcombine.low %v5996_v28, %v5999_v29  ;;  %v740_v30 = vcombine.low %v6017_v35, %v5230_v38  ;;  %v5396_v35 = vld.sshfl [vmem:[%s5964_s4 + $0x14] sm:$0x1 pattern:$0x75316420] }
  0x44   : > { %5681 = vmatprep.mubr.msk.bf16.mxu1 %vm637_vm0, %v598_v22  ;;  %v2582_v45 = vrot.slane %v2574_v37, %v5986_v23  ;;  %5754 = vmatpush3.bf16.msra.mxu0 %v5877_v0  ;;  %v742_v51 = vcombine.low %v6037_v54, %v6006_v32  ;;  %v2747_v56 = vcombine.high %v5393_v43, %v5393_v43  ;;  %v5397_v54 = vld.sshfl [vmem:[%s5964_s4 + $0x18] sm:$0x32 pattern:$0x75316420] }
  0x45   : > { %v2575_v47 = vcombine.low %v2566_v61, %v2573_v26  ;;  %5682 = vmatmul.mubr.msk.bf16.gmra.mrb[4].mxu1 %vm637_vm0, %v612_v40  ;;  %5755 = vmatprep.subr.bf16.mxu0 %v5879_v15  ;;  %v749_v28 = vrot.slane %v739_v46, %v5986_v23  ;;  %v756_v29 = vrot.slane %v740_v30, %v5986_v23 }
  0x46   : > { %v2754_v59 = vrot.slane %v5393_v43, %v5986_v23  ;;  %v770_v32 = vrot.slane %v742_v51, %v5986_v23  ;;  %v6277_v20 = vrot.slane %v5394_v36, %v5986_v23  ;;  %v6280_v3 = vrot.slane %v2747_v56, %v5986_v23  ;;  %v5398_v51 = vld.sshfl [vmem:[%s5964_s4 + $0x1c] sm:$0x1 pattern:$0x75316420] }
  0x47   : > { %v2589_v0 = vrot.slane %v2575_v47, %v5986_v23  ;;  %v771_v39 = vcombine.low %v749_v28, %v756_v29  ;;  %v2785_v6 = vcombine.high %v5395_v52, %v5395_v52  ;;  %v6286_v7 = vrot.slane %v5395_v52, %v5986_v23 }
  0x48   : > { %5756 = vmatpush3.bf16.msra.mxu0 %v5879_v15  ;;  %v6282_v5 = vcombine.high %v2754_v59, %v2754_v59  ;;  %v772_v27 = vcombine.low %v6073_v19, %v770_v32  ;;  %v6289_v60 = vrot.slane %v5396_v35, %v5986_v23  ;;  %v6295_v15 = vcombine.high %v6280_v3, %v6280_v3  ;;  %v5399_v35 = vld.sshfl [vmem:[%s5964_s4 + $0x20] sm:$0x32 pattern:$0x75316420] }
  0x49   : > { %v2590_v24 = vcombine.low %v2582_v45, %v2589_v0  ;;  %5765 = vmatprep.subr.bf16.mxu0 %v6266_v53  ;;  %v779_v17 = vrot.slane %v771_v39, %v5986_v23  ;;  %v6298_v22 = vrot.slane %v2785_v6, %v5986_v23  ;;  %v2823_v61 = vcombine.high %v5397_v54, %v5397_v54  ;;  %v5400_v32 = vld.sshfl [vmem:[%s5964_s4 + $0x24] sm:$0x1 pattern:$0x75316420] }
  0x4a   : > { %v786_v19 = vrot.slane %v772_v27, %v5986_v23  ;;  %v2800_v37 = vcombine.high %v6286_v7, %v6286_v7  ;;  %v6305_v38 = vrot.slane %v5397_v54, %v5986_v23  ;;  %v3089_v26 = vcombine.low %v6280_v3, %v6282_v5 }
  0x4b   : > { %5745 = vmatprep.mubr.msk.bf16.mxu0 %vm637_vm0, %v2590_v24  ;;  %v2801_v40 = vcombine.high %v6298_v22, %v6298_v22  ;;  %v6313_v43 = vrot.slane %v2823_v61, %v5986_v23  ;;  %v3014_v45 = vunpack.i.h.s16 %v6298_v22  ;;  %v5415_v46 = vpack.i.b16 %v6298_v22, %v6277_v20 }
  0x4c   : > { %5746 = vmatmul.mubr.msk.bf16.gmra.mrb[4].mxu0 %vm637_vm0, %v2604_v42  ;;  %v787_v30 = vcombine.low %v779_v17, %v786_v19  ;;  %v3016_v36 = vunpack.i.h.s16 %v2800_v37  ;;  %v3099_v47 = vrot.slane %v3089_v26, %v5986_v23  ;;  %v791_v59 = vcombine.low %v6063_v12, %v6069_v16  ;;  %v5401_v19 = vld.sshfl [vmem:[%s5964_s4 + $0x28] sm:$0x32 pattern:$0x75316420] }
  0x4d   : > { %v3018_v52 = vunpack.i.h.s16 %v2801_v40  ;;  %v5416_v28 = vpack.i.b16 %v2800_v37, %v3014_v45  ;;  %v3090_v42 = vcombine.low %v6295_v15, %v5415_v46  ;;  %v5427_v29 = vcombine.high %v6305_v38, %v6313_v43 }
  0x4e   : > { %5693 = vmatprep.mubr.msk.bf16.mxu1 %vm637_vm0, %v787_v30  ;;  %v5417_v56 = vpack.i.b16 %v2801_v40, %v3016_v36  ;;  %v805_v0 = vrot.slane %v6099_v57, %v5986_v23  ;;  %v6334_v24 = vrot.slane %v5398_v51, %v5986_v23  ;;  %v819_v17 = vrot.slane %v791_v59, %v5986_v23 }
  0x4f   : > { %v5418_v54 = vpack.i.b16 %v6289_v60, %v3018_v52  ;;  %v3106_v39 = vrot.slane %v3090_v42, %v5986_v23  ;;  %v3148_v6 = vrot.slane %v5427_v29, %v5986_v23  ;;  %v2861_v37 = vcombine.high %v5399_v35, %v5399_v35 }
  0x50   : > { %v3091_v27 = vcombine.low %v5416_v28, %v5417_v56  ;;  %v820_v61 = vcombine.low %v6059_v11, %v805_v0  ;;  %v2868_v40 = vrot.slane %v5399_v35, %v5986_v23  ;;  %v6342_v45 = vrot.slane %v5400_v32, %v5986_v23 }
  0x51   : > { %v3092_v26 = vcombine.low %v5418_v54, %v6313_v43  ;;  %v3121_v57 = vcombine.low %v3099_v47, %v3106_v39  ;;  %v821_v30 = vcombine.low %v6146_v41, %v819_v17  ;;  %v6348_v51 = vrot.slane %v2861_v37, %v5986_v23 }
  0x52   : > { %v3113_v46 = vrot.slane %v3091_v27, %v5986_v23  ;;  %v828_v36 = vrot.slane %v820_v61, %v5986_v23  ;;  %v6352_v28 = vcombine.high %v2868_v40, %v2868_v40  ;;  %v2899_v47 = vcombine.high %v5401_v19, %v5401_v19  ;;  %v5882_v61 = vld [vmem:[%s6847_s1 + $0x48] sm:$0xff]  }
  0x53   : > { %v3120_v11 = vrot.slane %v3092_v26, %v5986_v23  ;;  %v3129_v52 = vrot.slane %v3121_v57, %v5986_v23  ;;  %v835_v42 = vrot.slane %v821_v30, %v5986_v23  ;;  %v6357_v29 = vcombine.high %v6348_v51, %v6348_v51  ;;  %v5402_v57 = vld.sshfl [vmem:[%s5964_s4 + $0x2c] sm:$0x1 pattern:$0x75316420] }
  0x54   : > { %v2906_v41 = vrot.slane %v5401_v19, %v5986_v23  ;;  %v3028_v35 = vunpack.i.h.s16 %v6348_v51  ;;  %v6362_v59 = vrot.slane %v2899_v47, %v5986_v23  ;;  %v3030_v0 = vunpack.i.h.s16 %v6352_v28 }
  0x55   : > { %v3122_v56 = vcombine.low %v3113_v46, %v3120_v11  ;;  %v5419_v32 = vpack.i.b16 %v6348_v51, %v6334_v24  ;;  %v836_v54 = vcombine.low %v828_v36, %v835_v42  ;;  %v3032_v27 = vunpack.i.h.s16 %v6357_v29  ;;  %v5403_v36 = vld.sshfl [vmem:[%s5964_s4 + $0x30] sm:$0x32 pattern:$0x75316420] }
  0x56   : > { %v6367_v39 = vcombine.high %v2906_v41, %v2906_v41  ;;  %v5420_v17 = vpack.i.b16 %v6352_v28, %v3028_v35  ;;  %v5421_v37 = vpack.i.b16 %v6357_v29, %v3030_v0  ;;  %v6378_v26 = vpack.i.b16 %v6104_v58, %v6139_v31  ;;  %v5404_v31 = vld.sshfl [vmem:[%s5964_s4 + $0x34] sm:$0x1 pattern:$0x75316420] }
  0x57   : > { %v3136_v19 = vrot.slane %v3122_v56, %v5986_v23  ;;  %5694 = vmatmul.mubr.msk.bf16.vlgmr.msra.gmra.mrb[0].mxu1 %vm637_vm0, %v836_v54  ;;  %v5422_v40 = vpack.i.b16 %v6342_v45, %v3032_v27  ;;  %v839_v58 = vcombine.low %v6209_v4, %v6152_v44  ;;  %v6394_v42 = vcombine.high %v6362_v59, %v6362_v59 }
  0x58   : > { %v3139_v46 = vcombine.low %v5419_v32, %v5420_v17  ;;  %v3141_v30 = vcombine.low %v6362_v59, %v6367_v39  ;;  %5702 = vmatpush3.bf16.msra.mxu1 %v6226_v63  ;;  %v837_v47 = vcombine.low %v6077_v21, %v6378_v26  ;;  %v5884_v63 = vld [vmem:[%s6847_s1 + $0x50] sm:$0xff]   ;;  %v6406_v54 = vrot.slane %v5402_v57, %v5986_v23 }
  0x59   : > { %v3137_v11 = vcombine.low %v3129_v52, %v3136_v19  ;;  %v3140_v41 = vcombine.low %v5421_v37, %v5422_v40  ;;  %5703 = vmatprep.subr.bf16.mxu1 %v5882_v61  ;;  %v5405_v52 = vld.sshfl [vmem:[%s5964_s4 + $0x38] sm:$0x32 pattern:$0x75316420]  ;;  %v861_v32 = vrot.slane %v839_v58, %v5986_v23  ;;  %v2937_v27 = vcombine.high %v5403_v36, %v5403_v36 }
  0x5a   : > { %v3155_v35 = vrot.slane %v3139_v46, %v5986_v23  ;;  %v3169_v56 = vrot.slane %v3141_v30, %v5986_v23  ;;  %v847_v0 = vrot.slane %v837_v47, %v5986_v23  ;;  %v6410_v37 = vrot.slane %v5403_v36, %v5986_v23 }
  0x5b   : > { %5757 = vmatprep.mubr.msk.bf16.mxu0 %vm637_vm0, %v3137_v11  ;;  %v3162_v17 = vrot.slane %v3140_v41, %v5986_v23  ;;  %v6413_v40 = vrot.slane %v5404_v31, %v5986_v23  ;;  %v870_v30 = vcombine.low %v861_v32, %v6221_v50  ;;  %v6418_v11 = vrot.slane %v2937_v27, %v5986_v23  ;;  %v5406_v32 = vld.sshfl [vmem:[%s5964_s4 + $0x3c] sm:$0x1 pattern:$0x75316420] }
  0x5c   : > { %v3170_v19 = vcombine.low %v3148_v6, %v3155_v35  ;;  %5704 = vmatpush3.bf16.msra.mxu1 %v5882_v61  ;;  %v869_v46 = vcombine.low %v847_v0, %v6156_v33  ;;  %v2975_v57 = vcombine.high %v5405_v52, %v5405_v52  ;;  %v2952_v6 = vcombine.high %v6410_v37, %v6410_v37  ;;  %v5886_v33 = vld [vmem:[%s6847_s1 + $0x58] sm:$0xff]  }
  0x5d   : > { %v3171_v47 = vcombine.low %v3162_v17, %v3169_v56  ;;  %5705 = vmatprep.subr.bf16.mxu1 %v5884_v63  ;;  %v2982_v36 = vrot.slane %v5405_v52, %v5986_v23  ;;  %v884_v61 = vrot.slane %v870_v30, %v5986_v23  ;;  %v2953_v31 = vcombine.high %v6418_v11, %v6418_v11  ;;  %v5250_v30 = vld.sshfl [vmem:[%s5964_s4] sm:$0x32 pattern:$0x75316420] }
  0x5e   : > { %v3178_v58 = vrot.slane %v3170_v19, %v5986_v23  ;;  %v877_v50 = vrot.slane %v869_v46, %v5986_v23  ;;  %v2989_v41 = vrot.slane %v2975_v57, %v5986_v23  ;;  %v3042_v56 = vunpack.i.h.s16 %v6418_v11 }
  0x5f   : > { %v3185_v35 = vrot.slane %v3171_v47, %v5986_v23  ;;  %v3044_v52 = vunpack.i.h.s16 %v2952_v6  ;;  %v5423_v0 = vpack.i.b16 %v6418_v11, %v6406_v54  ;;  %v3046_v17 = vunpack.i.h.s16 %v2953_v31  ;;  %v5883_v47 = vld [vmem:[%s6847_s1 + $0xc8] sm:$0xff]  }
  0x60   : > { %v885_v27 = vcombine.low %v877_v50, %v884_v61  ;;  %v5428_v19 = vcombine.high %v2982_v36, %v2989_v41  ;;  %v892_v46 = vrot.slane %v402_v55, %v5986_v23  ;;  %5706 = vmatpush3.bf16.msra.mxu1 %v5884_v63  ;;  %v5424_v18 = vpack.i.b16 %v2952_v6, %v3042_v56 }
  0x61   : > { %v3186_v57 = vcombine.low %v3178_v58, %v3185_v35  ;;  %v5425_v49 = vpack.i.b16 %v2953_v31, %v3044_v52  ;;  %v3187_v1 = vcombine.low %v6394_v42, %v5423_v0  ;;  %5707 = vmatprep.subr.bf16.mxu1 %v5886_v33  ;;  %v5426_v36 = vpack.i.b16 %v6413_v40, %v3046_v17  ;;  %v6454_v58 = vld [vmem:[%s6847_s1 + $0x60] sm:$0xff]  }
  0x62   : > { %5697 = vmatprep.mubr.msk.bf16.mxu1 %vm637_vm0, %v885_v27  ;;  %v3218_v50 = vrot.slane %v5428_v19, %v5986_v23  ;;  %v899_v55 = vrot.slane %v892_v46, %v5986_v23  ;;  %v3005_v63 = vrot.slane %v5406_v32, %v5986_v23  ;;  %v1035_v31 = vcombine.high %v5250_v30, %v5250_v30 }
  0x63   : > { %5758 = vmatmul.mubr.msk.bf16.vlgmr.msra.gmra.mrb[0].mxu0 %vm637_vm0, %v3186_v57  ;;  %v3188_v6 = vcombine.low %v5424_v18, %v5425_v49  ;;  %v3197_v61 = vrot.slane %v3187_v1, %v5986_v23  ;;  %v1042_v35 = vrot.slane %v5250_v30, %v5986_v23  ;;  %v3189_v56 = vcombine.low %v5426_v36, %v2989_v41  ;;  %v5885_v49 = vld [vmem:[%s6847_s1 + $0xd0] sm:$0xff]  }
  0x64   : > { %5766 = vmatpush3.bf16.msra.mxu0 %v6266_v53  ;;  %5698 = vmatmul.mubr.msk.bf16.gmra.mrb[8].mxu1 %vm637_vm0, %v899_v55  ;;  %v3054_v52 = vunpack.i.l.s16 %v3005_v63  ;;  %v1065_v0 = vrot.slane %v5251_v2, %v5986_v23  ;;  %v1302_v32 = vunpack.i.h.s16 %v6280_v3  ;;  %v1049_v1 = vrot.slane %v1035_v31, %v5986_v23  ;;  %v5444_v36 = vld.sshfl [vmem:[%s5964_s4 + $0x10] sm:$0x33 pattern:$0x75316420] }
  0x65   : > { %5767 = vmatprep.subr.bf16.mxu0 %v5883_v47  ;;  %v3204_v27 = vrot.slane %v3188_v6, %v5986_v23  ;;  %5708 = vmatpush3.bf16.msra.mxu1 %v5886_v33  ;;  %v1050_v18 = vcombine.high %v1042_v35, %v1042_v35  ;;  %v1304_v53 = vunpack.i.h.s16 %v6282_v5  ;;  %v3211_v41 = vrot.slane %v3189_v56, %v5986_v23 }
  0x66   : > { %v3242_v2 = vrot.slane %v3054_v52, %v5986_v23  ;;  %v1306_v17 = vunpack.i.h.s16 %v6295_v15  ;;  %v5272_v19 = vpack.i.b16 %v6280_v3, %v1065_v0  ;;  %5717 = vmatprep.subr.bf16.mxu1 %v6454_v58  ;;  %v1051_v30 = vcombine.high %v1049_v1, %v1049_v1  ;;  %v5887_v3 = vld [vmem:[%s6847_s1 + $0xd8] sm:$0xff]  }
  0x67   : > { %v3219_v46 = vcombine.low %v3197_v61, %v3204_v27  ;;  %v5273_v57 = vpack.i.b16 %v6282_v5, %v1302_v32  ;;  %v5274_v33 = vpack.i.b16 %v6295_v15, %v1304_v53  ;;  %v3220_v55 = vcombine.low %v3211_v41, %v3218_v50 }
  0x68   : > { %5768 = vmatpush3.bf16.msra.mxu0 %v5883_v47  ;;  %v3249_v63 = vrot.slane %v3242_v2, %v5986_v23  ;;  %v5275_v6 = vpack.i.b16 %v6277_v20, %v1306_v17  ;;  %v1377_v31 = vcombine.low %v1049_v1, %v1050_v18  ;;  %v1378_v61 = vcombine.low %v1051_v30, %v5272_v19  ;;  %v6511_v17 = vld [vmem:[%s6847_s1 + $0xe0] sm:$0xff]  }
  0x69   : > { %v3227_v35 = vrot.slane %v3219_v46, %v5986_v23  ;;  %5769 = vmatprep.subr.bf16.mxu0 %v5885_v49  ;;  %v1379_v56 = vcombine.low %v5273_v57, %v5274_v33  ;;  %v5284_v5 = vcombine.high %v6286_v7, %v6298_v22  ;;  %v3234_v15 = vrot.slane %v3220_v55, %v5986_v23 }
  0x6a   : > { %v1380_v47 = vcombine.low %v5275_v6, %v6298_v22  ;;  %v1387_v50 = vrot.slane %v1377_v31, %v5986_v23  ;;  %v3379_v20 = vcombine.high %v5444_v36, %v5444_v36  ;;  %v1394_v52 = vrot.slane %v1378_v61, %v5986_v23 }
  0x6b   : > { %v1401_v0 = vrot.slane %v1379_v56, %v5986_v23  ;;  %v1436_v32 = vrot.slane %v5284_v5, %v5986_v23  ;;  %v6492_v27 = vrot.slane %v5444_v36, %v5986_v23  ;;  %v3235_v1 = vcombine.low %v3227_v35, %v3234_v15 }
  0x6c   : > { %5770 = vmatpush3.bf16.msra.mxu0 %v5885_v49  ;;  %v1408_v7 = vrot.slane %v1380_v47, %v5986_v23  ;;  %v6496_v18 = vrot.slane %v3379_v20, %v5986_v23  ;;  %v3625_v22 = vcombine.low %v6056_v8, %v6121_v9  ;;  %v1409_v53 = vcombine.low %v1387_v50, %v1394_v52 }
  0x6d   : > { %5771 = vmatprep.subr.bf16.mxu0 %v5887_v3  ;;  %v6502_v41 = vcombine.high %v6492_v27, %v6492_v27  ;;  %v3626_v2 = vcombine.low %v6123_v10, %v6063_v12  ;;  %v3672_v49 = vcombine.low %v6069_v16, %v6077_v21  ;;  %5761 = vmatprep.mubr.msk.bf16.mxu0 %vm637_vm0, %v3235_v1  ;;  %v1316_v36 = vunpack.i.h.s16 %v6313_v43 }
  0x6e   : > { %v1410_v8 = vcombine.low %v1401_v0, %v1408_v7  ;;  %v6516_v9 = vcombine.high %v6496_v18, %v6496_v18  ;;  %v3623_v19 = vcombine.low %v6492_v27, %v6496_v18  ;;  %v3647_v12 = vrot.slane %v3625_v22, %v5986_v23  ;;  %5762 = vmatmul.mubr.msk.bf16.gmra.mrb[8].mxu0 %vm637_vm0, %v3249_v63 }
  0x6f   : > { %v1417_v16 = vrot.slane %v1409_v53, %v5986_v23  ;;  %v3654_v21 = vrot.slane %v3626_v2, %v5986_v23  ;;  %v1164_v10 = vcombine.high %v6305_v38, %v6305_v38  ;;  %v1165_v46 = vcombine.high %v6313_v43, %v6313_v43 }
  0x70   : > { %5772 = vmatpush3.bf16.msra.mxu0 %v5887_v3  ;;  %v1424_v30 = vrot.slane %v1410_v8, %v5986_v23  ;;  %v5459_v57 = vpack.i.b16 %v6013_v34, %v6516_v9  ;;  %v3633_v33 = vrot.slane %v3623_v19, %v5986_v23  ;;  %v5276_v31 = vpack.i.b16 %v6313_v43, %v6289_v60 }
  0x71   : > { %v3656_v55 = vcombine.low %v3647_v12, %v3654_v21  ;;  %v1318_v63 = vunpack.i.h.s16 %v1164_v10  ;;  %v1320_v6 = vunpack.i.h.s16 %v1165_v46  ;;  %5781 = vmatprep.subr.bf16.mxu0 %v6511_v17  ;;  %v5277_v3 = vpack.i.b16 %v1164_v10, %v1316_v36 }
  0x72   : > { %v1425_v38 = vcombine.low %v1417_v16, %v1424_v30  ;;  %v3624_v35 = vcombine.low %v6502_v41, %v5459_v57  ;;  %v1429_v61 = vcombine.low %v6348_v51, %v6352_v28  ;;  %v3673_v15 = vcombine.low %v6378_v26, %v6125_v13  ;;  %v5450_v30 = vld.sshfl [vmem:[%s5964_s4 + $0x40] sm:$0x33 pattern:$0x75316420] }
  0x73   : > { %v3670_v34 = vrot.slane %v3656_v55, %v5986_v23  ;;  %v5278_v56 = vpack.i.b16 %v1165_v46, %v1318_v63  ;;  %v5279_v5 = vpack.i.b16 %v6334_v24, %v1320_v6  ;;  %v1427_v43 = vcombine.low %v5276_v31, %v5277_v3  ;;  %v6859_v3 = vld [vmem:[#allocation3_spill] sm:$0xff] }
  0x74   : > { %5709 = vmatprep.mubr.msk.bf16.mxu1 %vm637_vm0, %v1425_v38  ;;  %v3640_v60 = vrot.slane %v3624_v35, %v5986_v23  ;;  %v1457_v47 = vrot.slane %v1429_v61, %v5986_v23  ;;  %v3674_v50 = vcombine.low %v6128_v14, %v6209_v4  ;;  %v3675_v51 = vcombine.low %v6152_v44, %v6162_v48  ;;  %v6858_v35 = vld [vmem:[#allocation4_spill] sm:$0xff] }
  0x75   : > { %v1428_v20 = vcombine.low %v5278_v56, %v5279_v5  ;;  %v3682_v28 = vrot.slane %v3672_v49, %v5986_v23  ;;  %v3689_v24 = vrot.slane %v3673_v15, %v5986_v23  ;;  %v1443_v13 = vrot.slane %v1427_v43, %v5986_v23 }
  0x76   : > { %v3655_v52 = vcombine.low %v3633_v33, %v3640_v60  ;;  %v3696_v26 = vrot.slane %v3674_v50, %v5986_v23  ;;  %v1330_v0 = vunpack.i.h.s16 %v6362_v59  ;;  %v3703_v7 = vrot.slane %v3675_v51, %v5986_v23  ;;  %v5301_v33 = vld.sshfl [vmem:[%s5964_s4 + $0x8] sm:$0x33 pattern:$0x75316420]  ;;  %v5893_v50 = vld [vmem:[%s6847_s1 + $0xf0] sm:$0xff]  }
  0x77   : > { %v1450_v1 = vrot.slane %v1428_v20, %v5986_v23  ;;  %v3704_v14 = vcombine.low %v3682_v28, %v3689_v24  ;;  %v1332_v4 = vunpack.i.h.s16 %v6367_v39  ;;  %v1458_v48 = vcombine.low %v1436_v32, %v1443_v13  ;;  %v5303_v13 = vld.sshfl [vmem:[%s5964_s4 + $0x18] sm:$0x33 pattern:$0x75316420] }
  0x78   : > { %v3663_v44 = vrot.slane %v3655_v52, %v5986_v23  ;;  %v1334_v22 = vunpack.i.h.s16 %v6394_v42  ;;  %v5280_v53 = vpack.i.b16 %v6362_v59, %v6342_v45  ;;  %v3705_v49 = vcombine.low %v3696_v26, %v3703_v7 }
  0x79   : > { %v1459_v2 = vcombine.low %v1450_v1, %v1457_v47  ;;  %v3712_v8 = vrot.slane %v3704_v14, %v5986_v23  ;;  %v5281_v19 = vpack.i.b16 %v6367_v39, %v1330_v0  ;;  %v1466_v16 = vrot.slane %v1458_v48, %v5986_v23  ;;  %v5304_v14 = vld.sshfl [vmem:[%s5964_s4 + $0x20] sm:$0x33 pattern:$0x75316420] }
  0x7a   : > { %v3671_v12 = vcombine.low %v3663_v44, %v3670_v34  ;;  %v5282_v21 = vpack.i.b16 %v6394_v42, %v1332_v4  ;;  %v5283_v10 = vpack.i.b16 %v6406_v54, %v1334_v22  ;;  %v3719_v46 = vrot.slane %v3705_v49, %v5986_v23  ;;  %v5890_v54 = vld [vmem:[%s6847_s1 + $0x68] sm:$0xff]  }
  0x7b   : > { %v1473_v32 = vrot.slane %v1459_v2, %v5986_v23  ;;  %v1475_v45 = vcombine.low %v6357_v29, %v5280_v53  ;;  %v5285_v59 = vcombine.high %v6410_v37, %v6418_v11  ;;  %v5891_v29 = vld [vmem:[%s6847_s1 + $0xe8] sm:$0xff]   ;;  %v6587_v31 = vrot.slane %v5450_v30, %v5986_v23 }
  0x7c   : > { %5773 = vmatprep.mubr.msk.bf16.mxu0 %vm637_vm0, %v3671_v12  ;;  %v1476_v39 = vcombine.low %v5281_v19, %v5282_v21  ;;  %v1477_v57 = vcombine.low %v5283_v10, %v6418_v11  ;;  %v3720_v42 = vcombine.low %v3712_v8, %v3719_v46  ;;  %v3523_v11 = vcombine.high %v5450_v30, %v5450_v30  ;;  %v5894_v8 = vld [vmem:[%s6847_s1 + $0x78] sm:$0xff]  }
  0x7d   : > { %v1474_v36 = vcombine.low %v1466_v16, %v1473_v32  ;;  %v1485_v55 = vrot.slane %v1475_v45, %v5986_v23  ;;  %v1506_v37 = vrot.slane %v5285_v59, %v5986_v23  ;;  %v5467_v38 = vpack.i.b16 %v6195_v25, %v6177_v62  ;;  %v5892_v62 = vld [vmem:[%s6847_s1 + $0x70] sm:$0xff]   ;;  %v5895_v19 = vld [vmem:[%s6847_s1 + $0xf8] sm:$0xff]  }
  0x7e   : > { %v1492_v63 = vrot.slane %v1476_v39, %v5986_v23  ;;  %v1499_v6 = vrot.slane %v1477_v57, %v5986_v23  ;;  %5774 = vmatmul.mubr.msk.bf16.vlgmr.msra.gmra.mrb[0].mxu0 %vm637_vm0, %v3720_v42  ;;  %v3722_v61 = vcombine.low %v6859_v3, %v6858_v35  ;;  %v1342_v34 = vunpack.i.l.s16 %v6413_v40  ;;  %v6860_v40 = vld [vmem:[#allocation2_spill] sm:$0xff] }
  0x7f   : > { %5710 = vmatmul.mubr.msk.bf16.vlgmr.msra.gmra.mrb[0].mxu1 %vm637_vm0, %v1474_v36  ;;  %v1667_v56 = vcombine.high %v5301_v33, %v5301_v33  ;;  %5782 = vmatpush3.bf16.msra.mxu0 %v6511_v17  ;;  %v6599_v60 = vrot.slane %v3523_v11, %v5986_v23  ;;  %v1836_v43 = vunpack.i.h.s16 %v6492_v27  ;;  %v6607_v25 = vcombine.high %v6587_v31, %v6587_v31  ;;  %v6861_v17 = vld [vmem:[#allocation5_spill] sm:$0xff] }
  0x80   : > { %5718 = vmatpush3.bf16.msra.mxu1 %v6454_v58  ;;  %v1507_v5 = vcombine.low %v1485_v55, %v1492_v63  ;;  %v1508_v15 = vcombine.low %v1499_v6, %v1506_v37  ;;  %5783 = vmatprep.subr.bf16.mxu0 %v5891_v29  ;;  %v3721_v58 = vcombine.low %v6860_v40, %v5467_v38  ;;  %v1838_v20 = vunpack.i.h.s16 %v6496_v18  ;;  %v6660_v6 = vld [vmem:[%s6847_s1 + $0x100] sm:$0xff]  }
  0x81   : > { %5719 = vmatprep.subr.bf16.mxu1 %v5890_v54  ;;  %v3723_v47 = vcombine.low %v6861_v17, %v6587_v31  ;;  %v3738_v24 = vrot.slane %v3722_v61, %v5986_v23  ;;  %v1530_v52 = vrot.slane %v1342_v34, %v5986_v23  ;;  %v3724_v26 = vcombine.low %v6599_v60, %v6607_v25 }
  0x82   : > { %v1515_v51 = vrot.slane %v1507_v5, %v5986_v23  ;;  %v1522_v28 = vrot.slane %v1508_v15, %v5986_v23  ;;  %v3731_v0 = vrot.slane %v3721_v58, %v5986_v23  ;;  %v6627_v7 = vcombine.high %v6599_v60, %v6599_v60 }
  0x83   : > { %v3745_v1 = vrot.slane %v3723_v47, %v5986_v23  ;;  %5784 = vmatpush3.bf16.msra.mxu0 %v5891_v29  ;;  %v1537_v44 = vrot.slane %v1530_v52, %v5986_v23  ;;  %v1674_v48 = vrot.slane %v5301_v33, %v5986_v23  ;;  %v1840_v22 = vunpack.i.h.s16 %v6502_v41 }
  0x84   : > { %5720 = vmatpush3.bf16.msra.mxu1 %v5890_v54  ;;  %v1523_v4 = vcombine.low %v1515_v51, %v1522_v28  ;;  %v3752_v53 = vrot.slane %v3724_v26, %v5986_v23  ;;  %v3753_v2 = vcombine.low %v3731_v0, %v3738_v24  ;;  %v3588_v49 = vunpack.i.l.s16 %v6627_v7  ;;  %5785 = vmatprep.subr.bf16.mxu0 %v5893_v50  ;;  %v5305_v0 = vld.sshfl [vmem:[%s5964_s4 + $0x28] sm:$0x33 pattern:$0x75316420] }
  0x85   : > { %5721 = vmatprep.subr.bf16.mxu1 %v5892_v62  ;;  %v1681_v12 = vrot.slane %v1667_v56, %v5986_v23  ;;  %v1682_v16 = vcombine.high %v1674_v48, %v1674_v48  ;;  %v1715_v21 = vcombine.high %v5303_v13, %v5303_v13  ;;  %v1722_v10 = vrot.slane %v5303_v13, %v5986_v23 }
  0x86   : > { %5713 = vmatprep.mubr.msk.bf16.mxu1 %vm637_vm0, %v1523_v4  ;;  %v1739_v32 = vcombine.high %v5304_v14, %v5304_v14  ;;  %v3754_v46 = vcombine.low %v3745_v1, %v3752_v53  ;;  %v3761_v45 = vrot.slane %v3753_v2, %v5986_v23  ;;  %v3776_v59 = vrot.slane %v3588_v49, %v5986_v23 }
  0x87   : > { %5714 = vmatmul.mubr.msk.bf16.gmra.mrb[12].mxu1 %vm637_vm0, %v1537_v44  ;;  %v1683_v30 = vcombine.high %v1681_v12, %v1681_v12  ;;  %5786 = vmatpush3.bf16.msra.mxu0 %v5893_v50  ;;  %v1729_v39 = vrot.slane %v1715_v21, %v5986_v23  ;;  %v1730_v57 = vcombine.high %v1722_v10, %v1722_v10  ;;  %v4080_v40 = vunpack.i.h.s16 %v1722_v10 }
  0x88   : > { %5722 = vmatpush3.bf16.msra.mxu1 %v5892_v62  ;;  %v6649_v33 = vrot.slane %v5304_v14, %v5986_v23  ;;  %v3768_v36 = vrot.slane %v3754_v46, %v5986_v23  ;;  %v3783_v42 = vrot.slane %v3776_v59, %v5986_v23  ;;  %5787 = vmatprep.subr.bf16.mxu0 %v5895_v19  ;;  %v4079_v62 = vunpack.i.h.s16 %v6516_v9 }
  0x89   : > { %5723 = vmatprep.subr.bf16.mxu1 %v5894_v8  ;;  %v5316_v54 = vpack.i.b16 %v6492_v27, %v1683_v30  ;;  %v1731_v29 = vcombine.high %v1729_v39, %v1729_v39  ;;  %v5317_v55 = vpack.i.b16 %v6496_v18, %v1836_v43  ;;  %v5318_v37 = vpack.i.b16 %v6502_v41, %v1838_v20 }
  0x8a   : > { %v5319_v63 = vpack.i.b16 %v6516_v9, %v1840_v22  ;;  %v3769_v11 = vcombine.low %v3761_v45, %v3768_v36  ;;  %v1911_v38 = vcombine.low %v1674_v48, %v1681_v12  ;;  %v1960_v3 = vcombine.low %v1729_v39, %v1730_v57  ;;  %v5490_v22 = vld.sshfl [vmem:[%s5964_s4 + $0x30] sm:$0x33 pattern:$0x75316420] }
  0x8b   : > { %v1912_v35 = vcombine.low %v1682_v16, %v5316_v54  ;;  %5788 = vmatpush3.bf16.msra.mxu0 %v5895_v19  ;;  %v5320_v27 = vpack.i.b16 %v6649_v33, %v1731_v29  ;;  %v1913_v61 = vcombine.low %v5317_v55, %v5318_v37  ;;  %v3974_v56 = vrot.slane %v1739_v32, %v5986_v23 }
  0x8c   : > { %5724 = vmatpush3.bf16.msra.mxu1 %v5894_v8  ;;  %v1914_v34 = vcombine.low %v5319_v63, %v1722_v10  ;;  %5777 = vmatprep.mubr.msk.bf16.mxu0 %vm637_vm0, %v3769_v11  ;;  %v1921_v18 = vrot.slane %v1911_v38, %v5986_v23  ;;  %v3975_v5 = vcombine.high %v6649_v33, %v6649_v33  ;;  %v4087_v47 = vunpack.i.h.s16 %v6649_v33 }
  0x8d   : > { %v1928_v41 = vrot.slane %v1912_v35, %v5986_v23  ;;  %5778 = vmatmul.mubr.msk.bf16.gmra.mrb[12].mxu0 %vm637_vm0, %v3783_v42  ;;  %v1935_v15 = vrot.slane %v1913_v61, %v5986_v23  ;;  %5797 = vmatprep.subr.bf16.mxu0 %v6660_v6  ;;  %v3976_v17 = vcombine.high %v3974_v56, %v3974_v56  ;;  %v4089_v50 = vunpack.i.h.s16 %v3974_v56 }
  0x8e   : > { %v1942_v43 = vrot.slane %v1914_v34, %v5986_v23  ;;  %5813 = vmatprep.subr.bf16.mxu1 %v6660_v6  ;;  %v4091_v51 = vunpack.i.h.s16 %v3975_v5  ;;  %v4134_v52 = vpack.i.b16 %v4080_v40, %v4079_v62  ;;  %v5504_v13 = vpack.i.b16 %v3974_v56, %v4087_v47  ;;  %v5307_v34 = vld.sshfl [vmem:[%s5964_s4 + $0x38] sm:$0x33 pattern:$0x75316420] }
  0x8f   : > { %v1943_v58 = vcombine.low %v1921_v18, %v1928_v41  ;;  %v4093_v24 = vunpack.i.h.s16 %v3976_v17  ;;  %v5505_v26 = vpack.i.b16 %v3975_v5, %v4089_v50  ;;  %v4180_v14 = vrot.slane %v1960_v3, %v5986_v23 }
  0x90   : > { %v1944_v20 = vcombine.low %v1935_v15, %v1942_v43  ;;  %v4157_v1 = vcombine.low %v5319_v63, %v4134_v52  ;;  %v4159_v44 = vcombine.low %v1731_v29, %v5504_v13  ;;  %v1763_v48 = vcombine.high %v5305_v0, %v5305_v0 }
  0x91   : > { %v1951_v28 = vrot.slane %v1943_v58, %v5986_v23  ;;  %v1770_v2 = vrot.slane %v5305_v0, %v5986_v23  ;;  %v4008_v12 = vcombine.high %v5490_v22, %v5490_v22  ;;  %v5323_v21 = vpack.i.b16 %v3976_v17, %v4091_v51 }
  0x92   : > { %v1958_v9 = vrot.slane %v1944_v20, %v5986_v23  ;;  %v4173_v53 = vrot.slane %v4157_v1, %v5986_v23  ;;  %v4187_v49 = vrot.slane %v4159_v44, %v5986_v23  ;;  %v1777_v8 = vrot.slane %v1763_v48, %v5986_v23 }
  0x93   : > { %v1961_v46 = vcombine.low %v5320_v27, %v5504_v13  ;;  %v4015_v45 = vrot.slane %v5490_v22, %v5986_v23  ;;  %v4022_v59 = vrot.slane %v4008_v12, %v5986_v23  ;;  %v1962_v39 = vcombine.low %v5505_v26, %v5323_v21 }
  0x94   : > { %v1959_v4 = vcombine.low %v1951_v28, %v1958_v9  ;;  %v4188_v19 = vcombine.low %v1935_v15, %v4173_v53  ;;  %v4189_v16 = vcombine.low %v4180_v14, %v4187_v49  ;;  %v1963_v10 = vcombine.low %v1770_v2, %v1777_v8  ;;  %v5897_v28 = vld [vmem:[%s6847_s1 + $0x108] sm:$0xff]  }
  0x95   : > { %v4094_v33 = vunpack.i.h.s16 %v1770_v2  ;;  %v1977_v36 = vrot.slane %v1961_v46, %v5986_v23  ;;  %v4023_v42 = vcombine.high %v4015_v45, %v4015_v45  ;;  %v4101_v54 = vunpack.i.h.s16 %v4015_v45 }
  0x96   : > { %5725 = vmatprep.mubr.msk.bf16.mxu1 %vm637_vm0, %v1959_v4  ;;  %v4196_v32 = vrot.slane %v4188_v19, %v5986_v23  ;;  %v4203_v30 = vrot.slane %v4189_v16, %v5986_v23  ;;  %v1991_v57 = vrot.slane %v1963_v10, %v5986_v23  ;;  %v4103_v29 = vunpack.i.h.s16 %v4022_v59  ;;  %v5898_v10 = vld [vmem:[%s6847_s1 + $0x110] sm:$0xff]  }
  0x97   : > { %v1984_v37 = vrot.slane %v1962_v39, %v5986_v23  ;;  %v4141_v63 = vpack.i.b16 %v4094_v33, %v4093_v24  ;;  %v1992_v11 = vcombine.low %v4180_v14, %v1977_v36  ;;  %v5507_v38 = vpack.i.b16 %v4022_v59, %v4101_v54 }
  0x98   : > { %v4204_v55 = vcombine.low %v4196_v32, %v4203_v30  ;;  %v5508_v35 = vpack.i.b16 %v4023_v42, %v4103_v29  ;;  %v5513_v3 = vcombine.high %v1770_v2, %v1777_v8  ;;  %v1778_v18 = vcombine.high %v1770_v2, %v1770_v2 }
  0x99   : > { %v1993_v27 = vcombine.low %v1984_v37, %v1991_v57  ;;  %v4206_v61 = vcombine.low %v4141_v63, %v1777_v8  ;;  %v2000_v41 = vrot.slane %v1992_v11, %v5986_v23  ;;  %v1779_v15 = vcombine.high %v1777_v8, %v1777_v8  ;;  %v5536_v57 = vld.sshfl [vmem:[%s5964_s4 + $0x10] sm:$0x32 pattern:$0x75316420] }
  0x9a   : > { %5789 = vmatprep.mubr.msk.bf16.mxu0 %vm637_vm0, %v4204_v55  ;;  %v4208_v56 = vcombine.low %v5507_v38, %v5508_v35  ;;  %v4229_v5 = vrot.slane %v5513_v3, %v5986_v23  ;;  %v1803_v40 = vcombine.high %v4022_v59, %v4022_v59  ;;  %v1811_v17 = vcombine.high %v5307_v34, %v5307_v34  ;;  %v5538_v35 = vld.sshfl [vmem:[%s5964_s4 + $0x18] sm:$0x32 pattern:$0x75316420] }
  0x9b   : > { %v2007_v43 = vrot.slane %v1993_v27, %v5986_v23  ;;  %v4222_v62 = vrot.slane %v4206_v61, %v5986_v23  ;;  %v1818_v47 = vrot.slane %v5307_v34, %v5986_v23  ;;  %v1868_v50 = vunpack.i.h.s16 %v4023_v42  ;;  %v5540_v34 = vld.sshfl [vmem:[%s5964_s4 + $0x20] sm:$0x32 pattern:$0x75316420] }
  0x9c   : > { %v4236_v58 = vrot.slane %v4208_v56, %v5986_v23  ;;  %v5324_v24 = vpack.i.b16 %v4015_v45, %v1779_v15  ;;  %v1825_v9 = vrot.slane %v1811_v17, %v5986_v23  ;;  %v4107_v14 = vunpack.i.h.s16 %v1803_v40 }
  0x9d   : > { %v2008_v20 = vcombine.low %v2000_v41, %v2007_v43  ;;  %v4237_v51 = vcombine.low %v1984_v37, %v4222_v62  ;;  %v1826_v13 = vcombine.high %v1818_v47, %v1818_v47  ;;  %v5327_v26 = vpack.i.b16 %v1803_v40, %v1868_v50  ;;  %v5537_v37 = vld.sshfl [vmem:[%s5964_s4 + $0x14] sm:$0x1 pattern:$0x75316420] }
  0x9e   : > { %v4238_v52 = vcombine.low %v4229_v5, %v4236_v58  ;;  %v2009_v1 = vcombine.low %v1778_v18, %v5324_v24  ;;  %v4048_v22 = vcombine.high %v1825_v9, %v1825_v9  ;;  %v4108_v2 = vunpack.i.h.s16 %v1818_v47 }
  0x9f   : > { %5726 = vmatmul.mubr.msk.bf16.vlgmr.msra.gmra.mrb[0].mxu1 %vm637_vm0, %v2008_v20  ;;  %v4245_v0 = vrot.slane %v4237_v51, %v5986_v23  ;;  %v2011_v44 = vcombine.low %v5327_v26, %v1818_v47  ;;  %v2012_v48 = vcombine.low %v1825_v9, %v1826_v13  ;;  %v4115_v49 = vunpack.i.h.s16 %v6587_v31  ;;  %v5539_v47 = vld.sshfl [vmem:[%s5964_s4 + $0x1c] sm:$0x1 pattern:$0x75316420] }
  0xa0   : > { %v4252_v4 = vrot.slane %v4238_v52, %v5986_v23  ;;  %5817 = vmatpush3.bf16.msra.mxu1 %v6660_v6  ;;  %v2019_v53 = vrot.slane %v2009_v1, %v5986_v23  ;;  %v4117_v8 = vunpack.i.h.s16 %v6599_v60  ;;  %v4119_v21 = vunpack.i.h.s16 %v6607_v25 }
  0xa1   : > { %5814 = vmatprep.subr.bf16.mxu1 %v5897_v28  ;;  %v2033_v12 = vrot.slane %v2011_v44, %v5986_v23  ;;  %v2040_v16 = vrot.slane %v2012_v48, %v5986_v23  ;;  %v4148_v46 = vpack.i.b16 %v4108_v2, %v4107_v14  ;;  %v5510_v45 = vpack.i.b16 %v6599_v60, %v4115_v49  ;;  %v6729_v60 = vld [vmem:[%s6847_s1 + $0x118] sm:$0xff]   ;;  %v5545_v48 = vld.sshfl [vmem:[%s5964_s4 + $0x34] sm:$0x1 pattern:$0x75316420] }
  0xa2   : > { %v4253_v19 = vcombine.low %v4245_v0, %v4252_v4  ;;  %v2041_v32 = vcombine.low %v2019_v53, %v4236_v58  ;;  %v5511_v59 = vpack.i.b16 %v6607_v25, %v4117_v8  ;;  %v5512_v30 = vpack.i.b16 %v6627_v7, %v4119_v21  ;;  %v5544_v58 = vld.sshfl [vmem:[%s5964_s4 + $0x30] sm:$0x32 pattern:$0x75316420] }
  0xa3   : > { %v2042_v31 = vcombine.low %v2033_v12, %v2040_v16  ;;  %v4121_v39 = vunpack.i.h.s16 %v6627_v7  ;;  %v4254_v36 = vcombine.low %v5327_v26, %v4148_v46  ;;  %v4256_v42 = vcombine.low %v4048_v22, %v5510_v45  ;;  %v5546_v53 = vld.sshfl [vmem:[%s5964_s4 + $0x38] sm:$0x32 pattern:$0x75316420] }
  0xa4   : > { %5790 = vmatmul.mubr.msk.bf16.vlgmr.msra.gmra.mrb[0].mxu0 %vm637_vm0, %v4253_v19  ;;  %5818 = vmatpush3.bf16.msra.mxu1 %v5897_v28  ;;  %v2049_v33 = vrot.slane %v2041_v32, %v5986_v23  ;;  %v4257_v54 = vcombine.low %v5511_v59, %v5512_v30  ;;  %v1876_v55 = vunpack.i.l.s16 %v4048_v22  ;;  %v4459_v63 = vcombine.high %v5536_v57, %v5536_v57  ;;  %v5548_v21 = vld.sshfl [vmem:[%s5964_s4 + $0x40] sm:$0x32 pattern:$0x75316420] }
  0xa5   : > { %5798 = vmatpush3.bf16.msra.mxu0 %v6660_v6  ;;  %v2056_v25 = vrot.slane %v2042_v31, %v5986_v23  ;;  %v4309_v29 = vrot.slane %v4121_v39, %v5986_v23  ;;  %5815 = vmatprep.subr.bf16.mxu1 %v5898_v10  ;;  %v4264_v7 = vrot.slane %v4254_v36, %v5986_v23  ;;  %v5547_v46 = vld.sshfl [vmem:[%s5964_s4 + $0x3c] sm:$0x1 pattern:$0x75316420] }
  0xa6   : > { %5799 = vmatprep.subr.bf16.mxu0 %v5897_v28  ;;  %v4278_v6 = vrot.slane %v4256_v42, %v5986_v23  ;;  %v4285_v38 = vrot.slane %v4257_v54, %v5986_v23  ;;  %v4466_v3 = vrot.slane %v5536_v57, %v5986_v23  ;;  %v2064_v61 = vrot.slane %v1876_v55, %v5986_v23  ;;  %v5542_v55 = vld.sshfl [vmem:[%s5964_s4 + $0x28] sm:$0x32 pattern:$0x75316420] }
  0xa7   : > { %v2057_v11 = vcombine.low %v2049_v33, %v2056_v25  ;;  %v4286_v27 = vcombine.low %v4264_v7, %v2040_v16  ;;  %v4473_v18 = vrot.slane %v4459_v63, %v5986_v23  ;;  %v4316_v56 = vrot.slane %v4309_v29, %v5986_v23  ;;  %v5541_v33 = vld.sshfl [vmem:[%s5964_s4 + $0x24] sm:$0x1 pattern:$0x75316420] }
  0xa8   : > { %5819 = vmatpush3.bf16.msra.mxu1 %v5898_v10  ;;  %v4287_v41 = vcombine.low %v4278_v6, %v4285_v38  ;;  %v4474_v5 = vcombine.high %v4466_v3, %v4466_v3  ;;  %v2071_v43 = vrot.slane %v2064_v61, %v5986_v23  ;;  %v4489_v62 = vrot.slane %v5537_v37, %v5986_v23 }
  0xa9   : > { %5800 = vmatpush3.bf16.msra.mxu0 %v5897_v28  ;;  %5816 = vmatprep.subr.bf16.mxu1 %v6729_v60  ;;  %v4294_v15 = vrot.slane %v4286_v27, %v5986_v23  ;;  %v4497_v40 = vcombine.high %v5538_v35, %v5538_v35  ;;  %v4475_v50 = vcombine.high %v4473_v18, %v4473_v18 }
  0xaa   : > { %5729 = vmatprep.mubr.msk.bf16.mxu1 %vm637_vm0, %v2057_v11  ;;  %5801 = vmatprep.subr.bf16.mxu0 %v5898_v10  ;;  %v4301_v17 = vrot.slane %v4287_v41, %v5986_v23  ;;  %v4504_v20 = vrot.slane %v5538_v35, %v5986_v23  ;;  %v4535_v51 = vcombine.high %v5540_v34, %v5540_v34 }
  0xab   : > { %5730 = vmatmul.mubr.msk.bf16.gmra.mrb[16].mxu1 %vm637_vm0, %v2071_v43  ;;  %v4511_v28 = vrot.slane %v4497_v40, %v5986_v23  ;;  %v4542_v24 = vrot.slane %v5540_v34, %v5986_v23  ;;  %v4801_v52 = vcombine.low %v4473_v18, %v4474_v5  ;;  %v4611_v0 = vcombine.high %v5544_v58, %v5544_v58 }
  0xac   : > { %5820 = vmatpush3.bf16.msra.mxu1 %v6729_v60  ;;  %v4302_v9 = vcombine.low %v4294_v15, %v4301_v17  ;;  %v4512_v13 = vcombine.high %v4504_v20, %v4504_v20  ;;  %v4549_v26 = vrot.slane %v4535_v51, %v5986_v23  ;;  %v4527_v14 = vrot.slane %v5539_v47, %v5986_v23 }
  0xad   : > { %5802 = vmatpush3.bf16.msra.mxu0 %v5898_v10  ;;  %v4513_v1 = vcombine.high %v4511_v28, %v4511_v28  ;;  %v4726_v4 = vunpack.i.h.s16 %v4511_v28  ;;  %v5558_v44 = vpack.i.b16 %v4511_v28, %v4489_v62  ;;  %v6763_v2 = vrot.slane %v5544_v58, %v5986_v23 }
  0xae   : > { %5803 = vmatprep.subr.bf16.mxu0 %v6729_v60  ;;  %5793 = vmatprep.mubr.msk.bf16.mxu0 %vm637_vm0, %v4302_v9  ;;  %v4728_v22 = vunpack.i.h.s16 %v4512_v13  ;;  %v4625_v49 = vrot.slane %v4611_v0, %v5986_v23  ;;  %v4811_v16 = vrot.slane %v4801_v52, %v5986_v23  ;;  %v6770_v32 = vcombine.high %v4542_v24, %v4549_v26  ;;  %v5549_v0 = vld.sshfl [vmem:[%s5964_s4 + $0x44] sm:$0x1 pattern:$0x75316420] }
  0xaf   : > { %5794 = vmatmul.mubr.msk.bf16.gmra.mrb[16].mxu0 %vm637_vm0, %v4316_v56  ;;  %v4730_v8 = vunpack.i.h.s16 %v4513_v1  ;;  %v5559_v19 = vpack.i.b16 %v4512_v13, %v4726_v4  ;;  %v4802_v12 = vcombine.low %v4475_v50, %v5558_v44  ;;  %v4626_v45 = vcombine.high %v6763_v2, %v6763_v2  ;;  %v5543_v56 = vld.sshfl [vmem:[%s5964_s4 + $0x2c] sm:$0x1 pattern:$0x75316420]  ;;  %s5854_s4 = smul.u32 28, %s6865_s13 }
  0xb0   : > { %v5560_v10 = vpack.i.b16 %v4513_v1, %v4728_v22  ;;  %v4641_v31 = vrot.slane %v5545_v48, %v5986_v23  ;;  %v4649_v39 = vcombine.high %v5546_v53, %v5546_v53  ;;  %v4656_v57 = vrot.slane %v5546_v53, %v5986_v23 }
  0xb1   : > { %5804 = vmatpush3.bf16.msra.mxu0 %v6729_v60  ;;  %v5561_v59 = vpack.i.b16 %v4527_v14, %v4730_v8  ;;  %v4818_v30 = vrot.slane %v4802_v12, %v5986_v23  ;;  %v4627_v42 = vcombine.high %v4625_v49, %v4625_v49  ;;  %v4687_v60 = vcombine.high %v5548_v21, %v5548_v21  ;;  %s6821_s21 = scalar_lea.vmem %s6849_s3, %s5854_s4 }
  0xb2   : > { %v4803_v36 = vcombine.low %v5559_v19, %v5560_v10  ;;  %v4694_v25 = vrot.slane %v5548_v21, %v5986_v23  ;;  %v4663_v7 = vrot.slane %v4649_v39, %v5986_v23  ;;  %v4664_v6 = vcombine.high %v4656_v57, %v4656_v57 }
  0xb3   : > { %v4804_v54 = vcombine.low %v5561_v59, %v4549_v26  ;;  %v4833_v29 = vcombine.low %v4811_v16, %v4818_v30  ;;  %v4679_v63 = vrot.slane %v5547_v46, %v5986_v23  ;;  %v4701_v11 = vrot.slane %v4687_v60, %v5986_v23 }
  0xb4   : > { %v4825_v37 = vrot.slane %v4803_v36, %v5986_v23  ;;  %v4565_v38 = vrot.slane %v5541_v33, %v5986_v23  ;;  %v4665_v27 = vcombine.high %v4663_v7, %v4663_v7  ;;  %v4754_v61 = vunpack.i.h.s16 %v4663_v7 }
  0xb5   : > { %v4832_v35 = vrot.slane %v4804_v54, %v5986_v23  ;;  %v4841_v3 = vrot.slane %v4833_v29, %v5986_v23  ;;  %v4756_v34 = vunpack.i.h.s16 %v4664_v6  ;;  %v5566_v18 = vpack.i.b16 %v4663_v7, %v4641_v31 }
  0xb6   : > { %v5571_v41 = vcombine.high %v4694_v25, %v4701_v11  ;;  %v4573_v5 = vcombine.high %v5542_v55, %v5542_v55  ;;  %v4758_v43 = vunpack.i.h.s16 %v4665_v27  ;;  %v5567_v62 = vpack.i.b16 %v4664_v6, %v4754_v61 }
  0xb7   : > { %v4834_v15 = vcombine.low %v4825_v37, %v4832_v35  ;;  %v4580_v40 = vrot.slane %v5542_v55, %v5986_v23  ;;  %v5568_v58 = vpack.i.b16 %v4665_v27, %v4756_v34  ;;  %v4899_v17 = vcombine.low %v4627_v42, %v5566_v18 }
  0xb8   : > { %v4930_v47 = vrot.slane %v5571_v41, %v5986_v23  ;;  %v4587_v50 = vrot.slane %v4573_v5, %v5986_v23  ;;  %v5569_v51 = vpack.i.b16 %v4679_v63, %v4758_v43  ;;  %v4603_v24 = vrot.slane %v5543_v56, %v5986_v23 }
  0xb9   : > { %v4848_v20 = vrot.slane %v4834_v15, %v5986_v23  ;;  %v4588_v28 = vcombine.high %v4580_v40, %v4580_v40  ;;  %v4900_v52 = vcombine.low %v5567_v62, %v5568_v58  ;;  %v4909_v9 = vrot.slane %v4899_v17, %v5986_v23 }
  0xba   : > { %v4589_v13 = vcombine.high %v4587_v50, %v4587_v50  ;;  %v4740_v26 = vunpack.i.h.s16 %v4587_v50  ;;  %v4901_v14 = vcombine.low %v5569_v51, %v4701_v11  ;;  %v5562_v44 = vpack.i.b16 %v4587_v50, %v4565_v38 }
  0xbb   : > { %v4849_v1 = vcombine.low %v4841_v3, %v4848_v20  ;;  %v4742_v4 = vunpack.i.h.s16 %v4588_v28  ;;  %v4853_v48 = vcombine.low %v4625_v49, %v4626_v45  ;;  %v4916_v22 = vrot.slane %v4900_v52, %v5986_v23 }
  0xbc   : > { %v4744_v53 = vunpack.i.h.s16 %v4589_v13  ;;  %v5563_v2 = vpack.i.b16 %v4588_v28, %v4740_v26  ;;  %v4923_v8 = vrot.slane %v4901_v14, %v5986_v23  ;;  %v4717_v12 = vrot.slane %v5549_v0, %v5986_v23 }
  0xbd   : > { %5805 = vmatprep.mubr.msk.bf16.mxu0 %vm637_vm0, %v4849_v1  ;;  %v5564_v19 = vpack.i.b16 %v4589_v13, %v4742_v4  ;;  %v4860_v16 = vrot.slane %v6770_v32, %v5986_v23  ;;  %v4931_v21 = vcombine.low %v4909_v9, %v4916_v22  ;;  %v4881_v39 = vrot.slane %v4853_v48, %v5986_v23 }
  0xbe   : > { %v5565_v10 = vpack.i.b16 %v4603_v24, %v4744_v53  ;;  %v4851_v46 = vcombine.low %v5562_v44, %v5563_v2  ;;  %v4932_v31 = vcombine.low %v4923_v8, %v4930_v47  ;;  %v4766_v59 = vunpack.i.l.s16 %v4717_v12 }
  0xbf   : > { %v4939_v49 = vrot.slane %v4931_v21, %v5986_v23 }
  0xc0   : > { %v4852_v45 = vcombine.low %v5564_v19, %v5565_v10  ;;  %v4867_v30 = vrot.slane %v4851_v46, %v5986_v23  ;;  %v4946_v57 = vrot.slane %v4932_v31, %v5986_v23  ;;  %v4954_v33 = vrot.slane %v4766_v59, %v5986_v23 }
  0xc2   : > { %v4874_v36 = vrot.slane %v4852_v45, %v5986_v23  ;;  %v4882_v42 = vcombine.low %v4860_v16, %v4867_v30  ;;  %v4947_v32 = vcombine.low %v4939_v49, %v4946_v57  ;;  %v4961_v60 = vrot.slane %v4954_v33, %v5986_v23 }
  0xc4   : > { %v4883_v25 = vcombine.low %v4874_v36, %v4881_v39  ;;  %v4890_v54 = vrot.slane %v4882_v42, %v5986_v23  ;;  %5809 = vmatprep.mubr.msk.bf16.mxu1 %vm637_vm0, %v4947_v32 }
  0xc5   : > { %5810 = vmatmul.mubr.msk.bf16.vlgmr.msra.gmra.mrb[20].mxu1 %vm637_vm0, %v4961_v60 }
  0xc6   : > { %v4897_v29 = vrot.slane %v4883_v25, %v5986_v23  ;;  %v5580_v25 = vld [vmem:[%s6848_s2] ss:$0 sm:$0xff] }
  0xc8   : > { %v4898_v7 = vcombine.low %v4890_v54, %v4897_v29 }
  0xca   : > { %5806 = vmatmul.mubr.msk.bf16.vlgmr.msra.gmra.mrb[0].mxu0 %vm637_vm0, %v4898_v7 }
 0x118   : > { %v5683_v6 = vpop.f32.mrb[4].mxu1 }
 0x119   : > { %v700_v55 = vpop.f32.mrb[5].mxu1 }
 0x11a   : > { %v5684_v37 = vpop.f32.mrb[6].mxu1 }
 0x11b   : > { %v703_v63 = vpop.f32.mrb[7].mxu1 }
 0x11f   : > { %v5747_v11 = vpop.f32.mrb[4].mxu0 }
 0x120   : > { %v2691_v38 = vpop.f32.mrb[5].mxu0 }
 0x121   : > { %v5748_v35 = vpop.f32.mrb[6].mxu0 }
 0x122   : > { %v2694_v3 = vpop.f32.mrb[7].mxu0 }
 0x137   : > { %v5699_v27 = vpop.f32.mrb[8].mxu1 }
 0x138   : > { %v995_v61 = vadd.f32 %v5699_v27, %v5683_v6  ;;  %v986_v34 = vpop.f32.mrb[9].mxu1  ;;  %v5129_v27 = vld [vmem:[%s6821_s21 + $0x18] sm:$0x1] }
 0x139   : > { %v987_v18 = vadd.f32 %v986_v34, %v700_v55  ;;  %v5700_v41 = vpop.f32.mrb[10].mxu1 }
 0x13a   : > { %v989_v56 = vpop.f32.mrb[11].mxu1 }
 0x13b   : > { %v990_v23 = vadd.f32 %v989_v56, %v703_v63 }
 0x141   : > { %v5763_v5 = vpop.f32.mrb[8].mxu0 }
 0x142   : > { %v3336_v15 = vpop.f32.mrb[9].mxu0 }
 0x143   : > { %v5764_v43 = vpop.f32.mrb[10].mxu0 }
 0x144   : > { %v3339_v62 = vpop.f32.mrb[11].mxu0 }
 0x15a   : > { %v5715_v40 = vpop.f32.mrb[12].mxu1 }
 0x15b   : > { %v1644_v58 = vadd.f32 %v5715_v40, %v995_v61  ;;  %v1624_v17 = vpop.f32.mrb[13].mxu1 }
 0x15c   : > { %v1642_v47 = vadd.f32 %v1624_v17, %v987_v18  ;;  %v5716_v50 = vpop.f32.mrb[14].mxu1 }
 0x15d   : > { %v1627_v20 = vpop.f32.mrb[15].mxu1 }
 0x15e   : > { %v1643_v51 = vadd.f32 %v1627_v20, %v990_v23 }
 0x160   : > { %v5779_v28 = vpop.f32.mrb[12].mxu0 }
 0x161   : > { %v3870_v24 = vpop.f32.mrb[13].mxu0 }
 0x162   : > { %v5780_v52 = vpop.f32.mrb[14].mxu0 }
 0x163   : > { %v3873_v9 = vpop.f32.mrb[15].mxu0 }
 0x172   : > { %v5727_v13 = vpop.f32.mrb[0].mxu1 }
 0x173   : > { %v2142_v26 = vpop.f32.mrb[1].mxu1 }
 0x174   : > { %v5728_v0 = vpop.f32.mrb[2].mxu1 }
 0x175   : > { %v2145_v1 = vpop.f32.mrb[3].mxu1 }
 0x17e   : > { %v5731_v14 = vpop.f32.mrb[16].mxu1 }
 0x17f   : > { %v2178_v4 = vadd.f32 %v5731_v14, %v1644_v58  ;;  %v2158_v44 = vpop.f32.mrb[17].mxu1 }
 0x180   : > { %v2176_v48 = vadd.f32 %v2158_v44, %v1642_v47  ;;  %v5732_v22 = vpop.f32.mrb[18].mxu1 }
 0x181   : > { %v2711_v53 = vadd.f32 %v5747_v11, %v2178_v4  ;;  %v2161_v2 = vpop.f32.mrb[19].mxu1 }
 0x182   : > { %v5795_v8 = vpop.f32.mrb[16].mxu0  ;;  %v2709_v19 = vadd.f32 %v2691_v38, %v2176_v48  ;;  %v2177_v12 = vadd.f32 %v2161_v2, %v1643_v51 }
 0x183   : > { %v3356_v16 = vadd.f32 %v5763_v5, %v2711_v53  ;;  %v4403_v21 = vpop.f32.mrb[17].mxu0 }
 0x184   : > { %v3354_v10 = vadd.f32 %v3336_v15, %v2709_v19  ;;  %v5796_v46 = vpop.f32.mrb[18].mxu0  ;;  %v2710_v31 = vadd.f32 %v2694_v3, %v2177_v12 }
 0x185   : > { %v3890_v59 = vadd.f32 %v5779_v28, %v3356_v16  ;;  %v4406_v49 = vpop.f32.mrb[19].mxu0 }
 0x186   : > { %v3888_v45 = vadd.f32 %v3870_v24, %v3354_v10  ;;  %v3355_v30 = vadd.f32 %v3339_v62, %v2710_v31 }
 0x187   : > { %v4423_v39 = vadd.f32 %v5795_v8, %v3890_v59 }
 0x188   : > { %v4421_v57 = vadd.f32 %v4403_v21, %v3888_v45  ;;  %v3889_v33 = vadd.f32 %v3873_v9, %v3355_v30 }
 0x18a   : > { %v4422_v36 = vadd.f32 %v4406_v49, %v3889_v33 }
 0x198   : > { %v5811_v42 = vpop.f32.mrb[20].mxu1 }
 0x199   : > { %v5068_v32 = vadd.f32 %v5811_v42, %v4423_v39  ;;  %v5048_v60 = vpop.f32.mrb[21].mxu1 }
 0x19a   : > { %v5066_v54 = vadd.f32 %v5048_v60, %v4421_v57  ;;  %v5812_v29 = vpop.f32.mrb[22].mxu1 }
 0x19b   : > { %v5082_v7 = vadd.f32 %v5580_v25, %v5068_v32  ;;  %v5051_v6 = vpop.f32.mrb[23].mxu1 }
 0x19c   : > { %v5080_v37 = vadd.f32 %v5580_v25, %v5066_v54  ;;  %v5067_v63 = vadd.f32 %v5051_v6, %v4422_v36 }
 0x19d   : > { %v5807_v55 = vpop.f32.mrb[0].mxu0  ;;  %v5089_v38 = vmax.f32 %v5082_v7, 0.0 }
 0x19e   : > { %v5821_v11 = vadd.f32 %v5807_v55, %v5727_v13  ;;  %v5032_v35 = vpop.f32.mrb[1].mxu0  ;;  %v5087_v34 = vmax.f32 %v5080_v37, 0.0  ;;  %v5081_v41 = vadd.f32 %v5580_v25, %v5067_v63 }
 0x19f   : > { %v5822_v61 = vadd.f32 %v5032_v35, %v2142_v26  ;;  %v5808_v18 = vpop.f32.mrb[2].mxu0  ;;  %v5596_v23 = vpack.c.bf16 %v5089_v38, %v5089_v38 }
 0x1a0   : > { %v5078_v56 = vadd.f32 %v5821_v11, %v5580_v25  ;;  %v5823_v5 = vadd.f32 %v5808_v18, %v5728_v0  ;;  %v5035_v15 = vpop.f32.mrb[3].mxu0  ;;  %v5594_v62 = vpack.c.bf16 %v5087_v34, %v5087_v34  ;;  %v5088_v58 = vmax.f32 %v5081_v41, 0.0 }
 0x1a1   : > { %v5076_v43 = vadd.f32 %v5822_v61, %v5580_v25  ;;  %v5824_v40 = vadd.f32 %v5035_v15, %v2145_v1  ;;  %v5130_v47 = vsel %vm6823_vm3, %v5596_v23, %v5129_v27 }
 0x1a2   : > { %v5085_v17 = vmax.f32 %v5078_v56, 0.0  ;;  %v5079_v50 = vadd.f32 %v5823_v5, %v5580_v25  ;;  %5131 = vst [vmem:[%s6821_s21 + $0x18] sm:$0x1] %v5130_v47  ;;  %5124 = vst.msk [vmem:[%s6821_s21 + $0x10] sm:$0xf] %vm5119_vm4, %v5594_v62  ;;  %v5595_v28 = vpack.c.bf16 %v5088_v58, %v5088_v58 }
 0x1a3   : > { %v5083_v20 = vmax.f32 %v5076_v43, 0.0  ;;  %v5077_v51 = vadd.f32 %v5824_v40, %v5580_v25 }
 0x1a4   : > { %v5592_v24 = vpack.c.bf16 %v5085_v17, %v5085_v17  ;;  %v5086_v52 = vmax.f32 %v5079_v50, 0.0  ;;  %5125 = vst.msk [vmem:[%s6821_s21 + $0x14] sm:$0xf] %vm5119_vm4, %v5595_v28 }
 0x1a5   : > { %v5590_v9 = vpack.c.bf16 %v5083_v20, %v5083_v20  ;;  %v5084_v13 = vmax.f32 %v5077_v51, 0.0 }
 0x1a6   : > { %5122 = vst.msk [vmem:[%s6821_s21 + $0x8] sm:$0xf] %vm5119_vm4, %v5592_v24  ;;  %v5593_v26 = vpack.c.bf16 %v5086_v52, %v5086_v52 }
 0x1a7   : > { %5120 = vst.msk [vmem:[%s6821_s21] sm:$0xf] %vm5119_vm4, %v5590_v9  ;;  %v5591_v0 = vpack.c.bf16 %v5084_v13, %v5084_v13 }
 0x1a8   : > { %5123 = vst.msk [vmem:[%s6821_s21 + $0xc] sm:$0xf] %vm5119_vm4, %v5593_v26 }
 0x1a9   : > { %5121 = vst.msk [vmem:[%s6821_s21 + $0x4] sm:$0xf] %vm5119_vm4, %v5591_v0 }
 0x1aa PF: > { %s13_s12 = sadd.s32 1, %s5906_s12  }
 0x1ab   : > { %p10_p4 = scmp.ge.s32.totalorder %s13_s12, 4  }
 0x1ad   :  { %12 = sbr.rel (!%p10_p4) target bundleno = 1 (0x1), region = 72 }

// kernel: convolutional_qnet_forward.7
= control target key start
LH: loop header
LB: loop body
LE: loop exit
PB: predicated region body
PF: predicated region fallthrough
CT: control target
= control target key end

     0   :  { %v812_v36 = vlaneseq  ;;  %v8581_v37 = vmov 1966171168   ;;  %s11223_s0 = inlined_call_operand.vmem [shape: bf16[2,3136], index: 0, kind: input, shape index: {}]   ;;  %s11224_s1 = inlined_call_operand.vmem [shape: bf16[3136,512], index: 1, kind: input, shape index: {}]   ;;  %s11225_s2 = inlined_call_operand.vmem [shape: f32[1,512], index: 2, kind: input, shape index: {}]   ;;  %s11226_s3 = inlined_call_operand.vmem [shape: bf16[512,128], index: 3, kind: input, shape index: {}]   ;;  %s11227_s4 = inlined_call_operand.vmem [shape: f32[1,128], index: 4, kind: input, shape index: {}]   ;;  %s11228_s5 = inlined_call_operand.hbm [shape: f32[2,128], index: 5, kind: output, shape index: {}]  }
   0x1   :  { %v7344_v0 = vld [vmem:[%s11224_s1 + $0x4] ss:$16 sps:$4 sm:$0xff]   ;;  %v7346_v1 = vld [vmem:[%s11224_s1 + $0xc] ss:$16 sps:$4 sm:$0xff]   ;;  %v7348_v2 = vld [vmem:[%s11224_s1] ss:$16 sps:$4 sm:$0xff]   ;;  %v838_v38 = vunpack.c.l.s4 %v8581_v37 }
   0x2   :  { %4945 = vmatprep.subr.bf16.mxu0 %v7344_v0  ;;  %v7349_v3 = vld [vmem:[%s11224_s1 + $0x8] ss:$16 sps:$4 sm:$0xff]   ;;  %5478 = vmatprep.subr.bf16.mxu1 %v7346_v1  ;;  %v7350_v4 = vld [vmem:[%s11224_s1 + $0x24] ss:$16 sps:$4 sm:$0xff]   ;;  %v7352_v5 = vld [vmem:[%s11224_s1 + $0x2c] ss:$16 sps:$4 sm:$0xff]  }
   0x3   :  { %4946 = vmatpush1.bf16.msra.mxu0 %v7348_v2  ;;  %5479 = vmatpush1.bf16.msra.mxu1 %v7349_v3  ;;  %v7354_v6 = vld [vmem:[%s11224_s1 + $0x20] ss:$16 sps:$4 sm:$0xff]   ;;  %v7355_v7 = vld [vmem:[%s11224_s1 + $0x28] ss:$16 sps:$4 sm:$0xff]   ;;  %v7356_v8 = vld [vmem:[%s11224_s1 + $0x44] ss:$16 sps:$4 sm:$0xff]   ;;  %v839_v43 = vunpack.c.0.s8 %v838_v38 }
   0x4   :  { %4947 = vmatprep.subr.bf16.mxu0 %v7350_v4  ;;  %5480 = vmatprep.subr.bf16.mxu1 %v7352_v5  ;;  %v7358_v9 = vld [vmem:[%s11224_s1 + $0x4c] ss:$16 sps:$4 sm:$0xff]   ;;  %v7360_v10 = vld [vmem:[%s11224_s1 + $0x40] ss:$16 sps:$4 sm:$0xff]   ;;  %v7361_v11 = vld [vmem:[%s11224_s1 + $0x48] ss:$16 sps:$4 sm:$0xff]  }
   0x5   :  { %v7362_v12 = vld [vmem:[%s11224_s1 + $0x64] ss:$16 sps:$4 sm:$0xff]   ;;  %v7364_v13 = vld [vmem:[%s11224_s1 + $0x6c] ss:$16 sps:$4 sm:$0xff]   ;;  %v7366_v14 = vld [vmem:[%s11224_s1 + $0x60] ss:$16 sps:$4 sm:$0xff]  }
   0x6   :  { %v7367_v15 = vld [vmem:[%s11224_s1 + $0x68] ss:$16 sps:$4 sm:$0xff]   ;;  %v7368_v16 = vld [vmem:[%s11224_s1 + $0x84] ss:$16 sps:$4 sm:$0xff]   ;;  %v7370_v17 = vld [vmem:[%s11224_s1 + $0x8c] ss:$16 sps:$4 sm:$0xff]  }
   0x7   :  { %4948 = vmatpush1.bf16.msra.mxu0 %v7354_v6  ;;  %5481 = vmatpush1.bf16.msra.mxu1 %v7355_v7  ;;  %v7372_v18 = vld [vmem:[%s11224_s1 + $0x80] ss:$16 sps:$4 sm:$0xff]   ;;  %v7373_v19 = vld [vmem:[%s11224_s1 + $0x88] ss:$16 sps:$4 sm:$0xff]   ;;  %v7374_v20 = vld [vmem:[%s11224_s1 + $0xa4] ss:$16 sps:$4 sm:$0xff]  }
   0x8   :  { %4949 = vmatprep.subr.bf16.mxu0 %v7356_v8  ;;  %5482 = vmatprep.subr.bf16.mxu1 %v7358_v9  ;;  %v7376_v21 = vld [vmem:[%s11224_s1 + $0xac] ss:$16 sps:$4 sm:$0xff]   ;;  %v7378_v22 = vld [vmem:[%s11224_s1 + $0xa0] ss:$16 sps:$4 sm:$0xff]   ;;  %v7379_v23 = vld [vmem:[%s11224_s1 + $0xa8] ss:$16 sps:$4 sm:$0xff]  }
   0x9   :  { %v7380_v24 = vld [vmem:[%s11224_s1 + $0xc4] ss:$16 sps:$4 sm:$0xff]   ;;  %v7382_v25 = vld [vmem:[%s11224_s1 + $0xcc] ss:$16 sps:$4 sm:$0xff]   ;;  %v7384_v26 = vld [vmem:[%s11224_s1 + $0xc0] ss:$16 sps:$4 sm:$0xff]  }
   0xa   :  { %v7385_v27 = vld [vmem:[%s11224_s1 + $0xc8] ss:$16 sps:$4 sm:$0xff]   ;;  %v7386_v28 = vld [vmem:[%s11224_s1 + $0xe4] ss:$16 sps:$4 sm:$0xff]   ;;  %v7388_v29 = vld [vmem:[%s11224_s1 + $0xec] ss:$16 sps:$4 sm:$0xff]  }
   0xb   :  { %4950 = vmatpush1.bf16.msra.mxu0 %v7360_v10  ;;  %5483 = vmatpush1.bf16.msra.mxu1 %v7361_v11  ;;  %v7390_v30 = vld [vmem:[%s11224_s1 + $0xe0] ss:$16 sps:$4 sm:$0xff]   ;;  %v7391_v31 = vld [vmem:[%s11224_s1 + $0xe8] ss:$16 sps:$4 sm:$0xff]   ;;  %v7392_v32 = vld [vmem:[%s11224_s1 + $0x104] ss:$16 sps:$4 sm:$0xff]  }
   0xc   :  { %4951 = vmatprep.subr.bf16.mxu0 %v7362_v12  ;;  %5484 = vmatprep.subr.bf16.mxu1 %v7364_v13  ;;  %v7394_v33 = vld [vmem:[%s11224_s1 + $0x10c] ss:$16 sps:$4 sm:$0xff]   ;;  %v7396_v34 = vld [vmem:[%s11224_s1 + $0x100] ss:$16 sps:$4 sm:$0xff]   ;;  %v7397_v35 = vld [vmem:[%s11224_s1 + $0x108] ss:$16 sps:$4 sm:$0xff]  }
   0xd   :  { %v7398_v39 = vld [vmem:[%s11224_s1 + $0x124] ss:$16 sps:$4 sm:$0xff]   ;;  %v7400_v40 = vld [vmem:[%s11224_s1 + $0x12c] ss:$16 sps:$4 sm:$0xff]   ;;  %v7402_v41 = vld [vmem:[%s11224_s1 + $0x120] ss:$16 sps:$4 sm:$0xff]  }
   0xe   :  { %v8731_v42 = vshrl.u32 %v812_v36, 7  ;;  %v7403_v44 = vld [vmem:[%s11224_s1 + $0x128] ss:$16 sps:$4 sm:$0xff]   ;;  %v7404_v45 = vld [vmem:[%s11224_s1 + $0x144] ss:$16 sps:$4 sm:$0xff]  }
   0xf   :  { %4952 = vmatpush1.bf16.msra.mxu0 %v7366_v14  ;;  %5485 = vmatpush1.bf16.msra.mxu1 %v7367_v15  ;;  %v7406_v46 = vld [vmem:[%s11224_s1 + $0x14c] ss:$16 sps:$4 sm:$0xff]   ;;  %v7408_v47 = vld [vmem:[%s11224_s1 + $0x140] ss:$16 sps:$4 sm:$0xff]   ;;  %v7409_v48 = vld [vmem:[%s11224_s1 + $0x148] ss:$16 sps:$4 sm:$0xff]  }
  0x10   :  { %4953 = vmatprep.subr.bf16.mxu0 %v7368_v16  ;;  %5486 = vmatprep.subr.bf16.mxu1 %v7370_v17  ;;  %v8749_v49 = vsub.s32 %v839_v43, %v8731_v42  ;;  %v7410_v50 = vld [vmem:[%s11224_s1 + $0x164] ss:$16 sps:$4 sm:$0xff]   ;;  %v7412_v51 = vld [vmem:[%s11224_s1 + $0x16c] ss:$16 sps:$4 sm:$0xff]   ;;  %v7414_v53 = vld [vmem:[%s11224_s1 + $0x160] ss:$16 sps:$4 sm:$0xff]  }
  0x11   :  { %v8760_v52 = vld [vmem:[%s11223_s0] sm:$0xff]  ;;  %v7415_v55 = vld [vmem:[%s11224_s1 + $0x168] ss:$16 sps:$4 sm:$0xff]   ;;  %v7418_v57 = vld [vmem:[%s11224_s1 + $0x18c] ss:$16 sps:$4 sm:$0xff]  }
  0x12   :  { %v843_v54 = vrot.slane %v8760_v52, %v8749_v49  ;;  %v7416_v56 = vld [vmem:[%s11224_s1 + $0x184] ss:$16 sps:$4 sm:$0xff]   ;;  %v7420_v59 = vld [vmem:[%s11224_s1 + $0x180] ss:$16 sps:$4 sm:$0xff]   ;;  %v7421_v61 = vld [vmem:[%s11224_s1 + $0x188] ss:$16 sps:$4 sm:$0xff]  }
  0x13   :  { %4954 = vmatpush1.bf16.msra.mxu0 %v7372_v18  ;;  %5487 = vmatpush1.bf16.msra.mxu1 %v7373_v19  ;;  %v7422_v62 = vld [vmem:[%s11224_s1 + $0x1a4] ss:$16 sps:$4 sm:$0xff]   ;;  %v7424_v63 = vld [vmem:[%s11224_s1 + $0x1ac] ss:$16 sps:$4 sm:$0xff]   ;;  %v7426_v0 = vld [vmem:[%s11224_s1 + $0x1a0] ss:$16 sps:$4 sm:$0xff]  }
  0x14   :  { %4955 = vmatprep.subr.bf16.mxu0 %v7374_v20  ;;  %5488 = vmatprep.subr.bf16.mxu1 %v7376_v21  ;;  %v851_v58 = vcombine.high %v843_v54, %v843_v54  ;;  %v7427_v1 = vld [vmem:[%s11224_s1 + $0x1a8] ss:$16 sps:$4 sm:$0xff]   ;;  %v7428_v2 = vld [vmem:[%s11224_s1 + $0x1c4] ss:$16 sps:$4 sm:$0xff]   ;;  %v7430_v3 = vld [vmem:[%s11224_s1 + $0x1cc] ss:$16 sps:$4 sm:$0xff]   ;;  %v8829_v13 = vrot.slane %v843_v54, %v8749_v49 }
  0x15   :  { %v7432_v4 = vld [vmem:[%s11224_s1 + $0x1c0] ss:$16 sps:$4 sm:$0xff]   ;;  %v7433_v5 = vld [vmem:[%s11224_s1 + $0x1c8] ss:$16 sps:$4 sm:$0xff]   ;;  %v7434_v6 = vld [vmem:[%s11224_s1 + $0x1e4] ss:$16 sps:$4 sm:$0xff]  }
  0x16   :  { %v873_v60 = vrot.slane %v851_v58, %v8749_v49  ;;  %v7436_v7 = vld [vmem:[%s11224_s1 + $0x1ec] ss:$16 sps:$4 sm:$0xff]   ;;  %v7438_v8 = vld [vmem:[%s11224_s1 + $0x1e0] ss:$16 sps:$4 sm:$0xff]   ;;  %v7439_v9 = vld [vmem:[%s11224_s1 + $0x1e8] ss:$16 sps:$4 sm:$0xff]  }
  0x17   :  { %4956 = vmatpush1.bf16.msra.mxu0 %v7378_v22  ;;  %5489 = vmatpush1.bf16.msra.mxu1 %v7379_v23  ;;  %v7442_v10 = vld [vmem:[%s11224_s1 + $0x204] ss:$16 sps:$4 sm:$0xff]   ;;  %v7445_v11 = vld [vmem:[%s11224_s1 + $0x20c] ss:$16 sps:$4 sm:$0xff]   ;;  %v7440_v12 = vld [vmem:[%s11224_s1 + $0x200] ss:$16 sps:$4 sm:$0xff]  }
  0x18   :  { %4957 = vmatprep.subr.bf16.mxu0 %v7380_v24  ;;  %5490 = vmatprep.subr.bf16.mxu1 %v7382_v25  ;;  %v7443_v14 = vld [vmem:[%s11224_s1 + $0x208] ss:$16 sps:$4 sm:$0xff]   ;;  %v7448_v15 = vld [vmem:[%s11224_s1 + $0x224] ss:$16 sps:$4 sm:$0xff]   ;;  %v7451_v16 = vld [vmem:[%s11224_s1 + $0x22c] ss:$16 sps:$4 sm:$0xff]   ;;  %v883_v17 = vcombine.high %v873_v60, %v873_v60 }
  0x19   :  { %4977 = vmatprep.mubr.bf16.mxu0 %v873_v60  ;;  %5510 = vmatprep.mubr.bf16.mxu1 %v873_v60  ;;  %v7446_v18 = vld [vmem:[%s11224_s1 + $0x220] ss:$16 sps:$4 sm:$0xff]   ;;  %v7449_v19 = vld [vmem:[%s11224_s1 + $0x228] ss:$16 sps:$4 sm:$0xff]   ;;  %v7454_v20 = vld [vmem:[%s11224_s1 + $0x244] ss:$16 sps:$4 sm:$0xff]  }
  0x1a   :  { %v7457_v21 = vld [vmem:[%s11224_s1 + $0x24c] ss:$16 sps:$4 sm:$0xff]   ;;  %v7452_v22 = vld [vmem:[%s11224_s1 + $0x240] ss:$16 sps:$4 sm:$0xff]   ;;  %v7455_v23 = vld [vmem:[%s11224_s1 + $0x248] ss:$16 sps:$4 sm:$0xff]  }
  0x1b   :  { %4958 = vmatpush1.bf16.msra.mxu0 %v7384_v26  ;;  %5491 = vmatpush1.bf16.msra.mxu1 %v7385_v27  ;;  %v7460_v24 = vld [vmem:[%s11224_s1 + $0x264] ss:$16 sps:$4 sm:$0xff]   ;;  %v7463_v25 = vld [vmem:[%s11224_s1 + $0x26c] ss:$16 sps:$4 sm:$0xff]   ;;  %v7458_v26 = vld [vmem:[%s11224_s1 + $0x260] ss:$16 sps:$4 sm:$0xff]  }
  0x1c   :  { %4959 = vmatprep.subr.bf16.mxu0 %v7386_v28  ;;  %5492 = vmatprep.subr.bf16.mxu1 %v7388_v29  ;;  %v7461_v27 = vld [vmem:[%s11224_s1 + $0x268] ss:$16 sps:$4 sm:$0xff]   ;;  %v7466_v28 = vld [vmem:[%s11224_s1 + $0x284] ss:$16 sps:$4 sm:$0xff]   ;;  %v7469_v29 = vld [vmem:[%s11224_s1 + $0x28c] ss:$16 sps:$4 sm:$0xff]  }
  0x1d   :  { %v7478_v36 = vld [vmem:[%s11224_s1 + $0x2c4] ss:$16 sps:$4 sm:$0xff]   ;;  %v7481_v37 = vld [vmem:[%s11224_s1 + $0x2cc] ss:$16 sps:$4 sm:$0xff]   ;;  %v7476_v38 = vld [vmem:[%s11224_s1 + $0x2c0] ss:$16 sps:$4 sm:$0xff]  }
  0x1e   :  { %v7482_v43 = vld [vmem:[%s11224_s1 + $0x2e0] ss:$16 sps:$4 sm:$0xff]   ;;  %v7497_v54 = vld [vmem:[%s11224_s1 + $0x328] ss:$16 sps:$4 sm:$0xff]   ;;  %v7511_v60 = vld [vmem:[%s11224_s1 + $0x36c] ss:$16 sps:$4 sm:$0xff]  }
  0x1f   :  { %4960 = vmatpush1.bf16.msra.mxu0 %v7390_v30  ;;  %5493 = vmatpush1.bf16.msra.mxu1 %v7391_v31  ;;  %v7464_v30 = vld [vmem:[%s11224_s1 + $0x280] ss:$16 sps:$4 sm:$0xff]   ;;  %v7467_v31 = vld [vmem:[%s11224_s1 + $0x288] ss:$16 sps:$4 sm:$0xff]  }
  0x20   :  { %4961 = vmatprep.subr.bf16.mxu0 %v7392_v32  ;;  %5494 = vmatprep.subr.bf16.mxu1 %v7394_v33  ;;  %v7472_v32 = vld [vmem:[%s11224_s1 + $0x2a4] ss:$16 sps:$4 sm:$0xff]   ;;  %v7475_v33 = vld [vmem:[%s11224_s1 + $0x2ac] ss:$16 sps:$4 sm:$0xff]   ;;  %v7503_v58 = vld [vmem:[%s11224_s1 + $0x348] ss:$16 sps:$4 sm:$0xff]  }
  0x23   :  { %4962 = vmatpush1.bf16.msra.mxu0 %v7396_v34  ;;  %5495 = vmatpush1.bf16.msra.mxu1 %v7397_v35  ;;  %v7470_v34 = vld [vmem:[%s11224_s1 + $0x2a0] ss:$16 sps:$4 sm:$0xff]   ;;  %v7473_v35 = vld [vmem:[%s11224_s1 + $0x2a8] ss:$16 sps:$4 sm:$0xff]  }
  0x24   :  { %4963 = vmatprep.subr.bf16.mxu0 %v7398_v39  ;;  %5496 = vmatprep.subr.bf16.mxu1 %v7400_v40  ;;  %v7479_v39 = vld [vmem:[%s11224_s1 + $0x2c8] ss:$16 sps:$4 sm:$0xff]   ;;  %v7484_v40 = vld [vmem:[%s11224_s1 + $0x2e4] ss:$16 sps:$4 sm:$0xff]  }
  0x27   :  { %4964 = vmatpush1.bf16.msra.mxu0 %v7402_v41  ;;  %5497 = vmatpush1.bf16.msra.mxu1 %v7403_v44  ;;  %v7487_v41 = vld [vmem:[%s11224_s1 + $0x2ec] ss:$16 sps:$4 sm:$0xff]   ;;  %v7485_v44 = vld [vmem:[%s11224_s1 + $0x2e8] ss:$16 sps:$4 sm:$0xff]  }
  0x28   :  { %4965 = vmatprep.subr.bf16.mxu0 %v7404_v45  ;;  %5498 = vmatprep.subr.bf16.mxu1 %v7406_v46  ;;  %v7490_v45 = vld [vmem:[%s11224_s1 + $0x304] ss:$16 sps:$4 sm:$0xff]   ;;  %v7493_v46 = vld [vmem:[%s11224_s1 + $0x30c] ss:$16 sps:$4 sm:$0xff]  }
  0x2b   :  { %4966 = vmatpush1.bf16.msra.mxu0 %v7408_v47  ;;  %5499 = vmatpush1.bf16.msra.mxu1 %v7409_v48  ;;  %v7488_v47 = vld [vmem:[%s11224_s1 + $0x300] ss:$16 sps:$4 sm:$0xff]   ;;  %v7491_v48 = vld [vmem:[%s11224_s1 + $0x308] ss:$16 sps:$4 sm:$0xff]  }
  0x2c   :  { %4967 = vmatprep.subr.bf16.mxu0 %v7410_v50  ;;  %5500 = vmatprep.subr.bf16.mxu1 %v7412_v51  ;;  %v7496_v50 = vld [vmem:[%s11224_s1 + $0x324] ss:$16 sps:$4 sm:$0xff]   ;;  %v7499_v51 = vld [vmem:[%s11224_s1 + $0x32c] ss:$16 sps:$4 sm:$0xff]  }
  0x2f   :  { %4968 = vmatpush1.bf16.msra.mxu0 %v7414_v53  ;;  %5501 = vmatpush1.bf16.msra.mxu1 %v7415_v55  ;;  %v7494_v53 = vld [vmem:[%s11224_s1 + $0x320] ss:$16 sps:$4 sm:$0xff]   ;;  %v7502_v55 = vld [vmem:[%s11224_s1 + $0x344] ss:$16 sps:$4 sm:$0xff]  }
  0x30   :  { %4969 = vmatprep.subr.bf16.mxu0 %v7416_v56  ;;  %5502 = vmatprep.subr.bf16.mxu1 %v7418_v57  ;;  %v7505_v56 = vld [vmem:[%s11224_s1 + $0x34c] ss:$16 sps:$4 sm:$0xff]   ;;  %v7500_v57 = vld [vmem:[%s11224_s1 + $0x340] ss:$16 sps:$4 sm:$0xff]  }
  0x33   :  { %4970 = vmatpush1.bf16.msra.mxu0 %v7420_v59  ;;  %5503 = vmatpush1.bf16.msra.mxu1 %v7421_v61  ;;  %v7508_v59 = vld [vmem:[%s11224_s1 + $0x364] ss:$16 sps:$4 sm:$0xff]   ;;  %v7506_v61 = vld [vmem:[%s11224_s1 + $0x360] ss:$16 sps:$4 sm:$0xff]  }
  0x34   :  { %4971 = vmatprep.subr.bf16.mxu0 %v7422_v62  ;;  %5504 = vmatprep.subr.bf16.mxu1 %v7424_v63  ;;  %v7509_v62 = vld [vmem:[%s11224_s1 + $0x368] ss:$16 sps:$4 sm:$0xff]   ;;  %v7514_v63 = vld [vmem:[%s11224_s1 + $0x384] ss:$16 sps:$4 sm:$0xff]  }
  0x37   :  { %4972 = vmatpush1.bf16.msra.mxu0 %v7426_v0  ;;  %5505 = vmatpush1.bf16.msra.mxu1 %v7427_v1  ;;  %v7517_v0 = vld [vmem:[%s11224_s1 + $0x38c] ss:$16 sps:$4 sm:$0xff]   ;;  %v7512_v1 = vld [vmem:[%s11224_s1 + $0x380] ss:$16 sps:$4 sm:$0xff]  }
  0x38   :  { %4973 = vmatprep.subr.bf16.mxu0 %v7428_v2  ;;  %5506 = vmatprep.subr.bf16.mxu1 %v7430_v3  ;;  %v7515_v2 = vld [vmem:[%s11224_s1 + $0x388] ss:$16 sps:$4 sm:$0xff]   ;;  %v7520_v3 = vld [vmem:[%s11224_s1 + $0x3a4] ss:$16 sps:$4 sm:$0xff]  }
  0x3b   :  { %4974 = vmatpush1.bf16.msra.mxu0 %v7432_v4  ;;  %5507 = vmatpush1.bf16.msra.mxu1 %v7433_v5  ;;  %v7523_v4 = vld [vmem:[%s11224_s1 + $0x3ac] ss:$16 sps:$4 sm:$0xff]   ;;  %v7518_v5 = vld [vmem:[%s11224_s1 + $0x3a0] ss:$16 sps:$4 sm:$0xff]  }
  0x3c   :  { %4975 = vmatprep.subr.bf16.mxu0 %v7434_v6  ;;  %5508 = vmatprep.subr.bf16.mxu1 %v7436_v7  ;;  %v7521_v6 = vld [vmem:[%s11224_s1 + $0x3a8] ss:$16 sps:$4 sm:$0xff]   ;;  %v7526_v7 = vld [vmem:[%s11224_s1 + $0x3c4] ss:$16 sps:$4 sm:$0xff]  }
  0x3f   :  { %4976 = vmatpush1.bf16.msra.mxu0 %v7438_v8  ;;  %5509 = vmatpush1.bf16.msra.mxu1 %v7439_v9  ;;  %v7529_v8 = vld [vmem:[%s11224_s1 + $0x3cc] ss:$16 sps:$4 sm:$0xff]   ;;  %v836_v9 = vcombine.high %v8760_v52, %v8760_v52 }
  0x40   :  { %4986 = vmatprep.subr.bf16.mxu0 %v7442_v10  ;;  %5519 = vmatprep.subr.bf16.mxu1 %v7445_v11  ;;  %v7524_v10 = vld [vmem:[%s11224_s1 + $0x3c0] ss:$16 sps:$4 sm:$0xff]   ;;  %v7527_v11 = vld [vmem:[%s11224_s1 + $0x3c8] ss:$16 sps:$4 sm:$0xff]   ;;  %v7535_v52 = vld [vmem:[%s11224_s1 + $0x3ec] ss:$16 sps:$4 sm:$0xff]  }
  0x42   :  { %4978 = vmatmul.mubr.bf16.vlgmr.msra.gmra.mrb[0].mxu0 %v8829_v13  ;;  %5511 = vmatmul.mubr.bf16.vlgmr.msra.gmra.mrb[0].mxu1 %v8829_v13 }
  0x43   :  { %4987 = vmatpush1.bf16.msra.mxu0 %v7440_v12  ;;  %5520 = vmatpush1.bf16.msra.mxu1 %v7443_v14  ;;  %v7532_v12 = vld [vmem:[%s11224_s1 + $0x3e4] ss:$16 sps:$4 sm:$0xff]   ;;  %v9013_v14 = vrot.slane %v836_v9, %v8749_v49  ;;  %v7611_v9 = vld [vmem:[%s11224_s1 + $0x588] ss:$16 sps:$4 sm:$0xff]  }
  0x44   :  { %4988 = vmatprep.subr.bf16.mxu0 %v7448_v15  ;;  %5521 = vmatprep.subr.bf16.mxu1 %v7451_v16  ;;  %v7530_v15 = vld [vmem:[%s11224_s1 + $0x3e0] ss:$16 sps:$4 sm:$0xff]   ;;  %v7533_v16 = vld [vmem:[%s11224_s1 + $0x3e8] ss:$16 sps:$4 sm:$0xff]  }
  0x45   :  { %5018 = vmatprep.mubr.bf16.mxu0 %v883_v17  ;;  %5551 = vmatprep.mubr.bf16.mxu1 %v883_v17  ;;  %v7538_v17 = vld [vmem:[%s11224_s1 + $0x404] ss:$16 sps:$4 sm:$0xff]  }
  0x47   :  { %4989 = vmatpush1.bf16.msra.mxu0 %v7446_v18  ;;  %5522 = vmatpush1.bf16.msra.mxu1 %v7449_v19  ;;  %v7541_v18 = vld [vmem:[%s11224_s1 + $0x40c] ss:$16 sps:$4 sm:$0xff]   ;;  %v852_v19 = vcombine.high %v9013_v14, %v9013_v14 }
  0x48   :  { %4990 = vmatprep.subr.bf16.mxu0 %v7454_v20  ;;  %5523 = vmatprep.subr.bf16.mxu1 %v7457_v21  ;;  %v7536_v20 = vld [vmem:[%s11224_s1 + $0x400] ss:$16 sps:$4 sm:$0xff]   ;;  %v881_v21 = vcombine.high %v8829_v13, %v8829_v13 }
  0x49   :  { %v7542_v13 = vld [vmem:[%s11224_s1 + $0x420] ss:$16 sps:$4 sm:$0xff]  }
  0x4b   :  { %4991 = vmatpush1.bf16.msra.mxu0 %v7452_v22  ;;  %5524 = vmatpush1.bf16.msra.mxu1 %v7455_v23  ;;  %v7539_v22 = vld [vmem:[%s11224_s1 + $0x408] ss:$16 sps:$4 sm:$0xff]   ;;  %v7544_v23 = vld [vmem:[%s11224_s1 + $0x424] ss:$16 sps:$4 sm:$0xff]  }
  0x4c   :  { %4992 = vmatprep.subr.bf16.mxu0 %v7460_v24  ;;  %5525 = vmatprep.subr.bf16.mxu1 %v7463_v25  ;;  %v7547_v24 = vld [vmem:[%s11224_s1 + $0x42c] ss:$16 sps:$4 sm:$0xff]   ;;  %v9044_v25 = vrot.slane %v852_v19, %v8749_v49  ;;  %v7628_v19 = vld [vmem:[%s11224_s1 + $0x5e4] ss:$16 sps:$4 sm:$0xff]  }
  0x4f   :  { %4993 = vmatpush1.bf16.msra.mxu0 %v7458_v26  ;;  %5526 = vmatpush1.bf16.msra.mxu1 %v7461_v27  ;;  %v7545_v26 = vld [vmem:[%s11224_s1 + $0x428] ss:$16 sps:$4 sm:$0xff]   ;;  %v7550_v27 = vld [vmem:[%s11224_s1 + $0x444] ss:$16 sps:$4 sm:$0xff]  }
  0x50   :  { %4994 = vmatprep.subr.bf16.mxu0 %v7466_v28  ;;  %5527 = vmatprep.subr.bf16.mxu1 %v7469_v29  ;;  %v7553_v28 = vld [vmem:[%s11224_s1 + $0x44c] ss:$16 sps:$4 sm:$0xff]   ;;  %v7548_v29 = vld [vmem:[%s11224_s1 + $0x440] ss:$16 sps:$4 sm:$0xff]  }
  0x53   :  { %4995 = vmatpush1.bf16.msra.mxu0 %v7464_v30  ;;  %5528 = vmatpush1.bf16.msra.mxu1 %v7467_v31  ;;  %v7551_v30 = vld [vmem:[%s11224_s1 + $0x448] ss:$16 sps:$4 sm:$0xff]   ;;  %v7556_v31 = vld [vmem:[%s11224_s1 + $0x464] ss:$16 sps:$4 sm:$0xff]  }
  0x54   :  { %4996 = vmatprep.subr.bf16.mxu0 %v7472_v32  ;;  %5529 = vmatprep.subr.bf16.mxu1 %v7475_v33  ;;  %v7559_v32 = vld [vmem:[%s11224_s1 + $0x46c] ss:$16 sps:$4 sm:$0xff]   ;;  %v7554_v33 = vld [vmem:[%s11224_s1 + $0x460] ss:$16 sps:$4 sm:$0xff]  }
  0x57   :  { %4997 = vmatpush1.bf16.msra.mxu0 %v7470_v34  ;;  %5530 = vmatpush1.bf16.msra.mxu1 %v7473_v35  ;;  %v7557_v34 = vld [vmem:[%s11224_s1 + $0x468] ss:$16 sps:$4 sm:$0xff]   ;;  %v7562_v35 = vld [vmem:[%s11224_s1 + $0x484] ss:$16 sps:$4 sm:$0xff]  }
  0x58   :  { %4998 = vmatprep.subr.bf16.mxu0 %v7478_v36  ;;  %5531 = vmatprep.subr.bf16.mxu1 %v7481_v37  ;;  %v7565_v36 = vld [vmem:[%s11224_s1 + $0x48c] ss:$16 sps:$4 sm:$0xff]   ;;  %v7560_v37 = vld [vmem:[%s11224_s1 + $0x480] ss:$16 sps:$4 sm:$0xff]  }
  0x5b   :  { %4999 = vmatpush1.bf16.msra.mxu0 %v7476_v38  ;;  %5532 = vmatpush1.bf16.msra.mxu1 %v7479_v39  ;;  %v7563_v38 = vld [vmem:[%s11224_s1 + $0x488] ss:$16 sps:$4 sm:$0xff]   ;;  %v7568_v39 = vld [vmem:[%s11224_s1 + $0x4a4] ss:$16 sps:$4 sm:$0xff]  }
  0x5c   :  { %5000 = vmatprep.subr.bf16.mxu0 %v7484_v40  ;;  %5533 = vmatprep.subr.bf16.mxu1 %v7487_v41  ;;  %v7571_v40 = vld [vmem:[%s11224_s1 + $0x4ac] ss:$16 sps:$4 sm:$0xff]   ;;  %v7566_v41 = vld [vmem:[%s11224_s1 + $0x4a0] ss:$16 sps:$4 sm:$0xff]  }
  0x5f   :  { %5001 = vmatpush1.bf16.msra.mxu0 %v7482_v43  ;;  %5534 = vmatpush1.bf16.msra.mxu1 %v7485_v44  ;;  %v7569_v43 = vld [vmem:[%s11224_s1 + $0x4a8] ss:$16 sps:$4 sm:$0xff]   ;;  %v7574_v44 = vld [vmem:[%s11224_s1 + $0x4c4] ss:$16 sps:$4 sm:$0xff]  }
  0x60   :  { %5002 = vmatprep.subr.bf16.mxu0 %v7490_v45  ;;  %5535 = vmatprep.subr.bf16.mxu1 %v7493_v46  ;;  %v7577_v45 = vld [vmem:[%s11224_s1 + $0x4cc] ss:$16 sps:$4 sm:$0xff]   ;;  %v7572_v46 = vld [vmem:[%s11224_s1 + $0x4c0] ss:$16 sps:$4 sm:$0xff]  }
  0x63   :  { %5003 = vmatpush1.bf16.msra.mxu0 %v7488_v47  ;;  %5536 = vmatpush1.bf16.msra.mxu1 %v7491_v48  ;;  %v7575_v47 = vld [vmem:[%s11224_s1 + $0x4c8] ss:$16 sps:$4 sm:$0xff]   ;;  %v7580_v48 = vld [vmem:[%s11224_s1 + $0x4e4] ss:$16 sps:$4 sm:$0xff]  }
  0x64   :  { %5004 = vmatprep.subr.bf16.mxu0 %v7496_v50  ;;  %5537 = vmatprep.subr.bf16.mxu1 %v7499_v51  ;;  %v7583_v50 = vld [vmem:[%s11224_s1 + $0x4ec] ss:$16 sps:$4 sm:$0xff]   ;;  %v7578_v51 = vld [vmem:[%s11224_s1 + $0x4e0] ss:$16 sps:$4 sm:$0xff]  }
  0x67   :  { %5005 = vmatpush1.bf16.msra.mxu0 %v7494_v53  ;;  %5538 = vmatpush1.bf16.msra.mxu1 %v7497_v54  ;;  %v7581_v53 = vld [vmem:[%s11224_s1 + $0x4e8] ss:$16 sps:$4 sm:$0xff]   ;;  %v7586_v54 = vld [vmem:[%s11224_s1 + $0x504] ss:$16 sps:$4 sm:$0xff]  }
  0x68   :  { %5006 = vmatprep.subr.bf16.mxu0 %v7502_v55  ;;  %5539 = vmatprep.subr.bf16.mxu1 %v7505_v56  ;;  %v7589_v55 = vld [vmem:[%s11224_s1 + $0x50c] ss:$16 sps:$4 sm:$0xff]   ;;  %v7584_v56 = vld [vmem:[%s11224_s1 + $0x500] ss:$16 sps:$4 sm:$0xff]  }
  0x6b   :  { %5007 = vmatpush1.bf16.msra.mxu0 %v7500_v57  ;;  %5540 = vmatpush1.bf16.msra.mxu1 %v7503_v58  ;;  %v7587_v57 = vld [vmem:[%s11224_s1 + $0x508] ss:$16 sps:$4 sm:$0xff]   ;;  %v7592_v58 = vld [vmem:[%s11224_s1 + $0x524] ss:$16 sps:$4 sm:$0xff]  }
  0x6c   :  { %5008 = vmatprep.subr.bf16.mxu0 %v7508_v59  ;;  %5541 = vmatprep.subr.bf16.mxu1 %v7511_v60  ;;  %v7595_v59 = vld [vmem:[%s11224_s1 + $0x52c] ss:$16 sps:$4 sm:$0xff]   ;;  %v7590_v60 = vld [vmem:[%s11224_s1 + $0x520] ss:$16 sps:$4 sm:$0xff]  }
  0x6f   :  { %5009 = vmatpush1.bf16.msra.mxu0 %v7506_v61  ;;  %5542 = vmatpush1.bf16.msra.mxu1 %v7509_v62  ;;  %v7593_v61 = vld [vmem:[%s11224_s1 + $0x528] ss:$16 sps:$4 sm:$0xff]   ;;  %v7598_v62 = vld [vmem:[%s11224_s1 + $0x544] ss:$16 sps:$4 sm:$0xff]  }
  0x70   :  { %5010 = vmatprep.subr.bf16.mxu0 %v7514_v63  ;;  %5543 = vmatprep.subr.bf16.mxu1 %v7517_v0  ;;  %v7601_v63 = vld [vmem:[%s11224_s1 + $0x54c] ss:$16 sps:$4 sm:$0xff]   ;;  %v7596_v0 = vld [vmem:[%s11224_s1 + $0x540] ss:$16 sps:$4 sm:$0xff]  }
  0x73   :  { %5011 = vmatpush1.bf16.msra.mxu0 %v7512_v1  ;;  %5544 = vmatpush1.bf16.msra.mxu1 %v7515_v2  ;;  %v7599_v1 = vld [vmem:[%s11224_s1 + $0x548] ss:$16 sps:$4 sm:$0xff]   ;;  %v7604_v2 = vld [vmem:[%s11224_s1 + $0x564] ss:$16 sps:$4 sm:$0xff]  }
  0x74   :  { %5012 = vmatprep.subr.bf16.mxu0 %v7520_v3  ;;  %5545 = vmatprep.subr.bf16.mxu1 %v7523_v4  ;;  %v7607_v3 = vld [vmem:[%s11224_s1 + $0x56c] ss:$16 sps:$4 sm:$0xff]   ;;  %v7602_v4 = vld [vmem:[%s11224_s1 + $0x560] ss:$16 sps:$4 sm:$0xff]  }
  0x77   :  { %5013 = vmatpush1.bf16.msra.mxu0 %v7518_v5  ;;  %5546 = vmatpush1.bf16.msra.mxu1 %v7521_v6  ;;  %v7605_v5 = vld [vmem:[%s11224_s1 + $0x568] ss:$16 sps:$4 sm:$0xff]   ;;  %v7610_v6 = vld [vmem:[%s11224_s1 + $0x584] ss:$16 sps:$4 sm:$0xff]  }
  0x78   :  { %5014 = vmatprep.subr.bf16.mxu0 %v7526_v7  ;;  %5547 = vmatprep.subr.bf16.mxu1 %v7529_v8  ;;  %v7613_v7 = vld [vmem:[%s11224_s1 + $0x58c] ss:$16 sps:$4 sm:$0xff]   ;;  %v7608_v8 = vld [vmem:[%s11224_s1 + $0x580] ss:$16 sps:$4 sm:$0xff]  }
  0x7b   :  { %5015 = vmatpush1.bf16.msra.mxu0 %v7524_v10  ;;  %5548 = vmatpush1.bf16.msra.mxu1 %v7527_v11  ;;  %v7616_v10 = vld [vmem:[%s11224_s1 + $0x5a4] ss:$16 sps:$4 sm:$0xff]   ;;  %v7619_v11 = vld [vmem:[%s11224_s1 + $0x5ac] ss:$16 sps:$4 sm:$0xff]  }
  0x7c   :  { %5016 = vmatprep.subr.bf16.mxu0 %v7532_v12  ;;  %5549 = vmatprep.subr.bf16.mxu1 %v7535_v52  ;;  %v7614_v12 = vld [vmem:[%s11224_s1 + $0x5a0] ss:$16 sps:$4 sm:$0xff]   ;;  %v7617_v52 = vld [vmem:[%s11224_s1 + $0x5a8] ss:$16 sps:$4 sm:$0xff]  }
  0x7f   :  { %5017 = vmatpush1.bf16.msra.mxu0 %v7530_v15  ;;  %5550 = vmatpush1.bf16.msra.mxu1 %v7533_v16  ;;  %v7622_v15 = vld [vmem:[%s11224_s1 + $0x5c4] ss:$16 sps:$4 sm:$0xff]   ;;  %v7625_v16 = vld [vmem:[%s11224_s1 + $0x5cc] ss:$16 sps:$4 sm:$0xff]  }
  0x80   :  { %5027 = vmatprep.subr.bf16.mxu0 %v7538_v17  ;;  %5560 = vmatprep.subr.bf16.mxu1 %v7541_v18  ;;  %v7620_v17 = vld [vmem:[%s11224_s1 + $0x5c0] ss:$16 sps:$4 sm:$0xff]   ;;  %v7623_v18 = vld [vmem:[%s11224_s1 + $0x5c8] ss:$16 sps:$4 sm:$0xff]  }
  0x82   :  { %5019 = vmatmul.mubr.bf16.vlgmr.msra.gmra.mrb[0].mxu0 %v881_v21  ;;  %5552 = vmatmul.mubr.bf16.vlgmr.msra.gmra.mrb[0].mxu1 %v881_v21  ;;  %v7626_v21 = vld [vmem:[%s11224_s1 + $0x5e0] ss:$16 sps:$4 sm:$0xff]  }
  0x83   :  { %5028 = vmatpush1.bf16.msra.mxu0 %v7536_v20  ;;  %5561 = vmatpush1.bf16.msra.mxu1 %v7539_v22  ;;  %v7631_v20 = vld [vmem:[%s11224_s1 + $0x5ec] ss:$16 sps:$4 sm:$0xff]   ;;  %v7629_v22 = vld [vmem:[%s11224_s1 + $0x5e8] ss:$16 sps:$4 sm:$0xff]  }
  0x84   :  { %5029 = vmatprep.subr.bf16.mxu0 %v7544_v23  ;;  %5562 = vmatprep.subr.bf16.mxu1 %v7547_v24  ;;  %v7635_v23 = vld [vmem:[%s11224_s1 + $0x604] ss:$16 sps:$4 sm:$0xff]   ;;  %v7638_v24 = vld [vmem:[%s11224_s1 + $0x60c] ss:$16 sps:$4 sm:$0xff]  }
  0x85   :  { %5059 = vmatprep.mubr.bf16.mxu0 %v9044_v25  ;;  %5592 = vmatprep.mubr.bf16.mxu1 %v9044_v25 }
  0x87   :  { %5030 = vmatpush1.bf16.msra.mxu0 %v7542_v13  ;;  %5563 = vmatpush1.bf16.msra.mxu1 %v7545_v26  ;;  %v7633_v13 = vld [vmem:[%s11224_s1 + $0x600] ss:$16 sps:$4 sm:$0xff]   ;;  %v9233_v26 = vrot.slane %v9013_v14, %v8749_v49  ;;  %v884_v14 = vcombine.high %v9044_v25, %v9044_v25  ;;  %v7647_v25 = vld [vmem:[%s11224_s1 + $0x644] ss:$16 sps:$4 sm:$0xff]  }
  0x88   :  { %5031 = vmatprep.subr.bf16.mxu0 %v7550_v27  ;;  %5564 = vmatprep.subr.bf16.mxu1 %v7553_v28  ;;  %v7636_v27 = vld [vmem:[%s11224_s1 + $0x608] ss:$16 sps:$4 sm:$0xff]   ;;  %v7641_v28 = vld [vmem:[%s11224_s1 + $0x624] ss:$16 sps:$4 sm:$0xff]  }
  0x8b   :  { %5032 = vmatpush1.bf16.msra.mxu0 %v7548_v29  ;;  %5565 = vmatpush1.bf16.msra.mxu1 %v7551_v30  ;;  %v7644_v29 = vld [vmem:[%s11224_s1 + $0x62c] ss:$16 sps:$4 sm:$0xff]   ;;  %v7639_v30 = vld [vmem:[%s11224_s1 + $0x620] ss:$16 sps:$4 sm:$0xff]  }
  0x8c   :  { %5033 = vmatprep.subr.bf16.mxu0 %v7556_v31  ;;  %5566 = vmatprep.subr.bf16.mxu1 %v7559_v32  ;;  %v7642_v31 = vld [vmem:[%s11224_s1 + $0x628] ss:$16 sps:$4 sm:$0xff]   ;;  %v7650_v32 = vld [vmem:[%s11224_s1 + $0x64c] ss:$16 sps:$4 sm:$0xff]  }
  0x8f   :  { %5034 = vmatpush1.bf16.msra.mxu0 %v7554_v33  ;;  %5567 = vmatpush1.bf16.msra.mxu1 %v7557_v34  ;;  %v7645_v33 = vld [vmem:[%s11224_s1 + $0x640] ss:$16 sps:$4 sm:$0xff]   ;;  %v7648_v34 = vld [vmem:[%s11224_s1 + $0x648] ss:$16 sps:$4 sm:$0xff]  }
  0x90   :  { %5035 = vmatprep.subr.bf16.mxu0 %v7562_v35  ;;  %5568 = vmatprep.subr.bf16.mxu1 %v7565_v36  ;;  %v7653_v35 = vld [vmem:[%s11224_s1 + $0x664] ss:$16 sps:$4 sm:$0xff]   ;;  %v7656_v36 = vld [vmem:[%s11224_s1 + $0x66c] ss:$16 sps:$4 sm:$0xff]  }
  0x93   :  { %5036 = vmatpush1.bf16.msra.mxu0 %v7560_v37  ;;  %5569 = vmatpush1.bf16.msra.mxu1 %v7563_v38  ;;  %v7651_v37 = vld [vmem:[%s11224_s1 + $0x660] ss:$16 sps:$4 sm:$0xff]   ;;  %v7654_v38 = vld [vmem:[%s11224_s1 + $0x668] ss:$16 sps:$4 sm:$0xff]  }
  0x94   :  { %5037 = vmatprep.subr.bf16.mxu0 %v7568_v39  ;;  %5570 = vmatprep.subr.bf16.mxu1 %v7571_v40  ;;  %v7659_v39 = vld [vmem:[%s11224_s1 + $0x684] ss:$16 sps:$4 sm:$0xff]   ;;  %v7662_v40 = vld [vmem:[%s11224_s1 + $0x68c] ss:$16 sps:$4 sm:$0xff]  }
  0x97   :  { %5038 = vmatpush1.bf16.msra.mxu0 %v7566_v41  ;;  %5571 = vmatpush1.bf16.msra.mxu1 %v7569_v43  ;;  %v7657_v41 = vld [vmem:[%s11224_s1 + $0x680] ss:$16 sps:$4 sm:$0xff]   ;;  %v7660_v43 = vld [vmem:[%s11224_s1 + $0x688] ss:$16 sps:$4 sm:$0xff]  }
  0x98   :  { %5039 = vmatprep.subr.bf16.mxu0 %v7574_v44  ;;  %5572 = vmatprep.subr.bf16.mxu1 %v7577_v45  ;;  %v7665_v44 = vld [vmem:[%s11224_s1 + $0x6a4] ss:$16 sps:$4 sm:$0xff]   ;;  %v7668_v45 = vld [vmem:[%s11224_s1 + $0x6ac] ss:$16 sps:$4 sm:$0xff]  }
  0x9b   :  { %5040 = vmatpush1.bf16.msra.mxu0 %v7572_v46  ;;  %5573 = vmatpush1.bf16.msra.mxu1 %v7575_v47  ;;  %v7663_v46 = vld [vmem:[%s11224_s1 + $0x6a0] ss:$16 sps:$4 sm:$0xff]   ;;  %v7666_v47 = vld [vmem:[%s11224_s1 + $0x6a8] ss:$16 sps:$4 sm:$0xff]  }
  0x9c   :  { %5041 = vmatprep.subr.bf16.mxu0 %v7580_v48  ;;  %5574 = vmatprep.subr.bf16.mxu1 %v7583_v50  ;;  %v7671_v48 = vld [vmem:[%s11224_s1 + $0x6c4] ss:$16 sps:$4 sm:$0xff]   ;;  %v7674_v50 = vld [vmem:[%s11224_s1 + $0x6cc] ss:$16 sps:$4 sm:$0xff]  }
  0x9f   :  { %5042 = vmatpush1.bf16.msra.mxu0 %v7578_v51  ;;  %5575 = vmatpush1.bf16.msra.mxu1 %v7581_v53  ;;  %v7669_v51 = vld [vmem:[%s11224_s1 + $0x6c0] ss:$16 sps:$4 sm:$0xff]   ;;  %v7672_v53 = vld [vmem:[%s11224_s1 + $0x6c8] ss:$16 sps:$4 sm:$0xff]  }
  0xa0   :  { %5043 = vmatprep.subr.bf16.mxu0 %v7586_v54  ;;  %5576 = vmatprep.subr.bf16.mxu1 %v7589_v55  ;;  %v7677_v54 = vld [vmem:[%s11224_s1 + $0x6e4] ss:$16 sps:$4 sm:$0xff]   ;;  %v7680_v55 = vld [vmem:[%s11224_s1 + $0x6ec] ss:$16 sps:$4 sm:$0xff]  }
  0xa3   :  { %5044 = vmatpush1.bf16.msra.mxu0 %v7584_v56  ;;  %5577 = vmatpush1.bf16.msra.mxu1 %v7587_v57  ;;  %v7675_v56 = vld [vmem:[%s11224_s1 + $0x6e0] ss:$16 sps:$4 sm:$0xff]   ;;  %v7678_v57 = vld [vmem:[%s11224_s1 + $0x6e8] ss:$16 sps:$4 sm:$0xff]  }
  0xa4   :  { %5045 = vmatprep.subr.bf16.mxu0 %v7592_v58  ;;  %5578 = vmatprep.subr.bf16.mxu1 %v7595_v59  ;;  %v7683_v58 = vld [vmem:[%s11224_s1 + $0x704] ss:$16 sps:$4 sm:$0xff]   ;;  %v7686_v59 = vld [vmem:[%s11224_s1 + $0x70c] ss:$16 sps:$4 sm:$0xff]  }
  0xa7   :  { %5046 = vmatpush1.bf16.msra.mxu0 %v7590_v60  ;;  %5579 = vmatpush1.bf16.msra.mxu1 %v7593_v61  ;;  %v7681_v60 = vld [vmem:[%s11224_s1 + $0x700] ss:$16 sps:$4 sm:$0xff]   ;;  %v7684_v61 = vld [vmem:[%s11224_s1 + $0x708] ss:$16 sps:$4 sm:$0xff]  }
  0xa8   :  { %5047 = vmatprep.subr.bf16.mxu0 %v7598_v62  ;;  %5580 = vmatprep.subr.bf16.mxu1 %v7601_v63  ;;  %v7689_v62 = vld [vmem:[%s11224_s1 + $0x724] ss:$16 sps:$4 sm:$0xff]   ;;  %v7692_v63 = vld [vmem:[%s11224_s1 + $0x72c] ss:$16 sps:$4 sm:$0xff]  }
  0xab   :  { %5048 = vmatpush1.bf16.msra.mxu0 %v7596_v0  ;;  %5581 = vmatpush1.bf16.msra.mxu1 %v7599_v1  ;;  %v7687_v0 = vld [vmem:[%s11224_s1 + $0x720] ss:$16 sps:$4 sm:$0xff]   ;;  %v7690_v1 = vld [vmem:[%s11224_s1 + $0x728] ss:$16 sps:$4 sm:$0xff]  }
  0xac   :  { %5049 = vmatprep.subr.bf16.mxu0 %v7604_v2  ;;  %5582 = vmatprep.subr.bf16.mxu1 %v7607_v3  ;;  %v7695_v2 = vld [vmem:[%s11224_s1 + $0x744] ss:$16 sps:$4 sm:$0xff]   ;;  %v7698_v3 = vld [vmem:[%s11224_s1 + $0x74c] ss:$16 sps:$4 sm:$0xff]  }
  0xaf   :  { %5050 = vmatpush1.bf16.msra.mxu0 %v7602_v4  ;;  %5583 = vmatpush1.bf16.msra.mxu1 %v7605_v5  ;;  %v7693_v4 = vld [vmem:[%s11224_s1 + $0x740] ss:$16 sps:$4 sm:$0xff]   ;;  %v7696_v5 = vld [vmem:[%s11224_s1 + $0x748] ss:$16 sps:$4 sm:$0xff]  }
  0xb0   :  { %5051 = vmatprep.subr.bf16.mxu0 %v7610_v6  ;;  %5584 = vmatprep.subr.bf16.mxu1 %v7613_v7  ;;  %v7701_v6 = vld [vmem:[%s11224_s1 + $0x764] ss:$16 sps:$4 sm:$0xff]   ;;  %v7704_v7 = vld [vmem:[%s11224_s1 + $0x76c] ss:$16 sps:$4 sm:$0xff]  }
  0xb3   :  { %5052 = vmatpush1.bf16.msra.mxu0 %v7608_v8  ;;  %5585 = vmatpush1.bf16.msra.mxu1 %v7611_v9  ;;  %v7699_v8 = vld [vmem:[%s11224_s1 + $0x760] ss:$16 sps:$4 sm:$0xff]   ;;  %v7702_v9 = vld [vmem:[%s11224_s1 + $0x768] ss:$16 sps:$4 sm:$0xff]  }
  0xb4   :  { %5053 = vmatprep.subr.bf16.mxu0 %v7616_v10  ;;  %5586 = vmatprep.subr.bf16.mxu1 %v7619_v11  ;;  %v7707_v10 = vld [vmem:[%s11224_s1 + $0x784] ss:$16 sps:$4 sm:$0xff]   ;;  %v7710_v11 = vld [vmem:[%s11224_s1 + $0x78c] ss:$16 sps:$4 sm:$0xff]  }
  0xb7   :  { %5054 = vmatpush1.bf16.msra.mxu0 %v7614_v12  ;;  %5587 = vmatpush1.bf16.msra.mxu1 %v7617_v52  ;;  %v7705_v12 = vld [vmem:[%s11224_s1 + $0x780] ss:$16 sps:$4 sm:$0xff]   ;;  %v7708_v52 = vld [vmem:[%s11224_s1 + $0x788] ss:$16 sps:$4 sm:$0xff]  }
  0xb8   :  { %5055 = vmatprep.subr.bf16.mxu0 %v7622_v15  ;;  %5588 = vmatprep.subr.bf16.mxu1 %v7625_v16  ;;  %v7713_v15 = vld [vmem:[%s11224_s1 + $0x7a4] ss:$16 sps:$4 sm:$0xff]   ;;  %v7716_v16 = vld [vmem:[%s11224_s1 + $0x7ac] ss:$16 sps:$4 sm:$0xff]  }
  0xbb   :  { %5056 = vmatpush1.bf16.msra.mxu0 %v7620_v17  ;;  %5589 = vmatpush1.bf16.msra.mxu1 %v7623_v18  ;;  %v7711_v17 = vld [vmem:[%s11224_s1 + $0x7a0] ss:$16 sps:$4 sm:$0xff]   ;;  %v7714_v18 = vld [vmem:[%s11224_s1 + $0x7a8] ss:$16 sps:$4 sm:$0xff]  }
  0xbc   :  { %5057 = vmatprep.subr.bf16.mxu0 %v7628_v19  ;;  %5590 = vmatprep.subr.bf16.mxu1 %v7631_v20  ;;  %v7719_v19 = vld [vmem:[%s11224_s1 + $0x7c4] ss:$16 sps:$4 sm:$0xff]   ;;  %v7722_v20 = vld [vmem:[%s11224_s1 + $0x7cc] ss:$16 sps:$4 sm:$0xff]  }
  0xbf   :  { %5058 = vmatpush1.bf16.msra.mxu0 %v7626_v21  ;;  %5591 = vmatpush1.bf16.msra.mxu1 %v7629_v22  ;;  %v9407_v21 = vld.sshfl [vmem:[%s11223_s0 + $0x8] sm:$0xff pattern:$0x75316420]  ;;  %v7717_v22 = vld [vmem:[%s11224_s1 + $0x7c0] ss:$16 sps:$4 sm:$0xff]  }
  0xc0   :  { %5068 = vmatprep.subr.bf16.mxu0 %v7635_v23  ;;  %5601 = vmatprep.subr.bf16.mxu1 %v7638_v24  ;;  %v7720_v23 = vld [vmem:[%s11224_s1 + $0x7c8] ss:$16 sps:$4 sm:$0xff]   ;;  %v7725_v24 = vld [vmem:[%s11224_s1 + $0x7e4] ss:$16 sps:$4 sm:$0xff]  }
  0xc2   :  { %5060 = vmatmul.mubr.bf16.vlgmr.msra.gmra.mrb[0].mxu0 %v9233_v26  ;;  %5593 = vmatmul.mubr.bf16.vlgmr.msra.gmra.mrb[0].mxu1 %v9233_v26 }
  0xc3   :  { %5069 = vmatpush1.bf16.msra.mxu0 %v7633_v13  ;;  %5602 = vmatpush1.bf16.msra.mxu1 %v7636_v27  ;;  %v7728_v13 = vld [vmem:[%s11224_s1 + $0x7ec] ss:$16 sps:$4 sm:$0xff]   ;;  %v7723_v27 = vld [vmem:[%s11224_s1 + $0x7e0] ss:$16 sps:$4 sm:$0xff]  }
  0xc4   :  { %5070 = vmatprep.subr.bf16.mxu0 %v7641_v28  ;;  %5603 = vmatprep.subr.bf16.mxu1 %v7644_v29  ;;  %v7726_v28 = vld [vmem:[%s11224_s1 + $0x7e8] ss:$16 sps:$4 sm:$0xff]   ;;  %v7731_v29 = vld [vmem:[%s11224_s1 + $0x804] ss:$16 sps:$4 sm:$0xff]  }
  0xc5   :  { %5100 = vmatprep.mubr.bf16.mxu0 %v884_v14  ;;  %5633 = vmatprep.mubr.bf16.mxu1 %v884_v14  ;;  %v7734_v14 = vld [vmem:[%s11224_s1 + $0x80c] ss:$16 sps:$4 sm:$0xff]  }
  0xc7   :  { %5071 = vmatpush1.bf16.msra.mxu0 %v7639_v30  ;;  %5604 = vmatpush1.bf16.msra.mxu1 %v7642_v31  ;;  %v900_v30 = vcombine.high %v9407_v21, %v9407_v21  ;;  %v882_v31 = vcombine.high %v9233_v26, %v9233_v26  ;;  %v7740_v26 = vld [vmem:[%s11224_s1 + $0x82c] ss:$16 sps:$4 sm:$0xff]  }
  0xc8   :  { %5072 = vmatprep.subr.bf16.mxu0 %v7647_v25  ;;  %5605 = vmatprep.subr.bf16.mxu1 %v7650_v32  ;;  %v7729_v25 = vld [vmem:[%s11224_s1 + $0x800] ss:$16 sps:$4 sm:$0xff]   ;;  %v7732_v32 = vld [vmem:[%s11224_s1 + $0x808] ss:$16 sps:$4 sm:$0xff]  }
  0xcb   :  { %5073 = vmatpush1.bf16.msra.mxu0 %v7645_v33  ;;  %5606 = vmatpush1.bf16.msra.mxu1 %v7648_v34  ;;  %v7737_v33 = vld [vmem:[%s11224_s1 + $0x824] ss:$16 sps:$4 sm:$0xff]   ;;  %v9450_v34 = vrot.slane %v900_v30, %v8749_v49 }
  0xcc   :  { %5074 = vmatprep.subr.bf16.mxu0 %v7653_v35  ;;  %5607 = vmatprep.subr.bf16.mxu1 %v7656_v36  ;;  %v7735_v35 = vld [vmem:[%s11224_s1 + $0x820] ss:$16 sps:$4 sm:$0xff]   ;;  %v7738_v36 = vld [vmem:[%s11224_s1 + $0x828] ss:$16 sps:$4 sm:$0xff]   ;;  %v7821_v30 = vld [vmem:[%s11224_s1 + $0x9e4] ss:$16 sps:$4 sm:$0xff]  }
  0xcf   :  { %5075 = vmatpush1.bf16.msra.mxu0 %v7651_v37  ;;  %5608 = vmatpush1.bf16.msra.mxu1 %v7654_v38  ;;  %v7743_v37 = vld [vmem:[%s11224_s1 + $0x844] ss:$16 sps:$4 sm:$0xff]   ;;  %v7746_v38 = vld [vmem:[%s11224_s1 + $0x84c] ss:$16 sps:$4 sm:$0xff]  }
  0xd0   :  { %5076 = vmatprep.subr.bf16.mxu0 %v7659_v39  ;;  %5609 = vmatprep.subr.bf16.mxu1 %v7662_v40  ;;  %v7741_v39 = vld [vmem:[%s11224_s1 + $0x840] ss:$16 sps:$4 sm:$0xff]   ;;  %v7744_v40 = vld [vmem:[%s11224_s1 + $0x848] ss:$16 sps:$4 sm:$0xff]  }
  0xd3   :  { %5077 = vmatpush1.bf16.msra.mxu0 %v7657_v41  ;;  %5610 = vmatpush1.bf16.msra.mxu1 %v7660_v43  ;;  %v7749_v41 = vld [vmem:[%s11224_s1 + $0x864] ss:$16 sps:$4 sm:$0xff]   ;;  %v7752_v43 = vld [vmem:[%s11224_s1 + $0x86c] ss:$16 sps:$4 sm:$0xff]  }
  0xd4   :  { %5078 = vmatprep.subr.bf16.mxu0 %v7665_v44  ;;  %5611 = vmatprep.subr.bf16.mxu1 %v7668_v45  ;;  %v7747_v44 = vld [vmem:[%s11224_s1 + $0x860] ss:$16 sps:$4 sm:$0xff]   ;;  %v7750_v45 = vld [vmem:[%s11224_s1 + $0x868] ss:$16 sps:$4 sm:$0xff]  }
  0xd7   :  { %5079 = vmatpush1.bf16.msra.mxu0 %v7663_v46  ;;  %5612 = vmatpush1.bf16.msra.mxu1 %v7666_v47  ;;  %v7755_v46 = vld [vmem:[%s11224_s1 + $0x884] ss:$16 sps:$4 sm:$0xff]   ;;  %v7758_v47 = vld [vmem:[%s11224_s1 + $0x88c] ss:$16 sps:$4 sm:$0xff]  }
  0xd8   :  { %5080 = vmatprep.subr.bf16.mxu0 %v7671_v48  ;;  %5613 = vmatprep.subr.bf16.mxu1 %v7674_v50  ;;  %v7753_v48 = vld [vmem:[%s11224_s1 + $0x880] ss:$16 sps:$4 sm:$0xff]   ;;  %v7756_v50 = vld [vmem:[%s11224_s1 + $0x888] ss:$16 sps:$4 sm:$0xff]  }
  0xdb   :  { %5081 = vmatpush1.bf16.msra.mxu0 %v7669_v51  ;;  %5614 = vmatpush1.bf16.msra.mxu1 %v7672_v53  ;;  %v7761_v51 = vld [vmem:[%s11224_s1 + $0x8a4] ss:$16 sps:$4 sm:$0xff]   ;;  %v7764_v53 = vld [vmem:[%s11224_s1 + $0x8ac] ss:$16 sps:$4 sm:$0xff]  }
  0xdc   :  { %5082 = vmatprep.subr.bf16.mxu0 %v7677_v54  ;;  %5615 = vmatprep.subr.bf16.mxu1 %v7680_v55  ;;  %v7759_v54 = vld [vmem:[%s11224_s1 + $0x8a0] ss:$16 sps:$4 sm:$0xff]   ;;  %v7762_v55 = vld [vmem:[%s11224_s1 + $0x8a8] ss:$16 sps:$4 sm:$0xff]  }
  0xdf   :  { %5083 = vmatpush1.bf16.msra.mxu0 %v7675_v56  ;;  %5616 = vmatpush1.bf16.msra.mxu1 %v7678_v57  ;;  %v7767_v56 = vld [vmem:[%s11224_s1 + $0x8c4] ss:$16 sps:$4 sm:$0xff]   ;;  %v7770_v57 = vld [vmem:[%s11224_s1 + $0x8cc] ss:$16 sps:$4 sm:$0xff]  }
  0xe0   :  { %5084 = vmatprep.subr.bf16.mxu0 %v7683_v58  ;;  %5617 = vmatprep.subr.bf16.mxu1 %v7686_v59  ;;  %v7765_v58 = vld [vmem:[%s11224_s1 + $0x8c0] ss:$16 sps:$4 sm:$0xff]   ;;  %v7768_v59 = vld [vmem:[%s11224_s1 + $0x8c8] ss:$16 sps:$4 sm:$0xff]  }
  0xe3   :  { %5085 = vmatpush1.bf16.msra.mxu0 %v7681_v60  ;;  %5618 = vmatpush1.bf16.msra.mxu1 %v7684_v61  ;;  %v7773_v60 = vld [vmem:[%s11224_s1 + $0x8e4] ss:$16 sps:$4 sm:$0xff]   ;;  %v7776_v61 = vld [vmem:[%s11224_s1 + $0x8ec] ss:$16 sps:$4 sm:$0xff]  }
  0xe4   :  { %5086 = vmatprep.subr.bf16.mxu0 %v7689_v62  ;;  %5619 = vmatprep.subr.bf16.mxu1 %v7692_v63  ;;  %v7771_v62 = vld [vmem:[%s11224_s1 + $0x8e0] ss:$16 sps:$4 sm:$0xff]   ;;  %v7774_v63 = vld [vmem:[%s11224_s1 + $0x8e8] ss:$16 sps:$4 sm:$0xff]  }
  0xe7   :  { %5087 = vmatpush1.bf16.msra.mxu0 %v7687_v0  ;;  %5620 = vmatpush1.bf16.msra.mxu1 %v7690_v1  ;;  %v7779_v0 = vld [vmem:[%s11224_s1 + $0x904] ss:$16 sps:$4 sm:$0xff]   ;;  %v7782_v1 = vld [vmem:[%s11224_s1 + $0x90c] ss:$16 sps:$4 sm:$0xff]  }
  0xe8   :  { %5088 = vmatprep.subr.bf16.mxu0 %v7695_v2  ;;  %5621 = vmatprep.subr.bf16.mxu1 %v7698_v3  ;;  %v7777_v2 = vld [vmem:[%s11224_s1 + $0x900] ss:$16 sps:$4 sm:$0xff]   ;;  %v7780_v3 = vld [vmem:[%s11224_s1 + $0x908] ss:$16 sps:$4 sm:$0xff]  }
  0xeb   :  { %5089 = vmatpush1.bf16.msra.mxu0 %v7693_v4  ;;  %5622 = vmatpush1.bf16.msra.mxu1 %v7696_v5  ;;  %v7785_v4 = vld [vmem:[%s11224_s1 + $0x924] ss:$16 sps:$4 sm:$0xff]   ;;  %v7788_v5 = vld [vmem:[%s11224_s1 + $0x92c] ss:$16 sps:$4 sm:$0xff]  }
  0xec   :  { %5090 = vmatprep.subr.bf16.mxu0 %v7701_v6  ;;  %5623 = vmatprep.subr.bf16.mxu1 %v7704_v7  ;;  %v7783_v6 = vld [vmem:[%s11224_s1 + $0x920] ss:$16 sps:$4 sm:$0xff]   ;;  %v7786_v7 = vld [vmem:[%s11224_s1 + $0x928] ss:$16 sps:$4 sm:$0xff]  }
  0xef   :  { %5091 = vmatpush1.bf16.msra.mxu0 %v7699_v8  ;;  %5624 = vmatpush1.bf16.msra.mxu1 %v7702_v9  ;;  %v7791_v8 = vld [vmem:[%s11224_s1 + $0x944] ss:$16 sps:$4 sm:$0xff]   ;;  %v7794_v9 = vld [vmem:[%s11224_s1 + $0x94c] ss:$16 sps:$4 sm:$0xff]  }
  0xf0   :  { %5092 = vmatprep.subr.bf16.mxu0 %v7707_v10  ;;  %5625 = vmatprep.subr.bf16.mxu1 %v7710_v11  ;;  %v7789_v10 = vld [vmem:[%s11224_s1 + $0x940] ss:$16 sps:$4 sm:$0xff]   ;;  %v7792_v11 = vld [vmem:[%s11224_s1 + $0x948] ss:$16 sps:$4 sm:$0xff]  }
  0xf3   :  { %5093 = vmatpush1.bf16.msra.mxu0 %v7705_v12  ;;  %5626 = vmatpush1.bf16.msra.mxu1 %v7708_v52  ;;  %v7797_v12 = vld [vmem:[%s11224_s1 + $0x964] ss:$16 sps:$4 sm:$0xff]   ;;  %v7800_v52 = vld [vmem:[%s11224_s1 + $0x96c] ss:$16 sps:$4 sm:$0xff]  }
  0xf4   :  { %5094 = vmatprep.subr.bf16.mxu0 %v7713_v15  ;;  %5627 = vmatprep.subr.bf16.mxu1 %v7716_v16  ;;  %v7795_v15 = vld [vmem:[%s11224_s1 + $0x960] ss:$16 sps:$4 sm:$0xff]   ;;  %v7798_v16 = vld [vmem:[%s11224_s1 + $0x968] ss:$16 sps:$4 sm:$0xff]  }
  0xf7   :  { %5095 = vmatpush1.bf16.msra.mxu0 %v7711_v17  ;;  %5628 = vmatpush1.bf16.msra.mxu1 %v7714_v18  ;;  %v7803_v17 = vld [vmem:[%s11224_s1 + $0x984] ss:$16 sps:$4 sm:$0xff]   ;;  %v7806_v18 = vld [vmem:[%s11224_s1 + $0x98c] ss:$16 sps:$4 sm:$0xff]  }
  0xf8   :  { %5096 = vmatprep.subr.bf16.mxu0 %v7719_v19  ;;  %5629 = vmatprep.subr.bf16.mxu1 %v7722_v20  ;;  %v7801_v19 = vld [vmem:[%s11224_s1 + $0x980] ss:$16 sps:$4 sm:$0xff]   ;;  %v7804_v20 = vld [vmem:[%s11224_s1 + $0x988] ss:$16 sps:$4 sm:$0xff]  }
  0xfb   :  { %5097 = vmatpush1.bf16.msra.mxu0 %v7717_v22  ;;  %5630 = vmatpush1.bf16.msra.mxu1 %v7720_v23  ;;  %v7809_v22 = vld [vmem:[%s11224_s1 + $0x9a4] ss:$16 sps:$4 sm:$0xff]   ;;  %v7812_v23 = vld [vmem:[%s11224_s1 + $0x9ac] ss:$16 sps:$4 sm:$0xff]  }
  0xfc   :  { %5098 = vmatprep.subr.bf16.mxu0 %v7725_v24  ;;  %5631 = vmatprep.subr.bf16.mxu1 %v7728_v13  ;;  %v7807_v24 = vld [vmem:[%s11224_s1 + $0x9a0] ss:$16 sps:$4 sm:$0xff]   ;;  %v7810_v13 = vld [vmem:[%s11224_s1 + $0x9a8] ss:$16 sps:$4 sm:$0xff]  }
  0xff   :  { %5099 = vmatpush1.bf16.msra.mxu0 %v7723_v27  ;;  %5632 = vmatpush1.bf16.msra.mxu1 %v7726_v28  ;;  %v7815_v27 = vld [vmem:[%s11224_s1 + $0x9c4] ss:$16 sps:$4 sm:$0xff]   ;;  %v7818_v28 = vld [vmem:[%s11224_s1 + $0x9cc] ss:$16 sps:$4 sm:$0xff]  }
 0x100   :  { %5109 = vmatprep.subr.bf16.mxu0 %v7731_v29  ;;  %5642 = vmatprep.subr.bf16.mxu1 %v7734_v14  ;;  %v7813_v29 = vld [vmem:[%s11224_s1 + $0x9c0] ss:$16 sps:$4 sm:$0xff]   ;;  %v7816_v14 = vld [vmem:[%s11224_s1 + $0x9c8] ss:$16 sps:$4 sm:$0xff]  }
 0x102   :  { %5101 = vmatmul.mubr.bf16.vlgmr.msra.gmra.mrb[0].mxu0 %v882_v31  ;;  %5634 = vmatmul.mubr.bf16.vlgmr.msra.gmra.mrb[0].mxu1 %v882_v31  ;;  %v7824_v31 = vld [vmem:[%s11224_s1 + $0x9ec] ss:$16 sps:$4 sm:$0xff]  }
 0x103   :  { %5110 = vmatpush1.bf16.msra.mxu0 %v7729_v25  ;;  %5643 = vmatpush1.bf16.msra.mxu1 %v7732_v32  ;;  %v7819_v25 = vld [vmem:[%s11224_s1 + $0x9e0] ss:$16 sps:$4 sm:$0xff]   ;;  %v7822_v32 = vld [vmem:[%s11224_s1 + $0x9e8] ss:$16 sps:$4 sm:$0xff]  }
 0x104   :  { %5111 = vmatprep.subr.bf16.mxu0 %v7737_v33  ;;  %5644 = vmatprep.subr.bf16.mxu1 %v7740_v26  ;;  %v7827_v33 = vld [vmem:[%s11224_s1 + $0xa04] ss:$16 sps:$4 sm:$0xff]   ;;  %v7830_v26 = vld [vmem:[%s11224_s1 + $0xa0c] ss:$16 sps:$4 sm:$0xff]  }
 0x105   :  { %5141 = vmatprep.mubr.bf16.mxu0 %v9450_v34  ;;  %5674 = vmatprep.mubr.bf16.mxu1 %v9450_v34 }
 0x107   :  { %5112 = vmatpush1.bf16.msra.mxu0 %v7735_v35  ;;  %5645 = vmatpush1.bf16.msra.mxu1 %v7738_v36  ;;  %v9636_v35 = vrot.slane %v9407_v21, %v8749_v49  ;;  %v7825_v36 = vld [vmem:[%s11224_s1 + $0xa00] ss:$16 sps:$4 sm:$0xff]   ;;  %v7836_v21 = vld [vmem:[%s11224_s1 + $0xa2c] ss:$16 sps:$4 sm:$0xff]  }
 0x108   :  { %5113 = vmatprep.subr.bf16.mxu0 %v7743_v37  ;;  %5646 = vmatprep.subr.bf16.mxu1 %v7746_v38  ;;  %v7828_v37 = vld [vmem:[%s11224_s1 + $0xa08] ss:$16 sps:$4 sm:$0xff]   ;;  %v7833_v38 = vld [vmem:[%s11224_s1 + $0xa24] ss:$16 sps:$4 sm:$0xff]  }
 0x10b   :  { %5114 = vmatpush1.bf16.msra.mxu0 %v7741_v39  ;;  %5647 = vmatpush1.bf16.msra.mxu1 %v7744_v40  ;;  %v932_v39 = vcombine.high %v9450_v34, %v9450_v34  ;;  %v7831_v40 = vld [vmem:[%s11224_s1 + $0xa20] ss:$16 sps:$4 sm:$0xff]   ;;  %v7839_v34 = vld [vmem:[%s11224_s1 + $0xa44] ss:$16 sps:$4 sm:$0xff]  }
 0x10c   :  { %5115 = vmatprep.subr.bf16.mxu0 %v7749_v41  ;;  %5648 = vmatprep.subr.bf16.mxu1 %v7752_v43  ;;  %v7834_v41 = vld [vmem:[%s11224_s1 + $0xa28] ss:$16 sps:$4 sm:$0xff]   ;;  %v7842_v43 = vld [vmem:[%s11224_s1 + $0xa4c] ss:$16 sps:$4 sm:$0xff]  }
 0x10f   :  { %5116 = vmatpush1.bf16.msra.mxu0 %v7747_v44  ;;  %5649 = vmatpush1.bf16.msra.mxu1 %v7750_v45  ;;  %v7837_v44 = vld [vmem:[%s11224_s1 + $0xa40] ss:$16 sps:$4 sm:$0xff]   ;;  %v7840_v45 = vld [vmem:[%s11224_s1 + $0xa48] ss:$16 sps:$4 sm:$0xff]  }
 0x110   :  { %5117 = vmatprep.subr.bf16.mxu0 %v7755_v46  ;;  %5650 = vmatprep.subr.bf16.mxu1 %v7758_v47  ;;  %v7845_v46 = vld [vmem:[%s11224_s1 + $0xa64] ss:$16 sps:$4 sm:$0xff]   ;;  %v7848_v47 = vld [vmem:[%s11224_s1 + $0xa6c] ss:$16 sps:$4 sm:$0xff]  }
 0x113   :  { %5118 = vmatpush1.bf16.msra.mxu0 %v7753_v48  ;;  %5651 = vmatpush1.bf16.msra.mxu1 %v7756_v50  ;;  %v7843_v48 = vld [vmem:[%s11224_s1 + $0xa60] ss:$16 sps:$4 sm:$0xff]   ;;  %v7846_v50 = vld [vmem:[%s11224_s1 + $0xa68] ss:$16 sps:$4 sm:$0xff]  }
 0x114   :  { %5119 = vmatprep.subr.bf16.mxu0 %v7761_v51  ;;  %5652 = vmatprep.subr.bf16.mxu1 %v7764_v53  ;;  %v7851_v51 = vld [vmem:[%s11224_s1 + $0xa84] ss:$16 sps:$4 sm:$0xff]   ;;  %v7854_v53 = vld [vmem:[%s11224_s1 + $0xa8c] ss:$16 sps:$4 sm:$0xff]  }
 0x117   :  { %5120 = vmatpush1.bf16.msra.mxu0 %v7759_v54  ;;  %5653 = vmatpush1.bf16.msra.mxu1 %v7762_v55  ;;  %v7849_v54 = vld [vmem:[%s11224_s1 + $0xa80] ss:$16 sps:$4 sm:$0xff]   ;;  %v7852_v55 = vld [vmem:[%s11224_s1 + $0xa88] ss:$16 sps:$4 sm:$0xff]  }
 0x118   :  { %5121 = vmatprep.subr.bf16.mxu0 %v7767_v56  ;;  %5654 = vmatprep.subr.bf16.mxu1 %v7770_v57  ;;  %v7857_v56 = vld [vmem:[%s11224_s1 + $0xaa4] ss:$16 sps:$4 sm:$0xff]   ;;  %v7860_v57 = vld [vmem:[%s11224_s1 + $0xaac] ss:$16 sps:$4 sm:$0xff]  }
 0x11b   :  { %5122 = vmatpush1.bf16.msra.mxu0 %v7765_v58  ;;  %5655 = vmatpush1.bf16.msra.mxu1 %v7768_v59  ;;  %v7855_v58 = vld [vmem:[%s11224_s1 + $0xaa0] ss:$16 sps:$4 sm:$0xff]   ;;  %v7858_v59 = vld [vmem:[%s11224_s1 + $0xaa8] ss:$16 sps:$4 sm:$0xff]  }
 0x11c   :  { %5123 = vmatprep.subr.bf16.mxu0 %v7773_v60  ;;  %5656 = vmatprep.subr.bf16.mxu1 %v7776_v61  ;;  %v7863_v60 = vld [vmem:[%s11224_s1 + $0xac4] ss:$16 sps:$4 sm:$0xff]   ;;  %v7866_v61 = vld [vmem:[%s11224_s1 + $0xacc] ss:$16 sps:$4 sm:$0xff]  }
 0x11f   :  { %5124 = vmatpush1.bf16.msra.mxu0 %v7771_v62  ;;  %5657 = vmatpush1.bf16.msra.mxu1 %v7774_v63  ;;  %v7861_v62 = vld [vmem:[%s11224_s1 + $0xac0] ss:$16 sps:$4 sm:$0xff]   ;;  %v7864_v63 = vld [vmem:[%s11224_s1 + $0xac8] ss:$16 sps:$4 sm:$0xff]  }
 0x120   :  { %5125 = vmatprep.subr.bf16.mxu0 %v7779_v0  ;;  %5658 = vmatprep.subr.bf16.mxu1 %v7782_v1  ;;  %v7869_v0 = vld [vmem:[%s11224_s1 + $0xae4] ss:$16 sps:$4 sm:$0xff]   ;;  %v7872_v1 = vld [vmem:[%s11224_s1 + $0xaec] ss:$16 sps:$4 sm:$0xff]  }
 0x123   :  { %5126 = vmatpush1.bf16.msra.mxu0 %v7777_v2  ;;  %5659 = vmatpush1.bf16.msra.mxu1 %v7780_v3  ;;  %v7867_v2 = vld [vmem:[%s11224_s1 + $0xae0] ss:$16 sps:$4 sm:$0xff]   ;;  %v7870_v3 = vld [vmem:[%s11224_s1 + $0xae8] ss:$16 sps:$4 sm:$0xff]  }
 0x124   :  { %5127 = vmatprep.subr.bf16.mxu0 %v7785_v4  ;;  %5660 = vmatprep.subr.bf16.mxu1 %v7788_v5  ;;  %v7875_v4 = vld [vmem:[%s11224_s1 + $0xb04] ss:$16 sps:$4 sm:$0xff]   ;;  %v7878_v5 = vld [vmem:[%s11224_s1 + $0xb0c] ss:$16 sps:$4 sm:$0xff]  }
 0x127   :  { %5128 = vmatpush1.bf16.msra.mxu0 %v7783_v6  ;;  %5661 = vmatpush1.bf16.msra.mxu1 %v7786_v7  ;;  %v7873_v6 = vld [vmem:[%s11224_s1 + $0xb00] ss:$16 sps:$4 sm:$0xff]   ;;  %v7876_v7 = vld [vmem:[%s11224_s1 + $0xb08] ss:$16 sps:$4 sm:$0xff]  }
 0x128   :  { %5129 = vmatprep.subr.bf16.mxu0 %v7791_v8  ;;  %5662 = vmatprep.subr.bf16.mxu1 %v7794_v9  ;;  %v7881_v8 = vld [vmem:[%s11224_s1 + $0xb24] ss:$16 sps:$4 sm:$0xff]   ;;  %v7884_v9 = vld [vmem:[%s11224_s1 + $0xb2c] ss:$16 sps:$4 sm:$0xff]  }
 0x12b   :  { %5130 = vmatpush1.bf16.msra.mxu0 %v7789_v10  ;;  %5663 = vmatpush1.bf16.msra.mxu1 %v7792_v11  ;;  %v7879_v10 = vld [vmem:[%s11224_s1 + $0xb20] ss:$16 sps:$4 sm:$0xff]   ;;  %v7882_v11 = vld [vmem:[%s11224_s1 + $0xb28] ss:$16 sps:$4 sm:$0xff]  }
 0x12c   :  { %5131 = vmatprep.subr.bf16.mxu0 %v7797_v12  ;;  %5664 = vmatprep.subr.bf16.mxu1 %v7800_v52  ;;  %v7887_v12 = vld [vmem:[%s11224_s1 + $0xb44] ss:$16 sps:$4 sm:$0xff]   ;;  %v7890_v52 = vld [vmem:[%s11224_s1 + $0xb4c] ss:$16 sps:$4 sm:$0xff]  }
 0x12f   :  { %5132 = vmatpush1.bf16.msra.mxu0 %v7795_v15  ;;  %5665 = vmatpush1.bf16.msra.mxu1 %v7798_v16  ;;  %v7885_v15 = vld [vmem:[%s11224_s1 + $0xb40] ss:$16 sps:$4 sm:$0xff]   ;;  %v7888_v16 = vld [vmem:[%s11224_s1 + $0xb48] ss:$16 sps:$4 sm:$0xff]  }
 0x130   :  { %5133 = vmatprep.subr.bf16.mxu0 %v7803_v17  ;;  %5666 = vmatprep.subr.bf16.mxu1 %v7806_v18  ;;  %v7893_v17 = vld [vmem:[%s11224_s1 + $0xb64] ss:$16 sps:$4 sm:$0xff]   ;;  %v7896_v18 = vld [vmem:[%s11224_s1 + $0xb6c] ss:$16 sps:$4 sm:$0xff]  }
 0x133   :  { %5134 = vmatpush1.bf16.msra.mxu0 %v7801_v19  ;;  %5667 = vmatpush1.bf16.msra.mxu1 %v7804_v20  ;;  %v7891_v19 = vld [vmem:[%s11224_s1 + $0xb60] ss:$16 sps:$4 sm:$0xff]   ;;  %v7894_v20 = vld [vmem:[%s11224_s1 + $0xb68] ss:$16 sps:$4 sm:$0xff]  }
 0x134   :  { %5135 = vmatprep.subr.bf16.mxu0 %v7809_v22  ;;  %5668 = vmatprep.subr.bf16.mxu1 %v7812_v23  ;;  %v7899_v22 = vld [vmem:[%s11224_s1 + $0xb84] ss:$16 sps:$4 sm:$0xff]   ;;  %v7902_v23 = vld [vmem:[%s11224_s1 + $0xb8c] ss:$16 sps:$4 sm:$0xff]  }
 0x137   :  { %5136 = vmatpush1.bf16.msra.mxu0 %v7807_v24  ;;  %5669 = vmatpush1.bf16.msra.mxu1 %v7810_v13  ;;  %v7897_v24 = vld [vmem:[%s11224_s1 + $0xb80] ss:$16 sps:$4 sm:$0xff]   ;;  %v7900_v13 = vld [vmem:[%s11224_s1 + $0xb88] ss:$16 sps:$4 sm:$0xff]  }
 0x138   :  { %5137 = vmatprep.subr.bf16.mxu0 %v7815_v27  ;;  %5670 = vmatprep.subr.bf16.mxu1 %v7818_v28  ;;  %v7905_v27 = vld [vmem:[%s11224_s1 + $0xba4] ss:$16 sps:$4 sm:$0xff]   ;;  %v7908_v28 = vld [vmem:[%s11224_s1 + $0xbac] ss:$16 sps:$4 sm:$0xff]  }
 0x13b   :  { %5138 = vmatpush1.bf16.msra.mxu0 %v7813_v29  ;;  %5671 = vmatpush1.bf16.msra.mxu1 %v7816_v14  ;;  %v7903_v29 = vld [vmem:[%s11224_s1 + $0xba0] ss:$16 sps:$4 sm:$0xff]   ;;  %v7906_v14 = vld [vmem:[%s11224_s1 + $0xba8] ss:$16 sps:$4 sm:$0xff]  }
 0x13c   :  { %5139 = vmatprep.subr.bf16.mxu0 %v7821_v30  ;;  %5672 = vmatprep.subr.bf16.mxu1 %v7824_v31  ;;  %v7911_v30 = vld [vmem:[%s11224_s1 + $0xbc4] ss:$16 sps:$4 sm:$0xff]   ;;  %v7914_v31 = vld [vmem:[%s11224_s1 + $0xbcc] ss:$16 sps:$4 sm:$0xff]  }
 0x13f   :  { %5140 = vmatpush1.bf16.msra.mxu0 %v7819_v25  ;;  %5673 = vmatpush1.bf16.msra.mxu1 %v7822_v32  ;;  %v8555_v25 = vld [vmem:[%s11223_s0 + $0x8] sm:$0xff] }
 0x140   :  { %5150 = vmatprep.subr.bf16.mxu0 %v7827_v33  ;;  %5683 = vmatprep.subr.bf16.mxu1 %v7830_v26  ;;  %v885_v32 = vcombine.high %v8555_v25, %v8555_v25  ;;  %v7909_v33 = vld [vmem:[%s11224_s1 + $0xbc0] ss:$16 sps:$4 sm:$0xff]   ;;  %v7912_v26 = vld [vmem:[%s11224_s1 + $0xbc8] ss:$16 sps:$4 sm:$0xff]  }
 0x141   :  { %v7993_v25 = vld [vmem:[%s11224_s1 + $0xd80] ss:$16 sps:$4 sm:$0xff]  }
 0x142   :  { %5142 = vmatmul.mubr.bf16.vlgmr.msra.gmra.mrb[0].mxu0 %v9636_v35  ;;  %5675 = vmatmul.mubr.bf16.vlgmr.msra.gmra.mrb[0].mxu1 %v9636_v35 }
 0x143   :  { %5151 = vmatpush1.bf16.msra.mxu0 %v7825_v36  ;;  %5684 = vmatpush1.bf16.msra.mxu1 %v7828_v37  ;;  %v7917_v36 = vld [vmem:[%s11224_s1 + $0xbe4] ss:$16 sps:$4 sm:$0xff]   ;;  %v7920_v37 = vld [vmem:[%s11224_s1 + $0xbec] ss:$16 sps:$4 sm:$0xff]  }
 0x144   :  { %5152 = vmatprep.subr.bf16.mxu0 %v7833_v38  ;;  %5685 = vmatprep.subr.bf16.mxu1 %v7836_v21  ;;  %v9826_v38 = vrot.slane %v885_v32, %v8749_v49  ;;  %v7915_v21 = vld [vmem:[%s11224_s1 + $0xbe0] ss:$16 sps:$4 sm:$0xff]   ;;  %v7996_v32 = vld [vmem:[%s11224_s1 + $0xd88] ss:$16 sps:$4 sm:$0xff]  }
 0x145   :  { %5182 = vmatprep.mubr.bf16.mxu0 %v932_v39  ;;  %5715 = vmatprep.mubr.bf16.mxu1 %v932_v39  ;;  %v7918_v39 = vld [vmem:[%s11224_s1 + $0xbe8] ss:$16 sps:$4 sm:$0xff]  }
 0x147   :  { %5153 = vmatpush1.bf16.msra.mxu0 %v7831_v40  ;;  %5686 = vmatpush1.bf16.msra.mxu1 %v7834_v41  ;;  %v7923_v40 = vld [vmem:[%s11224_s1 + $0xc04] ss:$16 sps:$4 sm:$0xff]   ;;  %v7926_v41 = vld [vmem:[%s11224_s1 + $0xc0c] ss:$16 sps:$4 sm:$0xff]  }
 0x148   :  { %5154 = vmatprep.subr.bf16.mxu0 %v7839_v34  ;;  %5687 = vmatprep.subr.bf16.mxu1 %v7842_v43  ;;  %v901_v34 = vcombine.high %v9826_v38, %v9826_v38  ;;  %v930_v43 = vcombine.high %v9636_v35, %v9636_v35  ;;  %v7932_v35 = vld [vmem:[%s11224_s1 + $0xc2c] ss:$16 sps:$4 sm:$0xff]  }
 0x14b   :  { %5155 = vmatpush1.bf16.msra.mxu0 %v7837_v44  ;;  %5688 = vmatpush1.bf16.msra.mxu1 %v7840_v45  ;;  %v7921_v44 = vld [vmem:[%s11224_s1 + $0xc00] ss:$16 sps:$4 sm:$0xff]   ;;  %v7924_v45 = vld [vmem:[%s11224_s1 + $0xc08] ss:$16 sps:$4 sm:$0xff]  }
 0x14c   :  { %5156 = vmatprep.subr.bf16.mxu0 %v7845_v46  ;;  %5689 = vmatprep.subr.bf16.mxu1 %v7848_v47  ;;  %v7929_v46 = vld [vmem:[%s11224_s1 + $0xc24] ss:$16 sps:$4 sm:$0xff]   ;;  %v9857_v47 = vrot.slane %v901_v34, %v8749_v49 }
 0x14d   :  { %v8013_v34 = vld [vmem:[%s11224_s1 + $0xde4] ss:$16 sps:$4 sm:$0xff]  }
 0x14f   :  { %5157 = vmatpush1.bf16.msra.mxu0 %v7843_v48  ;;  %5690 = vmatpush1.bf16.msra.mxu1 %v7846_v50  ;;  %v7927_v48 = vld [vmem:[%s11224_s1 + $0xc20] ss:$16 sps:$4 sm:$0xff]   ;;  %v7930_v50 = vld [vmem:[%s11224_s1 + $0xc28] ss:$16 sps:$4 sm:$0xff]  }
 0x150   :  { %5158 = vmatprep.subr.bf16.mxu0 %v7851_v51  ;;  %5691 = vmatprep.subr.bf16.mxu1 %v7854_v53  ;;  %v7935_v51 = vld [vmem:[%s11224_s1 + $0xc44] ss:$16 sps:$4 sm:$0xff]   ;;  %v7938_v53 = vld [vmem:[%s11224_s1 + $0xc4c] ss:$16 sps:$4 sm:$0xff]  }
 0x153   :  { %5159 = vmatpush1.bf16.msra.mxu0 %v7849_v54  ;;  %5692 = vmatpush1.bf16.msra.mxu1 %v7852_v55  ;;  %v7933_v54 = vld [vmem:[%s11224_s1 + $0xc40] ss:$16 sps:$4 sm:$0xff]   ;;  %v7936_v55 = vld [vmem:[%s11224_s1 + $0xc48] ss:$16 sps:$4 sm:$0xff]  }
 0x154   :  { %5160 = vmatprep.subr.bf16.mxu0 %v7857_v56  ;;  %5693 = vmatprep.subr.bf16.mxu1 %v7860_v57  ;;  %v7941_v56 = vld [vmem:[%s11224_s1 + $0xc64] ss:$16 sps:$4 sm:$0xff]   ;;  %v7944_v57 = vld [vmem:[%s11224_s1 + $0xc6c] ss:$16 sps:$4 sm:$0xff]  }
 0x157   :  { %5161 = vmatpush1.bf16.msra.mxu0 %v7855_v58  ;;  %5694 = vmatpush1.bf16.msra.mxu1 %v7858_v59  ;;  %v7939_v58 = vld [vmem:[%s11224_s1 + $0xc60] ss:$16 sps:$4 sm:$0xff]   ;;  %v7942_v59 = vld [vmem:[%s11224_s1 + $0xc68] ss:$16 sps:$4 sm:$0xff]  }
 0x158   :  { %5162 = vmatprep.subr.bf16.mxu0 %v7863_v60  ;;  %5695 = vmatprep.subr.bf16.mxu1 %v7866_v61  ;;  %v7947_v60 = vld [vmem:[%s11224_s1 + $0xc84] ss:$16 sps:$4 sm:$0xff]   ;;  %v7950_v61 = vld [vmem:[%s11224_s1 + $0xc8c] ss:$16 sps:$4 sm:$0xff]  }
 0x15b   :  { %5163 = vmatpush1.bf16.msra.mxu0 %v7861_v62  ;;  %5696 = vmatpush1.bf16.msra.mxu1 %v7864_v63  ;;  %v7945_v62 = vld [vmem:[%s11224_s1 + $0xc80] ss:$16 sps:$4 sm:$0xff]   ;;  %v7948_v63 = vld [vmem:[%s11224_s1 + $0xc88] ss:$16 sps:$4 sm:$0xff]  }
 0x15c   :  { %5164 = vmatprep.subr.bf16.mxu0 %v7869_v0  ;;  %5697 = vmatprep.subr.bf16.mxu1 %v7872_v1  ;;  %v7953_v0 = vld [vmem:[%s11224_s1 + $0xca4] ss:$16 sps:$4 sm:$0xff]   ;;  %v7956_v1 = vld [vmem:[%s11224_s1 + $0xcac] ss:$16 sps:$4 sm:$0xff]  }
 0x15f   :  { %5165 = vmatpush1.bf16.msra.mxu0 %v7867_v2  ;;  %5698 = vmatpush1.bf16.msra.mxu1 %v7870_v3  ;;  %v7951_v2 = vld [vmem:[%s11224_s1 + $0xca0] ss:$16 sps:$4 sm:$0xff]   ;;  %v7954_v3 = vld [vmem:[%s11224_s1 + $0xca8] ss:$16 sps:$4 sm:$0xff]  }
 0x160   :  { %5166 = vmatprep.subr.bf16.mxu0 %v7875_v4  ;;  %5699 = vmatprep.subr.bf16.mxu1 %v7878_v5  ;;  %v7959_v4 = vld [vmem:[%s11224_s1 + $0xcc4] ss:$16 sps:$4 sm:$0xff]   ;;  %v7962_v5 = vld [vmem:[%s11224_s1 + $0xccc] ss:$16 sps:$4 sm:$0xff]  }
 0x163   :  { %5167 = vmatpush1.bf16.msra.mxu0 %v7873_v6  ;;  %5700 = vmatpush1.bf16.msra.mxu1 %v7876_v7  ;;  %v7957_v6 = vld [vmem:[%s11224_s1 + $0xcc0] ss:$16 sps:$4 sm:$0xff]   ;;  %v7960_v7 = vld [vmem:[%s11224_s1 + $0xcc8] ss:$16 sps:$4 sm:$0xff]  }
 0x164   :  { %5168 = vmatprep.subr.bf16.mxu0 %v7881_v8  ;;  %5701 = vmatprep.subr.bf16.mxu1 %v7884_v9  ;;  %v7965_v8 = vld [vmem:[%s11224_s1 + $0xce4] ss:$16 sps:$4 sm:$0xff]   ;;  %v7968_v9 = vld [vmem:[%s11224_s1 + $0xcec] ss:$16 sps:$4 sm:$0xff]  }
 0x167   :  { %5169 = vmatpush1.bf16.msra.mxu0 %v7879_v10  ;;  %5702 = vmatpush1.bf16.msra.mxu1 %v7882_v11  ;;  %v7963_v10 = vld [vmem:[%s11224_s1 + $0xce0] ss:$16 sps:$4 sm:$0xff]   ;;  %v7966_v11 = vld [vmem:[%s11224_s1 + $0xce8] ss:$16 sps:$4 sm:$0xff]  }
 0x168   :  { %5170 = vmatprep.subr.bf16.mxu0 %v7887_v12  ;;  %5703 = vmatprep.subr.bf16.mxu1 %v7890_v52  ;;  %v7971_v12 = vld [vmem:[%s11224_s1 + $0xd04] ss:$16 sps:$4 sm:$0xff]   ;;  %v7974_v52 = vld [vmem:[%s11224_s1 + $0xd0c] ss:$16 sps:$4 sm:$0xff]  }
 0x16b   :  { %5171 = vmatpush1.bf16.msra.mxu0 %v7885_v15  ;;  %5704 = vmatpush1.bf16.msra.mxu1 %v7888_v16  ;;  %v7969_v15 = vld [vmem:[%s11224_s1 + $0xd00] ss:$16 sps:$4 sm:$0xff]   ;;  %v7972_v16 = vld [vmem:[%s11224_s1 + $0xd08] ss:$16 sps:$4 sm:$0xff]  }
 0x16c   :  { %5172 = vmatprep.subr.bf16.mxu0 %v7893_v17  ;;  %5705 = vmatprep.subr.bf16.mxu1 %v7896_v18  ;;  %v7977_v17 = vld [vmem:[%s11224_s1 + $0xd24] ss:$16 sps:$4 sm:$0xff]   ;;  %v7980_v18 = vld [vmem:[%s11224_s1 + $0xd2c] ss:$16 sps:$4 sm:$0xff]  }
 0x16f   :  { %5173 = vmatpush1.bf16.msra.mxu0 %v7891_v19  ;;  %5706 = vmatpush1.bf16.msra.mxu1 %v7894_v20  ;;  %v7975_v19 = vld [vmem:[%s11224_s1 + $0xd20] ss:$16 sps:$4 sm:$0xff]   ;;  %v7978_v20 = vld [vmem:[%s11224_s1 + $0xd28] ss:$16 sps:$4 sm:$0xff]  }
 0x170   :  { %5174 = vmatprep.subr.bf16.mxu0 %v7899_v22  ;;  %5707 = vmatprep.subr.bf16.mxu1 %v7902_v23  ;;  %v7983_v22 = vld [vmem:[%s11224_s1 + $0xd44] ss:$16 sps:$4 sm:$0xff]   ;;  %v7986_v23 = vld [vmem:[%s11224_s1 + $0xd4c] ss:$16 sps:$4 sm:$0xff]  }
 0x173   :  { %5175 = vmatpush1.bf16.msra.mxu0 %v7897_v24  ;;  %5708 = vmatpush1.bf16.msra.mxu1 %v7900_v13  ;;  %v7981_v24 = vld [vmem:[%s11224_s1 + $0xd40] ss:$16 sps:$4 sm:$0xff]   ;;  %v7984_v13 = vld [vmem:[%s11224_s1 + $0xd48] ss:$16 sps:$4 sm:$0xff]  }
 0x174   :  { %5176 = vmatprep.subr.bf16.mxu0 %v7905_v27  ;;  %5709 = vmatprep.subr.bf16.mxu1 %v7908_v28  ;;  %v7989_v27 = vld [vmem:[%s11224_s1 + $0xd64] ss:$16 sps:$4 sm:$0xff]   ;;  %v7992_v28 = vld [vmem:[%s11224_s1 + $0xd6c] ss:$16 sps:$4 sm:$0xff]  }
 0x177   :  { %5177 = vmatpush1.bf16.msra.mxu0 %v7903_v29  ;;  %5710 = vmatpush1.bf16.msra.mxu1 %v7906_v14  ;;  %v7987_v29 = vld [vmem:[%s11224_s1 + $0xd60] ss:$16 sps:$4 sm:$0xff]   ;;  %v7990_v14 = vld [vmem:[%s11224_s1 + $0xd68] ss:$16 sps:$4 sm:$0xff]  }
 0x178   :  { %5178 = vmatprep.subr.bf16.mxu0 %v7911_v30  ;;  %5711 = vmatprep.subr.bf16.mxu1 %v7914_v31  ;;  %v7995_v30 = vld [vmem:[%s11224_s1 + $0xd84] ss:$16 sps:$4 sm:$0xff]   ;;  %v7998_v31 = vld [vmem:[%s11224_s1 + $0xd8c] ss:$16 sps:$4 sm:$0xff]  }
 0x17b   :  { %5179 = vmatpush1.bf16.msra.mxu0 %v7909_v33  ;;  %5712 = vmatpush1.bf16.msra.mxu1 %v7912_v26  ;;  %v8001_v33 = vld [vmem:[%s11224_s1 + $0xda4] ss:$16 sps:$4 sm:$0xff]   ;;  %v8004_v26 = vld [vmem:[%s11224_s1 + $0xdac] ss:$16 sps:$4 sm:$0xff]  }
 0x17c   :  { %5180 = vmatprep.subr.bf16.mxu0 %v7917_v36  ;;  %5713 = vmatprep.subr.bf16.mxu1 %v7920_v37  ;;  %v7999_v36 = vld [vmem:[%s11224_s1 + $0xda0] ss:$16 sps:$4 sm:$0xff]   ;;  %v8002_v37 = vld [vmem:[%s11224_s1 + $0xda8] ss:$16 sps:$4 sm:$0xff]  }
 0x17f   :  { %5181 = vmatpush1.bf16.msra.mxu0 %v7915_v21  ;;  %5714 = vmatpush1.bf16.msra.mxu1 %v7918_v39  ;;  %v8007_v21 = vld [vmem:[%s11224_s1 + $0xdc4] ss:$16 sps:$4 sm:$0xff]   ;;  %v8010_v39 = vld [vmem:[%s11224_s1 + $0xdcc] ss:$16 sps:$4 sm:$0xff]  }
 0x180   :  { %5191 = vmatprep.subr.bf16.mxu0 %v7923_v40  ;;  %5724 = vmatprep.subr.bf16.mxu1 %v7926_v41  ;;  %v8005_v40 = vld [vmem:[%s11224_s1 + $0xdc0] ss:$16 sps:$4 sm:$0xff]   ;;  %v8008_v41 = vld [vmem:[%s11224_s1 + $0xdc8] ss:$16 sps:$4 sm:$0xff]  }
 0x182   :  { %5183 = vmatmul.mubr.bf16.vlgmr.msra.gmra.mrb[0].mxu0 %v930_v43  ;;  %5716 = vmatmul.mubr.bf16.vlgmr.msra.gmra.mrb[0].mxu1 %v930_v43  ;;  %v8016_v43 = vld [vmem:[%s11224_s1 + $0xdec] ss:$16 sps:$4 sm:$0xff]  }
 0x183   :  { %5192 = vmatpush1.bf16.msra.mxu0 %v7921_v44  ;;  %5725 = vmatpush1.bf16.msra.mxu1 %v7924_v45  ;;  %v8011_v44 = vld [vmem:[%s11224_s1 + $0xde0] ss:$16 sps:$4 sm:$0xff]   ;;  %v8014_v45 = vld [vmem:[%s11224_s1 + $0xde8] ss:$16 sps:$4 sm:$0xff]  }
 0x184   :  { %5193 = vmatprep.subr.bf16.mxu0 %v7929_v46  ;;  %5726 = vmatprep.subr.bf16.mxu1 %v7932_v35  ;;  %v8020_v46 = vld [vmem:[%s11224_s1 + $0xe04] ss:$16 sps:$4 sm:$0xff]   ;;  %v8023_v35 = vld [vmem:[%s11224_s1 + $0xe0c] ss:$16 sps:$4 sm:$0xff]  }
 0x185   :  { %5223 = vmatprep.mubr.bf16.mxu0 %v9857_v47  ;;  %5756 = vmatprep.mubr.bf16.mxu1 %v9857_v47 }
 0x187   :  { %5194 = vmatpush1.bf16.msra.mxu0 %v7927_v48  ;;  %5727 = vmatpush1.bf16.msra.mxu1 %v7930_v50  ;;  %v10043_v48 = vrot.slane %v9826_v38, %v8749_v49  ;;  %v8018_v50 = vld [vmem:[%s11224_s1 + $0xe00] ss:$16 sps:$4 sm:$0xff]   ;;  %v8029_v38 = vld [vmem:[%s11224_s1 + $0xe2c] ss:$16 sps:$4 sm:$0xff]  }
 0x188   :  { %5195 = vmatprep.subr.bf16.mxu0 %v7935_v51  ;;  %5728 = vmatprep.subr.bf16.mxu1 %v7938_v53  ;;  %v8021_v51 = vld [vmem:[%s11224_s1 + $0xe08] ss:$16 sps:$4 sm:$0xff]   ;;  %v8026_v53 = vld [vmem:[%s11224_s1 + $0xe24] ss:$16 sps:$4 sm:$0xff]  }
 0x18b   :  { %5196 = vmatpush1.bf16.msra.mxu0 %v7933_v54  ;;  %5729 = vmatpush1.bf16.msra.mxu1 %v7936_v55  ;;  %v933_v54 = vcombine.high %v9857_v47, %v9857_v47  ;;  %v8024_v55 = vld [vmem:[%s11224_s1 + $0xe20] ss:$16 sps:$4 sm:$0xff]   ;;  %v8032_v47 = vld [vmem:[%s11224_s1 + $0xe44] ss:$16 sps:$4 sm:$0xff]  }
 0x18c   :  { %5197 = vmatprep.subr.bf16.mxu0 %v7941_v56  ;;  %5730 = vmatprep.subr.bf16.mxu1 %v7944_v57  ;;  %v8027_v56 = vld [vmem:[%s11224_s1 + $0xe28] ss:$16 sps:$4 sm:$0xff]   ;;  %v8035_v57 = vld [vmem:[%s11224_s1 + $0xe4c] ss:$16 sps:$4 sm:$0xff]  }
 0x18f   :  { %5198 = vmatpush1.bf16.msra.mxu0 %v7939_v58  ;;  %5731 = vmatpush1.bf16.msra.mxu1 %v7942_v59  ;;  %v8030_v58 = vld [vmem:[%s11224_s1 + $0xe40] ss:$16 sps:$4 sm:$0xff]   ;;  %v8033_v59 = vld [vmem:[%s11224_s1 + $0xe48] ss:$16 sps:$4 sm:$0xff]  }
 0x190   :  { %5199 = vmatprep.subr.bf16.mxu0 %v7947_v60  ;;  %5732 = vmatprep.subr.bf16.mxu1 %v7950_v61  ;;  %v8038_v60 = vld [vmem:[%s11224_s1 + $0xe64] ss:$16 sps:$4 sm:$0xff]   ;;  %v8041_v61 = vld [vmem:[%s11224_s1 + $0xe6c] ss:$16 sps:$4 sm:$0xff]  }
 0x193   :  { %5200 = vmatpush1.bf16.msra.mxu0 %v7945_v62  ;;  %5733 = vmatpush1.bf16.msra.mxu1 %v7948_v63  ;;  %v8036_v62 = vld [vmem:[%s11224_s1 + $0xe60] ss:$16 sps:$4 sm:$0xff]   ;;  %v8039_v63 = vld [vmem:[%s11224_s1 + $0xe68] ss:$16 sps:$4 sm:$0xff]  }
 0x194   :  { %5201 = vmatprep.subr.bf16.mxu0 %v7953_v0  ;;  %5734 = vmatprep.subr.bf16.mxu1 %v7956_v1  ;;  %v8044_v0 = vld [vmem:[%s11224_s1 + $0xe84] ss:$16 sps:$4 sm:$0xff]   ;;  %v8047_v1 = vld [vmem:[%s11224_s1 + $0xe8c] ss:$16 sps:$4 sm:$0xff]  }
 0x197   :  { %5202 = vmatpush1.bf16.msra.mxu0 %v7951_v2  ;;  %5735 = vmatpush1.bf16.msra.mxu1 %v7954_v3  ;;  %v8042_v2 = vld [vmem:[%s11224_s1 + $0xe80] ss:$16 sps:$4 sm:$0xff]   ;;  %v8045_v3 = vld [vmem:[%s11224_s1 + $0xe88] ss:$16 sps:$4 sm:$0xff]  }
 0x198   :  { %5203 = vmatprep.subr.bf16.mxu0 %v7959_v4  ;;  %5736 = vmatprep.subr.bf16.mxu1 %v7962_v5  ;;  %v8050_v4 = vld [vmem:[%s11224_s1 + $0xea4] ss:$16 sps:$4 sm:$0xff]   ;;  %v8053_v5 = vld [vmem:[%s11224_s1 + $0xeac] ss:$16 sps:$4 sm:$0xff]  }
 0x19b   :  { %5204 = vmatpush1.bf16.msra.mxu0 %v7957_v6  ;;  %5737 = vmatpush1.bf16.msra.mxu1 %v7960_v7  ;;  %v8048_v6 = vld [vmem:[%s11224_s1 + $0xea0] ss:$16 sps:$4 sm:$0xff]   ;;  %v8051_v7 = vld [vmem:[%s11224_s1 + $0xea8] ss:$16 sps:$4 sm:$0xff]  }
 0x19c   :  { %5205 = vmatprep.subr.bf16.mxu0 %v7965_v8  ;;  %5738 = vmatprep.subr.bf16.mxu1 %v7968_v9  ;;  %v8056_v8 = vld [vmem:[%s11224_s1 + $0xec4] ss:$16 sps:$4 sm:$0xff]   ;;  %v8059_v9 = vld [vmem:[%s11224_s1 + $0xecc] ss:$16 sps:$4 sm:$0xff]  }
 0x19f   :  { %5206 = vmatpush1.bf16.msra.mxu0 %v7963_v10  ;;  %5739 = vmatpush1.bf16.msra.mxu1 %v7966_v11  ;;  %v8054_v10 = vld [vmem:[%s11224_s1 + $0xec0] ss:$16 sps:$4 sm:$0xff]   ;;  %v8057_v11 = vld [vmem:[%s11224_s1 + $0xec8] ss:$16 sps:$4 sm:$0xff]  }
 0x1a0   :  { %5207 = vmatprep.subr.bf16.mxu0 %v7971_v12  ;;  %5740 = vmatprep.subr.bf16.mxu1 %v7974_v52  ;;  %v8062_v12 = vld [vmem:[%s11224_s1 + $0xee4] ss:$16 sps:$4 sm:$0xff]   ;;  %v8065_v52 = vld [vmem:[%s11224_s1 + $0xeec] ss:$16 sps:$4 sm:$0xff]  }
 0x1a3   :  { %5208 = vmatpush1.bf16.msra.mxu0 %v7969_v15  ;;  %5741 = vmatpush1.bf16.msra.mxu1 %v7972_v16  ;;  %v8060_v15 = vld [vmem:[%s11224_s1 + $0xee0] ss:$16 sps:$4 sm:$0xff]   ;;  %v8063_v16 = vld [vmem:[%s11224_s1 + $0xee8] ss:$16 sps:$4 sm:$0xff]  }
 0x1a4   :  { %5209 = vmatprep.subr.bf16.mxu0 %v7977_v17  ;;  %5742 = vmatprep.subr.bf16.mxu1 %v7980_v18  ;;  %v8068_v17 = vld [vmem:[%s11224_s1 + $0xf04] ss:$16 sps:$4 sm:$0xff]   ;;  %v8071_v18 = vld [vmem:[%s11224_s1 + $0xf0c] ss:$16 sps:$4 sm:$0xff]  }
 0x1a7   :  { %5210 = vmatpush1.bf16.msra.mxu0 %v7975_v19  ;;  %5743 = vmatpush1.bf16.msra.mxu1 %v7978_v20  ;;  %v8066_v19 = vld [vmem:[%s11224_s1 + $0xf00] ss:$16 sps:$4 sm:$0xff]   ;;  %v8069_v20 = vld [vmem:[%s11224_s1 + $0xf08] ss:$16 sps:$4 sm:$0xff]  }
 0x1a8   :  { %5211 = vmatprep.subr.bf16.mxu0 %v7983_v22  ;;  %5744 = vmatprep.subr.bf16.mxu1 %v7986_v23  ;;  %v8074_v22 = vld [vmem:[%s11224_s1 + $0xf24] ss:$16 sps:$4 sm:$0xff]   ;;  %v8077_v23 = vld [vmem:[%s11224_s1 + $0xf2c] ss:$16 sps:$4 sm:$0xff]  }
 0x1ab   :  { %5212 = vmatpush1.bf16.msra.mxu0 %v7981_v24  ;;  %5745 = vmatpush1.bf16.msra.mxu1 %v7984_v13  ;;  %v8072_v24 = vld [vmem:[%s11224_s1 + $0xf20] ss:$16 sps:$4 sm:$0xff]   ;;  %v8075_v13 = vld [vmem:[%s11224_s1 + $0xf28] ss:$16 sps:$4 sm:$0xff]  }
 0x1ac   :  { %5213 = vmatprep.subr.bf16.mxu0 %v7989_v27  ;;  %5746 = vmatprep.subr.bf16.mxu1 %v7992_v28  ;;  %v8080_v27 = vld [vmem:[%s11224_s1 + $0xf44] ss:$16 sps:$4 sm:$0xff]   ;;  %v8083_v28 = vld [vmem:[%s11224_s1 + $0xf4c] ss:$16 sps:$4 sm:$0xff]  }
 0x1af   :  { %5214 = vmatpush1.bf16.msra.mxu0 %v7987_v29  ;;  %5747 = vmatpush1.bf16.msra.mxu1 %v7990_v14  ;;  %v8078_v29 = vld [vmem:[%s11224_s1 + $0xf40] ss:$16 sps:$4 sm:$0xff]   ;;  %v8081_v14 = vld [vmem:[%s11224_s1 + $0xf48] ss:$16 sps:$4 sm:$0xff]  }
 0x1b0   :  { %5215 = vmatprep.subr.bf16.mxu0 %v7995_v30  ;;  %5748 = vmatprep.subr.bf16.mxu1 %v7998_v31  ;;  %v8086_v30 = vld [vmem:[%s11224_s1 + $0xf64] ss:$16 sps:$4 sm:$0xff]   ;;  %v8089_v31 = vld [vmem:[%s11224_s1 + $0xf6c] ss:$16 sps:$4 sm:$0xff]  }
 0x1b3   :  { %5216 = vmatpush1.bf16.msra.mxu0 %v7993_v25  ;;  %5749 = vmatpush1.bf16.msra.mxu1 %v7996_v32 }
 0x1b4   :  { %5217 = vmatprep.subr.bf16.mxu0 %v8001_v33  ;;  %5750 = vmatprep.subr.bf16.mxu1 %v8004_v26 }
 0x1b7   :  { %5218 = vmatpush1.bf16.msra.mxu0 %v7999_v36  ;;  %5751 = vmatpush1.bf16.msra.mxu1 %v8002_v37 }
 0x1b8   :  { %5219 = vmatprep.subr.bf16.mxu0 %v8007_v21  ;;  %5752 = vmatprep.subr.bf16.mxu1 %v8010_v39 }
 0x1bb   :  { %5220 = vmatpush1.bf16.msra.mxu0 %v8005_v40  ;;  %5753 = vmatpush1.bf16.msra.mxu1 %v8008_v41 }
 0x1bc   :  { %5221 = vmatprep.subr.bf16.mxu0 %v8013_v34  ;;  %5754 = vmatprep.subr.bf16.mxu1 %v8016_v43 }
 0x1bf   :  { %5222 = vmatpush1.bf16.msra.mxu0 %v8011_v44  ;;  %5755 = vmatpush1.bf16.msra.mxu1 %v8014_v45 }
 0x1c0   :  { %5232 = vmatprep.subr.bf16.mxu0 %v8020_v46  ;;  %5765 = vmatprep.subr.bf16.mxu1 %v8023_v35 }
 0x1c2   :  { %5224 = vmatmul.mubr.bf16.vlgmr.msra.gmra.mrb[0].mxu0 %v10043_v48  ;;  %5757 = vmatmul.mubr.bf16.vlgmr.msra.gmra.mrb[0].mxu1 %v10043_v48 }
 0x1c3   :  { %5233 = vmatpush1.bf16.msra.mxu0 %v8018_v50  ;;  %5766 = vmatpush1.bf16.msra.mxu1 %v8021_v51 }
 0x1c4   :  { %5234 = vmatprep.subr.bf16.mxu0 %v8026_v53  ;;  %5767 = vmatprep.subr.bf16.mxu1 %v8029_v38 }
 0x1c5   :  { %5264 = vmatprep.mubr.bf16.mxu0 %v933_v54  ;;  %5797 = vmatprep.mubr.bf16.mxu1 %v933_v54 }
 0x1c7   :  { %5235 = vmatpush1.bf16.msra.mxu0 %v8024_v55  ;;  %5768 = vmatpush1.bf16.msra.mxu1 %v8027_v56 }
 0x1c8   :  { %5236 = vmatprep.subr.bf16.mxu0 %v8032_v47  ;;  %5769 = vmatprep.subr.bf16.mxu1 %v8035_v57 }
 0x1cb   :  { %5237 = vmatpush1.bf16.msra.mxu0 %v8030_v58  ;;  %5770 = vmatpush1.bf16.msra.mxu1 %v8033_v59 }
 0x1cc   :  { %5238 = vmatprep.subr.bf16.mxu0 %v8038_v60  ;;  %5771 = vmatprep.subr.bf16.mxu1 %v8041_v61 }
 0x1cf   :  { %5239 = vmatpush1.bf16.msra.mxu0 %v8036_v62  ;;  %5772 = vmatpush1.bf16.msra.mxu1 %v8039_v63 }
 0x1d0   :  { %5240 = vmatprep.subr.bf16.mxu0 %v8044_v0  ;;  %5773 = vmatprep.subr.bf16.mxu1 %v8047_v1 }
 0x1d3   :  { %5241 = vmatpush1.bf16.msra.mxu0 %v8042_v2  ;;  %5774 = vmatpush1.bf16.msra.mxu1 %v8045_v3 }
 0x1d4   :  { %5242 = vmatprep.subr.bf16.mxu0 %v8050_v4  ;;  %5775 = vmatprep.subr.bf16.mxu1 %v8053_v5 }
 0x1d7   :  { %5243 = vmatpush1.bf16.msra.mxu0 %v8048_v6  ;;  %5776 = vmatpush1.bf16.msra.mxu1 %v8051_v7 }
 0x1d8   :  { %5244 = vmatprep.subr.bf16.mxu0 %v8056_v8  ;;  %5777 = vmatprep.subr.bf16.mxu1 %v8059_v9 }
 0x1db   :  { %5245 = vmatpush1.bf16.msra.mxu0 %v8054_v10  ;;  %5778 = vmatpush1.bf16.msra.mxu1 %v8057_v11 }
 0x1dc   :  { %5246 = vmatprep.subr.bf16.mxu0 %v8062_v12  ;;  %5779 = vmatprep.subr.bf16.mxu1 %v8065_v52 }
 0x1df   :  { %5247 = vmatpush1.bf16.msra.mxu0 %v8060_v15  ;;  %5780 = vmatpush1.bf16.msra.mxu1 %v8063_v16 }
 0x1e0   :  { %5248 = vmatprep.subr.bf16.mxu0 %v8068_v17  ;;  %5781 = vmatprep.subr.bf16.mxu1 %v8071_v18 }
 0x1e3   :  { %5249 = vmatpush1.bf16.msra.mxu0 %v8066_v19  ;;  %5782 = vmatpush1.bf16.msra.mxu1 %v8069_v20 }
 0x1e4   :  { %5250 = vmatprep.subr.bf16.mxu0 %v8074_v22  ;;  %5783 = vmatprep.subr.bf16.mxu1 %v8077_v23 }
 0x1e7   :  { %5251 = vmatpush1.bf16.msra.mxu0 %v8072_v24  ;;  %5784 = vmatpush1.bf16.msra.mxu1 %v8075_v13 }
 0x1e8   :  { %5252 = vmatprep.subr.bf16.mxu0 %v8080_v27  ;;  %5785 = vmatprep.subr.bf16.mxu1 %v8083_v28 }
 0x1e9   :  { %10 = vsyncpa [#allocation3], 0  ;;  %v8084_v25 = vld [vmem:[%s11224_s1 + $0xf60] ss:$16 sps:$4 sm:$0xff]   ;;  %v8087_v32 = vld [vmem:[%s11224_s1 + $0xf68] ss:$16 sps:$4 sm:$0xff]   ;;  %v931_v47 = vcombine.high %v10043_v48, %v10043_v48 }
 0x1ea   :  { %v8092_v33 = vld [vmem:[%s11224_s1 + $0xf84] ss:$16 sps:$4 sm:$0xff]   ;;  %v8095_v26 = vld [vmem:[%s11224_s1 + $0xf8c] ss:$16 sps:$4 sm:$0xff]   ;;  %v8090_v36 = vld [vmem:[%s11224_s1 + $0xf80] ss:$16 sps:$4 sm:$0xff]  }
 0x1eb   :  { %5253 = vmatpush1.bf16.msra.mxu0 %v8078_v29  ;;  %5786 = vmatpush1.bf16.msra.mxu1 %v8081_v14  ;;  %v8093_v37 = vld [vmem:[%s11224_s1 + $0xf88] ss:$16 sps:$4 sm:$0xff]   ;;  %v8098_v21 = vld [vmem:[%s11224_s1 + $0xfa4] ss:$16 sps:$4 sm:$0xff]   ;;  %v8101_v39 = vld [vmem:[%s11224_s1 + $0xfac] ss:$16 sps:$4 sm:$0xff]  }
 0x1ec   :  { %5254 = vmatprep.subr.bf16.mxu0 %v8086_v30  ;;  %5787 = vmatprep.subr.bf16.mxu1 %v8089_v31  ;;  %v8096_v40 = vld [vmem:[%s11224_s1 + $0xfa0] ss:$16 sps:$4 sm:$0xff]   ;;  %v8099_v41 = vld [vmem:[%s11224_s1 + $0xfa8] ss:$16 sps:$4 sm:$0xff]   ;;  %v8104_v34 = vld [vmem:[%s11224_s1 + $0xfc4] ss:$16 sps:$4 sm:$0xff]  }
 0x1ed   :  { %v8107_v43 = vld [vmem:[%s11224_s1 + $0xfcc] ss:$16 sps:$4 sm:$0xff]   ;;  %v10220_v44 = vld [vmem:[%s11223_s0 + $0x10] sm:$0xff]  ;;  %v8105_v46 = vld [vmem:[%s11224_s1 + $0xfc8] ss:$16 sps:$4 sm:$0xff]   ;;  %vm4941_vm0 = vcmask 523264  }
 0x1ee   :  { %v8102_v45 = vld [vmem:[%s11224_s1 + $0xfc0] ss:$16 sps:$4 sm:$0xff]   ;;  %v8110_v35 = vld [vmem:[%s11224_s1 + $0xfe4] ss:$16 sps:$4 sm:$0xff]   ;;  %v8113_v50 = vld [vmem:[%s11224_s1 + $0xfec] ss:$16 sps:$4 sm:$0xff]   ;;  %v10236_v51 = vrot.slane %v10220_v44, %v8749_v49 }
 0x1ef   :  { %5255 = vmatpush1.bf16.msra.mxu0 %v8084_v25  ;;  %5788 = vmatpush1.bf16.msra.mxu1 %v8087_v32  ;;  %v8108_v53 = vld [vmem:[%s11224_s1 + $0xfe0] ss:$16 sps:$4 sm:$0xff]   ;;  %v8111_v38 = vld [vmem:[%s11224_s1 + $0xfe8] ss:$16 sps:$4 sm:$0xff]   ;;  %v8116_v54 = vld [vmem:[%s11224_s1 + $0x1004] ss:$16 sps:$4 sm:$0xff]  }
 0x1f0   :  { %5256 = vmatprep.subr.bf16.mxu0 %v8092_v33  ;;  %5789 = vmatprep.subr.bf16.mxu1 %v8095_v26  ;;  %v8119_v55 = vld [vmem:[%s11224_s1 + $0x100c] ss:$16 sps:$4 sm:$0xff]   ;;  %v949_v56 = vcombine.high %v10236_v51, %v10236_v51  ;;  %v8114_v57 = vld [vmem:[%s11224_s1 + $0x1000] ss:$16 sps:$4 sm:$0xff]   ;;  %v8117_v58 = vld [vmem:[%s11224_s1 + $0x1008] ss:$16 sps:$4 sm:$0xff]  }
 0x1f1   :  { %v8122_v59 = vld [vmem:[%s11224_s1 + $0x1024] ss:$16 sps:$4 sm:$0xff]   ;;  %v8125_v48 = vld [vmem:[%s11224_s1 + $0x102c] ss:$16 sps:$4 sm:$0xff]   ;;  %v8120_v61 = vld [vmem:[%s11224_s1 + $0x1020] ss:$16 sps:$4 sm:$0xff]  }
 0x1f2   :  { %v10267_v60 = vrot.slane %v949_v56, %v8749_v49  ;;  %v8123_v62 = vld [vmem:[%s11224_s1 + $0x1028] ss:$16 sps:$4 sm:$0xff]   ;;  %v8128_v63 = vld [vmem:[%s11224_s1 + $0x1044] ss:$16 sps:$4 sm:$0xff]   ;;  %v8131_v0 = vld [vmem:[%s11224_s1 + $0x104c] ss:$16 sps:$4 sm:$0xff]  }
 0x1f3   :  { %5257 = vmatpush1.bf16.msra.mxu0 %v8090_v36  ;;  %5790 = vmatpush1.bf16.msra.mxu1 %v8093_v37  ;;  %v8126_v1 = vld [vmem:[%s11224_s1 + $0x1040] ss:$16 sps:$4 sm:$0xff]   ;;  %v8129_v2 = vld [vmem:[%s11224_s1 + $0x1048] ss:$16 sps:$4 sm:$0xff]   ;;  %v8134_v3 = vld [vmem:[%s11224_s1 + $0x1064] ss:$16 sps:$4 sm:$0xff]  }
 0x1f4   :  { %5258 = vmatprep.subr.bf16.mxu0 %v8098_v21  ;;  %5791 = vmatprep.subr.bf16.mxu1 %v8101_v39  ;;  %v8137_v4 = vld [vmem:[%s11224_s1 + $0x106c] ss:$16 sps:$4 sm:$0xff]   ;;  %v8132_v5 = vld [vmem:[%s11224_s1 + $0x1060] ss:$16 sps:$4 sm:$0xff]   ;;  %v8135_v6 = vld [vmem:[%s11224_s1 + $0x1068] ss:$16 sps:$4 sm:$0xff]  }
 0x1f5   :  { %v8140_v7 = vld [vmem:[%s11224_s1 + $0x1084] ss:$16 sps:$4 sm:$0xff]   ;;  %v8143_v8 = vld [vmem:[%s11224_s1 + $0x108c] ss:$16 sps:$4 sm:$0xff]   ;;  %v8138_v9 = vld [vmem:[%s11224_s1 + $0x1080] ss:$16 sps:$4 sm:$0xff]  }
 0x1f6   :  { %v8141_v10 = vld [vmem:[%s11224_s1 + $0x1088] ss:$16 sps:$4 sm:$0xff]   ;;  %v8146_v11 = vld [vmem:[%s11224_s1 + $0x10a4] ss:$16 sps:$4 sm:$0xff]   ;;  %v8149_v12 = vld [vmem:[%s11224_s1 + $0x10ac] ss:$16 sps:$4 sm:$0xff]  }
 0x1f7   :  { %5259 = vmatpush1.bf16.msra.mxu0 %v8096_v40  ;;  %5792 = vmatpush1.bf16.msra.mxu1 %v8099_v41  ;;  %v8144_v52 = vld [vmem:[%s11224_s1 + $0x10a0] ss:$16 sps:$4 sm:$0xff]   ;;  %v8147_v15 = vld [vmem:[%s11224_s1 + $0x10a8] ss:$16 sps:$4 sm:$0xff]   ;;  %v8152_v16 = vld [vmem:[%s11224_s1 + $0x10c4] ss:$16 sps:$4 sm:$0xff]  }
 0x1f8   :  { %5260 = vmatprep.subr.bf16.mxu0 %v8104_v34  ;;  %5793 = vmatprep.subr.bf16.mxu1 %v8107_v43  ;;  %v8155_v17 = vld [vmem:[%s11224_s1 + $0x10cc] ss:$16 sps:$4 sm:$0xff]   ;;  %v8150_v18 = vld [vmem:[%s11224_s1 + $0x10c0] ss:$16 sps:$4 sm:$0xff]   ;;  %v8153_v19 = vld [vmem:[%s11224_s1 + $0x10c8] ss:$16 sps:$4 sm:$0xff]  }
 0x1f9   :  { %v8158_v20 = vld [vmem:[%s11224_s1 + $0x10e4] ss:$16 sps:$4 sm:$0xff]   ;;  %v8161_v22 = vld [vmem:[%s11224_s1 + $0x10ec] ss:$16 sps:$4 sm:$0xff]   ;;  %v8156_v23 = vld [vmem:[%s11224_s1 + $0x10e0] ss:$16 sps:$4 sm:$0xff]  }
 0x1fa   :  { %v8159_v24 = vld [vmem:[%s11224_s1 + $0x10e8] ss:$16 sps:$4 sm:$0xff]   ;;  %v8164_v13 = vld [vmem:[%s11224_s1 + $0x1104] ss:$16 sps:$4 sm:$0xff]   ;;  %v8167_v27 = vld [vmem:[%s11224_s1 + $0x110c] ss:$16 sps:$4 sm:$0xff]  }
 0x1fb   :  { %5261 = vmatpush1.bf16.msra.mxu0 %v8102_v45  ;;  %5794 = vmatpush1.bf16.msra.mxu1 %v8105_v46  ;;  %v8162_v28 = vld [vmem:[%s11224_s1 + $0x1100] ss:$16 sps:$4 sm:$0xff]   ;;  %v8165_v29 = vld [vmem:[%s11224_s1 + $0x1108] ss:$16 sps:$4 sm:$0xff]   ;;  %v8170_v14 = vld [vmem:[%s11224_s1 + $0x1124] ss:$16 sps:$4 sm:$0xff]  }
 0x1fc   :  { %5262 = vmatprep.subr.bf16.mxu0 %v8110_v35  ;;  %5795 = vmatprep.subr.bf16.mxu1 %v8113_v50  ;;  %v8173_v30 = vld [vmem:[%s11224_s1 + $0x112c] ss:$16 sps:$4 sm:$0xff]   ;;  %v8168_v31 = vld [vmem:[%s11224_s1 + $0x1120] ss:$16 sps:$4 sm:$0xff]   ;;  %v8171_v25 = vld [vmem:[%s11224_s1 + $0x1128] ss:$16 sps:$4 sm:$0xff]  }
 0x1fd   :  { %v8176_v32 = vld [vmem:[%s11224_s1 + $0x1144] ss:$16 sps:$4 sm:$0xff]   ;;  %v8179_v33 = vld [vmem:[%s11224_s1 + $0x114c] ss:$16 sps:$4 sm:$0xff]   ;;  %v8174_v26 = vld [vmem:[%s11224_s1 + $0x1140] ss:$16 sps:$4 sm:$0xff]  }
 0x1fe   :  { %v8177_v36 = vld [vmem:[%s11224_s1 + $0x1148] ss:$16 sps:$4 sm:$0xff]   ;;  %v8182_v37 = vld [vmem:[%s11224_s1 + $0x1164] ss:$16 sps:$4 sm:$0xff]   ;;  %v8185_v21 = vld [vmem:[%s11224_s1 + $0x116c] ss:$16 sps:$4 sm:$0xff]  }
 0x1ff   :  { %5263 = vmatpush1.bf16.msra.mxu0 %v8108_v53  ;;  %5796 = vmatpush1.bf16.msra.mxu1 %v8111_v38  ;;  %v8180_v39 = vld [vmem:[%s11224_s1 + $0x1160] ss:$16 sps:$4 sm:$0xff]   ;;  %v8183_v40 = vld [vmem:[%s11224_s1 + $0x1168] ss:$16 sps:$4 sm:$0xff]   ;;  %v8188_v41 = vld [vmem:[%s11224_s1 + $0x1184] ss:$16 sps:$4 sm:$0xff]  }
 0x200   :  { %5273 = vmatprep.subr.bf16.mxu0 %v8116_v54  ;;  %5806 = vmatprep.subr.bf16.mxu1 %v8119_v55  ;;  %v8191_v34 = vld [vmem:[%s11224_s1 + $0x118c] ss:$16 sps:$4 sm:$0xff]   ;;  %v8186_v43 = vld [vmem:[%s11224_s1 + $0x1180] ss:$16 sps:$4 sm:$0xff]   ;;  %v8189_v45 = vld [vmem:[%s11224_s1 + $0x1188] ss:$16 sps:$4 sm:$0xff]  }
 0x201   :  { %v8194_v46 = vld [vmem:[%s11224_s1 + $0x11a4] ss:$16 sps:$4 sm:$0xff]   ;;  %v8197_v35 = vld [vmem:[%s11224_s1 + $0x11ac] ss:$16 sps:$4 sm:$0xff]   ;;  %v8192_v50 = vld [vmem:[%s11224_s1 + $0x11a0] ss:$16 sps:$4 sm:$0xff]  }
 0x202   :  { %5265 = vmatmul.mubr.bf16.vlgmr.msra.gmra.mrb[0].mxu0 %v931_v47  ;;  %5798 = vmatmul.mubr.bf16.vlgmr.msra.gmra.mrb[0].mxu1 %v931_v47  ;;  %v8195_v53 = vld [vmem:[%s11224_s1 + $0x11a8] ss:$16 sps:$4 sm:$0xff]   ;;  %v8200_v38 = vld [vmem:[%s11224_s1 + $0x11c4] ss:$16 sps:$4 sm:$0xff]   ;;  %v8203_v54 = vld [vmem:[%s11224_s1 + $0x11cc] ss:$16 sps:$4 sm:$0xff]  }
 0x203   :  { %5274 = vmatpush1.bf16.msra.mxu0 %v8114_v57  ;;  %5807 = vmatpush1.bf16.msra.mxu1 %v8117_v58  ;;  %v8198_v55 = vld [vmem:[%s11224_s1 + $0x11c0] ss:$16 sps:$4 sm:$0xff]   ;;  %v8201_v56 = vld [vmem:[%s11224_s1 + $0x11c8] ss:$16 sps:$4 sm:$0xff]   ;;  %v8206_v47 = vld [vmem:[%s11224_s1 + $0x11e4] ss:$16 sps:$4 sm:$0xff]  }
 0x204   :  { %5275 = vmatprep.subr.bf16.mxu0 %v8122_v59  ;;  %5808 = vmatprep.subr.bf16.mxu1 %v8125_v48  ;;  %v8209_v57 = vld [vmem:[%s11224_s1 + $0x11ec] ss:$16 sps:$4 sm:$0xff]   ;;  %v8204_v58 = vld [vmem:[%s11224_s1 + $0x11e0] ss:$16 sps:$4 sm:$0xff]   ;;  %v8207_v59 = vld [vmem:[%s11224_s1 + $0x11e8] ss:$16 sps:$4 sm:$0xff]  }
 0x205   :  { %5305 = vmatprep.mubr.bf16.mxu0 %v10267_v60  ;;  %5838 = vmatprep.mubr.bf16.mxu1 %v10267_v60  ;;  %v8212_v48 = vld [vmem:[%s11224_s1 + $0x1204] ss:$16 sps:$4 sm:$0xff]   ;;  %s8583_s6 = smov [#allocation2]  }
 0x206   :  { %s6369_s7 = sshll.u32 %s8583_s6, 4  ;;  %s6370_s7 = int_to_ptr.vmem [resolvable:$true] %s6369_s7 }
 0x207   :  { %5276 = vmatpush1.bf16.msra.mxu0 %v8120_v61  ;;  %5809 = vmatpush1.bf16.msra.mxu1 %v8123_v62  ;;  %v8215_v61 = vld [vmem:[%s11224_s1 + $0x120c] ss:$16 sps:$4 sm:$0xff]   ;;  %v10453_v62 = vrot.slane %v10236_v51, %v8749_v49  ;;  %s8557_s8 = scalar_lea.vmem %s6370_s7, 32  ;;  %p8562_p1 = scmp.lt.s32.totalorder %s6370_s7, %s6370_s7 }
 0x208   :  { %5277 = vmatprep.subr.bf16.mxu0 %v8128_v63  ;;  %5810 = vmatprep.subr.bf16.mxu1 %v8131_v0  ;;  %v8210_v63 = vld [vmem:[%s11224_s1 + $0x1200] ss:$16 sps:$4 sm:$0xff]   ;;  %v8213_v0 = vld [vmem:[%s11224_s1 + $0x1208] ss:$16 sps:$4 sm:$0xff]   ;;  %v8221_v51 = vld [vmem:[%s11224_s1 + $0x122c] ss:$16 sps:$4 sm:$0xff]   ;;  %p8558_p0 = scmp.ne.s32.totalorder %s6370_s7, %s8557_s8  ;;  %p8563_p2 = scmp.lt.s32.totalorder %s8557_s8, %s8557_s8 }
 0x20a   :  { %p8564_p3 = por %p8563_p2, %p8562_p1 }
 0x20b   :  { %5278 = vmatpush1.bf16.msra.mxu0 %v8126_v1  ;;  %5811 = vmatpush1.bf16.msra.mxu1 %v8129_v2  ;;  %v8218_v1 = vld [vmem:[%s11224_s1 + $0x1224] ss:$16 sps:$4 sm:$0xff]   ;;  %v981_v2 = vcombine.high %v10267_v60, %v10267_v60 }
 0x20c   :  { %5279 = vmatprep.subr.bf16.mxu0 %v8134_v3  ;;  %5812 = vmatprep.subr.bf16.mxu1 %v8137_v4  ;;  %v8216_v3 = vld [vmem:[%s11224_s1 + $0x1220] ss:$16 sps:$4 sm:$0xff]   ;;  %v8219_v4 = vld [vmem:[%s11224_s1 + $0x1228] ss:$16 sps:$4 sm:$0xff]   ;;  %v8224_v60 = vld [vmem:[%s11224_s1 + $0x1244] ss:$16 sps:$4 sm:$0xff]   ;;  %p8565_p4 = pnand %p8564_p3, %p8558_p0 }
 0x20f   :  { %5280 = vmatpush1.bf16.msra.mxu0 %v8132_v5  ;;  %5813 = vmatpush1.bf16.msra.mxu1 %v8135_v6  ;;  %v8227_v5 = vld [vmem:[%s11224_s1 + $0x124c] ss:$16 sps:$4 sm:$0xff]   ;;  %v8222_v6 = vld [vmem:[%s11224_s1 + $0x1240] ss:$16 sps:$4 sm:$0xff]  }
 0x210   :  { %5281 = vmatprep.subr.bf16.mxu0 %v8140_v7  ;;  %5814 = vmatprep.subr.bf16.mxu1 %v8143_v8  ;;  %v8225_v7 = vld [vmem:[%s11224_s1 + $0x1248] ss:$16 sps:$4 sm:$0xff]   ;;  %v8230_v8 = vld [vmem:[%s11224_s1 + $0x1264] ss:$16 sps:$4 sm:$0xff]  }
 0x213   :  { %5282 = vmatpush1.bf16.msra.mxu0 %v8138_v9  ;;  %5815 = vmatpush1.bf16.msra.mxu1 %v8141_v10  ;;  %v8233_v9 = vld [vmem:[%s11224_s1 + $0x126c] ss:$16 sps:$4 sm:$0xff]   ;;  %v8228_v10 = vld [vmem:[%s11224_s1 + $0x1260] ss:$16 sps:$4 sm:$0xff]  }
 0x214   :  { %5283 = vmatprep.subr.bf16.mxu0 %v8146_v11  ;;  %5816 = vmatprep.subr.bf16.mxu1 %v8149_v12  ;;  %v8231_v11 = vld [vmem:[%s11224_s1 + $0x1268] ss:$16 sps:$4 sm:$0xff]   ;;  %v8236_v12 = vld [vmem:[%s11224_s1 + $0x1284] ss:$16 sps:$4 sm:$0xff]  }
 0x217   :  { %5284 = vmatpush1.bf16.msra.mxu0 %v8144_v52  ;;  %5817 = vmatpush1.bf16.msra.mxu1 %v8147_v15  ;;  %v8239_v52 = vld [vmem:[%s11224_s1 + $0x128c] ss:$16 sps:$4 sm:$0xff]   ;;  %v8234_v15 = vld [vmem:[%s11224_s1 + $0x1280] ss:$16 sps:$4 sm:$0xff]  }
 0x218   :  { %5285 = vmatprep.subr.bf16.mxu0 %v8152_v16  ;;  %5818 = vmatprep.subr.bf16.mxu1 %v8155_v17  ;;  %v8237_v16 = vld [vmem:[%s11224_s1 + $0x1288] ss:$16 sps:$4 sm:$0xff]   ;;  %v8242_v17 = vld [vmem:[%s11224_s1 + $0x12a4] ss:$16 sps:$4 sm:$0xff]  }
 0x21b   :  { %5286 = vmatpush1.bf16.msra.mxu0 %v8150_v18  ;;  %5819 = vmatpush1.bf16.msra.mxu1 %v8153_v19  ;;  %v8245_v18 = vld [vmem:[%s11224_s1 + $0x12ac] ss:$16 sps:$4 sm:$0xff]   ;;  %v8240_v19 = vld [vmem:[%s11224_s1 + $0x12a0] ss:$16 sps:$4 sm:$0xff]  }
 0x21c   :  { %5287 = vmatprep.subr.bf16.mxu0 %v8158_v20  ;;  %5820 = vmatprep.subr.bf16.mxu1 %v8161_v22  ;;  %v8243_v20 = vld [vmem:[%s11224_s1 + $0x12a8] ss:$16 sps:$4 sm:$0xff]   ;;  %v8248_v22 = vld [vmem:[%s11224_s1 + $0x12c4] ss:$16 sps:$4 sm:$0xff]  }
 0x21f   :  { %5288 = vmatpush1.bf16.msra.mxu0 %v8156_v23  ;;  %5821 = vmatpush1.bf16.msra.mxu1 %v8159_v24  ;;  %v8251_v23 = vld [vmem:[%s11224_s1 + $0x12cc] ss:$16 sps:$4 sm:$0xff]   ;;  %v8246_v24 = vld [vmem:[%s11224_s1 + $0x12c0] ss:$16 sps:$4 sm:$0xff]  }
 0x220   :  { %5289 = vmatprep.subr.bf16.mxu0 %v8164_v13  ;;  %5822 = vmatprep.subr.bf16.mxu1 %v8167_v27  ;;  %v8249_v13 = vld [vmem:[%s11224_s1 + $0x12c8] ss:$16 sps:$4 sm:$0xff]   ;;  %v8254_v27 = vld [vmem:[%s11224_s1 + $0x12e4] ss:$16 sps:$4 sm:$0xff]  }
 0x223   :  { %5290 = vmatpush1.bf16.msra.mxu0 %v8162_v28  ;;  %5823 = vmatpush1.bf16.msra.mxu1 %v8165_v29  ;;  %v8257_v28 = vld [vmem:[%s11224_s1 + $0x12ec] ss:$16 sps:$4 sm:$0xff]   ;;  %v8252_v29 = vld [vmem:[%s11224_s1 + $0x12e0] ss:$16 sps:$4 sm:$0xff]  }
 0x224   :  { %5291 = vmatprep.subr.bf16.mxu0 %v8170_v14  ;;  %5824 = vmatprep.subr.bf16.mxu1 %v8173_v30  ;;  %v8255_v14 = vld [vmem:[%s11224_s1 + $0x12e8] ss:$16 sps:$4 sm:$0xff]   ;;  %v8260_v30 = vld [vmem:[%s11224_s1 + $0x1304] ss:$16 sps:$4 sm:$0xff]  }
 0x227   :  { %5292 = vmatpush1.bf16.msra.mxu0 %v8168_v31  ;;  %5825 = vmatpush1.bf16.msra.mxu1 %v8171_v25  ;;  %v8263_v31 = vld [vmem:[%s11224_s1 + $0x130c] ss:$16 sps:$4 sm:$0xff]   ;;  %v8258_v25 = vld [vmem:[%s11224_s1 + $0x1300] ss:$16 sps:$4 sm:$0xff]  }
 0x228   :  { %5293 = vmatprep.subr.bf16.mxu0 %v8176_v32  ;;  %5826 = vmatprep.subr.bf16.mxu1 %v8179_v33  ;;  %v8261_v32 = vld [vmem:[%s11224_s1 + $0x1308] ss:$16 sps:$4 sm:$0xff]   ;;  %v8266_v33 = vld [vmem:[%s11224_s1 + $0x1324] ss:$16 sps:$4 sm:$0xff]  }
 0x22b   :  { %5294 = vmatpush1.bf16.msra.mxu0 %v8174_v26  ;;  %5827 = vmatpush1.bf16.msra.mxu1 %v8177_v36  ;;  %v8269_v26 = vld [vmem:[%s11224_s1 + $0x132c] ss:$16 sps:$4 sm:$0xff]   ;;  %v8264_v36 = vld [vmem:[%s11224_s1 + $0x1320] ss:$16 sps:$4 sm:$0xff]  }
 0x22c   :  { %5295 = vmatprep.subr.bf16.mxu0 %v8182_v37  ;;  %5828 = vmatprep.subr.bf16.mxu1 %v8185_v21  ;;  %v8267_v37 = vld [vmem:[%s11224_s1 + $0x1328] ss:$16 sps:$4 sm:$0xff]   ;;  %v8272_v21 = vld [vmem:[%s11224_s1 + $0x1344] ss:$16 sps:$4 sm:$0xff]  }
 0x22f   :  { %5296 = vmatpush1.bf16.msra.mxu0 %v8180_v39  ;;  %5829 = vmatpush1.bf16.msra.mxu1 %v8183_v40  ;;  %v8275_v39 = vld [vmem:[%s11224_s1 + $0x134c] ss:$16 sps:$4 sm:$0xff]   ;;  %v8270_v40 = vld [vmem:[%s11224_s1 + $0x1340] ss:$16 sps:$4 sm:$0xff]  }
 0x230   :  { %5297 = vmatprep.subr.bf16.mxu0 %v8188_v41  ;;  %5830 = vmatprep.subr.bf16.mxu1 %v8191_v34  ;;  %v8273_v41 = vld [vmem:[%s11224_s1 + $0x1348] ss:$16 sps:$4 sm:$0xff]   ;;  %v8278_v34 = vld [vmem:[%s11224_s1 + $0x1364] ss:$16 sps:$4 sm:$0xff]  }
 0x233   :  { %5298 = vmatpush1.bf16.msra.mxu0 %v8186_v43  ;;  %5831 = vmatpush1.bf16.msra.mxu1 %v8189_v45  ;;  %v8281_v43 = vld [vmem:[%s11224_s1 + $0x136c] ss:$16 sps:$4 sm:$0xff]   ;;  %v8276_v45 = vld [vmem:[%s11224_s1 + $0x1360] ss:$16 sps:$4 sm:$0xff]  }
 0x234   :  { %5299 = vmatprep.subr.bf16.mxu0 %v8194_v46  ;;  %5832 = vmatprep.subr.bf16.mxu1 %v8197_v35  ;;  %v8279_v46 = vld [vmem:[%s11224_s1 + $0x1368] ss:$16 sps:$4 sm:$0xff]   ;;  %v8284_v35 = vld [vmem:[%s11224_s1 + $0x1384] ss:$16 sps:$4 sm:$0xff]  }
 0x237   :  { %5300 = vmatpush1.bf16.msra.mxu0 %v8192_v50  ;;  %5833 = vmatpush1.bf16.msra.mxu1 %v8195_v53  ;;  %v8287_v50 = vld [vmem:[%s11224_s1 + $0x138c] ss:$16 sps:$4 sm:$0xff]   ;;  %v8282_v53 = vld [vmem:[%s11224_s1 + $0x1380] ss:$16 sps:$4 sm:$0xff]  }
 0x238   :  { %5301 = vmatprep.subr.bf16.mxu0 %v8200_v38  ;;  %5834 = vmatprep.subr.bf16.mxu1 %v8203_v54  ;;  %v8285_v38 = vld [vmem:[%s11224_s1 + $0x1388] ss:$16 sps:$4 sm:$0xff]   ;;  %v8290_v54 = vld [vmem:[%s11224_s1 + $0x13a4] ss:$16 sps:$4 sm:$0xff]  }
 0x23b   :  { %5302 = vmatpush1.bf16.msra.mxu0 %v8198_v55  ;;  %5835 = vmatpush1.bf16.msra.mxu1 %v8201_v56  ;;  %v8293_v55 = vld [vmem:[%s11224_s1 + $0x13ac] ss:$16 sps:$4 sm:$0xff]   ;;  %v8288_v56 = vld [vmem:[%s11224_s1 + $0x13a0] ss:$16 sps:$4 sm:$0xff]  }
 0x23c   :  { %5303 = vmatprep.subr.bf16.mxu0 %v8206_v47  ;;  %5836 = vmatprep.subr.bf16.mxu1 %v8209_v57  ;;  %v8291_v47 = vld [vmem:[%s11224_s1 + $0x13a8] ss:$16 sps:$4 sm:$0xff]   ;;  %v8296_v57 = vld [vmem:[%s11224_s1 + $0x13c4] ss:$16 sps:$4 sm:$0xff]  }
 0x23f   :  { %5304 = vmatpush1.bf16.msra.mxu0 %v8204_v58  ;;  %5837 = vmatpush1.bf16.msra.mxu1 %v8207_v59  ;;  %v8299_v58 = vld [vmem:[%s11224_s1 + $0x13cc] ss:$16 sps:$4 sm:$0xff]   ;;  %v934_v59 = vcombine.high %v10220_v44, %v10220_v44 }
 0x240   :  { %5314 = vmatprep.subr.bf16.mxu0 %v8212_v48  ;;  %5847 = vmatprep.subr.bf16.mxu1 %v8215_v61  ;;  %v8294_v48 = vld [vmem:[%s11224_s1 + $0x13c0] ss:$16 sps:$4 sm:$0xff]   ;;  %v8297_v61 = vld [vmem:[%s11224_s1 + $0x13c8] ss:$16 sps:$4 sm:$0xff]   ;;  %v8305_v44 = vld [vmem:[%s11224_s1 + $0x13ec] ss:$16 sps:$4 sm:$0xff]  }
 0x242   :  { %5306 = vmatmul.mubr.bf16.vlgmr.msra.gmra.mrb[0].mxu0 %v10453_v62  ;;  %5839 = vmatmul.mubr.bf16.vlgmr.msra.gmra.mrb[0].mxu1 %v10453_v62 }
 0x243   :  { %5315 = vmatpush1.bf16.msra.mxu0 %v8210_v63  ;;  %5848 = vmatpush1.bf16.msra.mxu1 %v8213_v0  ;;  %v8302_v63 = vld [vmem:[%s11224_s1 + $0x13e4] ss:$16 sps:$4 sm:$0xff]   ;;  %v10642_v0 = vrot.slane %v934_v59, %v8749_v49  ;;  %v8381_v59 = vld [vmem:[%s11224_s1 + $0x1588] ss:$16 sps:$4 sm:$0xff]  }
 0x244   :  { %5316 = vmatprep.subr.bf16.mxu0 %v8218_v1  ;;  %5849 = vmatprep.subr.bf16.mxu1 %v8221_v51  ;;  %v8300_v1 = vld [vmem:[%s11224_s1 + $0x13e0] ss:$16 sps:$4 sm:$0xff]   ;;  %v8303_v51 = vld [vmem:[%s11224_s1 + $0x13e8] ss:$16 sps:$4 sm:$0xff]  }
 0x245   :  { %5346 = vmatprep.mubr.bf16.mxu0 %v981_v2  ;;  %5879 = vmatprep.mubr.bf16.mxu1 %v981_v2  ;;  %v8308_v2 = vld [vmem:[%s11224_s1 + $0x1404] ss:$16 sps:$4 sm:$0xff]  }
 0x247   :  { %5317 = vmatpush1.bf16.msra.mxu0 %v8216_v3  ;;  %5850 = vmatpush1.bf16.msra.mxu1 %v8219_v4  ;;  %v8311_v3 = vld [vmem:[%s11224_s1 + $0x140c] ss:$16 sps:$4 sm:$0xff]   ;;  %v950_v4 = vcombine.high %v10642_v0, %v10642_v0 }
 0x248   :  { %5318 = vmatprep.subr.bf16.mxu0 %v8224_v60  ;;  %5851 = vmatprep.subr.bf16.mxu1 %v8227_v5  ;;  %v979_v60 = vcombine.high %v10453_v62, %v10453_v62  ;;  %v8306_v5 = vld [vmem:[%s11224_s1 + $0x1400] ss:$16 sps:$4 sm:$0xff]   ;;  %v8317_v62 = vld [vmem:[%s11224_s1 + $0x142c] ss:$16 sps:$4 sm:$0xff]  }
 0x24b   :  { %5319 = vmatpush1.bf16.msra.mxu0 %v8222_v6  ;;  %5852 = vmatpush1.bf16.msra.mxu1 %v8225_v7  ;;  %v8309_v6 = vld [vmem:[%s11224_s1 + $0x1408] ss:$16 sps:$4 sm:$0xff]   ;;  %v8314_v7 = vld [vmem:[%s11224_s1 + $0x1424] ss:$16 sps:$4 sm:$0xff]  }
 0x24c   :  { %5320 = vmatprep.subr.bf16.mxu0 %v8230_v8  ;;  %5853 = vmatprep.subr.bf16.mxu1 %v8233_v9  ;;  %v10673_v8 = vrot.slane %v950_v4, %v8749_v49  ;;  %v8312_v9 = vld [vmem:[%s11224_s1 + $0x1420] ss:$16 sps:$4 sm:$0xff]   ;;  %v8398_v4 = vld [vmem:[%s11224_s1 + $0x15e4] ss:$16 sps:$4 sm:$0xff]  }
 0x24f   :  { %5321 = vmatpush1.bf16.msra.mxu0 %v8228_v10  ;;  %5854 = vmatpush1.bf16.msra.mxu1 %v8231_v11  ;;  %v8315_v10 = vld [vmem:[%s11224_s1 + $0x1428] ss:$16 sps:$4 sm:$0xff]   ;;  %v8320_v11 = vld [vmem:[%s11224_s1 + $0x1444] ss:$16 sps:$4 sm:$0xff]  }
 0x250   :  { %5322 = vmatprep.subr.bf16.mxu0 %v8236_v12  ;;  %5855 = vmatprep.subr.bf16.mxu1 %v8239_v52  ;;  %v8323_v12 = vld [vmem:[%s11224_s1 + $0x144c] ss:$16 sps:$4 sm:$0xff]   ;;  %v8318_v52 = vld [vmem:[%s11224_s1 + $0x1440] ss:$16 sps:$4 sm:$0xff]  }
 0x253   :  { %5323 = vmatpush1.bf16.msra.mxu0 %v8234_v15  ;;  %5856 = vmatpush1.bf16.msra.mxu1 %v8237_v16  ;;  %v8321_v15 = vld [vmem:[%s11224_s1 + $0x1448] ss:$16 sps:$4 sm:$0xff]   ;;  %v8326_v16 = vld [vmem:[%s11224_s1 + $0x1464] ss:$16 sps:$4 sm:$0xff]  }
 0x254   :  { %5324 = vmatprep.subr.bf16.mxu0 %v8242_v17  ;;  %5857 = vmatprep.subr.bf16.mxu1 %v8245_v18  ;;  %v8329_v17 = vld [vmem:[%s11224_s1 + $0x146c] ss:$16 sps:$4 sm:$0xff]   ;;  %v8324_v18 = vld [vmem:[%s11224_s1 + $0x1460] ss:$16 sps:$4 sm:$0xff]  }
 0x257   :  { %5325 = vmatpush1.bf16.msra.mxu0 %v8240_v19  ;;  %5858 = vmatpush1.bf16.msra.mxu1 %v8243_v20  ;;  %v8327_v19 = vld [vmem:[%s11224_s1 + $0x1468] ss:$16 sps:$4 sm:$0xff]   ;;  %v8332_v20 = vld [vmem:[%s11224_s1 + $0x1484] ss:$16 sps:$4 sm:$0xff]  }
 0x258   :  { %5326 = vmatprep.subr.bf16.mxu0 %v8248_v22  ;;  %5859 = vmatprep.subr.bf16.mxu1 %v8251_v23  ;;  %v8335_v22 = vld [vmem:[%s11224_s1 + $0x148c] ss:$16 sps:$4 sm:$0xff]   ;;  %v8330_v23 = vld [vmem:[%s11224_s1 + $0x1480] ss:$16 sps:$4 sm:$0xff]  }
 0x25b   :  { %5327 = vmatpush1.bf16.msra.mxu0 %v8246_v24  ;;  %5860 = vmatpush1.bf16.msra.mxu1 %v8249_v13  ;;  %v8333_v24 = vld [vmem:[%s11224_s1 + $0x1488] ss:$16 sps:$4 sm:$0xff]   ;;  %v8338_v13 = vld [vmem:[%s11224_s1 + $0x14a4] ss:$16 sps:$4 sm:$0xff]  }
 0x25c   :  { %5328 = vmatprep.subr.bf16.mxu0 %v8254_v27  ;;  %5861 = vmatprep.subr.bf16.mxu1 %v8257_v28  ;;  %v8341_v27 = vld [vmem:[%s11224_s1 + $0x14ac] ss:$16 sps:$4 sm:$0xff]   ;;  %v8336_v28 = vld [vmem:[%s11224_s1 + $0x14a0] ss:$16 sps:$4 sm:$0xff]  }
 0x25f   :  { %5329 = vmatpush1.bf16.msra.mxu0 %v8252_v29  ;;  %5862 = vmatpush1.bf16.msra.mxu1 %v8255_v14  ;;  %v8339_v29 = vld [vmem:[%s11224_s1 + $0x14a8] ss:$16 sps:$4 sm:$0xff]   ;;  %v8344_v14 = vld [vmem:[%s11224_s1 + $0x14c4] ss:$16 sps:$4 sm:$0xff]  }
 0x260   :  { %5330 = vmatprep.subr.bf16.mxu0 %v8260_v30  ;;  %5863 = vmatprep.subr.bf16.mxu1 %v8263_v31  ;;  %v8347_v30 = vld [vmem:[%s11224_s1 + $0x14cc] ss:$16 sps:$4 sm:$0xff]   ;;  %v8342_v31 = vld [vmem:[%s11224_s1 + $0x14c0] ss:$16 sps:$4 sm:$0xff]  }
 0x263   :  { %5331 = vmatpush1.bf16.msra.mxu0 %v8258_v25  ;;  %5864 = vmatpush1.bf16.msra.mxu1 %v8261_v32  ;;  %v8345_v25 = vld [vmem:[%s11224_s1 + $0x14c8] ss:$16 sps:$4 sm:$0xff]   ;;  %v8350_v32 = vld [vmem:[%s11224_s1 + $0x14e4] ss:$16 sps:$4 sm:$0xff]  }
 0x264   :  { %5332 = vmatprep.subr.bf16.mxu0 %v8266_v33  ;;  %5865 = vmatprep.subr.bf16.mxu1 %v8269_v26  ;;  %v8353_v33 = vld [vmem:[%s11224_s1 + $0x14ec] ss:$16 sps:$4 sm:$0xff]   ;;  %v8348_v26 = vld [vmem:[%s11224_s1 + $0x14e0] ss:$16 sps:$4 sm:$0xff]  }
 0x267   :  { %5333 = vmatpush1.bf16.msra.mxu0 %v8264_v36  ;;  %5866 = vmatpush1.bf16.msra.mxu1 %v8267_v37  ;;  %v8351_v36 = vld [vmem:[%s11224_s1 + $0x14e8] ss:$16 sps:$4 sm:$0xff]   ;;  %v8356_v37 = vld [vmem:[%s11224_s1 + $0x1504] ss:$16 sps:$4 sm:$0xff]  }
 0x268   :  { %5334 = vmatprep.subr.bf16.mxu0 %v8272_v21  ;;  %5867 = vmatprep.subr.bf16.mxu1 %v8275_v39  ;;  %v8359_v21 = vld [vmem:[%s11224_s1 + $0x150c] ss:$16 sps:$4 sm:$0xff]   ;;  %v8354_v39 = vld [vmem:[%s11224_s1 + $0x1500] ss:$16 sps:$4 sm:$0xff]  }
 0x26b   :  { %5335 = vmatpush1.bf16.msra.mxu0 %v8270_v40  ;;  %5868 = vmatpush1.bf16.msra.mxu1 %v8273_v41  ;;  %v8357_v40 = vld [vmem:[%s11224_s1 + $0x1508] ss:$16 sps:$4 sm:$0xff]   ;;  %v8362_v41 = vld [vmem:[%s11224_s1 + $0x1524] ss:$16 sps:$4 sm:$0xff]  }
 0x26c   :  { %5336 = vmatprep.subr.bf16.mxu0 %v8278_v34  ;;  %5869 = vmatprep.subr.bf16.mxu1 %v8281_v43  ;;  %v8365_v34 = vld [vmem:[%s11224_s1 + $0x152c] ss:$16 sps:$4 sm:$0xff]   ;;  %v8360_v43 = vld [vmem:[%s11224_s1 + $0x1520] ss:$16 sps:$4 sm:$0xff]  }
 0x26f   :  { %5337 = vmatpush1.bf16.msra.mxu0 %v8276_v45  ;;  %5870 = vmatpush1.bf16.msra.mxu1 %v8279_v46  ;;  %v8363_v45 = vld [vmem:[%s11224_s1 + $0x1528] ss:$16 sps:$4 sm:$0xff]   ;;  %v8368_v46 = vld [vmem:[%s11224_s1 + $0x1544] ss:$16 sps:$4 sm:$0xff]  }
 0x270   :  { %5338 = vmatprep.subr.bf16.mxu0 %v8284_v35  ;;  %5871 = vmatprep.subr.bf16.mxu1 %v8287_v50  ;;  %v8371_v35 = vld [vmem:[%s11224_s1 + $0x154c] ss:$16 sps:$4 sm:$0xff]   ;;  %v8366_v50 = vld [vmem:[%s11224_s1 + $0x1540] ss:$16 sps:$4 sm:$0xff]  }
 0x273   :  { %5339 = vmatpush1.bf16.msra.mxu0 %v8282_v53  ;;  %5872 = vmatpush1.bf16.msra.mxu1 %v8285_v38  ;;  %v8369_v53 = vld [vmem:[%s11224_s1 + $0x1548] ss:$16 sps:$4 sm:$0xff]   ;;  %v8374_v38 = vld [vmem:[%s11224_s1 + $0x1564] ss:$16 sps:$4 sm:$0xff]  }
 0x274   :  { %5340 = vmatprep.subr.bf16.mxu0 %v8290_v54  ;;  %5873 = vmatprep.subr.bf16.mxu1 %v8293_v55  ;;  %v8377_v54 = vld [vmem:[%s11224_s1 + $0x156c] ss:$16 sps:$4 sm:$0xff]   ;;  %v8372_v55 = vld [vmem:[%s11224_s1 + $0x1560] ss:$16 sps:$4 sm:$0xff]  }
 0x277   :  { %5341 = vmatpush1.bf16.msra.mxu0 %v8288_v56  ;;  %5874 = vmatpush1.bf16.msra.mxu1 %v8291_v47  ;;  %v8375_v56 = vld [vmem:[%s11224_s1 + $0x1568] ss:$16 sps:$4 sm:$0xff]   ;;  %v8380_v47 = vld [vmem:[%s11224_s1 + $0x1584] ss:$16 sps:$4 sm:$0xff]  }
 0x278   :  { %5342 = vmatprep.subr.bf16.mxu0 %v8296_v57  ;;  %5875 = vmatprep.subr.bf16.mxu1 %v8299_v58  ;;  %v8383_v57 = vld [vmem:[%s11224_s1 + $0x158c] ss:$16 sps:$4 sm:$0xff]   ;;  %v8378_v58 = vld [vmem:[%s11224_s1 + $0x1580] ss:$16 sps:$4 sm:$0xff]  }
 0x27b   :  { %5343 = vmatpush1.bf16.msra.mxu0 %v8294_v48  ;;  %5876 = vmatpush1.bf16.msra.mxu1 %v8297_v61  ;;  %v8386_v48 = vld [vmem:[%s11224_s1 + $0x15a4] ss:$16 sps:$4 sm:$0xff]   ;;  %v8389_v61 = vld [vmem:[%s11224_s1 + $0x15ac] ss:$16 sps:$4 sm:$0xff]  }
 0x27c   :  { %5344 = vmatprep.subr.bf16.mxu0 %v8302_v63  ;;  %5877 = vmatprep.subr.bf16.mxu1 %v8305_v44  ;;  %v8384_v63 = vld [vmem:[%s11224_s1 + $0x15a0] ss:$16 sps:$4 sm:$0xff]   ;;  %v8387_v44 = vld [vmem:[%s11224_s1 + $0x15a8] ss:$16 sps:$4 sm:$0xff]  }
 0x27f   :  { %5345 = vmatpush1.bf16.msra.mxu0 %v8300_v1  ;;  %5878 = vmatpush1.bf16.msra.mxu1 %v8303_v51  ;;  %v8392_v1 = vld [vmem:[%s11224_s1 + $0x15c4] ss:$16 sps:$4 sm:$0xff]   ;;  %v8395_v51 = vld [vmem:[%s11224_s1 + $0x15cc] ss:$16 sps:$4 sm:$0xff]  }
 0x280   :  { %5355 = vmatprep.subr.bf16.mxu0 %v8308_v2  ;;  %5888 = vmatprep.subr.bf16.mxu1 %v8311_v3  ;;  %v8390_v2 = vld [vmem:[%s11224_s1 + $0x15c0] ss:$16 sps:$4 sm:$0xff]   ;;  %v8393_v3 = vld [vmem:[%s11224_s1 + $0x15c8] ss:$16 sps:$4 sm:$0xff]  }
 0x282   :  { %5347 = vmatmul.mubr.bf16.vlgmr.msra.gmra.mrb[0].mxu0 %v979_v60  ;;  %5880 = vmatmul.mubr.bf16.vlgmr.msra.gmra.mrb[0].mxu1 %v979_v60  ;;  %v8401_v60 = vld [vmem:[%s11224_s1 + $0x15ec] ss:$16 sps:$4 sm:$0xff]  }
 0x283   :  { %5356 = vmatpush1.bf16.msra.mxu0 %v8306_v5  ;;  %5889 = vmatpush1.bf16.msra.mxu1 %v8309_v6  ;;  %v8396_v5 = vld [vmem:[%s11224_s1 + $0x15e0] ss:$16 sps:$4 sm:$0xff]   ;;  %v8399_v6 = vld [vmem:[%s11224_s1 + $0x15e8] ss:$16 sps:$4 sm:$0xff]  }
 0x284   :  { %5357 = vmatprep.subr.bf16.mxu0 %v8314_v7  ;;  %5890 = vmatprep.subr.bf16.mxu1 %v8317_v62  ;;  %v8405_v7 = vld [vmem:[%s11224_s1 + $0x1604] ss:$16 sps:$4 sm:$0xff]   ;;  %v8408_v62 = vld [vmem:[%s11224_s1 + $0x160c] ss:$16 sps:$4 sm:$0xff]  }
 0x285   :  { %5387 = vmatprep.mubr.bf16.mxu0 %v10673_v8  ;;  %5920 = vmatprep.mubr.bf16.mxu1 %v10673_v8 }
 0x287   :  { %5358 = vmatpush1.bf16.msra.mxu0 %v8312_v9  ;;  %5891 = vmatpush1.bf16.msra.mxu1 %v8315_v10  ;;  %v10859_v9 = vrot.slane %v10642_v0, %v8749_v49  ;;  %v8403_v10 = vld [vmem:[%s11224_s1 + $0x1600] ss:$16 sps:$4 sm:$0xff]   ;;  %v8414_v0 = vld [vmem:[%s11224_s1 + $0x162c] ss:$16 sps:$4 sm:$0xff]  }
 0x288   :  { %5359 = vmatprep.subr.bf16.mxu0 %v8320_v11  ;;  %5892 = vmatprep.subr.bf16.mxu1 %v8323_v12  ;;  %v8406_v11 = vld [vmem:[%s11224_s1 + $0x1608] ss:$16 sps:$4 sm:$0xff]   ;;  %v8411_v12 = vld [vmem:[%s11224_s1 + $0x1624] ss:$16 sps:$4 sm:$0xff]  }
 0x28b   :  { %5360 = vmatpush1.bf16.msra.mxu0 %v8318_v52  ;;  %5893 = vmatpush1.bf16.msra.mxu1 %v8321_v15  ;;  %v982_v52 = vcombine.high %v10673_v8, %v10673_v8  ;;  %v8409_v15 = vld [vmem:[%s11224_s1 + $0x1620] ss:$16 sps:$4 sm:$0xff]   ;;  %v8417_v8 = vld [vmem:[%s11224_s1 + $0x1644] ss:$16 sps:$4 sm:$0xff]  }
 0x28c   :  { %5361 = vmatprep.subr.bf16.mxu0 %v8326_v16  ;;  %5894 = vmatprep.subr.bf16.mxu1 %v8329_v17  ;;  %v8412_v16 = vld [vmem:[%s11224_s1 + $0x1628] ss:$16 sps:$4 sm:$0xff]   ;;  %v8420_v17 = vld [vmem:[%s11224_s1 + $0x164c] ss:$16 sps:$4 sm:$0xff]  }
 0x28f   :  { %5362 = vmatpush1.bf16.msra.mxu0 %v8324_v18  ;;  %5895 = vmatpush1.bf16.msra.mxu1 %v8327_v19  ;;  %v8415_v18 = vld [vmem:[%s11224_s1 + $0x1640] ss:$16 sps:$4 sm:$0xff]   ;;  %v8418_v19 = vld [vmem:[%s11224_s1 + $0x1648] ss:$16 sps:$4 sm:$0xff]  }
 0x290   :  { %5363 = vmatprep.subr.bf16.mxu0 %v8332_v20  ;;  %5896 = vmatprep.subr.bf16.mxu1 %v8335_v22  ;;  %v8423_v20 = vld [vmem:[%s11224_s1 + $0x1664] ss:$16 sps:$4 sm:$0xff]   ;;  %v8426_v22 = vld [vmem:[%s11224_s1 + $0x166c] ss:$16 sps:$4 sm:$0xff]  }
 0x293   :  { %5364 = vmatpush1.bf16.msra.mxu0 %v8330_v23  ;;  %5897 = vmatpush1.bf16.msra.mxu1 %v8333_v24  ;;  %v8421_v23 = vld [vmem:[%s11224_s1 + $0x1660] ss:$16 sps:$4 sm:$0xff]   ;;  %v8424_v24 = vld [vmem:[%s11224_s1 + $0x1668] ss:$16 sps:$4 sm:$0xff]  }
 0x294   :  { %5365 = vmatprep.subr.bf16.mxu0 %v8338_v13  ;;  %5898 = vmatprep.subr.bf16.mxu1 %v8341_v27  ;;  %v8429_v13 = vld [vmem:[%s11224_s1 + $0x1684] ss:$16 sps:$4 sm:$0xff]   ;;  %v8432_v27 = vld [vmem:[%s11224_s1 + $0x168c] ss:$16 sps:$4 sm:$0xff]  }
 0x297   :  { %5366 = vmatpush1.bf16.msra.mxu0 %v8336_v28  ;;  %5899 = vmatpush1.bf16.msra.mxu1 %v8339_v29  ;;  %v8427_v28 = vld [vmem:[%s11224_s1 + $0x1680] ss:$16 sps:$4 sm:$0xff]   ;;  %v8430_v29 = vld [vmem:[%s11224_s1 + $0x1688] ss:$16 sps:$4 sm:$0xff]  }
 0x298   :  { %5367 = vmatprep.subr.bf16.mxu0 %v8344_v14  ;;  %5900 = vmatprep.subr.bf16.mxu1 %v8347_v30  ;;  %v8435_v14 = vld [vmem:[%s11224_s1 + $0x16a4] ss:$16 sps:$4 sm:$0xff]   ;;  %v8438_v30 = vld [vmem:[%s11224_s1 + $0x16ac] ss:$16 sps:$4 sm:$0xff]  }
 0x29b   :  { %5368 = vmatpush1.bf16.msra.mxu0 %v8342_v31  ;;  %5901 = vmatpush1.bf16.msra.mxu1 %v8345_v25  ;;  %v8433_v31 = vld [vmem:[%s11224_s1 + $0x16a0] ss:$16 sps:$4 sm:$0xff]   ;;  %v8436_v25 = vld [vmem:[%s11224_s1 + $0x16a8] ss:$16 sps:$4 sm:$0xff]  }
 0x29c   :  { %5369 = vmatprep.subr.bf16.mxu0 %v8350_v32  ;;  %5902 = vmatprep.subr.bf16.mxu1 %v8353_v33  ;;  %v8441_v32 = vld [vmem:[%s11224_s1 + $0x16c4] ss:$16 sps:$4 sm:$0xff]   ;;  %v8444_v33 = vld [vmem:[%s11224_s1 + $0x16cc] ss:$16 sps:$4 sm:$0xff]  }
 0x29f   :  { %5370 = vmatpush1.bf16.msra.mxu0 %v8348_v26  ;;  %5903 = vmatpush1.bf16.msra.mxu1 %v8351_v36  ;;  %v8439_v26 = vld [vmem:[%s11224_s1 + $0x16c0] ss:$16 sps:$4 sm:$0xff]   ;;  %v8442_v36 = vld [vmem:[%s11224_s1 + $0x16c8] ss:$16 sps:$4 sm:$0xff]  }
 0x2a0   :  { %5371 = vmatprep.subr.bf16.mxu0 %v8356_v37  ;;  %5904 = vmatprep.subr.bf16.mxu1 %v8359_v21  ;;  %v8447_v37 = vld [vmem:[%s11224_s1 + $0x16e4] ss:$16 sps:$4 sm:$0xff]   ;;  %v8450_v21 = vld [vmem:[%s11224_s1 + $0x16ec] ss:$16 sps:$4 sm:$0xff]  }
 0x2a3   :  { %5372 = vmatpush1.bf16.msra.mxu0 %v8354_v39  ;;  %5905 = vmatpush1.bf16.msra.mxu1 %v8357_v40  ;;  %v8445_v39 = vld [vmem:[%s11224_s1 + $0x16e0] ss:$16 sps:$4 sm:$0xff]   ;;  %v8448_v40 = vld [vmem:[%s11224_s1 + $0x16e8] ss:$16 sps:$4 sm:$0xff]  }
 0x2a4   :  { %5373 = vmatprep.subr.bf16.mxu0 %v8362_v41  ;;  %5906 = vmatprep.subr.bf16.mxu1 %v8365_v34  ;;  %v8453_v41 = vld [vmem:[%s11224_s1 + $0x1704] ss:$16 sps:$4 sm:$0xff]   ;;  %v8456_v34 = vld [vmem:[%s11224_s1 + $0x170c] ss:$16 sps:$4 sm:$0xff]  }
 0x2a7   :  { %5374 = vmatpush1.bf16.msra.mxu0 %v8360_v43  ;;  %5907 = vmatpush1.bf16.msra.mxu1 %v8363_v45  ;;  %v8451_v43 = vld [vmem:[%s11224_s1 + $0x1700] ss:$16 sps:$4 sm:$0xff]   ;;  %v8454_v45 = vld [vmem:[%s11224_s1 + $0x1708] ss:$16 sps:$4 sm:$0xff]  }
 0x2a8   :  { %5375 = vmatprep.subr.bf16.mxu0 %v8368_v46  ;;  %5908 = vmatprep.subr.bf16.mxu1 %v8371_v35  ;;  %v8459_v46 = vld [vmem:[%s11224_s1 + $0x1724] ss:$16 sps:$4 sm:$0xff]   ;;  %v8462_v35 = vld [vmem:[%s11224_s1 + $0x172c] ss:$16 sps:$4 sm:$0xff]  }
 0x2ab   :  { %5376 = vmatpush1.bf16.msra.mxu0 %v8366_v50  ;;  %5909 = vmatpush1.bf16.msra.mxu1 %v8369_v53  ;;  %v8457_v50 = vld [vmem:[%s11224_s1 + $0x1720] ss:$16 sps:$4 sm:$0xff]   ;;  %v8460_v53 = vld [vmem:[%s11224_s1 + $0x1728] ss:$16 sps:$4 sm:$0xff]  }
 0x2ac   :  { %5377 = vmatprep.subr.bf16.mxu0 %v8374_v38  ;;  %5910 = vmatprep.subr.bf16.mxu1 %v8377_v54  ;;  %v8465_v38 = vld [vmem:[%s11224_s1 + $0x1744] ss:$16 sps:$4 sm:$0xff]   ;;  %v8468_v54 = vld [vmem:[%s11224_s1 + $0x174c] ss:$16 sps:$4 sm:$0xff]  }
 0x2af   :  { %5378 = vmatpush1.bf16.msra.mxu0 %v8372_v55  ;;  %5911 = vmatpush1.bf16.msra.mxu1 %v8375_v56  ;;  %v8463_v55 = vld [vmem:[%s11224_s1 + $0x1740] ss:$16 sps:$4 sm:$0xff]   ;;  %v8466_v56 = vld [vmem:[%s11224_s1 + $0x1748] ss:$16 sps:$4 sm:$0xff]  }
 0x2b0   :  { %5379 = vmatprep.subr.bf16.mxu0 %v8380_v47  ;;  %5912 = vmatprep.subr.bf16.mxu1 %v8383_v57  ;;  %v8471_v47 = vld [vmem:[%s11224_s1 + $0x1764] ss:$16 sps:$4 sm:$0xff]   ;;  %v8474_v57 = vld [vmem:[%s11224_s1 + $0x176c] ss:$16 sps:$4 sm:$0xff]  }
 0x2b3   :  { %5380 = vmatpush1.bf16.msra.mxu0 %v8378_v58  ;;  %5913 = vmatpush1.bf16.msra.mxu1 %v8381_v59  ;;  %v8469_v58 = vld [vmem:[%s11224_s1 + $0x1760] ss:$16 sps:$4 sm:$0xff]   ;;  %v8472_v59 = vld [vmem:[%s11224_s1 + $0x1768] ss:$16 sps:$4 sm:$0xff]  }
 0x2b4   :  { %5381 = vmatprep.subr.bf16.mxu0 %v8386_v48  ;;  %5914 = vmatprep.subr.bf16.mxu1 %v8389_v61  ;;  %v8477_v48 = vld [vmem:[%s11224_s1 + $0x1784] ss:$16 sps:$4 sm:$0xff]   ;;  %v8480_v61 = vld [vmem:[%s11224_s1 + $0x178c] ss:$16 sps:$4 sm:$0xff]  }
 0x2b7   :  { %5382 = vmatpush1.bf16.msra.mxu0 %v8384_v63  ;;  %5915 = vmatpush1.bf16.msra.mxu1 %v8387_v44  ;;  %v8475_v63 = vld [vmem:[%s11224_s1 + $0x1780] ss:$16 sps:$4 sm:$0xff]   ;;  %v8478_v44 = vld [vmem:[%s11224_s1 + $0x1788] ss:$16 sps:$4 sm:$0xff]  }
 0x2b8   :  { %5383 = vmatprep.subr.bf16.mxu0 %v8392_v1  ;;  %5916 = vmatprep.subr.bf16.mxu1 %v8395_v51  ;;  %v8483_v1 = vld [vmem:[%s11224_s1 + $0x17a4] ss:$16 sps:$4 sm:$0xff]   ;;  %v8486_v51 = vld [vmem:[%s11224_s1 + $0x17ac] ss:$16 sps:$4 sm:$0xff]  }
 0x2bb   :  { %5384 = vmatpush1.bf16.msra.mxu0 %v8390_v2  ;;  %5917 = vmatpush1.bf16.msra.mxu1 %v8393_v3  ;;  %v8481_v2 = vld [vmem:[%s11224_s1 + $0x17a0] ss:$16 sps:$4 sm:$0xff]   ;;  %v8484_v3 = vld [vmem:[%s11224_s1 + $0x17a8] ss:$16 sps:$4 sm:$0xff]  }
 0x2bc   :  { %5385 = vmatprep.subr.bf16.mxu0 %v8398_v4  ;;  %5918 = vmatprep.subr.bf16.mxu1 %v8401_v60  ;;  %v8489_v4 = vld [vmem:[%s11224_s1 + $0x17c4] ss:$16 sps:$4 sm:$0xff]   ;;  %v8492_v60 = vld [vmem:[%s11224_s1 + $0x17cc] ss:$16 sps:$4 sm:$0xff]  }
 0x2bf   :  { %5386 = vmatpush1.bf16.msra.mxu0 %v8396_v5  ;;  %5919 = vmatpush1.bf16.msra.mxu1 %v8399_v6  ;;  %v8487_v5 = vld [vmem:[%s11224_s1 + $0x17c0] ss:$16 sps:$4 sm:$0xff]   ;;  %v8490_v6 = vld [vmem:[%s11224_s1 + $0x17c8] ss:$16 sps:$4 sm:$0xff]  }
 0x2c0   :  { %5396 = vmatprep.subr.bf16.mxu0 %v8405_v7  ;;  %5929 = vmatprep.subr.bf16.mxu1 %v8408_v62  ;;  %v8495_v7 = vld [vmem:[%s11224_s1 + $0x17e4] ss:$16 sps:$4 sm:$0xff]   ;;  %v8498_v62 = vld [vmem:[%s11224_s1 + $0x17ec] ss:$16 sps:$4 sm:$0xff]  }
 0x2c2   :  { %5388 = vmatmul.mubr.bf16.vlgmr.msra.gmra.mrb[0].mxu0 %v10859_v9  ;;  %5921 = vmatmul.mubr.bf16.vlgmr.msra.gmra.mrb[0].mxu1 %v10859_v9 }
 0x2c3   :  { %5397 = vmatpush1.bf16.msra.mxu0 %v8403_v10  ;;  %5930 = vmatpush1.bf16.msra.mxu1 %v8406_v11  ;;  %v8493_v10 = vld [vmem:[%s11224_s1 + $0x17e0] ss:$16 sps:$4 sm:$0xff]   ;;  %v8496_v11 = vld [vmem:[%s11224_s1 + $0x17e8] ss:$16 sps:$4 sm:$0xff]  }
 0x2c4   :  { %5398 = vmatprep.subr.bf16.mxu0 %v8411_v12  ;;  %5931 = vmatprep.subr.bf16.mxu1 %v8414_v0  ;;  %v8501_v12 = vld [vmem:[%s11224_s1 + $0x1804] ss:$16 sps:$4 sm:$0xff]   ;;  %v8504_v0 = vld [vmem:[%s11224_s1 + $0x180c] ss:$16 sps:$4 sm:$0xff]  }
 0x2c5   :  { %5428 = vmatprep.mubr.bf16.mxu0 %v982_v52  ;;  %5961 = vmatprep.mubr.bf16.mxu1 %v982_v52  ;;  %v980_v52 = vcombine.high %v10859_v9, %v10859_v9  ;;  %v8510_v9 = vld [vmem:[%s11224_s1 + $0x182c] ss:$16 sps:$4 sm:$0xff]  }
 0x2c7   :  { %5399 = vmatpush1.bf16.msra.mxu0 %v8409_v15  ;;  %5932 = vmatpush1.bf16.msra.mxu1 %v8412_v16  ;;  %v8499_v15 = vld [vmem:[%s11224_s1 + $0x1800] ss:$16 sps:$4 sm:$0xff]   ;;  %v8502_v16 = vld [vmem:[%s11224_s1 + $0x1808] ss:$16 sps:$4 sm:$0xff]  }
 0x2c8   :  { %5400 = vmatprep.subr.bf16.mxu0 %v8417_v8  ;;  %5933 = vmatprep.subr.bf16.mxu1 %v8420_v17  ;;  %v8507_v8 = vld [vmem:[%s11224_s1 + $0x1824] ss:$16 sps:$4 sm:$0xff]   ;;  %v8505_v17 = vld [vmem:[%s11224_s1 + $0x1820] ss:$16 sps:$4 sm:$0xff]  }
 0x2cb   :  { %5401 = vmatpush1.bf16.msra.mxu0 %v8415_v18  ;;  %5934 = vmatpush1.bf16.msra.mxu1 %v8418_v19  ;;  %v8508_v18 = vld [vmem:[%s11224_s1 + $0x1828] ss:$16 sps:$4 sm:$0xff]   ;;  %v8513_v19 = vld [vmem:[%s11224_s1 + $0x1844] ss:$16 sps:$4 sm:$0xff]  }
 0x2cc   :  { %5402 = vmatprep.subr.bf16.mxu0 %v8423_v20  ;;  %5935 = vmatprep.subr.bf16.mxu1 %v8426_v22  ;;  %v8516_v20 = vld [vmem:[%s11224_s1 + $0x184c] ss:$16 sps:$4 sm:$0xff]   ;;  %v8582_v22 = vmov 0  }
 0x2cf   :  { %5403 = vmatpush1.bf16.msra.mxu0 %v8421_v23  ;;  %5936 = vmatpush1.bf16.msra.mxu1 %v8424_v24  ;;  %v8511_v23 = vld [vmem:[%s11224_s1 + $0x1840] ss:$16 sps:$4 sm:$0xff]   ;;  %v8514_v24 = vld [vmem:[%s11224_s1 + $0x1848] ss:$16 sps:$4 sm:$0xff]  }
 0x2d0   :  { %5404 = vmatprep.subr.bf16.mxu0 %v8429_v13  ;;  %5937 = vmatprep.subr.bf16.mxu1 %v8432_v27  ;;  %v8519_v13 = vld [vmem:[%s11224_s1 + $0x1864] ss:$16 sps:$4 sm:$0xff]   ;;  %v8522_v27 = vld [vmem:[%s11224_s1 + $0x186c] ss:$16 sps:$4 sm:$0xff]  }
 0x2d3   :  { %5405 = vmatpush1.bf16.msra.mxu0 %v8427_v28  ;;  %5938 = vmatpush1.bf16.msra.mxu1 %v8430_v29  ;;  %v8517_v28 = vld [vmem:[%s11224_s1 + $0x1860] ss:$16 sps:$4 sm:$0xff]   ;;  %v8520_v29 = vld [vmem:[%s11224_s1 + $0x1868] ss:$16 sps:$4 sm:$0xff]  }
 0x2d4   :  { %5406 = vmatprep.subr.bf16.mxu0 %v8435_v14  ;;  %5939 = vmatprep.subr.bf16.mxu1 %v8438_v30  ;;  %v6377_v14 = vld.sshfl [vmem:[%s11223_s0 + $0x18] sm:$0x1 pattern:$0x75316420]  ;;  %v8523_v30 = vld [vmem:[%s11226_s3 + $0x40] sm:$0xff]  }
 0x2d7   :  { %5407 = vmatpush1.bf16.msra.mxu0 %v8433_v31  ;;  %5940 = vmatpush1.bf16.msra.mxu1 %v8436_v25  ;;  %v8524_v31 = vld [vmem:[%s11226_s3 + $0xc0] sm:$0xff]   ;;  %v996_v25 = vrot.slane %v6377_v14, %v8749_v49  ;;  %v8528_v49 = vld [vmem:[%s11226_s3 + $0xc8] sm:$0xff]  }
 0x2d8   :  { %5408 = vmatprep.subr.bf16.mxu0 %v8441_v32  ;;  %5941 = vmatprep.subr.bf16.mxu1 %v8444_v33  ;;  %v8525_v32 = vld [vmem:[%s11226_s3] sm:$0xff]  }
 0x2d9   :  { %v8526_v33 = vld [vmem:[%s11226_s3 + $0x80] sm:$0xff]  }
 0x2db   :  { %5409 = vmatpush1.bf16.msra.mxu0 %v8439_v26  ;;  %5942 = vmatpush1.bf16.msra.mxu1 %v8442_v36  ;;  %v8527_v26 = vld [vmem:[%s11226_s3 + $0x48] sm:$0xff]  }
 0x2dc   :  { %5410 = vmatprep.subr.bf16.mxu0 %v8447_v37  ;;  %5943 = vmatprep.subr.bf16.mxu1 %v8450_v21  ;;  %v8529_v36 = vld [vmem:[%s11226_s3 + $0x8] sm:$0xff]   ;;  %v8531_v21 = vld [vmem:[%s11226_s3 + $0x50] sm:$0xff]  }
 0x2dd   :  { %v8530_v37 = vld [vmem:[%s11226_s3 + $0x88] sm:$0xff]  }
 0x2df   :  { %5411 = vmatpush1.bf16.msra.mxu0 %v8445_v39  ;;  %5944 = vmatpush1.bf16.msra.mxu1 %v8448_v40  ;;  %v8532_v39 = vld [vmem:[%s11226_s3 + $0xd0] sm:$0xff]  }
 0x2e0   :  { %5412 = vmatprep.subr.bf16.mxu0 %v8453_v41  ;;  %5945 = vmatprep.subr.bf16.mxu1 %v8456_v34  ;;  %v8533_v40 = vld [vmem:[%s11226_s3 + $0x10] sm:$0xff]   ;;  %v8535_v34 = vld [vmem:[%s11226_s3 + $0x58] sm:$0xff]  }
 0x2e1   :  { %v8534_v41 = vld [vmem:[%s11226_s3 + $0x90] sm:$0xff]  }
 0x2e3   :  { %5413 = vmatpush1.bf16.msra.mxu0 %v8451_v43  ;;  %5946 = vmatpush1.bf16.msra.mxu1 %v8454_v45  ;;  %v8536_v43 = vld [vmem:[%s11226_s3 + $0xd8] sm:$0xff]  }
 0x2e4   :  { %5414 = vmatprep.subr.bf16.mxu0 %v8459_v46  ;;  %5947 = vmatprep.subr.bf16.mxu1 %v8462_v35  ;;  %v8537_v45 = vld [vmem:[%s11226_s3 + $0x18] sm:$0xff]   ;;  %v8539_v35 = vld [vmem:[%s11226_s3 + $0x60] sm:$0xff]  }
 0x2e5   :  { %v8538_v46 = vld [vmem:[%s11226_s3 + $0x98] sm:$0xff]  }
 0x2e7   :  { %5415 = vmatpush1.bf16.msra.mxu0 %v8457_v50  ;;  %5948 = vmatpush1.bf16.msra.mxu1 %v8460_v53  ;;  %v8540_v50 = vld [vmem:[%s11226_s3 + $0xe0] sm:$0xff]  }
 0x2e8   :  { %5416 = vmatprep.subr.bf16.mxu0 %v8465_v38  ;;  %5949 = vmatprep.subr.bf16.mxu1 %v8468_v54  ;;  %v8541_v53 = vld [vmem:[%s11226_s3 + $0x20] sm:$0xff]   ;;  %v8543_v54 = vld [vmem:[%s11226_s3 + $0x68] sm:$0xff]  }
 0x2e9   :  { %v8542_v38 = vld [vmem:[%s11226_s3 + $0xa0] sm:$0xff]  }
 0x2eb   :  { %5417 = vmatpush1.bf16.msra.mxu0 %v8463_v55  ;;  %5950 = vmatpush1.bf16.msra.mxu1 %v8466_v56  ;;  %v8544_v55 = vld [vmem:[%s11226_s3 + $0xe8] sm:$0xff]  }
 0x2ec   :  { %5418 = vmatprep.subr.bf16.mxu0 %v8471_v47  ;;  %5951 = vmatprep.subr.bf16.mxu1 %v8474_v57  ;;  %v8545_v56 = vld [vmem:[%s11226_s3 + $0x28] sm:$0xff]   ;;  %v8547_v57 = vld [vmem:[%s11226_s3 + $0x70] sm:$0xff]  }
 0x2ed   :  { %v8546_v47 = vld [vmem:[%s11226_s3 + $0xa8] sm:$0xff]  }
 0x2ef   :  { %5419 = vmatpush1.bf16.msra.mxu0 %v8469_v58  ;;  %5952 = vmatpush1.bf16.msra.mxu1 %v8472_v59  ;;  %v8548_v58 = vld [vmem:[%s11226_s3 + $0xf0] sm:$0xff]  }
 0x2f0   :  { %5420 = vmatprep.subr.bf16.mxu0 %v8477_v48  ;;  %5953 = vmatprep.subr.bf16.mxu1 %v8480_v61  ;;  %v8549_v59 = vld [vmem:[%s11226_s3 + $0x30] sm:$0xff]   ;;  %v8551_v61 = vld [vmem:[%s11226_s3 + $0x78] sm:$0xff]  }
 0x2f1   :  { %v8550_v48 = vld [vmem:[%s11226_s3 + $0xb0] sm:$0xff]  }
 0x2f3   :  { %5421 = vmatpush1.bf16.msra.mxu0 %v8475_v63  ;;  %5954 = vmatpush1.bf16.msra.mxu1 %v8478_v44  ;;  %v8552_v63 = vld [vmem:[%s11226_s3 + $0xf8] sm:$0xff]  }
 0x2f4   :  { %5422 = vmatprep.subr.bf16.mxu0 %v8483_v1  ;;  %5955 = vmatprep.subr.bf16.mxu1 %v8486_v51  ;;  %v8553_v44 = vld [vmem:[%s11226_s3 + $0x38] sm:$0xff]   ;;  %v814_v51 = vsub.s32 0, %v8731_v42 }
 0x2f5   :  { %v8554_v1 = vld [vmem:[%s11226_s3 + $0xb8] sm:$0xff]  }
 0x2f7   :  { %5423 = vmatpush1.bf16.msra.mxu0 %v8481_v2  ;;  %5956 = vmatpush1.bf16.msra.mxu1 %v8484_v3  ;;  %v822_v2 = vsub.s32 2, %v8731_v42  ;;  %v810_v3 = vld [vmem:[%s11225_s2] sm:$0xf] }
 0x2f8   :  { %5424 = vmatprep.subr.bf16.mxu0 %v8489_v4  ;;  %5957 = vmatprep.subr.bf16.mxu1 %v8492_v60  ;;  %v818_v4 = vsub.s32 1, %v8731_v42  ;;  %v826_v60 = vsub.s32 3, %v8731_v42 }
 0x2fb   :  { %5425 = vmatpush1.bf16.msra.mxu0 %v8487_v5  ;;  %5958 = vmatpush1.bf16.msra.mxu1 %v8490_v6  ;;  %v815_v5 = vrot.slane %v810_v3, %v814_v51  ;;  %v823_v6 = vrot.slane %v810_v3, %v822_v2 }
 0x2fc   :  { %5426 = vmatprep.subr.bf16.mxu0 %v8495_v7  ;;  %5959 = vmatprep.subr.bf16.mxu1 %v8498_v62  ;;  %v819_v7 = vrot.slane %v810_v3, %v818_v4  ;;  %v827_v62 = vrot.slane %v810_v3, %v826_v60 }
 0x2ff   :  { %5427 = vmatpush1.bf16.msra.mxu0 %v8493_v10  ;;  %5960 = vmatpush1.bf16.msra.mxu1 %v8496_v11 }
 0x300   :  { %5437 = vmatprep.subr.bf16.mxu0 %v8501_v12  ;;  %5970 = vmatprep.subr.bf16.mxu1 %v8504_v0 }
 0x302   :  { %5429 = vmatmul.mubr.bf16.vlgmr.msra.gmra.mrb[0].mxu0 %v980_v52  ;;  %5962 = vmatmul.mubr.bf16.vlgmr.msra.gmra.mrb[0].mxu1 %v980_v52 }
 0x303   :  { %5438 = vmatpush1.bf16.msra.mxu0 %v8499_v15  ;;  %5971 = vmatpush1.bf16.msra.mxu1 %v8502_v16 }
 0x304   :  { %5439 = vmatprep.subr.bf16.mxu0 %v8507_v8  ;;  %5972 = vmatprep.subr.bf16.mxu1 %v8510_v9 }
 0x305   :  { %5469 = vmatprep.mubr.bf16.mxu0 %v8582_v22  ;;  %6002 = vmatprep.mubr.bf16.mxu1 %v8582_v22 }
 0x307   :  { %5440 = vmatpush1.bf16.msra.mxu0 %v8505_v17  ;;  %5973 = vmatpush1.bf16.msra.mxu1 %v8508_v18 }
 0x308   :  { %5441 = vmatprep.subr.bf16.mxu0 %v8513_v19  ;;  %5974 = vmatprep.subr.bf16.mxu1 %v8516_v20 }
 0x30b   :  { %5442 = vmatpush1.bf16.msra.mxu0 %v8511_v23  ;;  %5975 = vmatpush1.bf16.msra.mxu1 %v8514_v24 }
 0x30c   :  { %5443 = vmatprep.subr.bf16.mxu0 %v8519_v13  ;;  %5976 = vmatprep.subr.bf16.mxu1 %v8522_v27 }
 0x30f   :  { %5444 = vmatpush1.bf16.msra.mxu0 %v8517_v28  ;;  %5977 = vmatpush1.bf16.msra.mxu1 %v8520_v29 }
 0x310   :  { %7197 = vmatprep.subr.bf16.mxu0 %v8523_v30  ;;  %7219 = vmatprep.subr.bf16.mxu1 %v8524_v31  ;;  %v7164_v30 = vld [vmem:[%s11227_s4] ss:$0 sm:$0xff] }
 0x312   :  { %7162 = vmatmul.mubr.msk.bf16.vlgmr.msra.gmra.mrb[0].mxu0 %vm4941_vm0, %v996_v25  ;;  %7163 = vmatmul.mubr.msk.bf16.vlgmr.msra.gmra.mrb[0].mxu1 %vm4941_vm0, %v996_v25 }
 0x313   :  { %7198 = vmatpush3.bf16.msra.mxu0 %v8525_v32  ;;  %7220 = vmatpush3.bf16.msra.mxu1 %v8526_v33 }
 0x314   :  { %7199 = vmatprep.subr.bf16.mxu0 %v8527_v26  ;;  %7221 = vmatprep.subr.bf16.mxu1 %v8528_v49 }
 0x317   :  { %7200 = vmatpush3.bf16.msra.mxu0 %v8529_v36  ;;  %7222 = vmatpush3.bf16.msra.mxu1 %v8530_v37 }
 0x318   :  { %7201 = vmatprep.subr.bf16.mxu0 %v8531_v21  ;;  %7223 = vmatprep.subr.bf16.mxu1 %v8532_v39 }
 0x31b   :  { %7202 = vmatpush3.bf16.msra.mxu0 %v8533_v40  ;;  %7224 = vmatpush3.bf16.msra.mxu1 %v8534_v41 }
 0x31c   :  { %7203 = vmatprep.subr.bf16.mxu0 %v8535_v34  ;;  %7225 = vmatprep.subr.bf16.mxu1 %v8536_v43 }
 0x31f   :  { %7204 = vmatpush3.bf16.msra.mxu0 %v8537_v45  ;;  %7226 = vmatpush3.bf16.msra.mxu1 %v8538_v46 }
 0x320   :  { %7205 = vmatprep.subr.bf16.mxu0 %v8539_v35  ;;  %7227 = vmatprep.subr.bf16.mxu1 %v8540_v50 }
 0x323   :  { %7206 = vmatpush3.bf16.msra.mxu0 %v8541_v53  ;;  %7228 = vmatpush3.bf16.msra.mxu1 %v8542_v38 }
 0x324   :  { %7207 = vmatprep.subr.bf16.mxu0 %v8543_v54  ;;  %7229 = vmatprep.subr.bf16.mxu1 %v8544_v55 }
 0x327   :  { %7208 = vmatpush3.bf16.msra.mxu0 %v8545_v56  ;;  %7230 = vmatpush3.bf16.msra.mxu1 %v8546_v47 }
 0x328   :  { %7209 = vmatprep.subr.bf16.mxu0 %v8547_v57  ;;  %7231 = vmatprep.subr.bf16.mxu1 %v8548_v58 }
 0x32b   :  { %7210 = vmatpush3.bf16.msra.mxu0 %v8549_v59  ;;  %7232 = vmatpush3.bf16.msra.mxu1 %v8550_v48 }
 0x32c   :  { %7211 = vmatprep.subr.bf16.mxu0 %v8551_v61  ;;  %7233 = vmatprep.subr.bf16.mxu1 %v8552_v63 }
 0x32f   :  { %7212 = vmatpush3.bf16.msra.mxu0 %v8553_v44  ;;  %7234 = vmatpush3.bf16.msra.mxu1 %v8554_v1 }
 0x3e5   :  { %v5471_v10 = vpop.f32.mrb[0].mxu0  ;;  %v6004_v11 = vpop.f32.mrb[0].mxu1 }
 0x3e6   :  { %v7241_v12 = vadd.f32 %v5471_v10, %v815_v5  ;;  %v7243_v0 = vadd.f32 %v6004_v11, %v823_v6  ;;  %v5473_v52 = vpop.f32.mrb[1].mxu0  ;;  %v6006_v15 = vpop.f32.mrb[1].mxu1 }
 0x3e7   :  { %v7242_v16 = vadd.f32 %v5473_v52, %v819_v7  ;;  %v7244_v8 = vadd.f32 %v6006_v15, %v827_v62  ;;  %v5475_v9 = vpop.f32.mrb[2].mxu0  ;;  %v6008_v17 = vpop.f32.mrb[2].mxu1 }
 0x3e8   :  { %v6011_v18 = vmax.f32 %v7241_v12, 0.0  ;;  %v6013_v19 = vmax.f32 %v7243_v0, 0.0  ;;  %v5476_v20 = vpop.f32.mrb[3].mxu0  ;;  %v6009_v22 = vpop.f32.mrb[3].mxu1 }
 0x3e9   :  { %v6012_v23 = vmax.f32 %v7242_v16, 0.0  ;;  %v6014_v42 = vmax.f32 %v7244_v8, 0.0 }
 0x3ea   :  { %v6015_v27 = vpack.c.bf16 %v6011_v18, %v6011_v18  ;;  %v6017_v28 = vpack.c.bf16 %v6013_v19, %v6013_v19 }
 0x3eb   :  { %v6016_v24 = vpack.c.bf16 %v6012_v23, %v6012_v23  ;;  %v6018_v13 = vpack.c.bf16 %v6014_v42, %v6014_v42 }
 0x3ed   :  { %6314 = vmatprep.mubr.bf16.mxu0 %v6016_v24  ;;  %6354 = vmatprep.mubr.bf16.mxu1 %v6018_v13 }
 0x3ee   :  { %6315 = vmatmul.mubr.bf16.vlgmr.msra.gmra.mrb[4].mxu0 %v6015_v27  ;;  %6355 = vmatmul.mubr.bf16.vlgmr.msra.gmra.mrb[4].mxu1 %v6017_v28 }
 0x4c1   :  { %v7213_v29 = vpop.f32.mrb[4].mxu0  ;;  %v7235_v14 = vpop.f32.mrb[4].mxu1 }
 0x4c2   :  { %v7214_v31 = vpop.f32.mrb[5].mxu0  ;;  %v7236_v25 = vpop.f32.mrb[5].mxu1 }
 0x4c3   :  { %v7215_v32 = vadd.f32 %v7214_v31, %v7213_v29  ;;  %v7237_v33 = vadd.f32 %v7236_v25, %v7235_v14  ;;  %v7216_v26 = vpop.f32.mrb[6].mxu0  ;;  %v7238_v49 = vpop.f32.mrb[6].mxu1 }
 0x4c4   :  { %v7217_v36 = vpop.f32.mrb[7].mxu0  ;;  %v7239_v37 = vpop.f32.mrb[7].mxu1 }
 0x4c5   :  { %v6317_v21 = vadd.f32 %v7215_v32, %v7164_v30 }
 0x4c7   :  { %v6357_v39 = vadd.f32 %v7237_v33, %v6317_v21 }
 0x4c9   :  { %6362 = vst [vmem:[#allocation2] sm:$0x3] %v6357_v39 }
 0x4ca   :  { %8568 = shalt.err (!%p8565_p4)
}
 0x4cb   :  { %s8569_s10 = scalar_lea.hbm %s11228_s5, 32 }
 0x4cc   :  { %p8570_p5 = scmp.ne.s32.totalorder %s11228_s5, %s8569_s10  ;;  %p8573_p6 = scmp.lt.u32.totalorder %s8569_s10, %s11228_s5 }
 0x4ce   :  { %p8575_p7 = pnand %p8573_p6, %p8570_p5 }
 0x4d0   :  { %8578 = shalt.err (!%p8575_p7)
}
 0x4d1   :  { %6372 = dma.vmem_to_hbm [thread:$0]  %s6370_s7, 32, %s11228_s5, [#allocation3]  }
 0x4d2   :  { %8579 = dma.done.wait [#allocation3], 32  }
 0x4d3   :  { %8580 = vsyncadd [#allocation3], 4294967264 }
 0x4d4   :  { %6376 = vsyncpa [#allocation3], 1 }

</bundles_post_ra>
